<compile_context>
chip_gen: v5e
topology: v5e:2x2
jax: 0.10.0
libtpu: 0.0.40
codegen_flags: <defaults>
</compile_context>

<pallas_src>
import math

import jax
import jax.numpy as jnp
from jax import lax
from jax.experimental import pallas as pl
from jax.experimental.pallas import tpu as pltpu


def _make_kernel(num_blocks, num_layers, eps, approximate_gelu):
    inv_sqrt2 = 1.0 / math.sqrt(2.0)

    def kernel(x_ref, vec_ref, w_ref, o_ref):
        # x_ref:   (TM, C)               token tile (f32 in/out)
        # vec_ref: (NB, R, C)   f32      row0 = ln_w, row1 = ln_b, rows 2.. = biases
        # w_ref:   (NB*NL, C, C) bf16    per-layer weights, stored (in, out)
        x = x_ref[...].astype(jnp.float32)

        for b in range(num_blocks):
            vecs = vec_ref[b]                                   # (R, C), tiny
            # LayerNorm over channels (biased variance, eps = 1e-5), two-pass
            # (matches PyTorch numerics; both reductions go to the XLU slot).
            u = jnp.mean(x, axis=-1, keepdims=True)
            d = x - u
            var = jnp.mean(d * d, axis=-1, keepdims=True)
            y = d * lax.rsqrt(var + eps)
            y = y * vecs[0:1, :] + vecs[1:2, :]

            for l in range(num_layers):
                w = w_ref[b * num_layers + l]                   # (C, C) bf16
                bias = vecs[2 + l:3 + l, :]                     # (1, C) f32
                y = jnp.dot(y.astype(jnp.bfloat16), w,
                            preferred_element_type=jnp.float32) + bias
                if approximate_gelu:
                    # tanh-approx GELU -> EUP slot (slightly different numerics
                    # from PyTorch's exact-erf nn.GELU()).
                    y = jax.nn.gelu(y, approximate=True)
                else:
                    y = 0.5 * y * (1.0 + lax.erf(y * inv_sqrt2))

            x = x + y                                           # ResMLP residual

        o_ref[...] = x.astype(o_ref.dtype)

    return kernel


def sc_aligner(x_nchw, params, *, tm=None, eps=1e-5, approximate_gelu=False):
    """x_nchw: (B, C, H, W). Returns (B, C, H, W)."""
    B, C, H, W = x_nchw.shape
    w_all = params["w"]                       # (NB, NL, C, C), stored (in, out)
    b_all = params["b"]                       # (NB, NL, C)
    NB, NL = w_all.shape[0], w_all.shape[1]

    # NCHW -> NHWC -> (T, C).  The permutes are part of the module's semantics
    # (single permute in / out for the whole fused backbone, like PyTorch).
    x_tok = jnp.transpose(x_nchw, (0, 2, 3, 1)).reshape(B * H * W, C)
    T = x_tok.shape[0]

    # Big token tile amortizes per-step overhead; keep >= 2 grid steps when
    # possible so the parallel axis can shard across both v7x TensorCores.
    if tm is None:
        tm = 512
        while tm > 128 and T <= tm:
            tm //= 2
    tm = max(8, ((int(tm) + 7) // 8) * 8)     # sublane-aligned tile

    T_pad = ((T + tm - 1) // tm) * tm
    if T_pad != T:
        # Padded zero rows stay finite through LN/GELU and are sliced off below.
        x_tok = jnp.pad(x_tok, ((0, T_pad - T), (0, 0)))

    # Pack ln_w / ln_b / per-layer biases into one array: one DMA, no per-vector
    # 8x sublane padding waste.
    n_rows = max(8, ((2 + NL + 7) // 8) * 8)
    vec = jnp.zeros((NB, n_rows, C), jnp.float32)
    vec = vec.at[:, 0, :].set(params["ln_w"].astype(jnp.float32))
    vec = vec.at[:, 1, :].set(params["ln_b"].astype(jnp.float32))
    vec = vec.at[:, 2:2 + NL, :].set(b_all.astype(jnp.float32))

    # MXU operands in bf16 (accumulation stays f32 inside the kernel).
    w_flat = w_all.reshape(NB * NL, C, C).astype(jnp.bfloat16)

    grid = (T_pad // tm,)
    itm = x_tok.dtype.itemsize

    # VMEM budget: double-buffered token tiles (in + out), weights, vectors,
    # plus headroom for live f32 temps; clamp safely below v7x's 64 MiB VMEM.
    need = (2 * 2 * tm * C * itm
            + 2 * w_flat.size * 2
            + 2 * vec.size * 4
            + 6 * tm * C * 4)
    vmem_limit = int(min(max(2 * need, 32 * 1024 * 1024), 56 * 1024 * 1024))

    cost = pl.CostEstimate(
        flops=2 * T_pad * C * C * NL * NB,
        transcendentals=T_pad * C * NL * NB,
        bytes_accessed=2 * T_pad * C * itm + w_flat.size * 2 + vec.size * 4,
    )

    kernel = _make_kernel(NB, NL, eps, approximate_gelu)

    out = pl.pallas_call(
        kernel,
        out_shape=jax.ShapeDtypeStruct((T_pad, C), x_tok.dtype),
        grid_spec=pltpu.PrefetchScalarGridSpec(
            num_scalar_prefetch=0,
            grid=grid,
            in_specs=[
                pl.BlockSpec((tm, C), lambda i: (i, 0)),             # tokens
                pl.BlockSpec((NB, n_rows, C), lambda i: (0, 0, 0)),  # packed vectors
                pl.BlockSpec((NB * NL, C, C), lambda i: (0, 0, 0)),  # bf16 weights
            ],
            out_specs=pl.BlockSpec((tm, C), lambda i: (i, 0)),
        ),
        compiler_params=pltpu.CompilerParams(
            dimension_semantics=("parallel",),
            vmem_limit_bytes=vmem_limit,
        ),
        cost_estimate=cost,
        input_output_aliases={0: 0},           # update tokens in place (no extra HBM buffer)
    )(x_tok, vec, w_flat)

    out = out[:T].reshape(B, H, W, C)
    return jnp.transpose(out, (0, 3, 1, 2))


def init_params(key, dim, num_of_blocks=2, num_of_layers=2, dtype=jnp.float32):
    """Mimics nn.LayerNorm / nn.Linear default init. Linear weights stored (in, out)."""
    keys = jax.random.split(key, 2 * num_of_blocks * num_of_layers)
    bound = 1.0 / math.sqrt(dim)
    w_blocks, b_blocks = [], []
    ki = 0
    for _ in range(num_of_blocks):
        wl, bl = [], []
        for _ in range(num_of_layers):
            wl.append(jax.random.uniform(keys[ki], (dim, dim), jnp.float32, -bound, bound))
            bl.append(jax.random.uniform(keys[ki + 1], (dim,), jnp.float32, -bound, bound))
            ki += 2
        w_blocks.append(jnp.stack(wl))
        b_blocks.append(jnp.stack(bl))
    return {
        "ln_w": jnp.ones((num_of_blocks, dim), dtype),
        "ln_b": jnp.zeros((num_of_blocks, dim), dtype),
        "w": jnp.stack(w_blocks).astype(dtype),    # (NB, NL, dim, dim), (in, out)
        "b": jnp.stack(b_blocks).astype(dtype),    # (NB, NL, dim)
    }
    # TODO(synk): the camera branch described in SCAligner's docstring (cat + conv2d
    # + feature warp) is not part of forward() and is not implemented here.


def sc_aligner_ref(x_nchw, params, *, eps=1e-5, matmul_dtype=jnp.float32):
    """Pure-JAX reference. matmul_dtype=f32 reproduces the PyTorch module exactly;
    matmul_dtype=bf16 mirrors the kernel's MXU casts for a tight logic check."""
    x = jnp.transpose(x_nchw, (0, 2, 3, 1)).astype(jnp.float32)
    NB, NL = params["w"].shape[:2]
    inv_sqrt2 = 1.0 / math.sqrt(2.0)
    for b in range(NB):
        u = x.mean(-1, keepdims=True)
        d = x - u
        var = (d * d).mean(-1, keepdims=True)
        y = d * lax.rsqrt(var + eps)
        y = y * params["ln_w"][b] + params["ln_b"][b]
        for l in range(NL):
            w = params["w"][b, l].astype(matmul_dtype)
            y = jnp.dot(y.astype(matmul_dtype), w,
                        preferred_element_type=jnp.float32) + params["b"][b, l]
            y = 0.5 * y * (1.0 + lax.erf(y * inv_sqrt2))
        x = x + y
    return jnp.transpose(x.astype(x_nchw.dtype), (0, 3, 1, 2))


if __name__ == "__main__":
    key = jax.random.PRNGKey(0)
    kx, kp = jax.random.split(key)

    # Small but lane-dense config: dim is the module's hyperparameter; 128 keeps
    # the channel (lane) axis a multiple of 128.  T = 2*16*16 = 512 tokens.
    B, C, H, W = 2, 128, 16, 16
    num_of_blocks, num_of_layers = 2, 2

    x = jax.random.normal(kx, (B, C, H, W), jnp.float32)
    params = init_params(kp, dim=C, num_of_blocks=num_of_blocks,
                         num_of_layers=num_of_layers)

    y = jax.jit(sc_aligner)(x, params)
    jax.block_until_ready(y)
    assert y.shape == x.shape and y.dtype == x.dtype

    # (1) Logic check: reference that applies the same bf16 MXU-operand casts.
    y_match = sc_aligner_ref(x, params, matmul_dtype=jnp.bfloat16)
    err_match = float(jnp.max(jnp.abs(y - y_match)))
    assert jnp.allclose(y, y_match, atol=5e-3, rtol=5e-3), err_match

    # (2) Fidelity check vs full-f32 PyTorch semantics (bf16-matmul tolerance).
    y_f32 = sc_aligner_ref(x, params, matmul_dtype=jnp.float32)
    err_f32 = float(jnp.max(jnp.abs(y - y_f32)))
    assert jnp.allclose(y, y_f32, atol=2e-2, rtol=2e-2), err_f32

    print("KERNEL_OK")
</pallas_src>

<mosaic_0001>
module attributes {stable_mosaic.version = 11 : i64} {
  func.func @kernel(%arg0: i32, %arg1: memref<256x128xf32, #tpu.memory_space<vmem>>, %arg2: memref<2x8x128xf32, #tpu.memory_space<vmem>>, %arg3: memref<4x128x128xbf16, #tpu.memory_space<vmem>>, %arg4: memref<256x128xf32, #tpu.memory_space<vmem>>) attributes {dimension_semantics = [#tpu.dimension_semantics<parallel>], iteration_bounds = array<i64: 2>, scalar_prefetch = 0 : i64, scratch_operands = 0 : i64, tpu.core_type = #tpu.core_type<tc>, window_params = [{transform_indices = @transform_0, window_bounds = array<i64: 256, 128>}, {pipeline_mode = #tpu.pipeline_mode<synchronous>, transform_indices = @transform_1, window_bounds = array<i64: 2, 8, 128>}, {pipeline_mode = #tpu.pipeline_mode<synchronous>, transform_indices = @transform_2, window_bounds = array<i64: 4, 128, 128>}, {transform_indices = @transform_3, window_bounds = array<i64: 256, 128>}]} {
    %c0 = arith.constant 0 : index
    %c0_0 = arith.constant 0 : index
    %0 = vector.load %arg1[%c0, %c0_0] : memref<256x128xf32, #tpu.memory_space<vmem>>, vector<256x128xf32>
    %c0_1 = arith.constant 0 : index
    %c0_2 = arith.constant 0 : index
    %c0_3 = arith.constant 0 : index
    %1 = vector.load %arg2[%c0_1, %c0_2, %c0_3] : memref<2x8x128xf32, #tpu.memory_space<vmem>>, vector<1x8x128xf32>
    %2 = vector.shape_cast %1 : vector<1x8x128xf32> to vector<8x128xf32>
    %cst = arith.constant dense<0.000000e+00> : vector<256xf32>
    %3 = vector.multi_reduction <add>, %0, %cst [1] : vector<256x128xf32> to vector<256xf32>
    %4 = vector.shape_cast %3 : vector<256xf32> to vector<256x1xf32>
    %cst_4 = arith.constant 1.280000e+02 : f32
    %5 = vector.broadcast %cst_4 : f32 to vector<256x1xf32>
    %6 = arith.divf %4, %5 : vector<256x1xf32>
    %7 = vector.broadcast %6 : vector<256x1xf32> to vector<256x128xf32>
    %8 = arith.subf %0, %7 : vector<256x128xf32>
    %9 = arith.mulf %8, %8 : vector<256x128xf32>
    %cst_5 = arith.constant dense<0.000000e+00> : vector<256xf32>
    %10 = vector.multi_reduction <add>, %9, %cst_5 [1] : vector<256x128xf32> to vector<256xf32>
    %11 = vector.shape_cast %10 : vector<256xf32> to vector<256x1xf32>
    %cst_6 = arith.constant 1.280000e+02 : f32
    %12 = vector.broadcast %cst_6 : f32 to vector<256x1xf32>
    %13 = arith.divf %11, %12 : vector<256x1xf32>
    %cst_7 = arith.constant 9.99999974E-6 : f32
    %14 = vector.broadcast %cst_7 : f32 to vector<256x1xf32>
    %15 = arith.addf %13, %14 : vector<256x1xf32>
    %16 = math.rsqrt %15 : vector<256x1xf32>
    %17 = vector.broadcast %16 : vector<256x1xf32> to vector<256x128xf32>
    %18 = arith.mulf %8, %17 : vector<256x128xf32>
    %19 = vector.extract_strided_slice %2 {offsets = [0, 0], sizes = [1, 128], strides = [1, 1]} : vector<8x128xf32> to vector<1x128xf32>
    %20 = vector.broadcast %19 : vector<1x128xf32> to vector<256x128xf32>
    %21 = arith.mulf %18, %20 : vector<256x128xf32>
    %22 = vector.extract_strided_slice %2 {offsets = [1, 0], sizes = [1, 128], strides = [1, 1]} : vector<8x128xf32> to vector<1x128xf32>
    %23 = vector.broadcast %22 : vector<1x128xf32> to vector<256x128xf32>
    %24 = arith.addf %21, %23 : vector<256x128xf32>
    %c0_8 = arith.constant 0 : index
    %c0_9 = arith.constant 0 : index
    %c0_10 = arith.constant 0 : index
    %25 = vector.load %arg3[%c0_8, %c0_9, %c0_10] : memref<4x128x128xbf16, #tpu.memory_space<vmem>>, vector<1x128x128xbf16>
    %26 = vector.shape_cast %25 : vector<1x128x128xbf16> to vector<128x128xbf16>
    %27 = vector.extract_strided_slice %2 {offsets = [2, 0], sizes = [1, 128], strides = [1, 1]} : vector<8x128xf32> to vector<1x128xf32>
    %28 = arith.truncf %24 : vector<256x128xf32> to vector<256x128xbf16>
    %cst_11 = arith.constant dense<0.000000e+00> : vector<256x128xf32>
    %29 = tpu.matmul %28, %26, %cst_11 {dimension_numbers = #tpu.dot_dimension_numbers<[1], [0], [0], [1], [0, 0, 1, 1], [], []>} : vector<256x128xbf16>, vector<128x128xbf16>, vector<256x128xf32> -> vector<256x128xf32>
    %30 = vector.broadcast %27 : vector<1x128xf32> to vector<256x128xf32>
    %31 = arith.addf %29, %30 : vector<256x128xf32>
    %cst_12 = arith.constant 5.000000e-01 : f32
    %32 = vector.broadcast %cst_12 : f32 to vector<256x128xf32>
    %33 = arith.mulf %32, %31 : vector<256x128xf32>
    %cst_13 = arith.constant 0.707106769 : f32
    %34 = vector.broadcast %cst_13 : f32 to vector<256x128xf32>
    %35 = arith.mulf %31, %34 : vector<256x128xf32>
    %36 = math.erf %35 : vector<256x128xf32>
    %cst_14 = arith.constant 1.000000e+00 : f32
    %37 = vector.broadcast %cst_14 : f32 to vector<256x128xf32>
    %38 = arith.addf %37, %36 : vector<256x128xf32>
    %39 = arith.mulf %33, %38 : vector<256x128xf32>
    %c1 = arith.constant 1 : index
    %c0_15 = arith.constant 0 : index
    %c0_16 = arith.constant 0 : index
    %40 = vector.load %arg3[%c1, %c0_15, %c0_16] : memref<4x128x128xbf16, #tpu.memory_space<vmem>>, vector<1x128x128xbf16>
    %41 = vector.shape_cast %40 : vector<1x128x128xbf16> to vector<128x128xbf16>
    %42 = vector.extract_strided_slice %2 {offsets = [3, 0], sizes = [1, 128], strides = [1, 1]} : vector<8x128xf32> to vector<1x128xf32>
    %43 = arith.truncf %39 : vector<256x128xf32> to vector<256x128xbf16>
    %cst_17 = arith.constant dense<0.000000e+00> : vector<256x128xf32>
    %44 = tpu.matmul %43, %41, %cst_17 {dimension_numbers = #tpu.dot_dimension_numbers<[1], [0], [0], [1], [0, 0, 1, 1], [], []>} : vector<256x128xbf16>, vector<128x128xbf16>, vector<256x128xf32> -> vector<256x128xf32>
    %45 = vector.broadcast %42 : vector<1x128xf32> to vector<256x128xf32>
    %46 = arith.addf %44, %45 : vector<256x128xf32>
    %cst_18 = arith.constant 5.000000e-01 : f32
    %47 = vector.broadcast %cst_18 : f32 to vector<256x128xf32>
    %48 = arith.mulf %47, %46 : vector<256x128xf32>
    %cst_19 = arith.constant 0.707106769 : f32
    %49 = vector.broadcast %cst_19 : f32 to vector<256x128xf32>
    %50 = arith.mulf %46, %49 : vector<256x128xf32>
    %51 = math.erf %50 : vector<256x128xf32>
    %cst_20 = arith.constant 1.000000e+00 : f32
    %52 = vector.broadcast %cst_20 : f32 to vector<256x128xf32>
    %53 = arith.addf %52, %51 : vector<256x128xf32>
    %54 = arith.mulf %48, %53 : vector<256x128xf32>
    %55 = arith.addf %0, %54 : vector<256x128xf32>
    %c1_21 = arith.constant 1 : index
    %c0_22 = arith.constant 0 : index
    %c0_23 = arith.constant 0 : index
    %56 = vector.load %arg2[%c1_21, %c0_22, %c0_23] : memref<2x8x128xf32, #tpu.memory_space<vmem>>, vector<1x8x128xf32>
    %57 = vector.shape_cast %56 : vector<1x8x128xf32> to vector<8x128xf32>
    %cst_24 = arith.constant dense<0.000000e+00> : vector<256xf32>
    %58 = vector.multi_reduction <add>, %55, %cst_24 [1] : vector<256x128xf32> to vector<256xf32>
    %59 = vector.shape_cast %58 : vector<256xf32> to vector<256x1xf32>
    %cst_25 = arith.constant 1.280000e+02 : f32
    %60 = vector.broadcast %cst_25 : f32 to vector<256x1xf32>
    %61 = arith.divf %59, %60 : vector<256x1xf32>
    %62 = vector.broadcast %61 : vector<256x1xf32> to vector<256x128xf32>
    %63 = arith.subf %55, %62 : vector<256x128xf32>
    %64 = arith.mulf %63, %63 : vector<256x128xf32>
    %cst_26 = arith.constant dense<0.000000e+00> : vector<256xf32>
    %65 = vector.multi_reduction <add>, %64, %cst_26 [1] : vector<256x128xf32> to vector<256xf32>
    %66 = vector.shape_cast %65 : vector<256xf32> to vector<256x1xf32>
    %cst_27 = arith.constant 1.280000e+02 : f32
    %67 = vector.broadcast %cst_27 : f32 to vector<256x1xf32>
    %68 = arith.divf %66, %67 : vector<256x1xf32>
    %cst_28 = arith.constant 9.99999974E-6 : f32
    %69 = vector.broadcast %cst_28 : f32 to vector<256x1xf32>
    %70 = arith.addf %68, %69 : vector<256x1xf32>
    %71 = math.rsqrt %70 : vector<256x1xf32>
    %72 = vector.broadcast %71 : vector<256x1xf32> to vector<256x128xf32>
    %73 = arith.mulf %63, %72 : vector<256x128xf32>
    %74 = vector.extract_strided_slice %57 {offsets = [0, 0], sizes = [1, 128], strides = [1, 1]} : vector<8x128xf32> to vector<1x128xf32>
    %75 = vector.broadcast %74 : vector<1x128xf32> to vector<256x128xf32>
    %76 = arith.mulf %73, %75 : vector<256x128xf32>
    %77 = vector.extract_strided_slice %57 {offsets = [1, 0], sizes = [1, 128], strides = [1, 1]} : vector<8x128xf32> to vector<1x128xf32>
    %78 = vector.broadcast %77 : vector<1x128xf32> to vector<256x128xf32>
    %79 = arith.addf %76, %78 : vector<256x128xf32>
    %c2 = arith.constant 2 : index
    %c0_29 = arith.constant 0 : index
    %c0_30 = arith.constant 0 : index
    %80 = vector.load %arg3[%c2, %c0_29, %c0_30] : memref<4x128x128xbf16, #tpu.memory_space<vmem>>, vector<1x128x128xbf16>
    %81 = vector.shape_cast %80 : vector<1x128x128xbf16> to vector<128x128xbf16>
    %82 = vector.extract_strided_slice %57 {offsets = [2, 0], sizes = [1, 128], strides = [1, 1]} : vector<8x128xf32> to vector<1x128xf32>
    %83 = arith.truncf %79 : vector<256x128xf32> to vector<256x128xbf16>
    %cst_31 = arith.constant dense<0.000000e+00> : vector<256x128xf32>
    %84 = tpu.matmul %83, %81, %cst_31 {dimension_numbers = #tpu.dot_dimension_numbers<[1], [0], [0], [1], [0, 0, 1, 1], [], []>} : vector<256x128xbf16>, vector<128x128xbf16>, vector<256x128xf32> -> vector<256x128xf32>
    %85 = vector.broadcast %82 : vector<1x128xf32> to vector<256x128xf32>
    %86 = arith.addf %84, %85 : vector<256x128xf32>
    %cst_32 = arith.constant 5.000000e-01 : f32
    %87 = vector.broadcast %cst_32 : f32 to vector<256x128xf32>
    %88 = arith.mulf %87, %86 : vector<256x128xf32>
    %cst_33 = arith.constant 0.707106769 : f32
    %89 = vector.broadcast %cst_33 : f32 to vector<256x128xf32>
    %90 = arith.mulf %86, %89 : vector<256x128xf32>
    %91 = math.erf %90 : vector<256x128xf32>
    %cst_34 = arith.constant 1.000000e+00 : f32
    %92 = vector.broadcast %cst_34 : f32 to vector<256x128xf32>
    %93 = arith.addf %92, %91 : vector<256x128xf32>
    %94 = arith.mulf %88, %93 : vector<256x128xf32>
    %c3 = arith.constant 3 : index
    %c0_35 = arith.constant 0 : index
    %c0_36 = arith.constant 0 : index
    %95 = vector.load %arg3[%c3, %c0_35, %c0_36] : memref<4x128x128xbf16, #tpu.memory_space<vmem>>, vector<1x128x128xbf16>
    %96 = vector.shape_cast %95 : vector<1x128x128xbf16> to vector<128x128xbf16>
    %97 = vector.extract_strided_slice %57 {offsets = [3, 0], sizes = [1, 128], strides = [1, 1]} : vector<8x128xf32> to vector<1x128xf32>
    %98 = arith.truncf %94 : vector<256x128xf32> to vector<256x128xbf16>
    %cst_37 = arith.constant dense<0.000000e+00> : vector<256x128xf32>
    %99 = tpu.matmul %98, %96, %cst_37 {dimension_numbers = #tpu.dot_dimension_numbers<[1], [0], [0], [1], [0, 0, 1, 1], [], []>} : vector<256x128xbf16>, vector<128x128xbf16>, vector<256x128xf32> -> vector<256x128xf32>
    %100 = vector.broadcast %97 : vector<1x128xf32> to vector<256x128xf32>
    %101 = arith.addf %99, %100 : vector<256x128xf32>
    %cst_38 = arith.constant 5.000000e-01 : f32
    %102 = vector.broadcast %cst_38 : f32 to vector<256x128xf32>
    %103 = arith.mulf %102, %101 : vector<256x128xf32>
    %cst_39 = arith.constant 0.707106769 : f32
    %104 = vector.broadcast %cst_39 : f32 to vector<256x128xf32>
    %105 = arith.mulf %101, %104 : vector<256x128xf32>
    %106 = math.erf %105 : vector<256x128xf32>
    %cst_40 = arith.constant 1.000000e+00 : f32
    %107 = vector.broadcast %cst_40 : f32 to vector<256x128xf32>
    %108 = arith.addf %107, %106 : vector<256x128xf32>
    %109 = arith.mulf %103, %108 : vector<256x128xf32>
    %110 = arith.addf %55, %109 : vector<256x128xf32>
    %c0_41 = arith.constant 0 : index
    %c0_42 = arith.constant 0 : index
    %111 = vector.load %arg4[%c0_41, %c0_42] : memref<256x128xf32, #tpu.memory_space<vmem>>, vector<256x128xf32>
    tpu.vector_store %arg4[%c0_41, %c0_42], %110 {strides = array<i32>} : memref<256x128xf32, #tpu.memory_space<vmem>>, vector<256x128xf32>,
    return
  }
  func.func @transform_0(%arg0: i32) -> (i32, i32) {
    %c0_i32 = arith.constant 0 : i32
    %c0_i32_0 = arith.constant 0 : i32
    return %arg0, %c0_i32 : i32, i32
  }
  func.func @transform_1(%arg0: i32) -> (i32, i32, i32) {
    %c0_i32 = arith.constant 0 : i32
    %c0_i32_0 = arith.constant 0 : i32
    %c0_i32_1 = arith.constant 0 : i32
    %c0_i32_2 = arith.constant 0 : i32
    return %c0_i32, %c0_i32_0, %c0_i32_1 : i32, i32, i32
  }
  func.func @transform_2(%arg0: i32) -> (i32, i32, i32) {
    %c0_i32 = arith.constant 0 : i32
    %c0_i32_0 = arith.constant 0 : i32
    %c0_i32_1 = arith.constant 0 : i32
    %c0_i32_2 = arith.constant 0 : i32
    return %c0_i32, %c0_i32_0, %c0_i32_1 : i32, i32, i32
  }
  func.func @transform_3(%arg0: i32) -> (i32, i32) {
    %c0_i32 = arith.constant 0 : i32
    %c0_i32_0 = arith.constant 0 : i32
    return %arg0, %c0_i32 : i32, i32
  }
}

</mosaic_0001>

<bundles_post_ra>
// kernel: sc_aligner.1
= control target key start
LH: loop header
LB: loop body
LE: loop exit
PB: predicated region body
PF: predicated region fallthrough
CT: control target
= control target key end

     0   :  { %s8903_s12 = smov 0   ;;  %s16190_s0 = inlined_call_operand.vmem [shape: f32[512,128], index: 0, kind: input, shape index: {}, may-alias: {0,3}]   ;;  %s16191_s1 = inlined_call_operand.vmem [shape: f32[2,8,128], index: 1, kind: input, shape index: {}]   ;;  %s16192_s2 = inlined_call_operand.vmem [shape: bf16[4,128,128], index: 2, kind: input, shape index: {}]   ;;  %s16193_s3 = inlined_call_operand.vmem [shape: f32[512,128], index: 3, kind: output, shape index: {}, may-alias: {0,3}]  }
   0x1 LB: > { %s8095_s13 = sadd.s32 4294967295, %s8880_s12   ;;  %p8099_p0 = scmp.ge.s32.totalorder %s8880_s12, 1  ;;  %s8880_s12 = sphi %s8903_s12, %s13_s12  }
   0x2   : > { %p138_p1 = scmp.lt.s32.totalorder %s8880_s12, 3 }
   0x4   : > { %p139_p2 = pnand %p8099_p0, %p138_p1 }
   0x6   : > { %142 = sbr.rel (%p139_p2) target bundleno = 2200 (0x898), region = 32 }
   0xb   : > { %s8100_s14 = sshll.u32 %s8095_s13, 5  ;;  %v8882_v7 = vmov 128.0   ;;  %v8418_v50 = vld [vmem:[%s16192_s2 + $0x38] sm:$0xff]  ;;  %v8417_v51 = vld [vmem:[%s16192_s2 + $0x30] sm:$0xff]  ;;  %v8416_v52 = vld [vmem:[%s16192_s2 + $0x28] sm:$0xff] }
   0xc   : > { %p163_p3 = scmp.lt.s32.totalorder %s8100_s14, 63  ;;  %8452 = vrcp.f32 %v8882_v7  ;;  %1001 = vmatpush.bf16.msra.mxu0 %v8418_v50  ;;  %v8415_v53 = vld [vmem:[%s16192_s2 + $0x20] sm:$0xff]  ;;  %v8414_v54 = vld [vmem:[%s16192_s2 + $0x18] sm:$0xff]  ;;  %v8413_v55 = vld [vmem:[%s16192_s2 + $0x10] sm:$0xff] }
   0xd   : > { %v8412_v57 = vld [vmem:[%s16192_s2 + $0x8] sm:$0xff]  ;;  %v8411_v60 = vld [vmem:[%s16192_s2] sm:$0xff] }
   0xe   : > { %s16647_s14 = smov (!%p163_p3, %s8100_s14), 63 }
   0xf   : > { %s8101_s15 = sshll.u32 %s16647_s14, 3 }
  0x10   : > { %s8919_s18 = scalar_lea.vmem %s16190_s0, %s8101_s15  ;;  %1002 = vmatpush.bf16.msra.mxu0 %v8417_v51  ;;  %s14240_s25 = scalar_lea.vmem %s16193_s3, %s8101_s15 }
  0x11   : > { %v176_v0 = vld [vmem:[%s8919_s18 + $0x10] sm:$0xff]  ;;  %v174_v1 = vld [vmem:[%s8919_s18] sm:$0xff]  ;;  %v177_v3 = vld [vmem:[%s8919_s18 + $0x18] sm:$0xff] }
  0x12   : > { %211 = vadd.xlane.f32.xlu1 %v176_v0  ;;  %207 = vadd.xlane.f32.xlu0 %v174_v1  ;;  %v178_v2 = vld [vmem:[%s8919_s18 + $0x20] sm:$0xff]  ;;  %v175_v4 = vld [vmem:[%s8919_s18 + $0x8] sm:$0xff]  ;;  %v180_v6 = vld [vmem:[%s8919_s18 + $0x30] sm:$0xff]  ;;  %v8453_v8 = vpop.eup %8452 }
  0x13   : > { %215 = vadd.xlane.f32.xlu2 %v178_v2  ;;  %v179_v5 = vld [vmem:[%s8919_s18 + $0x28] sm:$0xff]  ;;  %v272_v9 = vmul.f32 128.0, %v8453_v8  ;;  %vm276_vm0 = vweird.f32 %v8453_v8  ;;  %v8944_v28 = vld [vmem:[%s8919_s18 + $0x38] sm:$0xff]  ;;  %v8959_v36 = vld [vmem:[%s8919_s18 + $0x40] sm:$0xff] }
  0x14   : > { %v8970_v42 = vld [vmem:[%s8919_s18 + $0x58] sm:$0xff]  ;;  %v8973_v43 = vld [vmem:[%s8919_s18 + $0x48] sm:$0xff]  ;;  %v8982_v46 = vld [vmem:[%s8919_s18 + $0x60] sm:$0xff]  ;;  %1003 = vmatpush.bf16.msra.mxu0 %v8416_v52 }
  0x15   : > { %v273_v10 = vsub.f32 1.0, %v272_v9  ;;  %v8985_v47 = vld [vmem:[%s8919_s18 + $0x50] sm:$0xff]  ;;  %v8990_v48 = vld [vmem:[%s8919_s18 + $0x68] sm:$0xff] }
  0x16   : > { %v8994_v49 = vld [vmem:[%s8919_s18 + $0x70] sm:$0xff] }
  0x17   : > { %v274_v11 = vmul.f32 %v8453_v8, %v273_v10 }
  0x18   : > { %1004 = vmatpush.bf16.msra.mxu0 %v8415_v53 }
  0x19   : > { %v275_v12 = vadd.f32 %v8453_v8, %v274_v11 }
  0x1a   : > { %213 = vadd.xlane.f32.xlu1 %v177_v3  ;;  %209 = vadd.xlane.f32.xlu0 %v175_v4 }
  0x1b   : > { %217 = vadd.xlane.f32.xlu2 %v179_v5  ;;  %v8928_v13 = vsel %vm276_vm0, %v8453_v8, %v275_v12 }
  0x1c   : > { %1005 = vmatpush.bf16.msra.mxu0 %v8414_v54 }
  0x20   : > { %1006 = vmatpush.bf16.msra.mxu0 %v8413_v55 }
  0x23   : > { %219 = vadd.xlane.f32.xlu2 %v180_v6 }
  0x24   : > { %1007 = vmatpush.bf16.msra.mxu0 %v8412_v57 }
  0x28   : > { %1008 = vmatpush.bf16.msra.mxu0 %v8411_v60 }
  0x85   : > { %v212_v14 = vpop.xlane.xlu1 %211  ;;  %v208_v15 = vpop.xlane.xlu0 %207 }
  0x86   : > { %v278_v16 = vmul.f32 %v8928_v13, %v208_v15  ;;  %v216_v18 = vpop.xlane.xlu2 %215  ;;  %v280_v27 = vmul.f32 %v8928_v13, %v212_v14 }
  0x87   : > { %v282_v26 = vmul.f32 %v8928_v13, %v216_v18 }
  0x88   : > { %v8931_v17 = vsub.f32 %v174_v1, %v278_v16  ;;  %v8953_v33 = vsub.f32 %v176_v0, %v280_v27 }
  0x89   : > { %v8951_v32 = vsub.f32 %v178_v2, %v282_v26 }
  0x8a   : > { %v342_v19 = vmul.f32 %v8931_v17, %v8931_v17  ;;  %v344_v37 = vmul.f32 %v8953_v33, %v8953_v33 }
  0x8b   : > { %v346_v34 = vmul.f32 %v8951_v32, %v8951_v32 }
  0x8c   : > { %374 = vadd.xlane.f32.xlu0 %v342_v19 }
  0x8d   : > { %v214_v20 = vpop.xlane.xlu1 %213  ;;  %v210_v21 = vpop.xlane.xlu0 %209 }
  0x8e   : > { %v281_v22 = vmul.f32 %v8928_v13, %v214_v20  ;;  %v279_v23 = vmul.f32 %v8928_v13, %v210_v21  ;;  %v218_v31 = vpop.xlane.xlu2 %217 }
  0x8f   : > { %v283_v35 = vmul.f32 %v8928_v13, %v218_v31 }
  0x90   : > { %v8937_v24 = vsub.f32 %v177_v3, %v281_v22  ;;  %v8939_v25 = vsub.f32 %v175_v4, %v279_v23 }
  0x91   : > { %v8964_v38 = vsub.f32 %v179_v5, %v283_v35 }
  0x92   : > { %v345_v29 = vmul.f32 %v8937_v24, %v8937_v24  ;;  %v343_v30 = vmul.f32 %v8939_v25, %v8939_v25 }
  0x93   : > { %v347_v40 = vmul.f32 %v8964_v38, %v8964_v38 }
  0x94   : > { %380 = vadd.xlane.f32.xlu2 %v345_v29  ;;  %221 = vadd.xlane.f32.xlu0 %v8944_v28 }
  0x95   : > { %376 = vadd.xlane.f32.xlu1 %v343_v30 }
  0x96   : > { %v220_v39 = vpop.xlane.xlu2 %219 }
  0x97   : > { %v284_v41 = vmul.f32 %v8928_v13, %v220_v39 }
  0x99   : > { %v8976_v44 = vsub.f32 %v180_v6, %v284_v41 }
  0x9b   : > { %v348_v45 = vmul.f32 %v8976_v44, %v8976_v44 }
  0x9c   : > { %382 = vadd.xlane.f32.xlu2 %v346_v34  ;;  %223 = vadd.xlane.f32.xlu0 %v8959_v36 }
  0x9d   : > { %378 = vadd.xlane.f32.xlu1 %v344_v37 }
  0xa4   : > { %229 = vadd.xlane.f32.xlu2 %v8970_v42  ;;  %384 = vadd.xlane.f32.xlu0 %v347_v40  ;;  %v9053_v40 = vld [vmem:[%s16191_s1] sm:$0xff] }
  0xa5   : > { %225 = vadd.xlane.f32.xlu1 %v8973_v43 }
  0xac   : > { %231 = vadd.xlane.f32.xlu2 %v8982_v46  ;;  %386 = vadd.xlane.f32.xlu0 %v348_v45 }
  0xad   : > { %227 = vadd.xlane.f32.xlu1 %v8985_v47 }
  0xb4   : > { %233 = vadd.xlane.f32.xlu0 %v8990_v48 }
  0xbc   : > { %235 = vadd.xlane.f32.xlu0 %v8994_v49 }
  0xff   : > { %v375_v56 = vpop.xlane.xlu0 %374 }
 0x100   : > { %v438_v58 = vmul.f32 %v375_v56, %v8928_v13 }
 0x102   : > { %v470_v59 = vadd.f32 1e-05, %v438_v58  ;;  %v9076_v58 = vperm.slane %v9053_v40, 0 }
 0x104   : > { %8454 = vrsqrt.f32 %v470_v59  ;;  %vm508_vm2 = vweird.f32 %v470_v59  ;;  %16267 = vst [vmem:[#allocation2_spill] sm:$0xff] %v9076_v58 }
 0x107   : > { %v381_v61 = vpop.xlane.xlu2 %380  ;;  %v222_v62 = vpop.xlane.xlu0 %221 }
 0x108   : > { %v441_v63 = vmul.f32 %v381_v61, %v8928_v13  ;;  %v377_v0 = vpop.xlane.xlu1 %376  ;;  %v285_v1 = vmul.f32 %v8928_v13, %v222_v62  ;;  %v9087_v61 = vld [vmem:[%s8919_s18 + $0x78] sm:$0xff] }
 0x109   : > { %v439_v2 = vmul.f32 %v377_v0, %v8928_v13 }
 0x10a   : > { %v8455_v3 = vpop.eup %8454  ;;  %v9025_v4 = vadd.f32 1e-05, %v441_v63  ;;  %v9028_v5 = vsub.f32 %v8944_v28, %v285_v1 }
 0x10b   : > { %v503_v6 = vmul.f32 %v8455_v3, %v470_v59  ;;  %v471_v7 = vadd.f32 1e-05, %v439_v2  ;;  %vm509_vm1 = vweird.f32 %v8455_v3 }
 0x10c   : > { %8456 = vrsqrt.f32 %v9025_v4  ;;  %v349_v8 = vmul.f32 %v9028_v5, %v9028_v5  ;;  %vm9055_vm3 = vmor %vm508_vm2, %vm509_vm1  ;;  %vm538_vm7 = vweird.f32 %v9025_v4 }
 0x10d   : > { %v504_v9 = vmul.f32 %v8455_v3, %v503_v6  ;;  %8458 = vrsqrt.f32 %v471_v7  ;;  %vm518_vm5 = vweird.f32 %v471_v7 }
 0x10e   : > { %388 = vadd.xlane.f32.xlu1 %v349_v8 }
 0x10f   : > { %v505_v10 = vmul.f32 0.5, %v504_v9  ;;  %v383_v11 = vpop.xlane.xlu2 %382  ;;  %v224_v12 = vpop.xlane.xlu0 %223 }
 0x110   : > { %v379_v14 = vpop.xlane.xlu1 %378  ;;  %v286_v15 = vmul.f32 %v8928_v13, %v224_v12  ;;  %v442_v27 = vmul.f32 %v383_v11, %v8928_v13  ;;  %v9100_v12 = vperm.slane %v9053_v40, 1 }
 0x111   : > { %v440_v16 = vmul.f32 %v379_v14, %v8928_v13  ;;  %v506_v19 = vsub.f32 1.5, %v505_v10 }
 0x112   : > { %v9035_v18 = vpop.eup %8456  ;;  %v9038_v20 = vsub.f32 %v8959_v36, %v286_v15  ;;  %v9060_v50 = vadd.f32 1e-05, %v442_v27  ;;  %16268 = vst [vmem:[#allocation3_spill] sm:$0xff] %v9100_v12 }
 0x113   : > { %v8459_v21 = vpop.eup %8458  ;;  %v9040_v22 = vadd.f32 1e-05, %v440_v16  ;;  %v533_v26 = vmul.f32 %v9035_v18, %v9025_v4  ;;  %v507_v29 = vmul.f32 %v8455_v3, %v506_v19  ;;  %vm539_vm8 = vweird.f32 %v9035_v18 }
 0x114   : > { %v513_v23 = vmul.f32 %v8459_v21, %v471_v7  ;;  %v350_v28 = vmul.f32 %v9038_v20, %v9038_v20  ;;  %vm519_vm4 = vweird.f32 %v8459_v21  ;;  %vm9128_vm10 = vmor %vm538_vm7, %vm539_vm8  ;;  %vm548_vm15 = vweird.f32 %v9060_v50 }
 0x115   : > { %8460 = vrsqrt.f32 %v9040_v22  ;;  %v534_v45 = vmul.f32 %v9035_v18, %v533_v26  ;;  %v511_v55 = vsel %vm9055_vm3, %v8455_v3, %v507_v29  ;;  %vm520_vm6 = vmor %vm518_vm5, %vm519_vm4  ;;  %v9125_v29 = vld [vmem:[%s8919_s18 + $0x80] sm:$0xff]  ;;  %vm528_vm11 = vweird.f32 %v9040_v22 }
 0x116   : > { %v514_v30 = vmul.f32 %v8459_v21, %v513_v23  ;;  %390 = vadd.xlane.f32.xlu1 %v350_v28  ;;  %v822_v62 = vmul.f32 %v511_v55, %v8931_v17  ;;  %v9148_v55 = vld [vmem:[%s8919_s18 + $0x98] sm:$0xff] }
 0x117   : > { %v230_v31 = vpop.xlane.xlu2 %229  ;;  %v385_v34 = vpop.xlane.xlu0 %384  ;;  %v535_v63 = vmul.f32 0.5, %v534_v45 }
 0x118   : > { %v515_v35 = vmul.f32 0.5, %v514_v30  ;;  %v289_v36 = vmul.f32 %v8928_v13, %v230_v31  ;;  %v226_v37 = vpop.xlane.xlu1 %225  ;;  %v443_v39 = vmul.f32 %v385_v34, %v8928_v13  ;;  %v855_v17 = vmul.f32 %v9076_v58, %v822_v62 }
 0x119   : > { %v287_v51 = vmul.f32 %v8928_v13, %v226_v37  ;;  %v536_v15 = vsub.f32 1.5, %v535_v63 }
 0x11a   : > { %v516_v52 = vsub.f32 1.5, %v515_v35  ;;  %v9064_v53 = vsub.f32 %v8970_v42, %v289_v36  ;;  %v9066_v54 = vadd.f32 1e-05, %v443_v39  ;;  %v888_v4 = vadd.f32 %v9100_v12, %v855_v17  ;;  %v9186_v17 = vld [vmem:[%s8919_s18 + $0xa8] sm:$0xff] }
 0x11b   : > { %v9070_v56 = vpop.eup %8460  ;;  %v9073_v57 = vsub.f32 %v8973_v43, %v287_v51 }
 0x11c   : > { %v517_v59 = vmul.f32 %v8459_v21, %v516_v52  ;;  %v523_v60 = vmul.f32 %v9070_v56, %v9040_v22  ;;  %8462 = vrsqrt.f32 %v9066_v54  ;;  %v353_v42 = vmul.f32 %v9064_v53, %v9064_v53 }
 0x11d   : > { %8464 = vrsqrt.f32 %v9060_v50  ;;  %v351_v43 = vmul.f32 %v9073_v57, %v9073_v57  ;;  %vm529_vm9 = vweird.f32 %v9070_v56  ;;  %vm558_vm13 = vweird.f32 %v9066_v54 }
 0x11e   : > { %v524_v0 = vmul.f32 %v9070_v56, %v523_v60  ;;  %v521_v1 = vsel %vm520_vm6, %v8459_v21, %v517_v59  ;;  %396 = vadd.xlane.f32.xlu0 %v353_v42  ;;  %237 = vadd.xlane.f32.xlu1 %v9087_v61  ;;  %vm530_vm12 = vmor %vm528_vm11, %vm529_vm9  ;;  %v9151_v59 = vld [vmem:[%s8919_s18 + $0x88] sm:$0xff] }
 0x11f   : > { %392 = vadd.xlane.f32.xlu2 %v351_v43  ;;  %v232_v2 = vpop.xlane.xlu2 %231  ;;  %v9091_v3 = vpop.xlane.xlu0 %386  ;;  %v823_v6 = vmul.f32 %v521_v1, %v8939_v25 }
 0x120   : > { %v525_v7 = vmul.f32 0.5, %v524_v0  ;;  %v290_v8 = vmul.f32 %v8928_v13, %v232_v2  ;;  %v228_v9 = vpop.xlane.xlu1 %227  ;;  %v9171_v2 = vld [vmem:[%s8919_s18 + $0xa0] sm:$0xff] }
 0x121   : > { %v288_v10 = vmul.f32 %v8928_v13, %v228_v9  ;;  %v856_v11 = vmul.f32 %v9076_v58, %v823_v6  ;;  %v9174_v6 = vld [vmem:[%s8919_s18 + $0x90] sm:$0xff] }
 0x122   : > { %v9102_v14 = vpop.eup %8462  ;;  %v526_v25 = vsub.f32 1.5, %v525_v7  ;;  %v9105_v16 = vsub.f32 %v8982_v46, %v290_v8 }
 0x123   : > { %v9107_v19 = vpop.eup %8464  ;;  %v9112_v21 = vsub.f32 %v8985_v47, %v288_v10  ;;  %v553_v26 = vmul.f32 %v9102_v14, %v9066_v54  ;;  %v889_v28 = vadd.f32 %v9100_v12, %v856_v11  ;;  %v537_v47 = vmul.f32 %v9035_v18, %v536_v15 }
 0x124   : > { %v527_v23 = vmul.f32 %v9070_v56, %v526_v25  ;;  %v354_v46 = vmul.f32 %v9105_v16, %v9105_v16  ;;  %v543_v31 = vmul.f32 %v9107_v19, %v9060_v50  ;;  %vm559_vm14 = vweird.f32 %v9102_v14 }
 0x125   : > { %v352_v27 = vmul.f32 %v9112_v21, %v9112_v21  ;;  %v936_v34 = vpack.c.bf16 %v889_v28, %v888_v4  ;;  %v554_v36 = vmul.f32 %v9102_v14, %v553_v26  ;;  %v541_v45 = vsel %vm9128_vm10, %v9035_v18, %v537_v47  ;;  %vm560_vm1 = vmor %vm558_vm13, %vm559_vm14 }
 0x126   : > { %398 = vadd.xlane.f32.xlu0 %v354_v46  ;;  %239 = vadd.xlane.f32.xlu1 %v9125_v29  ;;  %v531_v39 = vsel %vm530_vm12, %v9070_v56, %v527_v23  ;;  %v544_v41 = vmul.f32 %v9107_v19, %v543_v31  ;;  %v825_v60 = vmul.f32 %v541_v45, %v8937_v24  ;;  %vm549_vm0 = vweird.f32 %v9107_v19 }
 0x127   : > { %394 = vadd.xlane.f32.xlu2 %v352_v27  ;;  %v234_v35 = vpop.xlane.xlu0 %233  ;;  %1009 = vmatmul.bf16.vlgmr.msra.gmra.mxu0 %v936_v34  ;;  %v824_v51 = vmul.f32 %v531_v39, %v8953_v33  ;;  %v555_v52 = vmul.f32 0.5, %v554_v36  ;;  %vm550_vm2 = vmor %vm548_vm15, %vm549_vm0 }
 0x128   : > { %v291_v37 = vmul.f32 %v8928_v13, %v234_v35  ;;  %v545_v42 = vmul.f32 0.5, %v544_v41  ;;  %v858_v62 = vmul.f32 %v9076_v58, %v825_v60 }
 0x129   : > { %v857_v33 = vmul.f32 %v9076_v58, %v824_v51  ;;  %v556_v18 = vsub.f32 1.5, %v555_v52 }
 0x12a   : > { %v9141_v22 = vsub.f32 %v8990_v48, %v291_v37  ;;  %v546_v63 = vsub.f32 1.5, %v545_v42 }
 0x12b   : > { %v890_v0 = vadd.f32 %v9100_v12, %v857_v33  ;;  %v557_v1 = vmul.f32 %v9102_v14, %v556_v18 }
 0x12c   : > { %v355_v56 = vmul.f32 %v9141_v22, %v9141_v22  ;;  %v547_v7 = vmul.f32 %v9107_v19, %v546_v63 }
 0x12d   : > { %v561_v8 = vsel %vm560_vm1, %v9102_v14, %v557_v1  ;;  %v9195_v14 = vld [vmem:[%s8919_s18 + $0xb0] sm:$0xff] }
 0x12e   : > { %245 = vadd.xlane.f32.xlu0 %v9148_v55  ;;  %400 = vadd.xlane.f32.xlu1 %v355_v56  ;;  %v551_v9 = vsel %vm550_vm2, %v9107_v19, %v547_v7  ;;  %v827_v10 = vmul.f32 %v561_v8, %v8964_v38  ;;  %v444_v38 = vmul.f32 %v9091_v3, %v8928_v13 }
 0x12f   : > { %241 = vadd.xlane.f32.xlu2 %v9151_v59  ;;  %v236_v48 = vpop.xlane.xlu0 %235  ;;  %v826_v11 = vmul.f32 %v551_v9, %v8951_v32 }
 0x130   : > { %v292_v43 = vmul.f32 %v8928_v13, %v236_v48  ;;  %v860_v15 = vmul.f32 %v9076_v58, %v827_v10  ;;  %v476_v32 = vadd.f32 1e-05, %v444_v38 }
 0x131   : > { %v859_v25 = vmul.f32 %v9076_v58, %v826_v11 }
 0x132   : > { %v9164_v24 = vsub.f32 %v8994_v49, %v292_v43  ;;  %v891_v49 = vadd.f32 %v9100_v12, %v858_v62  ;;  %v893_v23 = vadd.f32 %v9100_v12, %v860_v15  ;;  %8466 = vrsqrt.f32 %v476_v32 }
 0x133   : > { %v892_v26 = vadd.f32 %v9100_v12, %v859_v25  ;;  %vm568_vm3 = vweird.f32 %v476_v32 }
 0x134   : > { %v356_v54 = vmul.f32 %v9164_v24, %v9164_v24  ;;  %v937_v50 = vpack.c.bf16 %v891_v49, %v890_v0 }
 0x135   : > { %v938_v46 = vpack.c.bf16 %v893_v23, %v892_v26 }
 0x136   : > { %247 = vadd.xlane.f32.xlu0 %v9171_v2  ;;  %402 = vadd.xlane.f32.xlu1 %v356_v54 }
 0x137   : > { %243 = vadd.xlane.f32.xlu2 %v9174_v6  ;;  %1014 = vmatmul.bf16.gmra.mxu0 %v937_v50 }
 0x138   : > { %v8467_v19 = vpop.eup %8466 }
 0x139   : > { %v563_v27 = vmul.f32 %v8467_v19, %v476_v32  ;;  %vm569_vm4 = vweird.f32 %v8467_v19 }
 0x13a   : > { %vm9205_vm5 = vmor %vm568_vm3, %vm569_vm4 }
 0x13b   : > { %v564_v47 = vmul.f32 %v8467_v19, %v563_v27 }
 0x13d   : > { %v565_v31 = vmul.f32 0.5, %v564_v47 }
 0x13e   : > { %249 = vadd.xlane.f32.xlu1 %v9186_v17 }
 0x13f   : > { %v566_v37 = vsub.f32 1.5, %v565_v31 }
 0x141   : > { %v567_v45 = vmul.f32 %v8467_v19, %v566_v37 }
 0x143   : > { %v571_v62 = vsel %vm9205_vm5, %v8467_v19, %v567_v45 }
 0x144   : > { %v828_v8 = vmul.f32 %v571_v62, %v8976_v44 }
 0x146   : > { %251 = vadd.xlane.f32.xlu1 %v9195_v14  ;;  %v861_v44 = vmul.f32 %v9076_v58, %v828_v8 }
 0x147   : > { %1019 = vmatmul.bf16.gmra.mxu0 %v938_v46 }
 0x148   : > { %v894_v31 = vadd.f32 %v9100_v12, %v861_v44 }
 0x181   : > { %v389_v4 = vpop.xlane.xlu1 %388 }
 0x182   : > { %v445_v28 = vmul.f32 %v389_v4, %v8928_v13 }
 0x184   : > { %v477_v30 = vadd.f32 1e-05, %v445_v28 }
 0x186   : > { %8468 = vrsqrt.f32 %v477_v30  ;;  %vm578_vm7 = vweird.f32 %v477_v30 }
 0x189   : > { %v391_v34 = vpop.xlane.xlu1 %390 }
 0x18a   : > { %v446_v35 = vmul.f32 %v391_v34, %v8928_v13 }
 0x18c   : > { %v8469_v36 = vpop.eup %8468  ;;  %v9202_v41 = vadd.f32 1e-05, %v446_v35 }
 0x18d   : > { %v573_v39 = vmul.f32 %v8469_v36, %v477_v30  ;;  %vm579_vm6 = vweird.f32 %v8469_v36 }
 0x18e   : > { %8470 = vrsqrt.f32 %v9202_v41  ;;  %vm580_vm8 = vmor %vm578_vm7, %vm579_vm6  ;;  %vm588_vm10 = vweird.f32 %v9202_v41 }
 0x18f   : > { %v574_v3 = vmul.f32 %v8469_v36, %v573_v39 }
 0x191   : > { %v575_v52 = vmul.f32 0.5, %v574_v3  ;;  %v397_v60 = vpop.xlane.xlu0 %396  ;;  %v238_v33 = vpop.xlane.xlu1 %237 }
 0x192   : > { %v393_v56 = vpop.xlane.xlu2 %392  ;;  %v449_v18 = vmul.f32 %v397_v60, %v8928_v13  ;;  %v293_v43 = vmul.f32 %v8928_v13, %v238_v33 }
 0x193   : > { %v576_v42 = vsub.f32 1.5, %v575_v52  ;;  %v447_v48 = vmul.f32 %v393_v56, %v8928_v13 }
 0x194   : > { %v9214_v63 = vpop.eup %8470  ;;  %v9218_v54 = vadd.f32 1e-05, %v449_v18  ;;  %v9223_v7 = vsub.f32 %v9087_v61, %v293_v43 }
 0x195   : > { %v577_v0 = vmul.f32 %v8469_v36, %v576_v42  ;;  %v9216_v1 = vadd.f32 1e-05, %v447_v48  ;;  %v583_v49 = vmul.f32 %v9214_v63, %v9202_v41  ;;  %vm589_vm9 = vweird.f32 %v9214_v63 }
 0x196   : > { %v357_v10 = vmul.f32 %v9223_v7, %v9223_v7  ;;  %v9263_v42 = vperm.slane %v9053_v40, 2  ;;  %vm9271_vm11 = vmor %vm588_vm10, %vm589_vm9  ;;  %vm618_vm15 = vweird.f32 %v9218_v54 }
 0x197   : > { %8472 = vrsqrt.f32 %v9216_v1  ;;  %v581_v50 = vsel %vm580_vm8, %v8469_v36, %v577_v0  ;;  %v584_v9 = vmul.f32 %v9214_v63, %v583_v49  ;;  %vm598_vm13 = vweird.f32 %v9216_v1 }
 0x198   : > { %8474 = vrsqrt.f32 %v9218_v54  ;;  %v829_v11 = vmul.f32 %v581_v50, %v9028_v5  ;;  %404 = vadd.xlane.f32.xlu2 %v357_v10  ;;  %16273 = vst [vmem:[#allocation4_spill] sm:$0xff] %v9263_v42  ;;  %v9296_v10 = vld [vmem:[%s8919_s18 + $0xb8] sm:$0xff] }
 0x199   : > { %v585_v15 = vmul.f32 0.5, %v584_v9  ;;  %v399_v23 = vpop.xlane.xlu0 %398  ;;  %v240_v46 = vpop.xlane.xlu1 %239 }
 0x19a   : > { %v395_v25 = vpop.xlane.xlu2 %394  ;;  %v862_v61 = vmul.f32 %v9076_v58, %v829_v11  ;;  %v294_v38 = vmul.f32 %v8928_v13, %v240_v46  ;;  %v450_v30 = vmul.f32 %v399_v23, %v8928_v13 }
 0x19b   : > { %v448_v26 = vmul.f32 %v395_v25, %v8928_v13  ;;  %v586_v4 = vsub.f32 1.5, %v585_v15 }
 0x19c   : > { %v895_v27 = vadd.f32 %v9100_v12, %v862_v61  ;;  %v9246_v47 = vsub.f32 %v9125_v29, %v294_v38  ;;  %v9258_v51 = vadd.f32 1e-05, %v450_v30 }
 0x19d   : > { %v9236_v32 = vpop.eup %8472  ;;  %v9238_v19 = vadd.f32 1e-05, %v448_v26  ;;  %v587_v39 = vmul.f32 %v9214_v63, %v586_v4 }
 0x19e   : > { %v9241_v5 = vpop.eup %8474  ;;  %v593_v28 = vmul.f32 %v9236_v32, %v9216_v1  ;;  %v358_v35 = vmul.f32 %v9246_v47, %v9246_v47  ;;  %v939_v37 = vpack.c.bf16 %v895_v27, %v894_v31  ;;  %vm599_vm12 = vweird.f32 %v9236_v32 }
 0x19f   : > { %8476 = vrsqrt.f32 %v9238_v19  ;;  %v613_v36 = vmul.f32 %v9241_v5, %v9218_v54  ;;  %v591_v9 = vsel %vm9271_vm11, %v9214_v63, %v587_v39  ;;  %v8426_v63 = vld [vmem:[%s16192_s2 + $0x78] sm:$0xff]  ;;  %vm9308_vm14 = vmor %vm598_vm13, %vm599_vm12  ;;  %vm619_vm0 = vweird.f32 %v9241_v5 }
 0x1a0   : > { %v594_v34 = vmul.f32 %v9236_v32, %v593_v28  ;;  %406 = vadd.xlane.f32.xlu2 %v358_v35  ;;  %1024 = vmatmul.bf16.gmra.mxu0 %v939_v37  ;;  %8478 = vrsqrt.f32 %v9258_v51  ;;  %v830_v23 = vmul.f32 %v591_v9, %v9038_v20  ;;  %vm9374_vm2 = vmor %vm618_vm15, %vm619_vm0  ;;  %vm608_vm3 = vweird.f32 %v9238_v19 }
 0x1a1   : > { %v246_v45 = vpop.xlane.xlu0 %245  ;;  %v401_v56 = vpop.xlane.xlu1 %400  ;;  %v614_v62 = vmul.f32 %v9241_v5, %v613_v36  ;;  %2580 = vmatpush.bf16.msra.mxu1 %v8426_v63  ;;  %vm628_vm5 = vweird.f32 %v9258_v51 }
 0x1a2   : > { %v595_v29 = vmul.f32 0.5, %v594_v34  ;;  %v242_v3 = vpop.xlane.xlu2 %241  ;;  %v297_v60 = vmul.f32 %v8928_v13, %v246_v45  ;;  %v451_v33 = vmul.f32 %v401_v56, %v8928_v13  ;;  %v8425_v34 = vld [vmem:[%s16192_s2 + $0x70] sm:$0xff]  ;;  %v863_v37 = vmul.f32 %v9076_v58, %v830_v23 }
 0x1a3   : > { %v295_v52 = vmul.f32 %v8928_v13, %v242_v3  ;;  %v615_v61 = vmul.f32 0.5, %v614_v62 }
 0x1a4   : > { %v596_v48 = vsub.f32 1.5, %v595_v29  ;;  %v9281_v41 = vsub.f32 %v9148_v55, %v297_v60  ;;  %v9286_v50 = vadd.f32 1e-05, %v451_v33  ;;  %v1010_v8 = vpop.f32.mrf.mxu0  ;;  %v896_v43 = vadd.f32 %v9100_v12, %v863_v37 }
 0x1a5   : > { %v9267_v18 = vpop.eup %8476  ;;  %v9278_v40 = vsub.f32 %v9151_v59, %v295_v52  ;;  %v9293_v59 = vadd.f32 %v1010_v8, %v9263_v42  ;;  %v616_v29 = vsub.f32 1.5, %v615_v61  ;;  %v9351_v52 = vld [vmem:[%s8919_s18 + $0xc0] sm:$0xff]  ;;  %2581 = vmatpush.bf16.msra.mxu1 %v8425_v34 }
 0x1a6   : > { %v597_v0 = vmul.f32 %v9236_v32, %v596_v48  ;;  %v603_v49 = vmul.f32 %v9267_v18, %v9238_v19  ;;  %8480 = vrsqrt.f32 %v9286_v50  ;;  %v361_v1 = vmul.f32 %v9281_v41, %v9281_v41  ;;  %v8424_v48 = vld [vmem:[%s16192_s2 + $0x68] sm:$0xff]  ;;  %v8423_v61 = vld [vmem:[%s16192_s2 + $0x60] sm:$0xff] }
 0x1a7   : > { %v359_v11 = vmul.f32 %v9278_v40, %v9278_v40  ;;  %v9313_v25 = vmul.f32 0.70710677, %v9293_v59  ;;  %vm609_vm1 = vweird.f32 %v9267_v18  ;;  %vm638_vm7 = vweird.f32 %v9286_v50 }
 0x1a8   : > { %v604_v55 = vmul.f32 %v9267_v18, %v603_v49  ;;  %253 = vadd.xlane.f32.xlu2 %v9296_v10  ;;  %v601_v38 = vsel %vm9308_vm14, %v9236_v32, %v597_v0  ;;  %412 = vadd.xlane.f32.xlu1 %v361_v1  ;;  %v9332_v32 = vpop.eup %8478  ;;  %v617_v49 = vmul.f32 %v9241_v5, %v616_v29  ;;  %vm9383_vm4 = vmor %vm608_vm3, %vm609_vm1  ;;  %v9419_v29 = vld [vmem:[%s8919_s18 + $0xd8] sm:$0xff] }
 0x1a9   : > { %408 = vadd.xlane.f32.xlu0 %v359_v11  ;;  %v248_v44 = vpop.xlane.xlu0 %247  ;;  %v1154_v27 = vmul.f32 %v9313_v25, %v9313_v25  ;;  %v9325_v28 = vpop.xlane.xlu1 %402  ;;  %v831_v31 = vmul.f32 %v601_v38, %v9073_v57  ;;  %v623_v33 = vmul.f32 %v9332_v32, %v9258_v51  ;;  %2582 = vmatpush.bf16.msra.mxu1 %v8424_v48  ;;  %vm629_vm6 = vweird.f32 %v9332_v32 }
 0x1aa   : > { %v605_v26 = vmul.f32 0.5, %v604_v55  ;;  %v244_v46 = vpop.xlane.xlu2 %243  ;;  %v298_v20 = vmul.f32 %v8928_v13, %v248_v44  ;;  %vm9487_vm10 = vmor %vm628_vm5, %vm629_vm6 }
 0x1ab   : > { %v296_v4 = vmul.f32 %v8928_v13, %v244_v46  ;;  %v864_v57 = vmul.f32 %v9076_v58, %v831_v31  ;;  %v624_v46 = vmul.f32 %v9332_v32, %v623_v33 }
 0x1ac   : > { %v606_v30 = vsub.f32 1.5, %v605_v26  ;;  %v9338_v36 = vsub.f32 %v9171_v2, %v298_v20  ;;  %v9341_v39 = vpop.eup %8480  ;;  %v1012_v3 = vpop.f32.mrf.mxu0 }
 0x1ad   : > { %v9335_v35 = vsub.f32 %v9174_v6, %v296_v4  ;;  %v633_v45 = vmul.f32 %v9341_v39, %v9286_v50  ;;  %v9348_v6 = vmin.f32 %v1154_v27, 16.0  ;;  %v9356_v56 = vadd.f32 %v1012_v3, %v9263_v42  ;;  %2583 = vmatpush.bf16.msra.mxu1 %v8423_v61  ;;  %v9454_v61 = vld [vmem:[%s8919_s18 + $0xd0] sm:$0xff] }
 0x1ae   : > { %16278 = vst [vmem:[#allocation5_spill] sm:$0xff] %v9338_v36  ;;  %v607_v2 = vmul.f32 %v9267_v18, %v606_v30  ;;  %v897_v62 = vadd.f32 %v9100_v12, %v864_v57  ;;  %v362_v0 = vmul.f32 %v9338_v36, %v9338_v36  ;;  %v9409_v30 = vld [vmem:[%s8919_s18 + $0xc8] sm:$0xff]  ;;  %v625_v57 = vmul.f32 0.5, %v624_v46 }
 0x1af   : > { %v360_v60 = vmul.f32 %v9335_v35, %v9335_v35  ;;  %v9380_v9 = vmul.f32 0.70710677, %v9356_v56  ;;  %v634_v11 = vmul.f32 %v9341_v39, %v633_v45  ;;  %v1156_v54 = vmul.f32 2.1237322e-06, %v9348_v6  ;;  %v8422_v45 = vld [vmem:[%s16192_s2 + $0x58] sm:$0xff] }
 0x1b0   : > { %255 = vadd.xlane.f32.xlu2 %v9351_v52  ;;  %v940_v63 = vpack.c.bf16 %v897_v62, %v896_v43  ;;  %414 = vadd.xlane.f32.xlu1 %v362_v0  ;;  %v611_v23 = vsel %vm9383_vm4, %v9267_v18, %v607_v2  ;;  %v1167_v26 = vmul.f32 3.8918573e-05, %v9348_v6  ;;  %v621_v18 = vsel %vm9374_vm2, %v9241_v5, %v617_v49 }
 0x1b1   : > { %410 = vadd.xlane.f32.xlu0 %v360_v60  ;;  %v250_v15 = vpop.xlane.xlu1 %249  ;;  %v1194_v19 = vmul.f32 %v9380_v9, %v9380_v9  ;;  %v635_v4 = vmul.f32 0.5, %v634_v11  ;;  %v1157_v20 = vadd.f32 0.00028619796, %v1156_v54  ;;  %v832_v31 = vmul.f32 %v611_v23, %v9112_v21  ;;  %2584 = vmatpush.bf16.msra.mxu1 %v8422_v45  ;;  %v8421_v11 = vld [vmem:[%s16192_s2 + $0x50] sm:$0xff] }
 0x1b2   : > { %v299_v1 = vmul.f32 %v8928_v13, %v250_v15  ;;  %1029 = vmatmul.bf16.gmra.mxu0 %v940_v63  ;;  %v1168_v3 = vadd.f32 0.001143296, %v1167_v26  ;;  %v833_v5 = vmul.f32 %v621_v18, %v9064_v53  ;;  %v626_v49 = vsub.f32 1.5, %v625_v57  ;;  %v8420_v57 = vld [vmem:[%s16192_s2 + $0x48] sm:$0xff] }
 0x1b3   : > { %v9400_v44 = vmin.f32 %v1194_v19, 16.0  ;;  %v1158_v60 = vmul.f32 %v1157_v20, %v9348_v6  ;;  %v865_v48 = vmul.f32 %v9076_v58, %v832_v31  ;;  %v636_v33 = vsub.f32 1.5, %v635_v4  ;;  %v9463_v4 = vld [vmem:[%s8919_s18 + $0xe0] sm:$0xff] }
 0x1b4   : > { %v9403_v38 = vsub.f32 %v9186_v17, %v299_v1  ;;  %v1015_v27 = vpop.f32.mrf.mxu0  ;;  %v1169_v0 = vmul.f32 %v1168_v3, %v9348_v6  ;;  %v866_v55 = vmul.f32 %v9076_v58, %v833_v5  ;;  %vm639_vm8 = vweird.f32 %v9341_v39 }
 0x1b5   : > { %v1196_v34 = vmul.f32 2.1237322e-06, %v9400_v44  ;;  %v9414_v37 = vadd.f32 %v1015_v27, %v9263_v42  ;;  %v1159_v1 = vadd.f32 0.0036580483, %v1158_v60  ;;  %v898_v26 = vadd.f32 %v9100_v12, %v865_v48  ;;  %2585 = vmatpush.bf16.msra.mxu1 %v8421_v11  ;;  %vm9470_vm9 = vmor %vm638_vm7, %vm639_vm8 }
 0x1b6   : > { %v363_v17 = vmul.f32 %v9403_v38, %v9403_v38  ;;  %v1170_v19 = vadd.f32 0.014752088, %v1169_v0  ;;  %v1207_v46 = vmul.f32 3.8918573e-05, %v9400_v44  ;;  %v637_v27 = vmul.f32 %v9341_v39, %v636_v33 }
 0x1b7   : > { %v1197_v21 = vadd.f32 0.00028619796, %v1196_v34  ;;  %v9426_v2 = vmul.f32 0.70710677, %v9414_v37  ;;  %v899_v3 = vadd.f32 %v9100_v12, %v866_v55  ;;  %v627_v5 = vmul.f32 %v9332_v32, %v626_v49  ;;  %v8419_v49 = vld [vmem:[%s16192_s2 + $0x40] sm:$0xff] }
 0x1b8   : > { %416 = vadd.xlane.f32.xlu2 %v363_v17  ;;  %261 = vadd.xlane.f32.xlu1 %v9419_v29  ;;  %v1171_v20 = vmul.f32 %v1170_v19, %v9348_v6  ;;  %v641_v51 = vsel %vm9470_vm9, %v9341_v39, %v637_v27 }
 0x1b9   : > { %257 = vadd.xlane.f32.xlu0 %v9409_v30  ;;  %v252_v53 = vpop.xlane.xlu1 %251  ;;  %v1234_v43 = vmul.f32 %v9426_v2, %v9426_v2  ;;  %v1198_v8 = vmul.f32 %v1197_v21, %v9400_v44  ;;  %v941_v60 = vpack.c.bf16 %v899_v3, %v898_v26  ;;  %2586 = vmatpush.bf16.msra.mxu1 %v8420_v57  ;;  %v9510_v26 = vld [vmem:[%s8919_s18 + $0xe8] sm:$0xff] }
 0x1ba   : > { %v300_v62 = vmul.f32 %v8928_v13, %v252_v53  ;;  %v1172_v50 = vadd.f32 0.112945676, %v1171_v20  ;;  %v1208_v53 = vadd.f32 0.001143296, %v1207_v46 }
 0x1bb   : > { %v9445_v54 = vmin.f32 %v1234_v43, 16.0  ;;  %v1199_v34 = vadd.f32 0.0036580483, %v1198_v8 }
 0x1bc   : > { %v9448_v63 = vsub.f32 %v9195_v14, %v300_v62  ;;  %v1017_v15 = vpop.f32.mrf.mxu0  ;;  %v1173_v43 = vmul.f32 %v1172_v50, %v9348_v6  ;;  %v1160_v62 = vmul.f32 %v1159_v1, %v9348_v6  ;;  %v1209_v8 = vmul.f32 %v1208_v53, %v9400_v44 }
 0x1bd   : > { %v9451_v23 = vadd.f32 %v1017_v15, %v9263_v42  ;;  %v1236_v18 = vmul.f32 2.1237322e-06, %v9445_v54  ;;  %v1247_v48 = vmul.f32 3.8918573e-05, %v9445_v54  ;;  %v1200_v0 = vmul.f32 %v1199_v34, %v9400_v44  ;;  %2587 = vmatpush.bf16.msra.mxu1 %v8419_v49 }
 0x1be   : > { %16283 = vst [vmem:[#allocation6_spill] sm:$0xff] %v9448_v63  ;;  %v364_v14 = vmul.f32 %v9448_v63, %v9448_v63  ;;  %v631_v15 = vsel %vm9487_vm10, %v9332_v32, %v627_v5  ;;  %v1174_v39 = vadd.f32 0.4994258, %v1173_v43  ;;  %v835_v1 = vmul.f32 %v641_v51, %v9141_v22 }
 0x1bf   : > { %v9475_v17 = vmul.f32 0.70710677, %v9451_v23  ;;  %v1237_v21 = vadd.f32 0.00028619796, %v1236_v18  ;;  %v1248_v55 = vadd.f32 0.001143296, %v1247_v48  ;;  %v834_v34 = vmul.f32 %v631_v15, %v9105_v16 }
 0x1c0   : > { %418 = vadd.xlane.f32.xlu2 %v364_v14  ;;  %263 = vadd.xlane.f32.xlu1 %v9463_v4  ;;  %v1210_v46 = vadd.f32 0.014752088, %v1209_v8  ;;  %v1175_v14 = vmul.f32 %v1174_v39, %v9348_v6  ;;  %v1161_v20 = vadd.f32 0.05243302, %v1160_v62  ;;  %v1201_v31 = vadd.f32 0.05243302, %v1200_v0 }
 0x1c1   : > { %259 = vadd.xlane.f32.xlu0 %v9454_v61  ;;  %v1274_v33 = vmul.f32 %v9475_v17, %v9475_v17  ;;  %v1238_v19 = vmul.f32 %v1237_v21, %v9445_v54  ;;  %v1249_v27 = vmul.f32 %v1248_v55, %v9445_v54  ;;  %v868_v5 = vmul.f32 %v9076_v58, %v835_v1  ;;  %v9542_v8 = vld [vmem:[%s8919_s18 + $0xf0] sm:$0xff] }
 0x1c2   : > { %1034 = vmatmul.bf16.gmra.mxu0 %v941_v60  ;;  %v1211_v32 = vmul.f32 %v1210_v46, %v9400_v44  ;;  %v9523_v22 = vadd.f32 1.0, %v1175_v14  ;;  %v1162_v16 = vmul.f32 %v1161_v20, %v9348_v6  ;;  %v1202_v60 = vmul.f32 %v1201_v31, %v9400_v44 }
 0x1c3   : > { %v9514_v18 = vmin.f32 %v1274_v33, 16.0  ;;  %v1239_v57 = vadd.f32 0.0036580483, %v1238_v19  ;;  %v1250_v45 = vadd.f32 0.014752088, %v1249_v27  ;;  %v867_v48 = vmul.f32 %v9076_v58, %v834_v34 }
 0x1c4   : > { %v1020_v11 = vpop.f32.mrf.mxu0  ;;  %v1212_v50 = vadd.f32 0.112945676, %v1211_v32  ;;  %8482 = vrcp.f32 %v9523_v22  ;;  %v901_v55 = vadd.f32 %v9100_v12, %v868_v5  ;;  %v1163_v19 = vadd.f32 0.18741608, %v1162_v16 }
 0x1c5   : > { %v9520_v3 = vadd.f32 %v1020_v11, %v9263_v42  ;;  %v1287_v21 = vmul.f32 3.8918573e-05, %v9514_v18  ;;  %v1276_v53 = vmul.f32 2.1237322e-06, %v9514_v18  ;;  %v1251_v62 = vmul.f32 %v1250_v45, %v9445_v54 }
 0x1c6   : > { %v1213_v43 = vmul.f32 %v1212_v50, %v9400_v44  ;;  %v1240_v0 = vmul.f32 %v1239_v57, %v9445_v54  ;;  %v1203_v1 = vadd.f32 0.18741608, %v1202_v60  ;;  %v900_v27 = vadd.f32 %v9100_v12, %v867_v48 }
 0x1c7   : > { %v9533_v33 = vmul.f32 0.70710677, %v9520_v3  ;;  %v1252_v15 = vadd.f32 0.112945676, %v1251_v62  ;;  %v1288_v39 = vadd.f32 0.001143296, %v1287_v21  ;;  %vm1182_vm12 = vweird.f32 %v9523_v22 }
 0x1c8   : > { %265 = vadd.xlane.f32.xlu2 %v9510_v26  ;;  %v1214_v11 = vadd.f32 0.4994258, %v1213_v43  ;;  %v1277_v46 = vadd.f32 0.00028619796, %v1276_v53  ;;  %v1241_v57 = vadd.f32 0.05243302, %v1240_v0  ;;  %v942_v5 = vpack.c.bf16 %v901_v55, %v900_v27 }
 0x1c9   : > { %v1314_v20 = vmul.f32 %v9533_v33, %v9533_v33  ;;  %v1253_v32 = vmul.f32 %v1252_v15, %v9445_v54  ;;  %v1289_v60 = vmul.f32 %v1288_v39, %v9514_v18  ;;  %v1164_v53 = vmul.f32 %v1163_v19, %v9348_v6 }
 0x1ca   : > { %v8483_v14 = vpop.eup %8482  ;;  %v1215_v34 = vmul.f32 %v1214_v11, %v9400_v44  ;;  %v1204_v48 = vmul.f32 %v1203_v1, %v9400_v44  ;;  %v1278_v43 = vmul.f32 %v1277_v46, %v9514_v18  ;;  %v1188_v11 = vand.u32 2147483648, %v9523_v22 }
 0x1cb   : > { %v1178_v50 = vmul.f32 %v8483_v14, %v9523_v22  ;;  %v1254_v16 = vadd.f32 0.4994258, %v1253_v32  ;;  %v9563_v62 = vmin.f32 %v1314_v20, 16.0  ;;  %vm1183_vm11 = vweird.f32 %v8483_v14 }
 0x1cc   : > { %v1022_v51 = vpop.f32.mrf.mxu0  ;;  %v9557_v21 = vadd.f32 1.0, %v1215_v34  ;;  %v1242_v15 = vmul.f32 %v1241_v57, %v9445_v54  ;;  %v1186_v6 = vand.u32 2147483647, %v9523_v22  ;;  %v1290_v39 = vadd.f32 0.014752088, %v1289_v60  ;;  %vm1184_vm13 = vmor %vm1182_vm12, %vm1183_vm11 }
 0x1cd   : > { %v9539_v49 = vadd.f32 %v1022_v51, %v9263_v42  ;;  %v1179_v51 = vsub.f32 1.0, %v1178_v50  ;;  %v1255_v44 = vmul.f32 %v1254_v16, %v9445_v54  ;;  %v1165_v19 = vadd.f32 1.1283791, %v1164_v53 }
 0x1ce   : > { %8484 = vrcp.f32 %v9557_v21  ;;  %v1205_v1 = vadd.f32 1.1283791, %v1204_v48  ;;  %v1279_v27 = vadd.f32 0.0036580483, %v1278_v43  ;;  %v1316_v20 = vmul.f32 2.1237322e-06, %v9563_v62 }
 0x1cf   : > { %v9549_v31 = vmul.f32 0.70710677, %v9539_v49  ;;  %v1180_v55 = vmul.f32 %v8483_v14, %v1179_v51  ;;  %v9574_v34 = vadd.f32 1.0, %v1255_v44  ;;  %v1189_v57 = vor.u32 1.1754944e-38, %v1188_v11 }
 0x1d0   : > { %267 = vadd.xlane.f32.xlu2 %v9542_v8  ;;  %v1291_v50 = vmul.f32 %v1290_v39, %v9514_v18  ;;  %v1243_v16 = vadd.f32 0.18741608, %v1242_v15  ;;  %vm1187_vm14 = vcmp.eq.f32.partialorder %v1186_v6, 8.507059e+37  ;;  %v1327_v60 = vmul.f32 3.8918573e-05, %v9563_v62 }
 0x1d1   : > { %v1354_v45 = vmul.f32 %v9549_v31, %v9549_v31  ;;  %v1181_v46 = vadd.f32 %v8483_v14, %v1180_v55  ;;  %8486 = vrcp.f32 %v9574_v34  ;;  %v9581_v22 = vmul.f32 0.5, %v9293_v59 }
 0x1d2   : > { %1039 = vmatmul.bf16.gmra.mxu0 %v942_v5  ;;  %v9584_v53 = vmul.f32 0.5, %v9356_v56  ;;  %v1280_v43 = vmul.f32 %v1279_v27, %v9514_v18  ;;  %v1317_v55 = vadd.f32 0.00028619796, %v1316_v20  ;;  %v1206_v15 = vmul.f32 %v1205_v1, %v9380_v9 }
 0x1d3   : > { %v9566_v0 = vmin.f32 %v1354_v45, 16.0  ;;  %v1185_v5 = vsel %vm1184_vm13, %v8483_v14, %v1181_v46  ;;  %v1166_v14 = vmul.f32 %v1165_v19, %v9313_v25  ;;  %v1292_v39 = vadd.f32 0.112945676, %v1291_v50 }
 0x1d4   : > { %v8485_v45 = vpop.eup %8484  ;;  %v1190_v48 = vsel %vm1187_vm14, %v1189_v57, %v1185_v5  ;;  %v1244_v59 = vmul.f32 %v1243_v16, %v9445_v54  ;;  %v1228_v56 = vand.u32 2147483648, %v9557_v21  ;;  %v1328_v5 = vadd.f32 0.001143296, %v1327_v60 }
 0x1d5   : > { %v1356_v32 = vmul.f32 2.1237322e-06, %v9566_v0  ;;  %v1218_v51 = vmul.f32 %v8485_v45, %v9557_v21  ;;  %v1367_v11 = vmul.f32 3.8918573e-05, %v9566_v0  ;;  %v1191_v46 = vmul.f32 %v1190_v48, %v1166_v14 }
 0x1d6   : > { %vm1223_vm15 = vweird.f32 %v8485_v45  ;;  %v1226_v25 = vand.u32 2147483647, %v9557_v21  ;;  %v1293_v19 = vmul.f32 %v1292_v39, %v9514_v18  ;;  %v1281_v20 = vadd.f32 0.05243302, %v1280_v43 }
 0x1d7   : > { %v1357_v6 = vadd.f32 0.00028619796, %v1356_v32  ;;  %v1219_v44 = vsub.f32 1.0, %v1218_v51  ;;  %v8487_v27 = vpop.eup %8486  ;;  %v1318_v63 = vmul.f32 %v1317_v55, %v9563_v62  ;;  %v1329_v9 = vmul.f32 %v1328_v5, %v9563_v62 }
 0x1d8   : > { %v1368_v1 = vadd.f32 0.001143296, %v1367_v11  ;;  %vm1222_vm0 = vweird.f32 %v9557_v21  ;;  %v1258_v50 = vmul.f32 %v8487_v27, %v9574_v34  ;;  %v8136_v16 = vclamps-f32 %v1191_v46, 1.0 }
 0x1d9   : > { %v1220_v57 = vmul.f32 %v8485_v45, %v1219_v44  ;;  %v1358_v32 = vmul.f32 %v1357_v6, %v9566_v0  ;;  %vm1224_vm1 = vmor %vm1222_vm0, %vm1223_vm15  ;;  %v1229_v60 = vor.u32 1.1754944e-38, %v1228_v56  ;;  %v1294_v48 = vadd.f32 0.4994258, %v1293_v19 }
 0x1da   : > { %v1330_v51 = vadd.f32 0.014752088, %v1329_v9  ;;  %vm1227_vm2 = vcmp.eq.f32.partialorder %v1226_v25, 8.507059e+37  ;;  %v1259_v43 = vsub.f32 1.0, %v1258_v50  ;;  %v1369_v55 = vmul.f32 %v1368_v1, %v9566_v0 }
 0x1db   : > { %v1221_v54 = vadd.f32 %v8485_v45, %v1220_v57  ;;  %v1319_v44 = vadd.f32 0.0036580483, %v1318_v63  ;;  %v1295_v11 = vmul.f32 %v1294_v48, %v9514_v18  ;;  %v1359_v5 = vadd.f32 0.0036580483, %v1358_v32 }
 0x1dc   : > { %v1331_v6 = vmul.f32 %v1330_v51, %v9563_v62  ;;  %v1260_v57 = vmul.f32 %v8487_v27, %v1259_v43  ;;  %v1370_v36 = vadd.f32 0.014752088, %v1369_v55  ;;  %v1282_v46 = vmul.f32 %v1281_v20, %v9514_v18 }
 0x1dd   : > { %v1225_v14 = vsel %vm1224_vm1, %v8485_v45, %v1221_v54  ;;  %v2434_v56 = vadd.f32 1.0, %v8136_v16  ;;  %v1296_v19 = vadd.f32 1.0, %v1295_v11  ;;  %vm1263_vm3 = vweird.f32 %v8487_v27 }
 0x1de   : > { %v1230_v39 = vsel %vm1227_vm2, %v1229_v60, %v1225_v14  ;;  %v1332_v9 = vadd.f32 0.112945676, %v1331_v6  ;;  %v1261_v25 = vadd.f32 %v8487_v27, %v1260_v57  ;;  %v1371_v1 = vmul.f32 %v1370_v36, %v9566_v0 }
 0x1df   : > { %v1231_v21 = vmul.f32 %v1230_v39, %v1206_v15  ;;  %v1320_v63 = vmul.f32 %v1319_v44, %v9563_v62  ;;  %vm1262_vm4 = vweird.f32 %v9574_v34  ;;  %v1268_v54 = vand.u32 2147483648, %v9574_v34 }
 0x1e0   : > { %8488 = vrcp.f32 %v1296_v19  ;;  %v1360_v15 = vmul.f32 %v1359_v5, %v9566_v0  ;;  %v1266_v20 = vand.u32 2147483647, %v9574_v34  ;;  %v1333_v50 = vmul.f32 %v1332_v9, %v9563_v62  ;;  %vm1264_vm5 = vmor %vm1262_vm4, %vm1263_vm3 }
 0x1e1   : > { %v8137_v45 = vclamps-f32 %v1231_v21, 1.0  ;;  %v1245_v16 = vadd.f32 1.1283791, %v1244_v59  ;;  %v1283_v60 = vadd.f32 0.18741608, %v1282_v46  ;;  %v2466_v36 = vmul.f32 %v2434_v56, %v9581_v22 }
 0x1e2   : > { %v1372_v48 = vadd.f32 0.112945676, %v1371_v1  ;;  %v1265_v14 = vsel %vm1264_vm5, %v8487_v27, %v1261_v25  ;;  %v1334_v43 = vadd.f32 0.4994258, %v1333_v50  ;;  %v1321_v55 = vadd.f32 0.05243302, %v1320_v63 }
 0x1e3   : > { %v2435_v32 = vadd.f32 1.0, %v8137_v45  ;;  %v1269_v44 = vor.u32 1.1754944e-38, %v1268_v54  ;;  %v1361_v11 = vadd.f32 0.05243302, %v1360_v15  ;;  %vm1267_vm6 = vcmp.eq.f32.partialorder %v1266_v20, 8.507059e+37 }
 0x1e4   : > { %v1373_v39 = vmul.f32 %v1372_v48, %v9566_v0  ;;  %v1335_v34 = vmul.f32 %v1334_v43, %v9563_v62  ;;  %v1246_v57 = vmul.f32 %v1245_v16, %v9426_v2  ;;  %v1284_v22 = vmul.f32 %v1283_v60, %v9514_v18 }
 0x1e5   : > { %v2467_v51 = vmul.f32 %v2435_v32, %v9584_v53  ;;  %v1270_v59 = vsel %vm1267_vm6, %v1269_v44, %v1265_v14  ;;  %v1322_v46 = vmul.f32 %v1321_v55, %v9563_v62  ;;  %v1362_v9 = vmul.f32 %v1361_v11, %v9566_v0 }
 0x1e6   : > { %v8489_v5 = vpop.eup %8488  ;;  %v1374_v21 = vadd.f32 0.4994258, %v1373_v39  ;;  %v1336_v27 = vadd.f32 1.0, %v1335_v34  ;;  %v1271_v45 = vmul.f32 %v1270_v59, %v1246_v57  ;;  %v1308_v1 = vand.u32 2147483648, %v1296_v19 }
 0x1e7   : > { %v2515_v6 = vpack.c.bf16 %v2467_v51, %v2466_v36  ;;  %v1298_v53 = vmul.f32 %v8489_v5, %v1296_v19  ;;  %v1285_v54 = vadd.f32 1.1283791, %v1284_v22  ;;  %vm1303_vm7 = vweird.f32 %v8489_v5 }
 0x1e8   : > { %v1375_v56 = vmul.f32 %v1374_v21, %v9566_v0  ;;  %8490 = vrcp.f32 %v1336_v27  ;;  %v1306_v2 = vand.u32 2147483647, %v1296_v19  ;;  %v1323_v18 = vadd.f32 0.18741608, %v1322_v46 }
 0x1e9   : > { %2588 = vmatmul.bf16.vlgmr.msra.gmra.mxu1 %v2515_v6  ;;  %v1299_v25 = vsub.f32 1.0, %v1298_v53  ;;  %v1363_v32 = vadd.f32 0.18741608, %v1362_v9  ;;  %v8138_v20 = vclamps-f32 %v1271_v45, 1.0  ;;  %vm1302_vm8 = vweird.f32 %v1296_v19 }
 0x1ea   : > { %v9620_v63 = vadd.f32 1.0, %v1375_v56  ;;  %v452_v16 = vmul.f32 %v9325_v28, %v8928_v13  ;;  %vm1304_vm9 = vmor %vm1302_vm8, %vm1303_vm7  ;;  %v1309_v60 = vor.u32 1.1754944e-38, %v1308_v1  ;;  %v1286_v36 = vmul.f32 %v1285_v54, %v9475_v17 }
 0x1eb   : > { %v1300_v15 = vmul.f32 %v8489_v5, %v1299_v25  ;;  %vm1307_vm10 = vcmp.eq.f32.partialorder %v1306_v2, 8.507059e+37  ;;  %v1324_v14 = vmul.f32 %v1323_v18, %v9563_v62  ;;  %v1364_v44 = vmul.f32 %v1363_v32, %v9566_v0 }
 0x1ec   : > { %8492 = vrcp.f32 %v9620_v63  ;;  %v2436_v11 = vadd.f32 1.0, %v8138_v20  ;;  %v9628_v19 = vadd.f32 1e-05, %v452_v16  ;;  %v1348_v28 = vand.u32 2147483648, %v1336_v27 }
 0x1ed   : > { %v1301_v50 = vadd.f32 %v8489_v5, %v1300_v15  ;;  %v1092_v59 = vmul.f32 0.5, %v9414_v37  ;;  %v1093_v21 = vmul.f32 0.5, %v9451_v23  ;;  %v1325_v57 = vadd.f32 1.1283791, %v1324_v14 }
 0x1ee   : > { %v8491_v48 = vpop.eup %8490  ;;  %v1346_v22 = vand.u32 2147483647, %v1336_v27  ;;  %v1365_v53 = vadd.f32 1.1283791, %v1364_v44  ;;  %vm1342_vm12 = vweird.f32 %v1336_v27  ;;  %v1349_v45 = vor.u32 1.1754944e-38, %v1348_v28 }
 0x1ef   : > { %v1305_v51 = vsel %vm1304_vm9, %v8489_v5, %v1301_v50  ;;  %v1338_v55 = vmul.f32 %v8491_v48, %v1336_v27  ;;  %vm1343_vm11 = vweird.f32 %v8491_v48  ;;  %v2468_v46 = vmul.f32 %v2436_v11, %v1092_v59 }
 0x1f0   : > { %v1310_v43 = vsel %vm1307_vm10, %v1309_v60, %v1305_v51  ;;  %v1388_v25 = vand.u32 2147483648, %v9620_v63  ;;  %vm1344_vm13 = vmor %vm1342_vm12, %vm1343_vm11  ;;  %v1386_v23 = vand.u32 2147483647, %v9620_v63  ;;  %8494 = vrsqrt.f32 %v9628_v19 }
 0x1f1   : > { %v1311_v39 = vmul.f32 %v1310_v43, %v1286_v36  ;;  %v1339_v34 = vsub.f32 1.0, %v1338_v55  ;;  %v1326_v54 = vmul.f32 %v1325_v57, %v9533_v33  ;;  %vm1347_vm15 = vcmp.eq.f32.partialorder %v1346_v22, 8.507059e+37 }
 0x1f2   : > { %v8493_v6 = vpop.eup %8492  ;;  %vm1382_vm0 = vweird.f32 %v9620_v63  ;;  %v1389_v20 = vor.u32 1.1754944e-38, %v1388_v25  ;;  %v1366_v50 = vmul.f32 %v1365_v53, %v9549_v31  ;;  %vm1387_vm2 = vcmp.eq.f32.partialorder %v1386_v23, 8.507059e+37 }
 0x1f3   : > { %v8139_v17 = vclamps-f32 %v1311_v39, 1.0  ;;  %v1378_v5 = vmul.f32 %v8493_v6, %v9620_v63  ;;  %v1340_v62 = vmul.f32 %v8491_v48, %v1339_v34  ;;  %vm1383_vm14 = vweird.f32 %v8493_v6 }
 0x1f4   : > { %vm1384_vm1 = vmor %vm1382_vm0, %vm1383_vm14  ;;  %v1094_v63 = vmul.f32 0.5, %v9520_v3  ;;  %vm648_vm3 = vweird.f32 %v9628_v19 }
 0x1f5   : > { %v2437_v0 = vadd.f32 1.0, %v8139_v17  ;;  %v1379_v56 = vsub.f32 1.0, %v1378_v5  ;;  %v1341_v9 = vadd.f32 %v8491_v48, %v1340_v62 }
 0x1f6   : > { %v8495_v14 = vpop.eup %8494 }
 0x1f7   : > { %v2469_v1 = vmul.f32 %v2437_v0, %v1093_v21  ;;  %v1380_v37 = vmul.f32 %v8493_v6, %v1379_v56  ;;  %v1345_v15 = vsel %vm1344_vm13, %v8491_v48, %v1341_v9  ;;  %v1095_v48 = vmul.f32 0.5, %v9539_v49 }
 0x1f8   : > { %v1350_v18 = vsel %vm1347_vm15, %v1349_v45, %v1345_v15  ;;  %v643_v44 = vmul.f32 %v8495_v14, %v9628_v19  ;;  %vm649_vm4 = vweird.f32 %v8495_v14 }
 0x1f9   : > { %v2516_v2 = vpack.c.bf16 %v2469_v1, %v2468_v46  ;;  %v1381_v32 = vadd.f32 %v8493_v6, %v1380_v37  ;;  %v1351_v27 = vmul.f32 %v1350_v18, %v1326_v54  ;;  %vm9648_vm5 = vmor %vm648_vm3, %vm649_vm4 }
 0x1fb   : > { %2593 = vmatmul.bf16.gmra.mxu1 %v2516_v2  ;;  %v1385_v16 = vsel %vm1384_vm1, %v8493_v6, %v1381_v32  ;;  %v8140_v36 = vclamps-f32 %v1351_v27, 1.0  ;;  %v644_v6 = vmul.f32 %v8495_v14, %v643_v44 }
 0x1fc   : > { %v1390_v60 = vsel %vm1387_vm2, %v1389_v20, %v1385_v16 }
 0x1fd   : > { %v1391_v51 = vmul.f32 %v1390_v60, %v1366_v50  ;;  %v2438_v43 = vadd.f32 1.0, %v8140_v36  ;;  %v645_v21 = vmul.f32 0.5, %v644_v6 }
 0x1ff   : > { %v8141_v33 = vclamps-f32 %v1391_v51, 1.0  ;;  %v2470_v34 = vmul.f32 %v2438_v43, %v1094_v63  ;;  %v646_v57 = vsub.f32 1.5, %v645_v21 }
 0x201   : > { %v2439_v55 = vadd.f32 1.0, %v8141_v33  ;;  %v647_v53 = vmul.f32 %v8495_v14, %v646_v57 }
 0x203   : > { %v2471_v39 = vmul.f32 %v2439_v55, %v1095_v48  ;;  %v651_v2 = vsel %vm9648_vm5, %v8495_v14, %v647_v53 }
 0x204   : > { %v836_v50 = vmul.f32 %v651_v2, %v9164_v24 }
 0x205   : > { %v2517_v59 = vpack.c.bf16 %v2471_v39, %v2470_v34 }
 0x206   : > { %v869_v24 = vmul.f32 %v9076_v58, %v836_v50 }
 0x20b   : > { %v405_v11 = vpop.xlane.xlu2 %404  ;;  %2598 = vmatmul.bf16.gmra.mxu1 %v2517_v59  ;;  %v902_v59 = vadd.f32 %v9100_v12, %v869_v24 }
 0x20c   : > { %v453_v31 = vmul.f32 %v405_v11, %v8928_v13 }
 0x20e   : > { %v485_v28 = vadd.f32 1e-05, %v453_v31 }
 0x210   : > { %8496 = vrsqrt.f32 %v485_v28  ;;  %vm658_vm7 = vweird.f32 %v485_v28 }
 0x213   : > { %v407_v17 = vpop.xlane.xlu2 %406 }
 0x214   : > { %v454_v49 = vmul.f32 %v407_v17, %v8928_v13 }
 0x216   : > { %v8497_v5 = vpop.eup %8496  ;;  %v9644_v62 = vadd.f32 1e-05, %v454_v49 }
 0x217   : > { %v653_v22 = vmul.f32 %v8497_v5, %v485_v28  ;;  %vm659_vm6 = vweird.f32 %v8497_v5 }
 0x218   : > { %8498 = vrsqrt.f32 %v9644_v62  ;;  %vm660_vm8 = vmor %vm658_vm7, %vm659_vm6  ;;  %vm668_vm10 = vweird.f32 %v9644_v62 }
 0x219   : > { %v654_v3 = vmul.f32 %v8497_v5, %v653_v22 }
 0x21b   : > { %v655_v46 = vmul.f32 0.5, %v654_v3  ;;  %v254_v56 = vpop.xlane.xlu2 %253  ;;  %v413_v25 = vpop.xlane.xlu1 %412 }
 0x21c   : > { %v409_v9 = vpop.xlane.xlu0 %408  ;;  %v301_v45 = vmul.f32 %v8928_v13, %v254_v56  ;;  %v457_v32 = vmul.f32 %v413_v25, %v8928_v13 }
 0x21d   : > { %v455_v1 = vmul.f32 %v409_v9, %v8928_v13  ;;  %v656_v37 = vsub.f32 1.5, %v655_v46  ;;  %v1025_v15 = vpop.f32.mrf.mxu0 }
 0x21e   : > { %v9654_v19 = vpop.eup %8498  ;;  %v9657_v23 = vsub.f32 %v9296_v10, %v301_v45  ;;  %v9671_v60 = vadd.f32 1e-05, %v457_v32  ;;  %v9674_v36 = vadd.f32 %v1025_v15, %v9263_v42 }
 0x21f   : > { %v9659_v54 = vadd.f32 1e-05, %v455_v1  ;;  %v657_v18 = vmul.f32 %v8497_v5, %v656_v37  ;;  %v663_v10 = vmul.f32 %v9654_v19, %v9644_v62  ;;  %vm669_vm9 = vweird.f32 %v9654_v19 }
 0x220   : > { %v365_v27 = vmul.f32 %v9657_v23, %v9657_v23  ;;  %v9692_v34 = vmul.f32 0.70710677, %v9674_v36  ;;  %vm9749_vm11 = vmor %vm668_vm10, %vm669_vm9  ;;  %vm698_vm15 = vweird.f32 %v9671_v60 }
 0x221   : > { %8500 = vrsqrt.f32 %v9659_v54  ;;  %v661_v20 = vsel %vm660_vm8, %v8497_v5, %v657_v18  ;;  %v664_v44 = vmul.f32 %v9654_v19, %v663_v10  ;;  %v205_v10 = vld [vmem:[%s8919_s18 + $0xf8] sm:$0xff]  ;;  %vm678_vm13 = vweird.f32 %v9659_v54 }
 0x222   : > { %420 = vadd.xlane.f32.xlu0 %v365_v27  ;;  %v837_v16 = vmul.f32 %v661_v20, %v9223_v7  ;;  %8502 = vrsqrt.f32 %v9671_v60  ;;  %v1394_v17 = vmul.f32 %v9692_v34, %v9692_v34 }
 0x223   : > { %v256_v51 = vpop.xlane.xlu2 %255  ;;  %v415_v48 = vpop.xlane.xlu1 %414  ;;  %v665_v28 = vmul.f32 0.5, %v664_v44 }
 0x224   : > { %v411_v14 = vpop.xlane.xlu0 %410  ;;  %v302_v33 = vmul.f32 %v8928_v13, %v256_v51  ;;  %v870_v55 = vmul.f32 %v9076_v58, %v837_v16  ;;  %v458_v9 = vmul.f32 %v415_v48, %v8928_v13  ;;  %v9712_v1 = vmin.f32 %v1394_v17, 16.0 }
 0x225   : > { %v456_v43 = vmul.f32 %v411_v14, %v8928_v13  ;;  %v1027_v11 = vpop.f32.mrf.mxu0  ;;  %v666_v53 = vsub.f32 1.5, %v665_v28 }
 0x226   : > { %v9684_v7 = vsub.f32 %v9351_v52, %v302_v33  ;;  %v903_v6 = vadd.f32 %v9100_v12, %v870_v55  ;;  %v9705_v0 = vadd.f32 %v1027_v11, %v9263_v42  ;;  %v9725_v50 = vadd.f32 1e-05, %v458_v9 }
 0x227   : > { %v9681_v63 = vpop.eup %8500  ;;  %v9686_v39 = vadd.f32 1e-05, %v456_v43  ;;  %v667_v18 = vmul.f32 %v9654_v19, %v666_v53  ;;  %v1396_v14 = vmul.f32 2.1237322e-06, %v9712_v1 }
 0x228   : > { %v673_v31 = vmul.f32 %v9681_v63, %v9659_v54  ;;  %v366_v21 = vmul.f32 %v9684_v7, %v9684_v7  ;;  %v943_v49 = vpack.c.bf16 %v903_v6, %v902_v59  ;;  %v9702_v3 = vpop.eup %8502  ;;  %v9722_v27 = vmul.f32 0.70710677, %v9705_v0 }
 0x229   : > { %8504 = vrsqrt.f32 %v9686_v39  ;;  %v693_v32 = vmul.f32 %v9702_v3, %v9671_v60  ;;  %vm679_vm12 = vweird.f32 %v9681_v63  ;;  %vm699_vm0 = vweird.f32 %v9702_v3 }
 0x22a   : > { %v674_v52 = vmul.f32 %v9681_v63, %v673_v31  ;;  %422 = vadd.xlane.f32.xlu0 %v366_v21  ;;  %1044 = vmatmul.bf16.gmra.mxu0 %v943_v49  ;;  %v1434_v62 = vmul.f32 %v9722_v27, %v9722_v27  ;;  %8506 = vrsqrt.f32 %v9725_v50  ;;  %v1397_v21 = vadd.f32 0.00028619796, %v1396_v14  ;;  %vm9773_vm14 = vmor %vm678_vm13, %vm679_vm12 }
 0x22b   : > { %v417_v5 = vpop.xlane.xlu2 %416  ;;  %v262_v22 = vpop.xlane.xlu1 %261  ;;  %v694_v31 = vmul.f32 %v9702_v3, %v693_v32  ;;  %vm9834_vm2 = vmor %vm698_vm15, %vm699_vm0  ;;  %vm688_vm3 = vweird.f32 %v9686_v39  ;;  %vm708_vm5 = vweird.f32 %v9725_v50 }
 0x22c   : > { %v258_v57 = vpop.xlane.xlu0 %257  ;;  %v675_v56 = vmul.f32 0.5, %v674_v52  ;;  %v305_v45 = vmul.f32 %v8928_v13, %v262_v22  ;;  %v459_v37 = vmul.f32 %v417_v5, %v8928_v13  ;;  %v671_v52 = vsel %vm9749_vm11, %v9654_v19, %v667_v18 }
 0x22d   : > { %v303_v25 = vmul.f32 %v8928_v13, %v258_v57  ;;  %v695_v22 = vmul.f32 0.5, %v694_v31  ;;  %v9777_v19 = vmin.f32 %v1434_v62, 16.0  ;;  %v838_v9 = vmul.f32 %v671_v52, %v9246_v47 }
 0x22e   : > { %v676_v20 = vsub.f32 1.5, %v675_v56  ;;  %v9728_v16 = vsub.f32 %v9419_v29, %v305_v45  ;;  %v9734_v33 = vadd.f32 1e-05, %v459_v37 }
 0x22f   : > { %v9707_v46 = vpop.eup %8504  ;;  %v1030_v2 = vpop.f32.mrf.mxu0  ;;  %v9731_v51 = vsub.f32 %v9409_v30, %v303_v25  ;;  %v696_v32 = vsub.f32 1.5, %v695_v22 }
 0x230   : > { %v683_v15 = vmul.f32 %v9707_v46, %v9686_v39  ;;  %16290 = vst [vmem:[#allocation7_spill] sm:$0xff] %v9728_v16  ;;  %v9737_v48 = vadd.f32 %v1030_v2, %v9263_v42  ;;  %v369_v29 = vmul.f32 %v9728_v16, %v9728_v16  ;;  %v677_v28 = vmul.f32 %v9681_v63, %v676_v20  ;;  %v9795_v18 = vpop.eup %8506 }
 0x231   : > { %v367_v30 = vmul.f32 %v9731_v51, %v9731_v51  ;;  %8508 = vrsqrt.f32 %v9734_v33  ;;  %vm689_vm1 = vweird.f32 %v9707_v46  ;;  %vm709_vm6 = vweird.f32 %v9795_v18 }
 0x232   : > { %v684_v55 = vmul.f32 %v9707_v46, %v683_v15  ;;  %269 = vadd.xlane.f32.xlu0 %v205_v10  ;;  %v9758_v6 = vmul.f32 0.70710677, %v9737_v48  ;;  %428 = vadd.xlane.f32.xlu2 %v369_v29  ;;  %v681_v37 = vsel %vm9773_vm14, %v9681_v63, %v677_v28  ;;  %v1398_v15 = vmul.f32 %v1397_v21, %v9712_v1  ;;  %vm9843_vm4 = vmor %vm688_vm3, %vm689_vm1 }
 0x233   : > { %v9739_v43 = vpop.xlane.xlu2 %418  ;;  %v264_v44 = vpop.xlane.xlu1 %263  ;;  %424 = vadd.xlane.f32.xlu1 %v367_v30  ;;  %v1436_v10 = vmul.f32 2.1237322e-06, %v9777_v19  ;;  %v839_v20 = vmul.f32 %v681_v37, %v9278_v40  ;;  %v871_v29 = vmul.f32 %v9076_v58, %v838_v9  ;;  %vm718_vm7 = vweird.f32 %v9734_v33  ;;  %vm9927_vm10 = vmor %vm708_vm5, %vm709_vm6 }
 0x234   : > { %v260_v24 = vpop.xlane.xlu0 %259  ;;  %v306_v59 = vmul.f32 %v8928_v13, %v264_v44  ;;  %v1474_v17 = vmul.f32 %v9758_v6, %v9758_v6  ;;  %v685_v5 = vmul.f32 0.5, %v684_v55  ;;  %v1399_v44 = vadd.f32 0.0036580483, %v1398_v15 }
 0x235   : > { %v304_v49 = vmul.f32 %v8928_v13, %v260_v24  ;;  %v703_v24 = vmul.f32 %v9795_v18, %v9725_v50  ;;  %v872_v11 = vmul.f32 %v9076_v58, %v839_v20  ;;  %v1437_v52 = vadd.f32 0.00028619796, %v1436_v10 }
 0x236   : > { %v9780_v56 = vsub.f32 %v9463_v4, %v306_v59  ;;  %v9783_v45 = vmin.f32 %v1474_v17, 16.0  ;;  %v686_v47 = vsub.f32 1.5, %v685_v5  ;;  %v904_v21 = vadd.f32 %v9100_v12, %v871_v29 }
 0x237   : > { %v1032_v57 = vpop.f32.mrf.mxu0  ;;  %v9786_v54 = vsub.f32 %v9454_v61, %v304_v49  ;;  %v9802_v4 = vpop.eup %8508  ;;  %v905_v17 = vadd.f32 %v9100_v12, %v872_v11  ;;  %v697_v5 = vmul.f32 %v9702_v3, %v696_v32  ;;  %v1400_v53 = vmul.f32 %v1399_v44, %v9712_v1 }
 0x238   : > { %16295 = vst [vmem:[#allocation8_spill] sm:$0xff] %v9780_v56  ;;  %v9789_v25 = vadd.f32 %v1032_v57, %v9263_v42  ;;  %v370_v63 = vmul.f32 %v9780_v56, %v9780_v56  ;;  %v1476_v14 = vmul.f32 2.1237322e-06, %v9783_v45  ;;  %v687_v40 = vmul.f32 %v9707_v46, %v686_v47 }
 0x239   : > { %v368_v30 = vmul.f32 %v9786_v54, %v9786_v54  ;;  %v713_v62 = vmul.f32 %v9802_v4, %v9734_v33  ;;  %v704_v9 = vmul.f32 %v9795_v18, %v703_v24  ;;  %v944_v60 = vpack.c.bf16 %v905_v17, %v904_v21 }
 0x23a   : > { %v9800_v61 = vmul.f32 0.70710677, %v9789_v25  ;;  %430 = vadd.xlane.f32.xlu0 %v370_v63  ;;  %v1477_v22 = vadd.f32 0.00028619796, %v1476_v14  ;;  %v691_v32 = vsel %vm9843_vm4, %v9707_v46, %v687_v40  ;;  %v1438_v10 = vmul.f32 %v1437_v52, %v9777_v19 }
 0x23b   : > { %v266_v2 = vpop.xlane.xlu2 %265  ;;  %426 = vadd.xlane.f32.xlu1 %v368_v30  ;;  %1049 = vmatmul.bf16.gmra.mxu0 %v944_v60  ;;  %v701_v14 = vsel %vm9834_vm2, %v9702_v3, %v697_v5  ;;  %v840_v44 = vmul.f32 %v691_v32, %v9335_v35  ;;  %v9868_v46 = vmul.f32 0.5, %v9674_v36  ;;  %v705_v24 = vmul.f32 0.5, %v704_v9 }
 0x23c   : > { %v1514_v55 = vmul.f32 %v9800_v61, %v9800_v61  ;;  %v307_v31 = vmul.f32 %v8928_v13, %v266_v2  ;;  %v714_v2 = vmul.f32 %v9802_v4, %v713_v62  ;;  %v1478_v20 = vmul.f32 %v1477_v22, %v9783_v45 }
 0x23d   : > { %v1439_v62 = vadd.f32 0.0036580483, %v1438_v10  ;;  %v460_v36 = vmul.f32 %v9739_v43, %v8928_v13  ;;  %v1407_v52 = vmul.f32 3.8918573e-05, %v9712_v1  ;;  %v9885_v17 = vmul.f32 0.5, %v9705_v0 }
 0x23e   : > { %v9822_v28 = vmin.f32 %v1514_v55, 16.0  ;;  %v9827_v49 = vsub.f32 %v9510_v26, %v307_v31  ;;  %v1401_v55 = vadd.f32 0.05243302, %v1400_v53  ;;  %v715_v11 = vmul.f32 0.5, %v714_v2 }
 0x23f   : > { %v1035_v59 = vpop.f32.mrf.mxu0  ;;  %v1479_v35 = vadd.f32 0.0036580483, %v1478_v20  ;;  %v873_v57 = vmul.f32 %v9076_v58, %v840_v44  ;;  %v706_v53 = vsub.f32 1.5, %v705_v24  ;;  %v1440_v9 = vmul.f32 %v1439_v62, %v9777_v19 }
 0x240   : > { %16296 = vst [vmem:[#allocation9_spill] sm:$0xff] %v9827_v49  ;;  %v1516_v37 = vmul.f32 2.1237322e-06, %v9822_v28  ;;  %v9850_v47 = vadd.f32 %v1035_v59, %v9263_v42  ;;  %v371_v39 = vmul.f32 %v9827_v49, %v9827_v49  ;;  %v841_v59 = vmul.f32 %v701_v14, %v9281_v41 }
 0x241   : > { %v1402_v21 = vmul.f32 %v1401_v55, %v9712_v1  ;;  %v716_v41 = vsub.f32 1.5, %v715_v11  ;;  %vm719_vm8 = vweird.f32 %v9802_v4  ;;  %v1480_v26 = vmul.f32 %v1479_v35, %v9783_v45 }
 0x242   : > { %v1517_v29 = vadd.f32 0.00028619796, %v1516_v37  ;;  %v9871_v31 = vmul.f32 0.70710677, %v9850_v47  ;;  %v874_v0 = vmul.f32 %v9076_v58, %v841_v59  ;;  %v9900_v37 = vadd.f32 1e-05, %v460_v36  ;;  %vm9912_vm9 = vmor %vm718_vm7, %vm719_vm8 }
 0x243   : > { %v268_v15 = vpop.xlane.xlu2 %267  ;;  %432 = vadd.xlane.f32.xlu1 %v371_v39  ;;  %v1408_v60 = vadd.f32 0.001143296, %v1407_v52  ;;  %v906_v39 = vadd.f32 %v9100_v12, %v873_v57  ;;  %v1447_v32 = vmul.f32 3.8918573e-05, %v9777_v19  ;;  %v717_v10 = vmul.f32 %v9802_v4, %v716_v41 }
 0x244   : > { %v308_v63 = vmul.f32 %v8928_v13, %v268_v15  ;;  %v1518_v5 = vmul.f32 %v1517_v29, %v9822_v28  ;;  %v1554_v22 = vmul.f32 %v9871_v31, %v9871_v31  ;;  %v1403_v15 = vadd.f32 0.18741608, %v1402_v21 }
 0x245   : > { %v1409_v14 = vmul.f32 %v1408_v60, %v9712_v1  ;;  %v1441_v55 = vadd.f32 0.05243302, %v1440_v9  ;;  %v9917_v44 = vmul.f32 0.5, %v9737_v48  ;;  %v907_v24 = vadd.f32 %v9100_v12, %v874_v0 }
 0x246   : > { %v9864_v30 = vsub.f32 %v9542_v8, %v308_v63  ;;  %v1519_v2 = vadd.f32 0.0036580483, %v1518_v5  ;;  %v9905_v63 = vmin.f32 %v1554_v22, 16.0  ;;  %v707_v62 = vmul.f32 %v9795_v18, %v706_v53 }
 0x247   : > { %v1037_v40 = vpop.f32.mrf.mxu0  ;;  %8510 = vrsqrt.f32 %v9900_v37  ;;  %v1410_v59 = vadd.f32 0.014752088, %v1409_v14  ;;  %v1404_v35 = vmul.f32 %v1403_v15, %v9712_v1  ;;  %v945_v36 = vpack.c.bf16 %v907_v24, %v906_v39 }
 0x248   : > { %16301 = vst [vmem:[#allocation10_spill] sm:$0xff] %v9864_v30  ;;  %v9874_v3 = vadd.f32 %v1037_v40, %v9263_v42  ;;  %v372_v8 = vmul.f32 %v9864_v30, %v9864_v30  ;;  %v1448_v40 = vadd.f32 0.001143296, %v1447_v32  ;;  %v1520_v48 = vmul.f32 %v1519_v2, %v9822_v28 }
 0x249   : > { %v1556_v21 = vmul.f32 2.1237322e-06, %v9905_v63  ;;  %v721_v57 = vsel %vm9912_vm9, %v9802_v4, %v717_v10  ;;  %v1411_v41 = vmul.f32 %v1410_v59, %v9712_v1  ;;  %v1442_v50 = vmul.f32 %v1441_v55, %v9777_v19 }
 0x24a   : > { %434 = vadd.xlane.f32.xlu2 %v372_v8  ;;  %v9893_v43 = vmul.f32 0.70710677, %v9874_v3  ;;  %v1481_v8 = vadd.f32 0.05243302, %v1480_v26  ;;  %v1449_v52 = vmul.f32 %v1448_v40, %v9777_v19  ;;  %v1487_v9 = vmul.f32 3.8918573e-05, %v9783_v45 }
 0x24b   : > { %1054 = vmatmul.bf16.gmra.mxu0 %v945_v36  ;;  %v711_v26 = vsel %vm9927_vm10, %v9795_v18, %v707_v62  ;;  %v1412_v60 = vadd.f32 0.112945676, %v1411_v41  ;;  %v1527_v4 = vmul.f32 3.8918573e-05, %v9822_v28  ;;  %v1521_v15 = vadd.f32 0.05243302, %v1520_v48 }
 0x24c   : > { %v1594_v20 = vmul.f32 %v9893_v43, %v9893_v43  ;;  %v1450_v53 = vadd.f32 0.014752088, %v1449_v52  ;;  %v1482_v0 = vmul.f32 %v1481_v8, %v9783_v45  ;;  %v843_v2 = vmul.f32 %v721_v57, %v9403_v38 }
 0x24d   : > { %v1488_v32 = vadd.f32 0.001143296, %v1487_v9  ;;  %v9952_v10 = vpop.eup %8510  ;;  %v1413_v55 = vmul.f32 %v1412_v60, %v9712_v1  ;;  %v1528_v29 = vadd.f32 0.001143296, %v1527_v4  ;;  %v1443_v24 = vadd.f32 0.18741608, %v1442_v50 }
 0x24e   : > { %v9934_v5 = vmin.f32 %v1594_v20, 16.0  ;;  %v1451_v39 = vmul.f32 %v1450_v53, %v9777_v19  ;;  %v1557_v20 = vadd.f32 0.00028619796, %v1556_v21  ;;  %v1483_v8 = vadd.f32 0.18741608, %v1482_v0 }
 0x24f   : > { %v1040_v11 = vpop.f32.mrf.mxu0  ;;  %v1414_v38 = vadd.f32 0.4994258, %v1413_v55  ;;  %v1489_v59 = vmul.f32 %v1488_v32, %v9783_v45  ;;  %v1529_v33 = vmul.f32 %v1528_v29, %v9822_v28  ;;  %v723_v48 = vmul.f32 %v9952_v10, %v9900_v37 }
 0x250   : > { %v9942_v22 = vadd.f32 %v1040_v11, %v9263_v42  ;;  %v1596_v14 = vmul.f32 2.1237322e-06, %v9934_v5  ;;  %v16306_v11 = vld [vmem:[#allocation5_spill] sm:$0xff]  ;;  %v1452_v62 = vadd.f32 0.112945676, %v1451_v39  ;;  %v1522_v36 = vmul.f32 %v1521_v15, %v9822_v28 }
 0x251   : > { %v842_v40 = vmul.f32 %v711_v26, %v16306_v11  ;;  %v876_v21 = vmul.f32 %v9076_v58, %v843_v2  ;;  %v1558_v41 = vmul.f32 %v1557_v20, %v9905_v63  ;;  %v1415_v53 = vmul.f32 %v1414_v38, %v9712_v1 }
 0x252   : > { %v9957_v18 = vmul.f32 0.70710677, %v9942_v22  ;;  %v1453_v57 = vmul.f32 %v1452_v62, %v9777_v19  ;;  %v1597_v50 = vadd.f32 0.00028619796, %v1596_v14  ;;  %v1490_v9 = vadd.f32 0.014752088, %v1489_v59 }
 0x253   : > { %v1444_v0 = vmul.f32 %v1443_v24, %v9777_v19  ;;  %v875_v60 = vmul.f32 %v9076_v58, %v842_v40  ;;  %v1484_v15 = vmul.f32 %v1483_v8, %v9783_v45  ;;  %v9977_v39 = vadd.f32 1.0, %v1415_v53 }
 0x254   : > { %v1634_v26 = vmul.f32 %v9957_v18, %v9957_v18  ;;  %v1454_v4 = vadd.f32 0.4994258, %v1453_v57  ;;  %v1530_v32 = vadd.f32 0.014752088, %v1529_v33  ;;  %v1523_v20 = vadd.f32 0.18741608, %v1522_v36 }
 0x255   : > { %v909_v1 = vadd.f32 %v9100_v12, %v876_v21  ;;  %v1491_v55 = vmul.f32 %v1490_v9, %v9783_v45  ;;  %v1405_v29 = vadd.f32 1.1283791, %v1404_v35  ;;  %v1559_v24 = vadd.f32 0.0036580483, %v1558_v41 }
 0x256   : > { %v1455_v14 = vmul.f32 %v1454_v4, %v9777_v19  ;;  %v1598_v11 = vmul.f32 %v1597_v50, %v9934_v5  ;;  %8512 = vrcp.f32 %v9977_v39  ;;  %v724_v40 = vmul.f32 %v9952_v10, %v723_v48 }
 0x257   : > { %v1042_v52 = vpop.f32.mrf.mxu0  ;;  %v9985_v62 = vmin.f32 %v1634_v26, 16.0  ;;  %v908_v8 = vadd.f32 %v9100_v12, %v875_v60  ;;  %v1445_v59 = vadd.f32 1.1283791, %v1444_v0  ;;  %v1492_v19 = vadd.f32 0.112945676, %v1491_v55 }
 0x258   : > { %v9975_v2 = vadd.f32 %v1042_v52, %v9263_v42  ;;  %v9988_v38 = vadd.f32 1.0, %v1455_v14  ;;  %v1531_v35 = vmul.f32 %v1530_v32, %v9822_v28  ;;  %v1485_v36 = vadd.f32 1.1283791, %v1484_v15 }
 0x259   : > { %v1524_v52 = vmul.f32 %v1523_v20, %v9822_v28  ;;  %v946_v21 = vpack.c.bf16 %v909_v1, %v908_v8  ;;  %v1406_v48 = vmul.f32 %v1405_v29, %v9692_v34  ;;  %v9998_v57 = vmul.f32 0.5, %v9789_v25 }
 0x25a   : > { %v9991_v33 = vmul.f32 0.70710677, %v9975_v2  ;;  %8514 = vrcp.f32 %v9988_v38  ;;  %v1560_v41 = vmul.f32 %v1559_v24, %v9905_v63  ;;  %v1599_v50 = vadd.f32 0.0036580483, %v1598_v11 }
 0x25b   : > { %v10002_v53 = vmul.f32 0.5, %v9850_v47  ;;  %v1636_v9 = vmul.f32 2.1237322e-06, %v9985_v62  ;;  %1059 = vmatmul.bf16.gmra.mxu0 %v946_v21  ;;  %v1493_v0 = vmul.f32 %v1492_v19, %v9783_v45  ;;  %v1532_v26 = vadd.f32 0.112945676, %v1531_v35 }
 0x25c   : > { %v8513_v60 = vpop.eup %8512  ;;  %v10007_v4 = vmul.f32 %v1445_v59, %v9722_v27  ;;  %v10009_v34 = vmul.f32 0.5, %v724_v40  ;;  %v1674_v25 = vmul.f32 %v9991_v33, %v9991_v33  ;;  %v1567_v15 = vmul.f32 3.8918573e-05, %v9905_v63 }
 0x25d   : > { %v10015_v47 = vmul.f32 %v1485_v36, %v9758_v6  ;;  %v10017_v32 = vadd.f32 1.1283791, %v1524_v52  ;;  %v1418_v20 = vmul.f32 %v8513_v60, %v9977_v39  ;;  %v1494_v1 = vadd.f32 0.4994258, %v1493_v0  ;;  %v8838_v6 = vld [vmem:[%s16191_s1] sm:$0xff] }
 0x25e   : > { %v10020_v14 = vadd.f32 0.05243302, %v1560_v41  ;;  %v1600_v27 = vmul.f32 %v1599_v50, %v9934_v5  ;;  %v1428_v55 = vand.u32 2147483648, %v9977_v39  ;;  %v1533_v29 = vmul.f32 %v1532_v26, %v9822_v28 }
 0x25f   : > { %v1637_v11 = vadd.f32 0.00028619796, %v1636_v9  ;;  %v1419_v40 = vsub.f32 1.0, %v1418_v20  ;;  %v10028_v8 = vperm.slane %v8838_v6, 3  ;;  %v1495_v59 = vmul.f32 %v1494_v1, %v9783_v45 }
 0x260   : > { %v8515_v24 = vpop.eup %8514  ;;  %v10031_v19 = vmin.f32 %v1674_v25, 16.0  ;;  %v1534_v36 = vadd.f32 0.4994258, %v1533_v29  ;;  %v1568_v52 = vadd.f32 0.001143296, %v1567_v15  ;;  %vm1423_vm11 = vweird.f32 %v8513_v60 }
 0x261   : > { %v1458_v35 = vmul.f32 %v8515_v24, %v9988_v38  ;;  %v1420_v21 = vmul.f32 %v8513_v60, %v1419_v40  ;;  %v1426_v41 = vand.u32 2147483647, %v9977_v39  ;;  %v10035_v50 = vadd.f32 1.0, %v1495_v59 }
 0x262   : > { %vm1422_vm12 = vweird.f32 %v9977_v39  ;;  %v1429_v9 = vor.u32 1.1754944e-38, %v1428_v55  ;;  %v1468_v26 = vand.u32 2147483648, %v9988_v38  ;;  %v1535_v15 = vmul.f32 %v1534_v36, %v9822_v28 }
 0x263   : > { %v1459_v0 = vsub.f32 1.0, %v1458_v35  ;;  %v1421_v45 = vadd.f32 %v8513_v60, %v1420_v21  ;;  %8516 = vrcp.f32 %v10035_v50  ;;  %vm1424_vm13 = vmor %vm1422_vm12, %vm1423_vm11  ;;  %vm1463_vm14 = vweird.f32 %v8515_v24 }
 0x264   : > { %v1466_v29 = vand.u32 2147483647, %v9988_v38  ;;  %v1569_v39 = vmul.f32 %v1568_v52, %v9905_v63  ;;  %v1638_v55 = vmul.f32 %v1637_v11, %v9985_v62  ;;  %vm1427_vm15 = vcmp.eq.f32.partialorder %v1426_v41, 8.507059e+37 }
 0x265   : > { %v1460_v1 = vmul.f32 %v8515_v24, %v1459_v0  ;;  %v1425_v40 = vsel %vm1424_vm13, %v8513_v60, %v1421_v45  ;;  %v1676_v59 = vmul.f32 2.1237322e-06, %v10031_v19  ;;  %vm1462_vm0 = vweird.f32 %v9988_v38 }
 0x266   : > { %v2589_v20 = vpop.f32.mrf.mxu1  ;;  %v1430_v35 = vsel %vm1427_vm15, %v1429_v9, %v1425_v40  ;;  %vm1464_vm1 = vmor %vm1462_vm0, %vm1463_vm14  ;;  %v1469_v36 = vor.u32 1.1754944e-38, %v1468_v26  ;;  %v10054_v52 = vadd.f32 1.0, %v1535_v15  ;;  %vm1467_vm2 = vcmp.eq.f32.partialorder %v1466_v29, 8.507059e+37 }
 0x267   : > { %v10040_v25 = vadd.f32 %v2589_v20, %v10028_v8  ;;  %v1461_v21 = vadd.f32 %v8515_v24, %v1460_v1  ;;  %v1431_v28 = vmul.f32 %v1430_v35, %v1406_v48  ;;  %v1506_v60 = vand.u32 2147483647, %v10035_v50 }
 0x268   : > { %v1570_v41 = vadd.f32 0.014752088, %v1569_v39  ;;  %8518 = vrcp.f32 %v10054_v52  ;;  %v10060_v38 = vadd.f32 0.05243302, %v1600_v27  ;;  %v1639_v35 = vadd.f32 0.0036580483, %v1638_v55 }
 0x269   : > { %v10048_v6 = vmul.f32 0.70710677, %v10040_v25  ;;  %v1465_v11 = vsel %vm1464_vm1, %v8515_v24, %v1461_v21  ;;  %v8517_v20 = vpop.eup %8516  ;;  %v8142_v45 = vclamps-f32 %v1431_v28, 1.0  ;;  %v1508_v24 = vand.u32 2147483648, %v10035_v50 }
 0x26a   : > { %v1470_v30 = vsel %vm1467_vm2, %v1469_v36, %v1465_v11  ;;  %v1498_v15 = vmul.f32 %v8517_v20, %v10035_v50  ;;  %v1677_v21 = vadd.f32 0.00028619796, %v1676_v59  ;;  %vm1502_vm3 = vweird.f32 %v10035_v50 }
 0x26b   : > { %v2733_v0 = vmul.f32 %v10048_v6, %v10048_v6  ;;  %v1471_v48 = vmul.f32 %v1470_v30, %v10007_v4  ;;  %v2440_v1 = vadd.f32 1.0, %v8142_v45  ;;  %vm10071_vm4 = vcmp.eq.f32.partialorder %v1506_v60, 8.507059e+37 }
 0x26c   : > { %v1499_v27 = vsub.f32 1.0, %v1498_v15  ;;  %v1571_v4 = vmul.f32 %v1570_v41, %v9905_v63  ;;  %vm1503_vm5 = vweird.f32 %v8517_v20  ;;  %v1509_v15 = vor.u32 1.1754944e-38, %v1508_v24 }
 0x26d   : > { %v10057_v9 = vmin.f32 %v2733_v0, 16.0  ;;  %v8143_v28 = vclamps-f32 %v1471_v48, 1.0  ;;  %v2472_v55 = vmul.f32 %v2440_v1, %v9868_v46  ;;  %vm1504_vm6 = vmor %vm1502_vm3, %vm1503_vm5  ;;  %v1546_v46 = vand.u32 2147483647, %v10054_v52 }
 0x26e   : > { %v2591_v26 = vpop.f32.mrf.mxu1  ;;  %v1500_v45 = vmul.f32 %v8517_v20, %v1499_v27  ;;  %v1572_v1 = vadd.f32 0.112945676, %v1571_v4  ;;  %vm1542_vm8 = vweird.f32 %v10054_v52  ;;  %vm728_vm15 = vweird.f32 %v9900_v37 }
 0x26f   : > { %v2735_v29 = vmul.f32 2.1237322e-06, %v10057_v9  ;;  %v2746_v39 = vmul.f32 3.8918573e-05, %v10057_v9  ;;  %v10068_v40 = vadd.f32 %v2591_v26, %v10028_v8  ;;  %v2441_v0 = vadd.f32 1.0, %v8143_v28  ;;  %v8519_v26 = vpop.eup %8518 }
 0x270   : > { %v1501_v56 = vadd.f32 %v8517_v20, %v1500_v45  ;;  %v1538_v41 = vmul.f32 %v8519_v26, %v10054_v52  ;;  %v1526_v28 = vmul.f32 %v10017_v32, %v9800_v61  ;;  %v1548_v61 = vand.u32 2147483648, %v10054_v52 }
 0x271   : > { %v2747_v36 = vadd.f32 0.001143296, %v2746_v39  ;;  %v10077_v11 = vmul.f32 0.70710677, %v10068_v40  ;;  %v2736_v59 = vadd.f32 0.00028619796, %v2735_v29  ;;  %v2473_v60 = vmul.f32 %v2441_v0, %v9885_v17 }
 0x272   : > { %v1505_v17 = vsel %vm1504_vm6, %v8517_v20, %v1501_v56  ;;  %v1640_v0 = vmul.f32 %v1639_v35, %v9985_v62  ;;  %vm1543_vm7 = vweird.f32 %v8519_v26  ;;  %v1573_v20 = vmul.f32 %v1572_v1, %v9905_v63 }
 0x273   : > { %v2748_v48 = vmul.f32 %v2747_v36, %v10057_v9  ;;  %v2773_v39 = vmul.f32 %v10077_v11, %v10077_v11  ;;  %v2518_v29 = vpack.c.bf16 %v2473_v60, %v2472_v55  ;;  %v1539_v36 = vsub.f32 1.0, %v1538_v41  ;;  %vm1544_vm10 = vmor %vm1542_vm8, %vm1543_vm7 }
 0x274   : > { %v1510_v49 = vsel %vm10071_vm4, %v1509_v15, %v1505_v17  ;;  %v1678_v55 = vmul.f32 %v1677_v21, %v10031_v19  ;;  %v2737_v35 = vmul.f32 %v2736_v59, %v10057_v9  ;;  %vm1547_vm9 = vcmp.eq.f32.partialorder %v1546_v46, 8.507059e+37 }
 0x275   : > { %v2749_v27 = vadd.f32 0.014752088, %v2748_v48  ;;  %v10090_v24 = vmin.f32 %v2773_v39, 16.0  ;;  %2603 = vmatmul.bf16.gmra.mxu1 %v2518_v29  ;;  %v1511_v50 = vmul.f32 %v1510_v49, %v10015_v47  ;;  %v1540_v4 = vmul.f32 %v8519_v26, %v1539_v36 }
 0x276   : > { %v1549_v39 = vor.u32 1.1754944e-38, %v1548_v61  ;;  %v1574_v47 = vadd.f32 0.4994258, %v1573_v20  ;;  %v1562_v59 = vmul.f32 %v10020_v14, %v9905_v63  ;;  %v1679_v1 = vadd.f32 0.0036580483, %v1678_v55 }
 0x277   : > { %v2750_v45 = vmul.f32 %v2749_v27, %v10057_v9  ;;  %v2786_v32 = vmul.f32 3.8918573e-05, %v10090_v24  ;;  %v1541_v48 = vadd.f32 %v8519_v26, %v1540_v4  ;;  %v2775_v21 = vmul.f32 2.1237322e-06, %v10090_v24 }
 0x278   : > { %v2594_v15 = vpop.f32.mrf.mxu1  ;;  %v8144_v41 = vclamps-f32 %v1511_v50, 1.0  ;;  %v1602_v17 = vmul.f32 %v10060_v38, %v9934_v5  ;;  %v2738_v36 = vadd.f32 0.0036580483, %v2737_v35  ;;  %vm729_vm0 = vweird.f32 %v9952_v10 }
 0x279   : > { %v2751_v56 = vadd.f32 0.112945676, %v2750_v45  ;;  %v2787_v30 = vadd.f32 0.001143296, %v2786_v32  ;;  %v10105_v49 = vadd.f32 %v2594_v15, %v10028_v8  ;;  %v1545_v27 = vsel %vm1544_vm10, %v8519_v26, %v1541_v48  ;;  %vm10290_vm8 = vmor %vm728_vm15, %vm729_vm0 }
 0x27a   : > { %v1550_v29 = vsel %vm1547_vm9, %v1549_v39, %v1545_v27  ;;  %v1641_v32 = vadd.f32 0.05243302, %v1640_v0  ;;  %v1575_v26 = vmul.f32 %v1574_v47, %v9905_v63  ;;  %v2776_v50 = vadd.f32 0.00028619796, %v2775_v21 }
 0x27b   : > { %v2752_v60 = vmul.f32 %v2751_v56, %v10057_v9  ;;  %v2788_v52 = vmul.f32 %v2787_v30, %v10090_v24  ;;  %v1551_v61 = vmul.f32 %v1550_v29, %v1526_v28  ;;  %v10115_v56 = vmul.f32 0.70710677, %v10105_v49 }
 0x27c   : > { %v2442_v20 = vadd.f32 1.0, %v8144_v41  ;;  %v1680_v30 = vmul.f32 %v1679_v1, %v10031_v19  ;;  %v1607_v28 = vmul.f32 3.8918573e-05, %v9934_v5  ;;  %v1563_v0 = vadd.f32 0.18741608, %v1562_v59 }
 0x27d   : > { %v2753_v46 = vadd.f32 0.4994258, %v2752_v60  ;;  %v2789_v45 = vadd.f32 0.014752088, %v2788_v52  ;;  %v8145_v55 = vclamps-f32 %v1551_v61, 1.0  ;;  %v2813_v38 = vmul.f32 %v10115_v56, %v10115_v56 }
 0x27e   : > { %v2739_v35 = vmul.f32 %v2738_v36, %v10057_v9  ;;  %v1603_v47 = vadd.f32 0.18741608, %v1602_v17  ;;  %v1642_v21 = vmul.f32 %v1641_v32, %v9985_v62  ;;  %v10128_v52 = vadd.f32 1.0, %v1575_v26 }
 0x27f   : > { %v2754_v4 = vmul.f32 %v2753_v46, %v10057_v9  ;;  %v2790_v14 = vmul.f32 %v2789_v45, %v10090_v24  ;;  %v2443_v60 = vadd.f32 1.0, %v8145_v55  ;;  %v2777_v41 = vmul.f32 %v2776_v50, %v10090_v24 }
 0x280   : > { %v2596_v39 = vpop.f32.mrf.mxu1  ;;  %v2474_v1 = vmul.f32 %v2442_v20, %v9917_v44  ;;  %v1681_v46 = vadd.f32 0.05243302, %v1680_v30  ;;  %v10134_v29 = vmin.f32 %v2813_v38, 16.0  ;;  %v1608_v17 = vadd.f32 0.001143296, %v1607_v28 }
 0x281   : > { %v10120_v48 = vadd.f32 1.0, %v2754_v4  ;;  %v2791_v15 = vadd.f32 0.112945676, %v2790_v14  ;;  %v2475_v59 = vmul.f32 %v2443_v60, %v9998_v57  ;;  %v10137_v36 = vadd.f32 %v2596_v39, %v10028_v8 }
 0x282   : > { %v1564_v45 = vmul.f32 %v1563_v0, %v9905_v63  ;;  %v2740_v61 = vadd.f32 0.05243302, %v2739_v35  ;;  %v1604_v26 = vmul.f32 %v1603_v47, %v9934_v5  ;;  %v2815_v50 = vmul.f32 2.1237322e-06, %v10134_v29 }
 0x283   : > { %8520 = vrcp.f32 %v10120_v48  ;;  %v2792_v27 = vmul.f32 %v2791_v15, %v10090_v24  ;;  %v2519_v4 = vpack.c.bf16 %v2475_v59, %v2474_v1  ;;  %v2826_v44 = vmul.f32 3.8918573e-05, %v10134_v29 }
 0x284   : > { %8522 = vrcp.f32 %v10128_v52  ;;  %v1643_v57 = vadd.f32 0.18741608, %v1642_v21  ;;  %v2778_v14 = vadd.f32 0.0036580483, %v2777_v41  ;;  %v10146_v20 = vmul.f32 0.70710677, %v10137_v36 }
 0x285   : > { %v2793_v32 = vadd.f32 0.4994258, %v2792_v27  ;;  %2608 = vmatmul.bf16.gmra.mxu1 %v2519_v4  ;;  %v1682_v30 = vmul.f32 %v1681_v46, %v10031_v19  ;;  %v2816_v38 = vadd.f32 0.00028619796, %v2815_v50  ;;  %v2827_v28 = vadd.f32 0.001143296, %v2826_v44 }
 0x286   : > { %v1609_v0 = vmul.f32 %v1608_v17, %v9934_v5  ;;  %v726_v35 = vsub.f32 1.5, %v10009_v34  ;;  %v2741_v15 = vmul.f32 %v2740_v61, %v10057_v9  ;;  %v1565_v47 = vadd.f32 1.1283791, %v1564_v45 }
 0x287   : > { %v2794_v55 = vmul.f32 %v2793_v32, %v10090_v24  ;;  %v2817_v21 = vmul.f32 %v2816_v38, %v10134_v29  ;;  %v2828_v41 = vmul.f32 %v2827_v28, %v10134_v29  ;;  %v2853_v27 = vmul.f32 %v10146_v20, %v10146_v20 }
 0x288   : > { %v1605_v1 = vadd.f32 1.1283791, %v1604_v26  ;;  %v2779_v46 = vmul.f32 %v2778_v14, %v10090_v24  ;;  %v1644_v17 = vmul.f32 %v1643_v57, %v9985_v62  ;;  %v1683_v61 = vadd.f32 0.18741608, %v1682_v30 }
 0x289   : > { %v10148_v63 = vpop.eup %8520  ;;  %v10156_v39 = vadd.f32 1.0, %v2794_v55  ;;  %v10167_v32 = vmin.f32 %v2853_v27, 16.0  ;;  %v1610_v45 = vadd.f32 0.014752088, %v1609_v0  ;;  %v10170_v4 = vmul.f32 %v9952_v10, %v726_v35 }
 0x28a   : > { %v2757_v60 = vmul.f32 %v10148_v63, %v10120_v48  ;;  %v10164_v34 = vpop.eup %8522  ;;  %v2742_v50 = vadd.f32 0.18741608, %v2741_v15  ;;  %v2818_v44 = vadd.f32 0.0036580483, %v2817_v21  ;;  %v2829_v55 = vadd.f32 0.014752088, %v2828_v41 }
 0x28b   : > { %8524 = vrcp.f32 %v10156_v39  ;;  %v10173_v26 = vmul.f32 0.5, %v9874_v3  ;;  %v10176_v14 = vmul.f32 0.5, %v9942_v22  ;;  %v10179_v38 = vmul.f32 0.5, %v9975_v2 }
 0x28c   : > { %v2758_v59 = vsub.f32 1.0, %v2757_v60  ;;  %v2780_v30 = vadd.f32 0.05243302, %v2779_v46  ;;  %v2830_v28 = vmul.f32 %v2829_v55, %v10134_v29  ;;  %v2866_v0 = vmul.f32 3.8918573e-05, %v10167_v32 }
 0x28d   : > { %v1578_v35 = vmul.f32 %v10164_v34, %v10128_v52  ;;  %v10187_v15 = vmul.f32 %v1565_v47, %v9871_v31  ;;  %v10190_v3 = vmul.f32 %v1605_v1, %v9893_v43  ;;  %v1645_v22 = vadd.f32 1.1283791, %v1644_v17 }
 0x28e   : > { %v2759_v57 = vmul.f32 %v10148_v63, %v2758_v59  ;;  %v1684_v2 = vmul.f32 %v1683_v61, %v10031_v19  ;;  %v2743_v21 = vmul.f32 %v2742_v50, %v10057_v9  ;;  %v2819_v41 = vmul.f32 %v2818_v44, %v10134_v29 }
 0x28f   : > { %v2867_v27 = vadd.f32 0.001143296, %v2866_v0  ;;  %v1611_v59 = vmul.f32 %v1610_v45, %v9934_v5  ;;  %vm2762_vm11 = vweird.f32 %v10148_v63  ;;  %v2831_v31 = vadd.f32 0.112945676, %v2830_v28 }
 0x290   : > { %v2760_v46 = vadd.f32 %v10148_v63, %v2759_v57  ;;  %v2855_v43 = vmul.f32 2.1237322e-06, %v10167_v32  ;;  %v2767_v47 = vand.u32 2147483648, %v10120_v48  ;;  %v2781_v1 = vmul.f32 %v2780_v30, %v10090_v24 }
 0x291   : > { %v10193_v60 = vpop.eup %8524  ;;  %v2868_v17 = vmul.f32 %v2867_v27, %v10167_v32  ;;  %v1579_v61 = vsub.f32 1.0, %v1578_v35  ;;  %v1685_v9 = vadd.f32 1.1283791, %v1684_v2  ;;  %vm2761_vm12 = vweird.f32 %v10120_v48 }
 0x292   : > { %v2765_v50 = vand.u32 2147483647, %v10120_v48  ;;  %v2797_v45 = vmul.f32 %v10193_v60, %v10156_v39  ;;  %v10209_v44 = vmul.f32 %v1645_v22, %v9957_v18  ;;  %v2744_v55 = vadd.f32 1.1283791, %v2743_v21  ;;  %vm10211_vm13 = vmor %vm2761_vm12, %vm2762_vm11 }
 0x293   : > { %v2820_v30 = vadd.f32 0.05243302, %v2819_v41  ;;  %v1612_v28 = vadd.f32 0.112945676, %v1611_v59  ;;  %v2764_v0 = vsel %vm10211_vm13, %v10148_v63, %v2760_v46  ;;  %v2832_v35 = vmul.f32 %v2831_v31, %v10134_v29 }
 0x294   : > { %v2856_v48 = vadd.f32 0.00028619796, %v2855_v43  ;;  %v2869_v2 = vadd.f32 0.014752088, %v2868_v17  ;;  %v10220_v27 = vmul.f32 0.5, %v10040_v25  ;;  %v2768_v18 = vor.u32 1.1754944e-38, %v2767_v47 }
 0x295   : > { %v2782_v22 = vadd.f32 0.18741608, %v2781_v1  ;;  %v1580_v21 = vmul.f32 %v10164_v34, %v1579_v61  ;;  %vm2766_vm14 = vcmp.eq.f32.partialorder %v2765_v50, 8.507059e+37  ;;  %v2798_v16 = vsub.f32 1.0, %v2797_v45 }
 0x296   : > { %v2870_v41 = vmul.f32 %v2869_v2, %v10167_v32  ;;  %v1586_v59 = vand.u32 2147483647, %v10128_v52  ;;  %v10228_v63 = vmul.f32 %v1685_v9, %v9991_v33  ;;  %v2745_v25 = vmul.f32 %v2744_v55, %v10048_v6 }
 0x297   : > { %v2769_v46 = vsel %vm2766_vm14, %v2768_v18, %v2764_v0  ;;  %v1613_v31 = vmul.f32 %v1612_v28, %v9934_v5  ;;  %v2821_v43 = vmul.f32 %v2820_v30, %v10134_v29  ;;  %v2833_v47 = vadd.f32 0.4994258, %v2832_v35 }
 0x298   : > { %v2857_v1 = vmul.f32 %v2856_v48, %v10167_v32  ;;  %v2871_v17 = vadd.f32 0.112945676, %v2870_v41  ;;  %v2783_v61 = vmul.f32 %v2782_v22, %v10090_v24  ;;  %v1581_v50 = vadd.f32 %v10164_v34, %v1580_v21  ;;  %v2599_v48 = vpop.f32.mrf.mxu1 }
 0x299   : > { %vm1582_vm1 = vweird.f32 %v10128_v52  ;;  %vm1583_vm2 = vweird.f32 %v10164_v34  ;;  %v2799_v33 = vmul.f32 %v10193_v60, %v2798_v16  ;;  %vm10240_vm3 = vcmp.eq.f32.partialorder %v1586_v59, 8.507059e+37 }
 0x29a   : > { %v2872_v6 = vmul.f32 %v2871_v17, %v10167_v32  ;;  %v1588_v45 = vand.u32 2147483648, %v10128_v52  ;;  %v2770_v55 = vmul.f32 %v2769_v46, %v2745_v25  ;;  %vm2801_vm4 = vweird.f32 %v10156_v39  ;;  %vm10248_vm5 = vmor %vm1582_vm1, %vm1583_vm2 }
 0x29b   : > { %v1614_v24 = vadd.f32 0.4994258, %v1613_v31  ;;  %v1647_v57 = vmul.f32 3.8918573e-05, %v9985_v62  ;;  %v2822_v30 = vadd.f32 0.18741608, %v2821_v43  ;;  %v2834_v28 = vmul.f32 %v2833_v47, %v10134_v29 }
 0x29c   : > { %v2858_v0 = vadd.f32 0.0036580483, %v2857_v1  ;;  %v2873_v35 = vadd.f32 0.4994258, %v2872_v6  ;;  %v1585_v52 = vsel %vm10248_vm5, %v10164_v34, %v1581_v50  ;;  %v10257_v18 = vadd.f32 %v2599_v48, %v10028_v8 }
 0x29d   : > { %v1615_v2 = vmul.f32 %v1614_v24, %v9934_v5  ;;  %v1648_v22 = vadd.f32 0.001143296, %v1647_v57  ;;  %v2800_v21 = vadd.f32 %v10193_v60, %v2799_v33  ;;  %vm2802_vm6 = vweird.f32 %v10193_v60 }
 0x29e   : > { %v2874_v41 = vmul.f32 %v2873_v35, %v10167_v32  ;;  %v1589_v59 = vor.u32 1.1754944e-38, %v1588_v45  ;;  %v8216_v25 = vclamps-f32 %v2770_v55, 1.0  ;;  %v2807_v46 = vand.u32 2147483648, %v10156_v39  ;;  %vm10279_vm7 = vmor %vm2801_vm4, %vm2802_vm6 }
 0x29f   : > { %v10263_v31 = vadd.f32 1.0, %v1615_v2  ;;  %v10266_v34 = vmul.f32 0.70710677, %v10257_v18  ;;  %v2805_v5 = vand.u32 2147483647, %v10156_v39  ;;  %v2823_v43 = vmul.f32 %v2822_v30, %v10134_v29 }
 0x2a0   : > { %v10270_v47 = vadd.f32 1.0, %v2834_v28  ;;  %v1590_v1 = vsel %vm10240_vm3, %v1589_v59, %v1585_v52  ;;  %v10275_v17 = vmul.f32 0.5, %v10068_v40  ;;  %v2859_v33 = vmul.f32 %v2858_v0, %v10167_v32 }
 0x2a1   : > { %8526 = vrcp.f32 %v10263_v31  ;;  %v1649_v29 = vmul.f32 %v1648_v22, %v9985_v62  ;;  %v2804_v40 = vsel %vm10279_vm7, %v10193_v60, %v2800_v21  ;;  %v10298_v39 = vmul.f32 0.5, %v10105_v49 }
 0x2a2   : > { %v10300_v9 = vadd.f32 1.0, %v2874_v41  ;;  %v2893_v45 = vmul.f32 %v10266_v34, %v10266_v34  ;;  %v4013_v55 = vadd.f32 1.0, %v8216_v25  ;;  %v2784_v24 = vadd.f32 1.1283791, %v2783_v61 }
 0x2a3   : > { %v2808_v57 = vor.u32 1.1754944e-38, %v2807_v46  ;;  %v1591_v37 = vmul.f32 %v1590_v1, %v10187_v15  ;;  %vm2806_vm9 = vcmp.eq.f32.partialorder %v2805_v5, 8.507059e+37  ;;  %v2824_v30 = vadd.f32 1.1283791, %v2823_v43  ;;  %v2601_v5 = vpop.f32.mrf.mxu1 }
 0x2a4   : > { %8528 = vrcp.f32 %v10270_v47  ;;  %v10306_v28 = vmin.f32 %v2893_v45, 16.0  ;;  %v2860_v0 = vadd.f32 0.05243302, %v2859_v33  ;;  %v1650_v49 = vadd.f32 0.014752088, %v1649_v29 }
 0x2a5   : > { %v2809_v60 = vsel %vm2806_vm9, %v2808_v57, %v2804_v40  ;;  %8530 = vrcp.f32 %v10300_v9  ;;  %v1687_v16 = vmul.f32 3.8918573e-05, %v10031_v19  ;;  %v10317_v52 = vmul.f32 %v4013_v55, %v10220_v27 }
 0x2a6   : > { %v2895_v61 = vmul.f32 2.1237322e-06, %v10306_v28  ;;  %v2906_v15 = vmul.f32 3.8918573e-05, %v10306_v28  ;;  %v2785_v2 = vmul.f32 %v2784_v24, %v10077_v11  ;;  %v8146_v22 = vclamps-f32 %v1591_v37, 1.0 }
 0x2a7   : > { %v8527_v48 = vpop.eup %8526  ;;  %v1651_v21 = vmul.f32 %v1650_v49, %v9985_v62  ;;  %v10322_v41 = vmul.f32 %v2824_v30, %v10115_v56  ;;  %v10329_v27 = vadd.f32 %v2601_v5, %v10028_v8  ;;  %v2861_v33 = vmul.f32 %v2860_v0, %v10167_v32 }
 0x2a8   : > { %v1618_v25 = vmul.f32 %v8527_v48, %v10263_v31  ;;  %v2896_v46 = vadd.f32 0.00028619796, %v2895_v61  ;;  %v10326_v43 = vmul.f32 %v2809_v60, %v2785_v2  ;;  %v2907_v1 = vadd.f32 0.001143296, %v2906_v15 }
 0x2a9   : > { %v1652_v50 = vadd.f32 0.112945676, %v1651_v21  ;;  %v1628_v56 = vand.u32 2147483648, %v10263_v31  ;;  %v1688_v40 = vadd.f32 0.001143296, %v1687_v16  ;;  %v2444_v45 = vadd.f32 1.0, %v8146_v22 }
 0x2aa   : > { %v10331_v11 = vpop.eup %8528  ;;  %v1619_v29 = vsub.f32 1.0, %v1618_v25  ;;  %v2897_v55 = vmul.f32 %v2896_v46, %v10306_v28  ;;  %v2908_v24 = vmul.f32 %v2907_v1, %v10306_v28  ;;  %v10338_v57 = vmul.f32 0.70710677, %v10329_v27 }
 0x2ab   : > { %v10340_v37 = vpop.eup %8530  ;;  %vm1623_vm10 = vweird.f32 %v8527_v48  ;;  %v1626_v60 = vand.u32 2147483647, %v10263_v31  ;;  %v1653_v0 = vmul.f32 %v1652_v50, %v9985_v62  ;;  %v2837_v49 = vmul.f32 %v10331_v11, %v10270_v47 }
 0x2ac   : > { %v1620_v30 = vmul.f32 %v8527_v48, %v1619_v29  ;;  %vm1622_vm11 = vweird.f32 %v10263_v31  ;;  %v2909_v61 = vadd.f32 0.014752088, %v2908_v24  ;;  %v2933_v15 = vmul.f32 %v10338_v57, %v10338_v57 }
 0x2ad   : > { %v1629_v2 = vor.u32 1.1754944e-38, %v1628_v56  ;;  %v1654_v22 = vadd.f32 0.4994258, %v1653_v0  ;;  %v1689_v21 = vmul.f32 %v1688_v40, %v10031_v19  ;;  %v2877_v25 = vmul.f32 %v10340_v37, %v10300_v9  ;;  %vm1624_vm12 = vmor %vm1622_vm11, %vm1623_vm10 }
 0x2ae   : > { %v1621_v16 = vadd.f32 %v8527_v48, %v1620_v30  ;;  %v2898_v46 = vadd.f32 0.0036580483, %v2897_v55  ;;  %v2910_v5 = vmul.f32 %v2909_v61, %v10306_v28  ;;  %v10353_v1 = vmin.f32 %v2933_v15, 16.0 }
 0x2af   : > { %v8217_v31 = vclamps-f32 %v10326_v43, 1.0  ;;  %vm1627_vm13 = vcmp.eq.f32.partialorder %v1626_v60, 8.507059e+37  ;;  %v1655_v29 = vmul.f32 %v1654_v22, %v9985_v62  ;;  %v2838_v24 = vsub.f32 1.0, %v2837_v49 }
 0x2b0   : > { %v1625_v50 = vsel %vm1624_vm12, %v8527_v48, %v1621_v16  ;;  %v2911_v30 = vadd.f32 0.112945676, %v2910_v5  ;;  %v2935_v40 = vmul.f32 2.1237322e-06, %v10353_v1  ;;  %v2946_v35 = vmul.f32 3.8918573e-05, %v10353_v1 }
 0x2b1   : > { %v1630_v56 = vsel %vm1627_vm13, %v1629_v2, %v1625_v50  ;;  %v10360_v55 = vadd.f32 1.0, %v1655_v29  ;;  %v1690_v61 = vadd.f32 0.014752088, %v1689_v21  ;;  %v2878_v15 = vsub.f32 1.0, %v2877_v25 }
 0x2b2   : > { %v1631_v0 = vmul.f32 %v1630_v56, %v10190_v3  ;;  %v2899_v59 = vmul.f32 %v2898_v46, %v10306_v28  ;;  %v2912_v48 = vmul.f32 %v2911_v30, %v10306_v28  ;;  %v2936_v43 = vadd.f32 0.00028619796, %v2935_v40 }
 0x2b3   : > { %v2862_v60 = vadd.f32 0.18741608, %v2861_v33  ;;  %v2947_v49 = vadd.f32 0.001143296, %v2946_v35  ;;  %8532 = vrcp.f32 %v10360_v55  ;;  %v2839_v16 = vmul.f32 %v10331_v11, %v2838_v24 }
 0x2b4   : > { %v8147_v62 = vclamps-f32 %v1631_v0, 1.0  ;;  %vm2841_vm14 = vweird.f32 %v10270_v47  ;;  %v2847_v3 = vand.u32 2147483648, %v10270_v47  ;;  %v2913_v2 = vadd.f32 0.4994258, %v2912_v48 }
 0x2b5   : > { %v2937_v21 = vmul.f32 %v2936_v43, %v10353_v1  ;;  %v2948_v25 = vmul.f32 %v2947_v49, %v10353_v1  ;;  %v1691_v46 = vmul.f32 %v1690_v61, %v10031_v19  ;;  %v2879_v33 = vmul.f32 %v10340_v37, %v2878_v15 }
 0x2b6   : > { %v2445_v22 = vadd.f32 1.0, %v8147_v62  ;;  %v2476_v35 = vmul.f32 %v2444_v45, %v10002_v53  ;;  %v2900_v5 = vadd.f32 0.05243302, %v2899_v59  ;;  %v2914_v50 = vmul.f32 %v2913_v2, %v10306_v28 }
 0x2b7   : > { %v4014_v29 = vadd.f32 1.0, %v8217_v31  ;;  %v16319_v24 = vand.u32 2147483647, %v10270_v47  ;;  %v2863_v30 = vmul.f32 %v2862_v60, %v10167_v32  ;;  %v2949_v0 = vadd.f32 0.014752088, %v2948_v25 }
 0x2b8   : > { %v2477_v40 = vmul.f32 %v2445_v22, %v10173_v26  ;;  %v2840_v61 = vadd.f32 %v10331_v11, %v2839_v16  ;;  %vm2842_vm0 = vweird.f32 %v10331_v11  ;;  %v2885_v53 = vand.u32 2147483647, %v10300_v9 }
 0x2b9   : > { %vm10376_vm15 = vcmp.eq.f32.partialorder %v16319_v24, 8.507059e+37  ;;  %v10385_v59 = vadd.f32 1.0, %v2914_v50  ;;  %v10387_v45 = vpop.eup %8532  ;;  %v2938_v15 = vadd.f32 0.0036580483, %v2937_v21  ;;  %v2950_v48 = vmul.f32 %v2949_v0, %v10353_v1  ;;  %vm10402_vm2 = vmor %vm2841_vm14, %vm2842_vm0  ;;  %v421_v24 = vpop.xlane.xlu0 %420 }
 0x2ba   : > { %v2520_v31 = vpack.c.bf16 %v2477_v40, %v2476_v35  ;;  %v1692_v43 = vadd.f32 0.112945676, %v1691_v46  ;;  %v2880_v32 = vadd.f32 %v10340_v37, %v2879_v33  ;;  %vm2882_vm1 = vweird.f32 %v10340_v37 }
 0x2bb   : > { %v2901_v26 = vmul.f32 %v2900_v5, %v10306_v28  ;;  %8534 = vrcp.f32 %v10385_v59  ;;  %v2848_v60 = vor.u32 1.1754944e-38, %v2847_v3  ;;  %v2887_v62 = vand.u32 2147483648, %v10300_v9 }
 0x2bc   : > { %2613 = vmatmul.bf16.gmra.mxu1 %v2520_v31  ;;  %v2951_v49 = vadd.f32 0.112945676, %v2950_v48  ;;  %v1658_v16 = vmul.f32 %v10387_v45, %v10360_v55  ;;  %v4046_v2 = vmul.f32 %v4014_v29, %v10275_v17  ;;  %v2864_v21 = vadd.f32 1.1283791, %v2863_v30  ;;  %v8839_v30 = vld [vmem:[%s8919_s18] sm:$0xff] }
 0x2bd   : > { %vm2881_vm3 = vweird.f32 %v10300_v9  ;;  %v1693_v3 = vmul.f32 %v1692_v43, %v10031_v19  ;;  %v2844_v25 = vsel %vm10402_vm2, %v10331_v11, %v2840_v61  ;;  %v2939_v47 = vmul.f32 %v2938_v15, %v10353_v1 }
 0x2be   : > { %vm10411_vm4 = vmor %vm2881_vm3, %vm2882_vm1  ;;  %v2952_v46 = vmul.f32 %v2951_v49, %v10353_v1  ;;  %v1659_v33 = vsub.f32 1.0, %v1658_v16  ;;  %vm2886_vm5 = vcmp.eq.f32.partialorder %v2885_v53, 8.507059e+37  ;;  %v2902_v35 = vadd.f32 0.18741608, %v2901_v26  ;;  %v8840_v53 = vld [vmem:[%s8919_s18 + $0x8] sm:$0xff] }
 0x2bf   : > { %v2884_v9 = vsel %vm10411_vm4, %v10340_v37, %v2880_v32  ;;  %v1694_v5 = vadd.f32 0.4994258, %v1693_v3  ;;  %v2888_v50 = vor.u32 1.1754944e-38, %v2887_v62  ;;  %v10423_v40 = vadd.f32 %v8839_v30, %v10317_v52 }
 0x2c0   : > { %v2953_v29 = vadd.f32 0.4994258, %v2952_v46  ;;  %v1660_v11 = vmul.f32 %v10387_v45, %v1659_v33  ;;  %v2849_v61 = vsel %vm10376_vm15, %v2848_v60, %v2844_v25  ;;  %v461_v37 = vmul.f32 %v421_v24, %v8928_v13  ;;  %v16330_v24 = vld [vmem:[#allocation6_spill] sm:$0xff] }
 0x2c1   : > { %16326 = vst [vmem:[#allocation5_spill] sm:$0xff] %v10423_v40  ;;  %v10425_v0 = vpop.eup %8534  ;;  %v1695_v31 = vmul.f32 %v1694_v5, %v10031_v19  ;;  %v10432_v15 = vadd.f32 %v8840_v53, %v4046_v2  ;;  %v2889_v48 = vsel %vm2886_vm5, %v2888_v50, %v2884_v9  ;;  %v2940_v32 = vadd.f32 0.05243302, %v2939_v47  ;;  %4111 = vadd.xlane.f32.xlu1 %v10423_v40  ;;  %v425_v2 = vpop.xlane.xlu1 %424 }
 0x2c2   : > { %v2917_v43 = vmul.f32 %v10425_v0, %v10385_v59  ;;  %v2954_v52 = vmul.f32 %v2953_v29, %v10353_v1  ;;  %v2903_v26 = vmul.f32 %v2902_v35, %v10306_v28  ;;  %vm1663_vm6 = vweird.f32 %v10387_v45  ;;  %v429_v53 = vpop.xlane.xlu2 %428 }
 0x2c3   : > { %16327 = vst [vmem:[#allocation11_spill] sm:$0xff] %v10432_v15  ;;  %v1668_v19 = vand.u32 2147483648, %v10360_v55  ;;  %v10441_v56 = vadd.f32 1.0, %v1695_v31  ;;  %4113 = vadd.xlane.f32.xlu2 %v10432_v15  ;;  %v1661_v49 = vadd.f32 %v10387_v45, %v1660_v11  ;;  %v10447_v16 = vadd.f32 1e-05, %v461_v37 }
 0x2c4   : > { %v2918_v60 = vsub.f32 1.0, %v2917_v43  ;;  %v10444_v62 = vadd.f32 1.0, %v2954_v52  ;;  %v10450_v22 = vmul.f32 %v2849_v61, %v10322_v41  ;;  %v2865_v28 = vmul.f32 %v2864_v21, %v10146_v20 }
 0x2c5   : > { %vm1662_vm7 = vweird.f32 %v10360_v55  ;;  %8536 = vrcp.f32 %v10441_v56  ;;  %v2941_v25 = vmul.f32 %v2940_v32, %v10353_v1  ;;  %v1666_v17 = vand.u32 2147483647, %v10360_v55 }
 0x2c6   : > { %v2919_v3 = vmul.f32 %v10425_v0, %v2918_v60  ;;  %8538 = vrcp.f32 %v10444_v62  ;;  %v10460_v47 = vmul.f32 0.5, %v10137_v36  ;;  %v10462_v46 = vmul.f32 %v2889_v48, %v2865_v28  ;;  %vm10466_vm9 = vmor %vm1662_vm7, %vm1663_vm6  ;;  %v423_v36 = vpop.xlane.xlu0 %422 }
 0x2c7   : > { %v2904_v41 = vadd.f32 1.1283791, %v2903_v26  ;;  %v463_v21 = vmul.f32 %v425_v2, %v8928_v13  ;;  %v2925_v33 = vand.u32 2147483647, %v10385_v59  ;;  %v1665_v55 = vsel %vm10466_vm9, %v10387_v45, %v1661_v49 }
 0x2c8   : > { %v1669_v9 = vor.u32 1.1754944e-38, %v1668_v19  ;;  %8540 = vrsqrt.f32 %v10447_v16  ;;  %v2920_v35 = vadd.f32 %v10425_v0, %v2919_v3  ;;  %vm2922_vm10 = vweird.f32 %v10425_v0  ;;  %v10520_v3 = vpop.f32.mrf.mxu0 }
 0x2c9   : > { %v2927_v5 = vand.u32 2147483648, %v10385_v59  ;;  %v462_v50 = vmul.f32 %v423_v36, %v8928_v13  ;;  %v8218_v29 = vclamps-f32 %v10450_v22, 1.0  ;;  %v2942_v11 = vadd.f32 0.18741608, %v2941_v25 }
 0x2ca   : > { %vm1667_vm11 = vcmp.eq.f32.partialorder %v1666_v17, 8.507059e+37  ;;  %v16331_v45 = vsel %vm10290_vm8, %v9952_v10, %v10170_v4  ;;  %vm2921_vm12 = vweird.f32 %v10385_v59  ;;  %v10492_v48 = vadd.f32 1e-05, %v463_v21 }
 0x2cb   : > { %v10487_v30 = vmul.f32 %v16331_v45, %v16330_v24  ;;  %v8537_v61 = vpop.eup %8536  ;;  %v1670_v31 = vsel %vm1667_vm11, %v1669_v9, %v1665_v55  ;;  %v10490_v37 = vadd.f32 1e-05, %v462_v50  ;;  %v8219_v32 = vclamps-f32 %v10462_v46, 1.0  ;;  %vm10500_vm8 = vmor %vm2921_vm12, %vm2922_vm10 }
 0x2cc   : > { %v10494_v43 = vpop.eup %8538  ;;  %v2905_v6 = vmul.f32 %v2904_v41, %v10266_v34  ;;  %vm10504_vm13 = vcmp.eq.f32.partialorder %v2925_v33, 8.507059e+37  ;;  %v1698_v59 = vmul.f32 %v8537_v61, %v10441_v56  ;;  %v2924_v52 = vsel %vm10500_vm8, %v10425_v0, %v2920_v35 }
 0x2cd   : > { %v2928_v26 = vor.u32 1.1754944e-38, %v2927_v5  ;;  %v2957_v34 = vmul.f32 %v10494_v43, %v10444_v62  ;;  %8542 = vrsqrt.f32 %v10490_v37  ;;  %v2943_v60 = vmul.f32 %v2942_v11, %v10353_v1 }
 0x2ce   : > { %v10515_v19 = vpop.eup %8540  ;;  %v1671_v49 = vmul.f32 %v1670_v31, %v10209_v44  ;;  %v1699_v2 = vsub.f32 1.0, %v1698_v59  ;;  %v465_v28 = vmul.f32 %v429_v53, %v8928_v13  ;;  %v1708_v0 = vand.u32 2147483648, %v10441_v56  ;;  %v270_v1 = vpop.xlane.xlu0 %269  ;;  %v8841_v59 = vld [vmem:[%s8919_s18 + $0xf8] sm:$0xff] }
 0x2cf   : > { %v2958_v25 = vsub.f32 1.0, %v2957_v34  ;;  %v733_v17 = vmul.f32 %v10515_v19, %v10447_v16  ;;  %8544 = vrsqrt.f32 %v10492_v48  ;;  %v2929_v46 = vsel %vm10504_vm13, %v2928_v26, %v2924_v52  ;;  %v427_v34 = vpop.xlane.xlu1 %426 }
 0x2d0   : > { %v1700_v41 = vmul.f32 %v8537_v61, %v1699_v2  ;;  %vm1703_vm14 = vweird.f32 %v8537_v61  ;;  %v1706_v44 = vand.u32 2147483647, %v10441_v56  ;;  %vm2961_vm15 = vweird.f32 %v10444_v62 }
 0x2d1   : > { %v2959_v20 = vmul.f32 %v10494_v43, %v2958_v25  ;;  %vm1702_vm0 = vweird.f32 %v10441_v56  ;;  %v734_v21 = vmul.f32 %v10515_v19, %v733_v17  ;;  %vm2962_vm1 = vweird.f32 %v10494_v43 }
 0x2d2   : > { %v2967_v33 = vand.u32 2147483648, %v10444_v62  ;;  %v1701_v55 = vadd.f32 %v8537_v61, %v1700_v41  ;;  %v309_v9 = vmul.f32 %v8928_v13, %v270_v1  ;;  %v2930_v35 = vmul.f32 %v2929_v46, %v2905_v6  ;;  %vm1704_vm2 = vmor %vm1702_vm0, %vm1703_vm14  ;;  %v1047_v46 = vpop.f32.mrf.mxu0 }
 0x2d3   : > { %v10536_v36 = vpop.eup %8542  ;;  %v2960_v5 = vadd.f32 %v10494_v43, %v2959_v20  ;;  %v8148_v50 = vclamps-f32 %v1671_v49, 1.0  ;;  %v1709_v11 = vor.u32 1.1754944e-38, %v1708_v0  ;;  %v2965_v56 = vand.u32 2147483647, %v10444_v62  ;;  %vm10547_vm4 = vmor %vm2961_vm15, %vm2962_vm1 }
 0x2d4   : > { %v1705_v24 = vsel %vm1704_vm2, %v8537_v61, %v1701_v55  ;;  %vm1707_vm3 = vcmp.eq.f32.partialorder %v1706_v44, 8.507059e+37  ;;  %v735_v45 = vmul.f32 0.5, %v734_v21  ;;  %v4016_v53 = vadd.f32 1.0, %v8219_v32 }
 0x2d5   : > { %v10541_v31 = vpop.eup %8544  ;;  %v1710_v10 = vsel %vm1707_vm3, %v1709_v11, %v1705_v24  ;;  %v10551_v4 = vadd.f32 1e-05, %v465_v28  ;;  %v10554_v52 = vsub.f32 %v8841_v59, %v309_v9  ;;  %v2944_v61 = vadd.f32 1.1283791, %v2943_v60 }
 0x2d6   : > { %v2964_v26 = vsel %vm10547_vm4, %v10494_v43, %v2960_v5  ;;  %v1711_v32 = vmul.f32 %v1710_v10, %v10228_v63  ;;  %v743_v62 = vmul.f32 %v10536_v36, %v10490_v37  ;;  %v4015_v49 = vadd.f32 1.0, %v8218_v29 }
 0x2d7   : > { %16338 = vst [vmem:[#allocation6_spill] sm:$0xff] %v10554_v52  ;;  %v8220_v2 = vclamps-f32 %v2930_v35, 1.0  ;;  %v2968_v28 = vor.u32 1.1754944e-38, %v2967_v33  ;;  %v2446_v25 = vadd.f32 1.0, %v8148_v50  ;;  %vm2966_vm5 = vcmp.eq.f32.partialorder %v2965_v56, 8.507059e+37  ;;  %v8842_v56 = vld [vmem:[%s8919_s18 + $0x18] sm:$0xff]  ;;  %v433_v6 = vpop.xlane.xlu1 %432 }
 0x2d8   : > { %v8149_v0 = vclamps-f32 %v1711_v32, 1.0  ;;  %v736_v17 = vsub.f32 1.5, %v735_v45  ;;  %v753_v60 = vmul.f32 %v10541_v31, %v10492_v48  ;;  %v4048_v43 = vmul.f32 %v4016_v53, %v10460_v47 }
 0x2d9   : > { %v2969_v63 = vsel %vm2966_vm5, %v2968_v28, %v2964_v26  ;;  %v373_v41 = vmul.f32 %v10554_v52, %v10554_v52  ;;  %v464_v44 = vmul.f32 %v427_v34, %v8928_v13  ;;  %v2945_v22 = vmul.f32 %v2944_v61, %v10338_v57  ;;  %v8843_v61 = vld [vmem:[%s8919_s18 + $0x10] sm:$0xff] }
 0x2da   : > { %v2447_v29 = vadd.f32 1.0, %v8149_v0  ;;  %v744_v1 = vmul.f32 %v10536_v36, %v743_v62  ;;  %8546 = vrsqrt.f32 %v10551_v4  ;;  %v4017_v20 = vadd.f32 1.0, %v8220_v2  ;;  %v1050_v32 = vpop.f32.mrf.mxu0 }
 0x2db   : > { %v2478_v21 = vmul.f32 %v2446_v25, %v10176_v14  ;;  %vm739_vm6 = vweird.f32 %v10515_v19  ;;  %436 = vadd.xlane.f32.xlu0 %v373_v41  ;;  %v10575_v47 = vadd.f32 1e-05, %v464_v44  ;;  %v2970_v33 = vmul.f32 %v2969_v63, %v2945_v22 }
 0x2dc   : > { %v2479_v55 = vmul.f32 %v2447_v29, %v10179_v38  ;;  %v737_v9 = vmul.f32 %v10515_v19, %v736_v17  ;;  %v754_v57 = vmul.f32 %v10541_v31, %v753_v60  ;;  %v2673_v35 = vmul.f32 0.5, %v10257_v18 }
 0x2dd   : > { %8548 = vrsqrt.f32 %v10575_v47  ;;  %v4047_v5 = vmul.f32 %v4015_v49, %v10298_v39  ;;  %vm738_vm7 = vweird.f32 %v10447_v16  ;;  %v745_v50 = vmul.f32 0.5, %v744_v1  ;;  %v8844_v49 = vld [vmem:[%s8919_s18 + $0x20] sm:$0xff] }
 0x2de   : > { %v2521_v14 = vpack.c.bf16 %v2479_v55, %v2478_v21  ;;  %v4049_v11 = vmul.f32 %v4017_v20, %v2673_v35  ;;  %vm740_vm9 = vmor %vm738_vm7, %vm739_vm6  ;;  %v10586_v38 = vadd.f32 %v10520_v3, %v9263_v42  ;;  %v10589_v24 = vadd.f32 %v8842_v56, %v4048_v43  ;;  %v431_v3 = vpop.xlane.xlu0 %430 }
 0x2df   : > { %v877_v18 = vmul.f32 %v9076_v58, %v10487_v30  ;;  %v8221_v39 = vclamps-f32 %v2970_v33, 1.0  ;;  %v755_v16 = vmul.f32 0.5, %v754_v57  ;;  %v741_v53 = vsel %vm740_vm9, %v10515_v19, %v737_v9 }
 0x2e0   : > { %16339 = vst [vmem:[#allocation12_spill] sm:$0xff] %v10589_v24  ;;  %v10593_v45 = vpop.eup %8546  ;;  %2618 = vmatmul.bf16.gmra.mxu1 %v2521_v14  ;;  %4117 = vadd.xlane.f32.xlu1 %v10589_v24  ;;  %v746_v10 = vsub.f32 1.5, %v745_v50  ;;  %v845_v59 = vmul.f32 %v741_v53, %v9657_v23  ;;  %v10599_v26 = vadd.f32 %v8843_v61, %v4047_v5  ;;  %v10604_v62 = vmul.f32 0.70710677, %v10586_v38  ;;  %v8845_v5 = vld [vmem:[%s8919_s18 + $0x28] sm:$0xff] }
 0x2e1   : > { %v910_v34 = vadd.f32 %v9100_v12, %v877_v18  ;;  %v10608_v19 = vadd.f32 %v8844_v49, %v4049_v11  ;;  %v4018_v2 = vadd.f32 1.0, %v8221_v39  ;;  %v756_v28 = vsub.f32 1.5, %v755_v16 }
 0x2e2   : > { %16340 = vst [vmem:[#allocation13_spill] sm:$0xff] %v10599_v26  ;;  %v878_v25 = vmul.f32 %v9076_v58, %v845_v59  ;;  %v467_v23 = vmul.f32 %v433_v6, %v8928_v13  ;;  %v2674_v0 = vmul.f32 0.5, %v10329_v27  ;;  %v773_v17 = vmul.f32 %v10593_v45, %v10551_v4  ;;  %v1052_v35 = vpop.f32.mrf.mxu0 }
 0x2e3   : > { %v10601_v30 = vpop.eup %8548  ;;  %16341 = vst [vmem:[#allocation14_spill] sm:$0xff] %v10608_v19  ;;  %4115 = vadd.xlane.f32.xlu0 %v10599_v26  ;;  %v466_v43 = vmul.f32 %v431_v3, %v8928_v13  ;;  %4119 = vadd.xlane.f32.xlu2 %v10608_v19  ;;  %v747_v63 = vmul.f32 %v10536_v36, %v746_v10  ;;  %vm749_vm10 = vweird.f32 %v10536_v36  ;;  %vm748_vm11 = vweird.f32 %v10490_v37 }
 0x2e4   : > { %v763_v60 = vmul.f32 %v10601_v30, %v10575_v47  ;;  %v10623_v41 = vadd.f32 %v1047_v46, %v9263_v42  ;;  %v911_v44 = vadd.f32 %v9100_v12, %v878_v25  ;;  %vm759_vm12 = vweird.f32 %v10541_v31  ;;  %vm750_vm8 = vmor %vm748_vm11, %vm749_vm10 }
 0x2e5   : > { %v1714_v27 = vmul.f32 %v10604_v62, %v10604_v62  ;;  %v4050_v22 = vmul.f32 %v4018_v2, %v2674_v0  ;;  %v757_v29 = vmul.f32 %v10541_v31, %v756_v28  ;;  %v10631_v20 = vadd.f32 1e-05, %v467_v23  ;;  %v435_v0 = vpop.xlane.xlu2 %434 }
 0x2e6   : > { %v947_v1 = vpack.c.bf16 %v911_v44, %v910_v34  ;;  %v764_v46 = vmul.f32 %v10601_v30, %v763_v60  ;;  %v10634_v21 = vadd.f32 1e-05, %v466_v43  ;;  %v751_v33 = vsel %vm750_vm8, %v10536_v36, %v747_v63 }
 0x2e7   : > { %v774_v37 = vmul.f32 %v10593_v45, %v773_v17  ;;  %vm758_vm13 = vweird.f32 %v10492_v48  ;;  %v10640_v55 = vmul.f32 0.70710677, %v10623_v41  ;;  %v10643_v57 = vmin.f32 %v1714_v27, 16.0 }
 0x2e8   : > { %1064 = vmatmul.bf16.gmra.mxu0 %v947_v1  ;;  %vm760_vm14 = vmor %vm758_vm13, %vm759_vm12  ;;  %8550 = vrsqrt.f32 %v10631_v20  ;;  %v10647_v14 = vadd.f32 %v8845_v5, %v4050_v22  ;;  %v846_v36 = vmul.f32 %v751_v33, %v9684_v7  ;;  %v765_v50 = vmul.f32 0.5, %v764_v46 }
 0x2e9   : > { %v761_v9 = vsel %vm760_vm14, %v10541_v31, %v757_v29  ;;  %8552 = vrsqrt.f32 %v10634_v21  ;;  %v775_v48 = vmul.f32 0.5, %v774_v37  ;;  %v1754_v11 = vmul.f32 %v10640_v55, %v10640_v55 }
 0x2ea   : > { %16342 = vst [vmem:[#allocation15_spill] sm:$0xff] %v10647_v14  ;;  %v847_v31 = vmul.f32 %v761_v9, %v9731_v51  ;;  %v10656_v56 = vadd.f32 %v1050_v32, %v9263_v42  ;;  %v1716_v18 = vmul.f32 2.1237322e-06, %v10643_v57  ;;  %v10660_v39 = vadd.f32 %v1052_v35, %v9263_v42  ;;  %v1055_v17 = vpop.f32.mrf.mxu0 }
 0x2eb   : > { %4121 = vadd.xlane.f32.xlu0 %v10647_v14  ;;  %v766_v7 = vsub.f32 1.5, %v765_v50  ;;  %v879_v16 = vmul.f32 %v9076_v58, %v846_v36  ;;  %v776_v6 = vsub.f32 1.5, %v775_v48  ;;  %v10665_v10 = vmin.f32 %v1754_v11, 16.0 }
 0x2ec   : > { %vm768_vm15 = vweird.f32 %v10575_v47  ;;  %vm769_vm0 = vweird.f32 %v10601_v30  ;;  %v10672_v51 = vmul.f32 0.70710677, %v10656_v56  ;;  %v880_v59 = vmul.f32 %v9076_v58, %v847_v31  ;;  %v16347_v31 = vld [vmem:[#allocation7_spill] sm:$0xff] }
 0x2ed   : > { %vm778_vm1 = vweird.f32 %v10551_v4  ;;  %vm779_vm2 = vweird.f32 %v10593_v45  ;;  %v1717_v61 = vadd.f32 0.00028619796, %v1716_v18  ;;  %v10678_v32 = vmul.f32 0.70710677, %v10660_v39  ;;  %vm10685_vm3 = vmor %vm768_vm15, %vm769_vm0 }
 0x2ee   : > { %v10663_v53 = vpop.eup %8550  ;;  %v767_v34 = vmul.f32 %v10601_v30, %v766_v7  ;;  %v912_v49 = vadd.f32 %v9100_v12, %v879_v16  ;;  %v913_v2 = vadd.f32 %v9100_v12, %v880_v59  ;;  %v1756_v23 = vmul.f32 2.1237322e-06, %v10665_v10  ;;  %vm10699_vm4 = vmor %vm778_vm1, %vm779_vm2 }
 0x2ef   : > { %v10667_v3 = vpop.eup %8552  ;;  %v793_v47 = vmul.f32 %v10663_v53, %v10631_v20  ;;  %v777_v60 = vmul.f32 %v10593_v45, %v776_v6  ;;  %v1794_v43 = vmul.f32 %v10672_v51, %v10672_v51  ;;  %v1718_v27 = vmul.f32 %v1717_v61, %v10643_v57 }
 0x2f0   : > { %v783_v25 = vmul.f32 %v10667_v3, %v10634_v21  ;;  %v948_v63 = vpack.c.bf16 %v913_v2, %v912_v49  ;;  %v1834_v22 = vmul.f32 %v10678_v32, %v10678_v32  ;;  %v771_v29 = vsel %vm10685_vm3, %v10601_v30, %v767_v34 }
 0x2f1   : > { %v794_v1 = vmul.f32 %v10663_v53, %v793_v47  ;;  %v468_v46 = vmul.f32 %v435_v0, %v8928_v13  ;;  %v1757_v4 = vadd.f32 0.00028619796, %v1756_v23  ;;  %v781_v37 = vsel %vm10699_vm4, %v10593_v45, %v777_v60 }
 0x2f2   : > { %v784_v33 = vmul.f32 %v10667_v3, %v783_v25  ;;  %v10715_v9 = vmin.f32 %v1794_v43, 16.0  ;;  %v10718_v35 = vadd.f32 %v1055_v17, %v9263_v42  ;;  %v2604_v5 = vpop.f32.mrf.mxu1  ;;  %v1719_v36 = vadd.f32 0.0036580483, %v1718_v27  ;;  %v1057_v34 = vpop.f32.mrf.mxu0 }
 0x2f3   : > { %v848_v30 = vmul.f32 %v771_v29, %v9786_v54  ;;  %v10721_v50 = vmin.f32 %v1834_v22, 16.0  ;;  %v795_v48 = vmul.f32 0.5, %v794_v1  ;;  %v10723_v11 = vadd.f32 1e-05, %v468_v46 }
 0x2f4   : > { %v849_v18 = vmul.f32 %v781_v37, %v16347_v31  ;;  %v785_v7 = vmul.f32 0.5, %v784_v33  ;;  %v1758_v16 = vmul.f32 %v1757_v4, %v10665_v10  ;;  %v10728_v45 = vadd.f32 %v2604_v5, %v10028_v8 }
 0x2f5   : > { %v1796_v6 = vmul.f32 2.1237322e-06, %v10715_v9  ;;  %v10732_v59 = vmul.f32 0.70710677, %v10718_v35  ;;  %v1720_v54 = vmul.f32 %v1719_v36, %v10643_v57  ;;  %vm788_vm5 = vweird.f32 %v10634_v21 }
 0x2f6   : > { %v1836_v61 = vmul.f32 2.1237322e-06, %v10721_v50  ;;  %v881_v47 = vmul.f32 %v9076_v58, %v848_v30  ;;  %v796_v49 = vsub.f32 1.5, %v795_v48  ;;  %vm798_vm6 = vweird.f32 %v10631_v20 }
 0x2f7   : > { %8554 = vrsqrt.f32 %v10723_v11  ;;  %v10741_v2 = vmul.f32 0.70710677, %v10728_v45  ;;  %v786_v28 = vsub.f32 1.5, %v785_v7  ;;  %v1759_v25 = vadd.f32 0.0036580483, %v1758_v16 }
 0x2f8   : > { %1069 = vmatmul.bf16.gmra.mxu0 %v948_v63  ;;  %v882_v23 = vmul.f32 %v9076_v58, %v849_v18  ;;  %v1727_v0 = vmul.f32 3.8918573e-05, %v10643_v57  ;;  %vm799_vm7 = vweird.f32 %v10663_v53  ;;  %v1797_v17 = vadd.f32 0.00028619796, %v1796_v6 }
 0x2f9   : > { %v1874_v60 = vmul.f32 %v10732_v59, %v10732_v59  ;;  %v2973_v43 = vmul.f32 %v10741_v2, %v10741_v2  ;;  %v1721_v63 = vadd.f32 0.05243302, %v1720_v54  ;;  %vm789_vm9 = vweird.f32 %v10667_v3  ;;  %vm10763_vm10 = vmor %vm798_vm6, %vm799_vm7 }
 0x2fa   : > { %v1837_v44 = vadd.f32 0.00028619796, %v1836_v61  ;;  %v914_v27 = vadd.f32 %v9100_v12, %v881_v47  ;;  %v797_v22 = vmul.f32 %v10663_v53, %v796_v49  ;;  %v10754_v29 = vadd.f32 %v1057_v34, %v9263_v42  ;;  %vm10772_vm11 = vmor %vm788_vm5, %vm789_vm9 }
 0x2fb   : > { %v10756_v1 = vmin.f32 %v2973_v43, 16.0  ;;  %v1767_v46 = vmul.f32 3.8918573e-05, %v10665_v10  ;;  %v787_v33 = vmul.f32 %v10667_v3, %v786_v28  ;;  %v1760_v4 = vmul.f32 %v1759_v25, %v10665_v10 }
 0x2fc   : > { %v915_v5 = vadd.f32 %v9100_v12, %v882_v23  ;;  %v1728_v36 = vadd.f32 0.001143296, %v1727_v0  ;;  %v1798_v31 = vmul.f32 %v1797_v17, %v10715_v9  ;;  %v10777_v18 = vmin.f32 %v1874_v60, 16.0  ;;  %v1060_v23 = vpop.f32.mrf.mxu0 }
 0x2fd   : > { %v10768_v30 = vpop.eup %8554  ;;  %v2986_v20 = vmul.f32 3.8918573e-05, %v10756_v1  ;;  %v1722_v7 = vmul.f32 %v1721_v63, %v10643_v57  ;;  %v1838_v16 = vmul.f32 %v1837_v44, %v10721_v50  ;;  %v801_v21 = vsel %vm10763_vm10, %v10663_v53, %v797_v22 }
 0x2fe   : > { %v949_v6 = vpack.c.bf16 %v915_v5, %v914_v27  ;;  %v1729_v54 = vmul.f32 %v1728_v36, %v10643_v57  ;;  %v10787_v61 = vmul.f32 0.70710677, %v10754_v29  ;;  %v1768_v47 = vadd.f32 0.001143296, %v1767_v46  ;;  %v16352_v27 = vld [vmem:[#allocation9_spill] sm:$0xff]  ;;  %v16354_v5 = vld [vmem:[#allocation8_spill] sm:$0xff] }
 0x2ff   : > { %v2987_v34 = vadd.f32 0.001143296, %v2986_v20  ;;  %v791_v49 = vsel %vm10772_vm11, %v10667_v3, %v787_v33  ;;  %v1761_v28 = vadd.f32 0.05243302, %v1760_v4  ;;  %v803_v25 = vmul.f32 %v10768_v30, %v10723_v11 }
 0x300   : > { %v1730_v0 = vadd.f32 0.014752088, %v1729_v54  ;;  %v1799_v17 = vadd.f32 0.0036580483, %v1798_v31  ;;  %v1876_v60 = vmul.f32 2.1237322e-06, %v10777_v18  ;;  %v1769_v43 = vmul.f32 %v1768_v47, %v10665_v10 }
 0x301   : > { %v2988_v53 = vmul.f32 %v2987_v34, %v10756_v1  ;;  %v10798_v63 = vmul.f32 0.5, %v10586_v38  ;;  %v1723_v44 = vadd.f32 0.18741608, %v1722_v7  ;;  %v851_v3 = vmul.f32 %v801_v21, %v16352_v27 }
 0x302   : > { %v1731_v22 = vmul.f32 %v1730_v0, %v10643_v57  ;;  %v1839_v46 = vadd.f32 0.0036580483, %v1838_v16  ;;  %v1914_v33 = vmul.f32 %v10787_v61, %v10787_v61  ;;  %v10805_v4 = vadd.f32 %v1060_v23, %v9263_v42 }
 0x303   : > { %v1770_v37 = vadd.f32 0.014752088, %v1769_v43  ;;  %v850_v36 = vmul.f32 %v791_v49, %v16354_v5  ;;  %v1762_v48 = vmul.f32 %v1761_v28, %v10665_v10  ;;  %v2989_v31 = vadd.f32 0.014752088, %v2988_v53 }
 0x304   : > { %16353 = vst [vmem:[#allocation7_spill] sm:$0xff] %v10805_v4  ;;  %v1732_v38 = vadd.f32 0.112945676, %v1731_v22  ;;  %v1800_v20 = vmul.f32 %v1799_v17, %v10715_v9  ;;  %v804_v7 = vmul.f32 %v10768_v30, %v803_v25  ;;  %v1724_v54 = vmul.f32 %v1723_v44, %v10643_v57 }
 0x305   : > { %v1771_v16 = vmul.f32 %v1770_v37, %v10665_v10  ;;  %v10814_v21 = vmul.f32 0.5, %v10623_v41  ;;  %v884_v34 = vmul.f32 %v9076_v58, %v851_v3  ;;  %v1840_v49 = vmul.f32 %v1839_v46, %v10721_v50 }
 0x306   : > { %v1733_v47 = vmul.f32 %v1732_v38, %v10643_v57  ;;  %v10819_v28 = vmin.f32 %v1914_v33, 16.0  ;;  %v10822_v23 = vmul.f32 0.70710677, %v10805_v4  ;;  %v10825_v0 = vmul.f32 0.5, %v10656_v56 }
 0x307   : > { %v1772_v25 = vadd.f32 0.112945676, %v1771_v16  ;;  %v2990_v17 = vmul.f32 %v2989_v31, %v10756_v1  ;;  %v883_v41 = vmul.f32 %v9076_v58, %v850_v36  ;;  %v1763_v43 = vadd.f32 0.18741608, %v1762_v48 }
 0x308   : > { %1074 = vmatmul.bf16.gmra.mxu0 %v949_v6  ;;  %v1877_v6 = vadd.f32 0.00028619796, %v1876_v60  ;;  %16355 = vst [vmem:[#allocation9_spill] sm:$0xff] %v10822_v23  ;;  %v2606_v60 = vpop.f32.mrf.mxu1  ;;  %v1734_v53 = vadd.f32 0.4994258, %v1733_v47  ;;  %v805_v27 = vmul.f32 0.5, %v804_v7  ;;  %v917_v46 = vadd.f32 %v9100_v12, %v884_v34 }
 0x309   : > { %v1801_v44 = vadd.f32 0.05243302, %v1800_v20  ;;  %v10831_v22 = vadd.f32 %v2606_v60, %v10028_v8  ;;  %v1773_v56 = vmul.f32 %v1772_v25, %v10665_v10  ;;  %v1725_v37 = vadd.f32 1.1283791, %v1724_v54 }
 0x30a   : > { %v1878_v3 = vmul.f32 %v1877_v6, %v10777_v18  ;;  %v1735_v33 = vmul.f32 %v1734_v53, %v10643_v57  ;;  %v1841_v5 = vadd.f32 0.05243302, %v1840_v49  ;;  %v1916_v31 = vmul.f32 2.1237322e-06, %v10819_v28 }
 0x30b   : > { %v1954_v36 = vmul.f32 %v10822_v23, %v10822_v23  ;;  %v2991_v48 = vadd.f32 0.112945676, %v2990_v17  ;;  %v10840_v38 = vmul.f32 0.70710677, %v10831_v22  ;;  %v916_v20 = vadd.f32 %v9100_v12, %v883_v41 }
 0x30c   : > { %v10843_v7 = vadd.f32 1.0, %v1735_v33  ;;  %v1764_v6 = vmul.f32 %v1763_v43, %v10665_v10  ;;  %v1802_v57 = vmul.f32 %v1801_v44, %v10715_v9  ;;  %v806_v16 = vsub.f32 1.5, %v805_v27 }
 0x30d   : > { %v1774_v54 = vadd.f32 0.4994258, %v1773_v56  ;;  %v1879_v34 = vadd.f32 0.0036580483, %v1878_v3  ;;  %v3013_v47 = vmul.f32 %v10840_v38, %v10840_v38  ;;  %v950_v49 = vpack.c.bf16 %v917_v46, %v916_v20 }
 0x30e   : > { %8556 = vrcp.f32 %v10843_v7  ;;  %vm808_vm12 = vweird.f32 %v10723_v11  ;;  %vm809_vm8 = vweird.f32 %v10768_v30  ;;  %v1842_v25 = vmul.f32 %v1841_v5, %v10721_v50 }
 0x30f   : > { %v1917_v17 = vadd.f32 0.00028619796, %v1916_v31  ;;  %v10853_v60 = vmin.f32 %v1954_v36, 16.0  ;;  %v2992_v41 = vmul.f32 %v2991_v48, %v10756_v1  ;;  %v10856_v53 = vmin.f32 %v3013_v47, 16.0  ;;  %vm10877_vm13 = vmor %vm808_vm12, %vm809_vm8 }
 0x310   : > { %v1775_v43 = vmul.f32 %v1774_v54, %v10665_v10  ;;  %v10860_v44 = vmul.f32 %v1725_v37, %v10604_v62  ;;  %v1765_v27 = vadd.f32 1.1283791, %v1764_v6  ;;  %v10863_v3 = vmul.f32 0.5, %v10660_v39 }
 0x311   : > { %v10866_v46 = vmul.f32 0.5, %v10718_v35  ;;  %v1803_v33 = vadd.f32 0.18741608, %v1802_v57  ;;  %v10869_v56 = vmul.f32 %v10768_v30, %v806_v16  ;;  %v1880_v5 = vmul.f32 %v1879_v34, %v10777_v18  ;;  %v1062_v35 = vpop.f32.mrf.mxu0 }
 0x312   : > { %v2975_v31 = vmul.f32 2.1237322e-06, %v10756_v1  ;;  %v1843_v39 = vadd.f32 0.18741608, %v1842_v25  ;;  %v10882_v10 = vmul.f32 0.5, %v10754_v29  ;;  %v10885_v36 = vadd.f32 1.0, %v1775_v43 }
 0x313   : > { %16356 = vst [vmem:[#allocation8_spill] sm:$0xff] %v10869_v56  ;;  %v3026_v37 = vmul.f32 3.8918573e-05, %v10856_v53  ;;  %v1918_v20 = vmul.f32 %v1917_v17, %v10819_v28  ;;  %v1956_v6 = vmul.f32 2.1237322e-06, %v10853_v60  ;;  %v10891_v16 = vmul.f32 %v1765_v27, %v10640_v55  ;;  %v2609_v27 = vpop.f32.mrf.mxu1 }
 0x314   : > { %v8557_v48 = vpop.eup %8556  ;;  %v2993_v57 = vadd.f32 0.4994258, %v2992_v41  ;;  %v1807_v11 = vmul.f32 3.8918573e-05, %v10715_v9  ;;  %8558 = vrcp.f32 %v10885_v36  ;;  %v1881_v47 = vadd.f32 0.05243302, %v1880_v5 }
 0x315   : > { %v3027_v54 = vadd.f32 0.001143296, %v3026_v37  ;;  %v1738_v29 = vmul.f32 %v8557_v48, %v10843_v7  ;;  %v10900_v25 = vadd.f32 %v1062_v35, %v9263_v42  ;;  %v10903_v17 = vmul.f32 %v1803_v33, %v10715_v9 }
 0x316   : > { %v10906_v55 = vmul.f32 %v1843_v39, %v10721_v50  ;;  %v1919_v37 = vadd.f32 0.0036580483, %v1918_v20  ;;  %v1957_v12 = vadd.f32 0.00028619796, %v1956_v6  ;;  %v2994_v4 = vmul.f32 %v2993_v57, %v10756_v1 }
 0x317   : > { %16359 = vst [vmem:[#allocation16_spill] sm:$0xff] %v10900_v25  ;;  %v3028_v41 = vmul.f32 %v3027_v54, %v10856_v53  ;;  %v1739_v43 = vsub.f32 1.0, %v1738_v29  ;;  %v1808_v34 = vadd.f32 0.001143296, %v1807_v11  ;;  %vm1743_vm14 = vweird.f32 %v8557_v48 }
 0x318   : > { %1079 = vmatmul.bf16.gmra.mxu0 %v950_v49  ;;  %v2976_v49 = vadd.f32 0.00028619796, %v2975_v31  ;;  %v1748_v35 = vand.u32 2147483648, %v10843_v7  ;;  %v1882_v33 = vmul.f32 %v1881_v47, %v10777_v18  ;;  %v10914_v39 = vmul.f32 0.70710677, %v10900_v25 }
 0x319   : > { %v3029_v5 = vadd.f32 0.014752088, %v3028_v41  ;;  %v1740_v31 = vmul.f32 %v8557_v48, %v1739_v43  ;;  %v1746_v54 = vand.u32 2147483647, %v10843_v7  ;;  %vm1742_vm15 = vweird.f32 %v10843_v7 }
 0x31a   : > { %v2977_v58 = vmul.f32 %v2976_v49, %v10756_v1  ;;  %16360 = vst [vmem:[#allocation17_spill] sm:$0xff] %v10914_v39  ;;  %v8559_v29 = vpop.eup %8558  ;;  %v10920_v57 = vadd.f32 %v2609_v27, %v10028_v8  ;;  %v1920_v11 = vmul.f32 %v1919_v37, %v10819_v28  ;;  %v10923_v41 = vadd.f32 1.0, %v2994_v4  ;;  %vm1744_vm0 = vmor %vm1742_vm15, %vm1743_vm14 }
 0x31b   : > { %v3030_v20 = vmul.f32 %v3029_v5, %v10856_v53  ;;  %v1741_v6 = vadd.f32 %v8557_v48, %v1740_v31  ;;  %v1778_v47 = vmul.f32 %v8559_v29, %v10885_v36  ;;  %v1809_v49 = vmul.f32 %v1808_v34, %v10715_v9  ;;  %v2611_v34 = vpop.f32.mrf.mxu1 }
 0x31c   : > { %v1958_v43 = vmul.f32 %v1957_v12, %v10853_v60  ;;  %v1749_v5 = vor.u32 1.1754944e-38, %v1748_v35  ;;  %v2978_v31 = vadd.f32 0.0036580483, %v2977_v58  ;;  %v1994_v7 = vmul.f32 %v10914_v39, %v10914_v39 }
 0x31d   : > { %v3031_v25 = vadd.f32 0.112945676, %v3030_v20  ;;  %v1745_v52 = vsel %vm1744_vm0, %v8557_v48, %v1741_v6  ;;  %v3015_v27 = vmul.f32 2.1237322e-06, %v10856_v53  ;;  %vm1747_vm1 = vcmp.eq.f32.partialorder %v1746_v54, 8.507059e+37 }
 0x31e   : > { %v1750_v37 = vsel %vm1747_vm1, %v1749_v5, %v1745_v52  ;;  %v1779_v42 = vsub.f32 1.0, %v1778_v47  ;;  %v10933_v14 = vmul.f32 0.70710677, %v10920_v57  ;;  %8560 = vrcp.f32 %v10923_v41 }
 0x31f   : > { %v3032_v4 = vmul.f32 %v3031_v25, %v10856_v53  ;;  %v1786_v12 = vand.u32 2147483647, %v10885_v36  ;;  %v1788_v58 = vand.u32 2147483648, %v10885_v36  ;;  %v1810_v48 = vadd.f32 0.014752088, %v1809_v49 }
 0x320   : > { %v1780_v20 = vmul.f32 %v8559_v29, %v1779_v42  ;;  %vm1783_vm2 = vweird.f32 %v8559_v29  ;;  %v10939_v54 = vadd.f32 %v2611_v34, %v10028_v8  ;;  %v1883_v25 = vadd.f32 0.18741608, %v1882_v33 }
 0x321   : > { %v3033_v35 = vadd.f32 0.4994258, %v3032_v4  ;;  %v1921_v52 = vadd.f32 0.05243302, %v1920_v11  ;;  %v10941_v6 = vmin.f32 %v1994_v7, 16.0  ;;  %v1751_v47 = vmul.f32 %v1750_v37, %v10860_v44 }
 0x322   : > { %16361 = vst [vmem:[#allocation18_spill] sm:$0xff] %v10939_v54  ;;  %v3016_v5 = vadd.f32 0.00028619796, %v3015_v27  ;;  %v1781_v19 = vadd.f32 %v8559_v29, %v1780_v20  ;;  %vm1782_vm3 = vweird.f32 %v10885_v36  ;;  %v3053_v26 = vmul.f32 %v10933_v14, %v10933_v14 }
 0x323   : > { %v1959_v49 = vadd.f32 0.0036580483, %v1958_v43  ;;  %v2979_v42 = vmul.f32 %v2978_v31, %v10756_v1  ;;  %vm1784_vm4 = vmor %vm1782_vm3, %vm1783_vm2  ;;  %vm1787_vm5 = vcmp.eq.f32.partialorder %v1786_v12, 8.507059e+37  ;;  %v1789_v4 = vor.u32 1.1754944e-38, %v1788_v58 }
 0x324   : > { %v3034_v33 = vmul.f32 %v3033_v35, %v10856_v53  ;;  %v1785_v11 = vsel %vm1784_vm4, %v8559_v29, %v1781_v19  ;;  %v10950_v7 = vmul.f32 0.70710677, %v10939_v54  ;;  %v1811_v44 = vmul.f32 %v1810_v48, %v10715_v9  ;;  %v10953_v27 = vpop.eup %8560 }
 0x325   : > { %v1805_v36 = vadd.f32 1.1283791, %v10903_v17  ;;  %v1996_v37 = vmul.f32 2.1237322e-06, %v10941_v6  ;;  %v8150_v43 = vclamps-f32 %v1751_v47, 1.0  ;;  %v1790_v34 = vsel %vm1787_vm5, %v1789_v4, %v1785_v11 }
 0x326   : > { %v1845_v31 = vadd.f32 1.1283791, %v10906_v55  ;;  %v3017_v12 = vmul.f32 %v3016_v5, %v10856_v53  ;;  %v10959_v58 = vmin.f32 %v3053_v26, 16.0  ;;  %v1847_v19 = vmul.f32 3.8918573e-05, %v10721_v50 }
 0x327   : > { %v1884_v29 = vmul.f32 %v1883_v25, %v10777_v18  ;;  %v1922_v48 = vmul.f32 %v1921_v52, %v10819_v28  ;;  %v1960_v35 = vmul.f32 %v1959_v49, %v10853_v60  ;;  %v1791_v17 = vmul.f32 %v1790_v34, %v10891_v16 }
 0x328   : > { %v2980_v20 = vadd.f32 0.05243302, %v2979_v42  ;;  %v10966_v24 = vadd.f32 1.0, %v3034_v33  ;;  %v3093_v55 = vmul.f32 %v10950_v7, %v10950_v7  ;;  %v1812_v47 = vadd.f32 0.112945676, %v1811_v44 }
 0x329   : > { %v2997_v26 = vmul.f32 %v10953_v27, %v10923_v41  ;;  %v1997_v5 = vadd.f32 0.00028619796, %v1996_v37  ;;  %v8151_v4 = vclamps-f32 %v1791_v17, 1.0  ;;  %v2448_v11 = vadd.f32 1.0, %v8150_v43 }
 0x32a   : > { %v3018_v25 = vadd.f32 0.0036580483, %v3017_v12  ;;  %v3066_v52 = vmul.f32 3.8918573e-05, %v10959_v58  ;;  %v1813_v49 = vmul.f32 %v1812_v47, %v10715_v9  ;;  %v1848_v54 = vadd.f32 0.001143296, %v1847_v19 }
 0x32b   : > { %v1923_v16 = vadd.f32 0.18741608, %v1922_v48  ;;  %v1961_v42 = vadd.f32 0.05243302, %v1960_v35  ;;  %v2449_v33 = vadd.f32 1.0, %v8151_v4  ;;  %v10974_v34 = vmin.f32 %v3093_v55, 16.0 }
 0x32c   : > { %v2981_v39 = vmul.f32 %v2980_v20, %v10756_v1  ;;  %8562 = vrcp.f32 %v10966_v24  ;;  %v1814_v44 = vadd.f32 0.4994258, %v1813_v49  ;;  %v1849_v37 = vmul.f32 %v1848_v54, %v10721_v50 }
 0x32d   : > { %v1998_v43 = vmul.f32 %v1997_v5, %v10941_v6  ;;  %v2480_v12 = vmul.f32 %v2448_v11, %v10798_v63  ;;  %v2481_v17 = vmul.f32 %v2449_v33, %v10814_v21  ;;  %v3055_v19 = vmul.f32 2.1237322e-06, %v10959_v58 }
 0x32e   : > { %v2998_v48 = vsub.f32 1.0, %v2997_v26  ;;  %v3019_v35 = vmul.f32 %v3018_v25, %v10856_v53  ;;  %v3067_v55 = vadd.f32 0.001143296, %v3066_v52  ;;  %v1815_v47 = vmul.f32 %v1814_v44, %v10715_v9 }
 0x32f   : > { %v1962_v20 = vmul.f32 %v1961_v42, %v10853_v60  ;;  %v2522_v4 = vpack.c.bf16 %v2481_v17, %v2480_v12  ;;  %v3106_v49 = vmul.f32 3.8918573e-05, %v10974_v34  ;;  %v1850_v54 = vadd.f32 0.014752088, %v1849_v37 }
 0x330   : > { %v1885_v23 = vadd.f32 1.1283791, %v1884_v29  ;;  %v1924_v5 = vmul.f32 %v1923_v16, %v10819_v28  ;;  %v2982_v63 = vadd.f32 0.18741608, %v2981_v39  ;;  %v10988_v11 = vadd.f32 1.0, %v1815_v47 }
 0x331   : > { %v10991_v21 = vmul.f32 %v1805_v36, %v10672_v51  ;;  %v1999_v26 = vadd.f32 0.0036580483, %v1998_v43  ;;  %2623 = vmatmul.bf16.gmra.mxu1 %v2522_v4  ;;  %v3056_v25 = vadd.f32 0.00028619796, %v3055_v19  ;;  %v1851_v9 = vmul.f32 %v1850_v54, %v10721_v50 }
 0x332   : > { %v10994_v52 = vpop.eup %8562  ;;  %v2999_v42 = vmul.f32 %v10953_v27, %v2998_v48  ;;  %v3020_v33 = vadd.f32 0.05243302, %v3019_v35  ;;  %v3068_v29 = vmul.f32 %v3067_v55, %v10959_v58  ;;  %8564 = vrcp.f32 %v10988_v11 }
 0x333   : > { %v11000_v39 = vmul.f32 %v1845_v31, %v10678_v32  ;;  %v1963_v16 = vadd.f32 0.18741608, %v1962_v20  ;;  %v11003_v51 = vmul.f32 0.5, %v10728_v45  ;;  %v3107_v36 = vadd.f32 0.001143296, %v3106_v49 }
 0x334   : > { %v11006_v44 = vmul.f32 %v1885_v23, %v10732_v59  ;;  %v1925_v37 = vadd.f32 1.1283791, %v1924_v5  ;;  %v2983_v43 = vmul.f32 %v2982_v63, %v10756_v1  ;;  %vm3002_vm6 = vweird.f32 %v10953_v27 }
 0x335   : > { %v3037_v12 = vmul.f32 %v10994_v52, %v10966_v24  ;;  %v3057_v17 = vmul.f32 %v3056_v25, %v10959_v58  ;;  %v1852_v32 = vadd.f32 0.112945676, %v1851_v9  ;;  %v1887_v31 = vmul.f32 3.8918573e-05, %v10777_v18 }
 0x336   : > { %v3000_v45 = vadd.f32 %v10953_v27, %v2999_v42  ;;  %v2000_v19 = vmul.f32 %v1999_v26, %v10941_v6  ;;  %v3021_v59 = vmul.f32 %v3020_v33, %v10856_v53  ;;  %v3069_v23 = vadd.f32 0.014752088, %v3068_v29 }
 0x337   : > { %v1964_v48 = vmul.f32 %v1963_v16, %v10853_v60  ;;  %v3007_v1 = vand.u32 2147483648, %v10923_v41  ;;  %v3108_v35 = vmul.f32 %v3107_v36, %v10974_v34  ;;  %v1853_v55 = vmul.f32 %v1852_v32, %v10721_v50 }
 0x338   : > { %v11021_v47 = vpop.eup %8564  ;;  %v2984_v20 = vadd.f32 1.1283791, %v2983_v43  ;;  %vm3001_vm7 = vweird.f32 %v10923_v41  ;;  %v3005_v4 = vand.u32 2147483647, %v10923_v41  ;;  %v3095_v49 = vmul.f32 2.1237322e-06, %v10974_v34 }
 0x339   : > { %vm11028_vm9 = vmor %vm3001_vm7, %vm3002_vm6  ;;  %v3038_v5 = vsub.f32 1.0, %v3037_v12  ;;  %v3058_v63 = vadd.f32 0.0036580483, %v3057_v17  ;;  %v1818_v26 = vmul.f32 %v11021_v47, %v10988_v11  ;;  %v1888_v25 = vadd.f32 0.001143296, %v1887_v31 }
 0x33a   : > { %v3004_v9 = vsel %vm11028_vm9, %v10953_v27, %v3000_v45  ;;  %v2001_v42 = vadd.f32 0.05243302, %v2000_v19  ;;  %v3022_v41 = vadd.f32 0.18741608, %v3021_v59  ;;  %v3070_v33 = vmul.f32 %v3069_v23, %v10959_v58  ;;  %v2614_v45 = vpop.f32.mrf.mxu1 }
 0x33b   : > { %v3008_v29 = vor.u32 1.1754944e-38, %v3007_v1  ;;  %v3109_v16 = vadd.f32 0.014752088, %v3108_v35  ;;  %v1819_v36 = vsub.f32 1.0, %v1818_v26  ;;  %v1854_v43 = vadd.f32 0.4994258, %v1853_v55 }
 0x33c   : > { %v11039_v32 = vmul.f32 %v1925_v37, %v10787_v61  ;;  %v2985_v12 = vmul.f32 %v2984_v20, %v10741_v2  ;;  %vm3006_vm10 = vcmp.eq.f32.partialorder %v3005_v4, 8.507059e+37  ;;  %v3096_v17 = vadd.f32 0.00028619796, %v3095_v49 }
 0x33d   : > { %v3009_v31 = vsel %vm3006_vm10, %v3008_v29, %v3004_v9  ;;  %v3039_v56 = vmul.f32 %v10994_v52, %v3038_v5  ;;  %v3059_v27 = vmul.f32 %v3058_v63, %v10959_v58  ;;  %v1889_v19 = vmul.f32 %v1888_v25, %v10777_v18 }
 0x33e   : > { %v3071_v59 = vadd.f32 0.112945676, %v3070_v33  ;;  %v1820_v23 = vmul.f32 %v11021_v47, %v1819_v36  ;;  %v1855_v1 = vmul.f32 %v1854_v43, %v10721_v50  ;;  %v11048_v61 = vadd.f32 %v2614_v45, %v10028_v8 }
 0x33f   : > { %v11050_v37 = vadd.f32 1.1283791, %v1964_v48  ;;  %v11053_v2 = vmul.f32 %v2001_v42, %v10941_v6  ;;  %v3023_v35 = vmul.f32 %v3022_v41, %v10856_v53  ;;  %v3110_v55 = vmul.f32 %v3109_v16, %v10974_v34 }
 0x340   : > { %v11057_v20 = vmul.f32 %v3009_v31, %v2985_v12  ;;  %vm3042_vm11 = vweird.f32 %v10994_v52  ;;  %v3097_v4 = vmul.f32 %v3096_v17, %v10974_v34  ;;  %v11061_v49 = vadd.f32 1.0, %v1855_v1 }
 0x341   : > { %v3040_v50 = vadd.f32 %v10994_v52, %v3039_v56  ;;  %v3060_v54 = vadd.f32 0.05243302, %v3059_v27  ;;  %v11065_v48 = vmul.f32 0.70710677, %v11048_v61  ;;  %v1890_v5 = vadd.f32 0.014752088, %v1889_v19 }
 0x342   : > { %v3072_v63 = vmul.f32 %v3071_v59, %v10959_v58  ;;  %v1821_v53 = vadd.f32 %v11021_v47, %v1820_v23  ;;  %vm1823_vm12 = vweird.f32 %v11021_v47  ;;  %8566 = vrcp.f32 %v11061_v49 }
 0x343   : > { %v3024_v26 = vadd.f32 1.1283791, %v3023_v35  ;;  %vm3041_vm8 = vweird.f32 %v10966_v24  ;;  %v3111_v25 = vadd.f32 0.112945676, %v3110_v55  ;;  %v1828_v9 = vand.u32 2147483648, %v10988_v11 }
 0x344   : > { %vm11075_vm14 = vmor %vm3041_vm8, %vm3042_vm11  ;;  %v3045_v42 = vand.u32 2147483647, %v10966_v24  ;;  %v3047_v41 = vand.u32 2147483648, %v10966_v24  ;;  %vm1822_vm15 = vweird.f32 %v10988_v11  ;;  %v1826_v33 = vand.u32 2147483647, %v10988_v11 }
 0x345   : > { %v3098_v29 = vadd.f32 0.0036580483, %v3097_v4  ;;  %vm11083_vm0 = vmor %vm1822_vm15, %vm1823_vm12  ;;  %v3133_v36 = vmul.f32 %v11065_v48, %v11065_v48  ;;  %v1891_v43 = vmul.f32 %v1890_v5, %v10777_v18  ;;  %v1927_v12 = vmul.f32 3.8918573e-05, %v10819_v28 }
 0x346   : > { %v3044_v24 = vsel %vm11075_vm14, %v10994_v52, %v3040_v50  ;;  %v3061_v17 = vmul.f32 %v3060_v54, %v10959_v58  ;;  %v3073_v31 = vadd.f32 0.4994258, %v3072_v63  ;;  %v1825_v11 = vsel %vm11083_vm0, %v11021_v47, %v1821_v53  ;;  %v2616_v63 = vpop.f32.mrf.mxu1 }
 0x347   : > { %v3112_v27 = vmul.f32 %v3111_v25, %v10974_v34  ;;  %v1829_v45 = vor.u32 1.1754944e-38, %v1828_v9  ;;  %v11099_v19 = vmin.f32 %v3133_v36, 16.0  ;;  %v1892_v59 = vadd.f32 0.112945676, %v1891_v43 }
 0x348   : > { %v8567_v23 = vpop.eup %8566  ;;  %v3025_v1 = vmul.f32 %v3024_v26, %v10840_v38  ;;  %vm3046_vm1 = vcmp.eq.f32.partialorder %v3045_v42, 8.507059e+37  ;;  %v3048_v35 = vor.u32 1.1754944e-38, %v3047_v41  ;;  %vm1827_vm2 = vcmp.eq.f32.partialorder %v1826_v33, 8.507059e+37 }
 0x349   : > { %v3099_v52 = vmul.f32 %v3098_v29, %v10974_v34  ;;  %v1830_v55 = vsel %vm1827_vm2, %v1829_v45, %v1825_v11  ;;  %v1858_v4 = vmul.f32 %v8567_v23, %v11061_v49  ;;  %v1928_v50 = vadd.f32 0.001143296, %v1927_v12 }
 0x34a   : > { %v3049_v54 = vsel %vm3046_vm1, %v3048_v35, %v3044_v24  ;;  %v3062_v47 = vadd.f32 0.18741608, %v3061_v17  ;;  %v3146_v5 = vmul.f32 3.8918573e-05, %v11099_v19  ;;  %v1893_v53 = vmul.f32 %v1892_v59, %v10777_v18 }
 0x34b   : > { %v3074_v25 = vmul.f32 %v3073_v31, %v10959_v58  ;;  %v3113_v9 = vadd.f32 0.4994258, %v3112_v27  ;;  %v1859_v38 = vsub.f32 1.0, %v1858_v4  ;;  %v11108_v26 = vadd.f32 %v2616_v63, %v10028_v8 }
 0x34c   : > { %v1831_v56 = vmul.f32 %v1830_v55, %v10991_v21  ;;  %v1868_v42 = vand.u32 2147483648, %v11061_v49  ;;  %v3147_v41 = vadd.f32 0.001143296, %v3146_v5  ;;  %v1894_v33 = vadd.f32 0.4994258, %v1893_v53 }
 0x34d   : > { %v1860_v29 = vmul.f32 %v8567_v23, %v1859_v38  ;;  %vm1863_vm3 = vweird.f32 %v8567_v23  ;;  %v1866_v16 = vand.u32 2147483647, %v11061_v49  ;;  %v1929_v36 = vmul.f32 %v1928_v50, %v10819_v28 }
 0x34e   : > { %v3100_v43 = vadd.f32 0.05243302, %v3099_v52  ;;  %v3148_v12 = vmul.f32 %v3147_v41, %v11099_v19  ;;  %v11116_v24 = vmul.f32 0.70710677, %v11108_v26  ;;  %v1895_v17 = vmul.f32 %v1894_v33, %v10777_v18 }
 0x34f   : > { %v11119_v31 = vadd.f32 1.0, %v3074_v25  ;;  %v3114_v21 = vmul.f32 %v3113_v9, %v10974_v34  ;;  %v1861_v11 = vadd.f32 %v8567_v23, %v1860_v29  ;;  %vm1862_vm4 = vweird.f32 %v11061_v49 }
 0x350   : > { %vm1864_vm5 = vmor %vm1862_vm4, %vm1863_vm3  ;;  %v1869_v27 = vor.u32 1.1754944e-38, %v1868_v42  ;;  %v3149_v45 = vadd.f32 0.014752088, %v3148_v12  ;;  %v3173_v59 = vmul.f32 %v11116_v24, %v11116_v24  ;;  %v11125_v35 = vadd.f32 1.0, %v1895_v17 }
 0x351   : > { %v8152_v52 = vclamps-f32 %v1831_v56, 1.0  ;;  %v1865_v55 = vsel %vm1864_vm5, %v8567_v23, %v1861_v11  ;;  %vm1867_vm6 = vcmp.eq.f32.partialorder %v1866_v16, 8.507059e+37  ;;  %v1930_v4 = vadd.f32 0.014752088, %v1929_v36 }
 0x352   : > { %v3101_v18 = vmul.f32 %v3100_v43, %v10974_v34  ;;  %v1870_v50 = vsel %vm1867_vm6, %v1869_v27, %v1865_v55  ;;  %v3150_v5 = vmul.f32 %v3149_v45, %v11099_v19  ;;  %v11129_v63 = vmin.f32 %v3173_v59, 16.0 }
 0x353   : > { %v8222_v49 = vclamps-f32 %v11057_v20, 1.0  ;;  %v2003_v53 = vadd.f32 0.18741608, %v11053_v2  ;;  %v1871_v25 = vmul.f32 %v1870_v50, %v11000_v39  ;;  %8568 = vrcp.f32 %v11125_v35 }
 0x354   : > { %v3050_v9 = vmul.f32 %v3049_v54, %v3025_v1  ;;  %v3063_v23 = vmul.f32 %v3062_v47, %v10959_v58  ;;  %8570 = vrcp.f32 %v11119_v31  ;;  %v11137_v38 = vadd.f32 1.0, %v3114_v21 }
 0x355   : > { %v8153_v56 = vclamps-f32 %v1871_v25, 1.0  ;;  %v2450_v42 = vadd.f32 1.0, %v8152_v52  ;;  %v3186_v41 = vmul.f32 3.8918573e-05, %v11129_v63  ;;  %v1931_v33 = vmul.f32 %v1930_v4, %v10819_v28 }
 0x356   : > { %v2676_v20 = vmul.f32 0.5, %v10831_v22  ;;  %v11143_v2 = vmul.f32 0.5, %v10920_v57  ;;  %v3102_v39 = vadd.f32 0.18741608, %v3101_v18  ;;  %v3151_v29 = vadd.f32 0.112945676, %v3150_v5 }
 0x357   : > { %v2004_v1 = vmul.f32 %v2003_v53, %v10941_v6  ;;  %v2451_v58 = vadd.f32 1.0, %v8153_v56  ;;  %v3135_v54 = vmul.f32 2.1237322e-06, %v11099_v19  ;;  %v3187_v47 = vadd.f32 0.001143296, %v3186_v41 }
 0x358   : > { %v4019_v16 = vadd.f32 1.0, %v8222_v49  ;;  %v8223_v36 = vclamps-f32 %v3050_v9, 1.0  ;;  %v3064_v43 = vadd.f32 1.1283791, %v3063_v23  ;;  %8572 = vrcp.f32 %v11137_v38 }
 0x359   : > { %v11148_v12 = vpop.eup %8568  ;;  %v2482_v22 = vmul.f32 %v2450_v42, %v10825_v0  ;;  %v2483_v57 = vmul.f32 %v2451_v58, %v10863_v3  ;;  %v3188_v17 = vmul.f32 %v3187_v47, %v11129_v63  ;;  %v1932_v21 = vadd.f32 0.112945676, %v1931_v33 }
 0x35a   : > { %v11153_v11 = vpop.eup %8570  ;;  %v3103_v27 = vmul.f32 %v3102_v39, %v10974_v34  ;;  %v3152_v45 = vmul.f32 %v3151_v29, %v11099_v19  ;;  %v1898_v59 = vmul.f32 %v11148_v12, %v11125_v35  ;;  %v1967_v52 = vmul.f32 3.8918573e-05, %v10853_v60 }
 0x35b   : > { %v2523_v55 = vpack.c.bf16 %v2483_v57, %v2482_v22  ;;  %v3136_v4 = vadd.f32 0.00028619796, %v3135_v54  ;;  %v3189_v18 = vadd.f32 0.014752088, %v3188_v17  ;;  %v1933_v0 = vmul.f32 %v1932_v21, %v10819_v28 }
 0x35c   : > { %v11161_v3 = vadd.f32 1.1283791, %v2004_v1  ;;  %v4020_v50 = vadd.f32 1.0, %v8223_v36  ;;  %v3175_v5 = vmul.f32 2.1237322e-06, %v11129_v63  ;;  %v1899_v49 = vsub.f32 1.0, %v1898_v59 }
 0x35d   : > { %v3077_v34 = vmul.f32 %v11153_v11, %v11119_v31  ;;  %v3087_v53 = vand.u32 2147483648, %v11119_v31  ;;  %2628 = vmatmul.bf16.gmra.mxu1 %v2523_v55  ;;  %v3190_v25 = vmul.f32 %v3189_v18, %v11129_v63  ;;  %v1934_v9 = vadd.f32 0.4994258, %v1933_v0  ;;  %v2619_v57 = vpop.f32.mrf.mxu1 }
 0x35e   : > { %v11168_v23 = vpop.eup %8572  ;;  %v4051_v56 = vmul.f32 %v4019_v16, %v11003_v51  ;;  %v3104_v42 = vadd.f32 1.1283791, %v3103_v27  ;;  %v3153_v41 = vadd.f32 0.4994258, %v3152_v45  ;;  %v1968_v33 = vadd.f32 0.001143296, %v1967_v52 }
 0x35f   : > { %v11172_v39 = vmul.f32 %v3064_v43, %v10933_v14  ;;  %v3137_v29 = vmul.f32 %v3136_v4, %v11099_v19  ;;  %v3191_v1 = vadd.f32 0.112945676, %v3190_v25  ;;  %v1935_v58 = vmul.f32 %v1934_v9, %v10819_v28 }
 0x360   : > { %v11176_v54 = vmul.f32 %v4020_v50, %v2676_v20  ;;  %v3085_v47 = vand.u32 2147483647, %v11119_v31  ;;  %v3176_v36 = vadd.f32 0.00028619796, %v3175_v5  ;;  %v1900_v22 = vmul.f32 %v11148_v12, %v1899_v49  ;;  %v4112_v5 = vpop.xlane.xlu1 %4111 }
 0x361   : > { %v3078_v51 = vsub.f32 1.0, %v3077_v34  ;;  %v11180_v16 = vor.u32 1.1754944e-38, %v3087_v53  ;;  %v3192_v17 = vmul.f32 %v3191_v1, %v11129_v63  ;;  %v11183_v14 = vadd.f32 1.0, %v1935_v58  ;;  %v8846_v58 = vld [vmem:[%s8919_s18 + $0x30] sm:$0xff] }
 0x362   : > { %v11186_v43 = vmul.f32 %v3104_v42, %v10950_v7  ;;  %v3117_v28 = vmul.f32 %v11168_v23, %v11137_v38  ;;  %v3154_v20 = vmul.f32 %v3153_v41, %v11099_v19  ;;  %v1969_v21 = vmul.f32 %v1968_v33, %v10853_v60 }
 0x363   : > { %v3138_v27 = vadd.f32 0.0036580483, %v3137_v29  ;;  %v3193_v45 = vadd.f32 0.4994258, %v3192_v17  ;;  %8574 = vrcp.f32 %v11183_v14  ;;  %v11194_v59 = vadd.f32 %v2619_v57, %v10028_v8 }
 0x364   : > { %v3125_v52 = vand.u32 2147483647, %v11137_v38  ;;  %v3177_v55 = vmul.f32 %v3176_v36, %v11129_v63  ;;  %v1901_v7 = vadd.f32 %v11148_v12, %v1900_v22  ;;  %vm1903_vm7 = vweird.f32 %v11148_v12 }
 0x365   : > { %v3079_v4 = vmul.f32 %v11153_v11, %v3078_v51  ;;  %vm3081_vm9 = vweird.f32 %v11119_v31  ;;  %v3127_v18 = vand.u32 2147483648, %v11137_v38  ;;  %v3194_v0 = vmul.f32 %v3193_v45, %v11129_v63 }
 0x366   : > { %v1908_v50 = vand.u32 2147483648, %v11125_v35  ;;  %v11205_v49 = vadd.f32 1.0, %v3154_v20  ;;  %vm1902_vm10 = vweird.f32 %v11125_v35  ;;  %v1906_v34 = vand.u32 2147483647, %v11125_v35 }
 0x367   : > { %v1970_v53 = vadd.f32 0.014752088, %v1969_v21  ;;  %v3118_v25 = vsub.f32 1.0, %v3117_v28  ;;  %v3139_v9 = vmul.f32 %v3138_v27, %v11099_v19  ;;  %v11210_v42 = vadd.f32 1.0, %v3194_v0  ;;  %vm11212_vm11 = vmor %vm1902_vm10, %vm1903_vm7 }
 0x368   : > { %v11217_v33 = vmul.f32 0.70710677, %v11194_v59  ;;  %v3178_v29 = vadd.f32 0.0036580483, %v3177_v55  ;;  %v1905_v1 = vsel %vm11212_vm11, %v11148_v12, %v1901_v7  ;;  %v4175_v35 = vmul.f32 %v4112_v5, %v8928_v13 }
 0x369   : > { %v11224_v36 = vadd.f32 %v8846_v58, %v4051_v56  ;;  %v8575_v22 = vpop.eup %8574  ;;  %v3080_v57 = vadd.f32 %v11153_v11, %v3079_v4  ;;  %vm3082_vm12 = vweird.f32 %v11153_v11  ;;  %8576 = vrcp.f32 %v11210_v42 }
 0x36a   : > { %v1909_v51 = vor.u32 1.1754944e-38, %v1908_v50  ;;  %vm11229_vm8 = vcmp.eq.f32.partialorder %v3085_v47, 8.507059e+37  ;;  %8578 = vrcp.f32 %v11205_v49  ;;  %vm1907_vm14 = vcmp.eq.f32.partialorder %v1906_v34, 8.507059e+37  ;;  %vm11256_vm0 = vmor %vm3081_vm9, %vm3082_vm12 }
 0x36b   : > { %16370 = vst [vmem:[#allocation19_spill] sm:$0xff] %v11224_v36  ;;  %v1938_v12 = vmul.f32 %v8575_v22, %v11183_v14  ;;  %4123 = vadd.xlane.f32.xlu0 %v11224_v36  ;;  %v1971_v56 = vmul.f32 %v1970_v53, %v10853_v60  ;;  %v3119_v28 = vmul.f32 %v11168_v23, %v3118_v25  ;;  %vm3121_vm15 = vweird.f32 %v11137_v38 }
 0x36c   : > { %v1910_v20 = vsel %vm1907_vm14, %v1909_v51, %v1905_v1  ;;  %v3213_v21 = vmul.f32 %v11217_v33, %v11217_v33  ;;  %v11241_v47 = vsub.f32 %v10423_v40, %v4175_v35  ;;  %v3140_v27 = vadd.f32 0.05243302, %v3139_v9 }
 0x36d   : > { %v3179_v45 = vmul.f32 %v3178_v29, %v11129_v63  ;;  %v1939_v55 = vsub.f32 1.0, %v1938_v12  ;;  %v2007_v7 = vmul.f32 3.8918573e-05, %v10941_v6  ;;  %v1946_v4 = vand.u32 2147483647, %v11183_v14 }
 0x36e   : > { %v1948_v0 = vand.u32 2147483648, %v11183_v14  ;;  %v11248_v50 = vmin.f32 %v3213_v21, 16.0  ;;  %v4239_v5 = vmul.f32 %v11241_v47, %v11241_v47  ;;  %v1911_v53 = vmul.f32 %v1910_v20, %v11006_v44 }
 0x36f   : > { %v1940_v25 = vmul.f32 %v8575_v22, %v1939_v55  ;;  %vm1943_vm1 = vweird.f32 %v8575_v22  ;;  %v1972_v9 = vadd.f32 0.112945676, %v1971_v56  ;;  %v11261_v41 = vpop.eup %8576  ;;  %v3084_v29 = vsel %vm11256_vm0, %v11153_v11, %v3080_v57 }
 0x370   : > { %v3120_v1 = vadd.f32 %v11168_v23, %v3119_v28  ;;  %vm3122_vm2 = vweird.f32 %v11168_v23  ;;  %v3226_v31 = vmul.f32 3.8918573e-05, %v11248_v50  ;;  %4271 = vadd.xlane.f32.xlu1 %v4239_v5  ;;  %v11269_v35 = vpop.eup %8578  ;;  %vm11271_vm3 = vcmp.eq.f32.partialorder %v3125_v52, 8.507059e+37 }
 0x371   : > { %v3141_v58 = vmul.f32 %v3140_v27, %v11099_v19  ;;  %v3180_v51 = vadd.f32 0.05243302, %v3179_v45  ;;  %v1941_v12 = vadd.f32 %v8575_v22, %v1940_v25  ;;  %vm1942_vm4 = vweird.f32 %v11183_v14  ;;  %vm11293_vm7 = vmor %vm3121_vm15, %vm3122_vm2 }
 0x372   : > { %vm1944_vm5 = vmor %vm1942_vm4, %vm1943_vm1  ;;  %vm1947_vm6 = vcmp.eq.f32.partialorder %v1946_v4, 8.507059e+37  ;;  %v1949_v11 = vor.u32 1.1754944e-38, %v1948_v0  ;;  %v3227_v57 = vadd.f32 0.001143296, %v3226_v31  ;;  %v2008_v56 = vadd.f32 0.001143296, %v2007_v7 }
 0x373   : > { %v3197_v28 = vmul.f32 %v11261_v41, %v11210_v42  ;;  %v8154_v20 = vclamps-f32 %v1911_v53, 1.0  ;;  %v1945_v21 = vsel %vm1944_vm5, %v8575_v22, %v1941_v12  ;;  %v1973_v52 = vmul.f32 %v1972_v9, %v10853_v60  ;;  %v2621_v12 = vpop.f32.mrf.mxu1 }
 0x374   : > { %v3089_v27 = vsel %vm11229_vm8, %v11180_v16, %v3084_v29  ;;  %v3157_v45 = vmul.f32 %v11269_v35, %v11205_v49  ;;  %v1950_v14 = vsel %vm1947_vm6, %v1949_v11, %v1945_v21  ;;  %v3228_v55 = vmul.f32 %v3227_v57, %v11248_v50 }
 0x375   : > { %v3142_v4 = vadd.f32 0.18741608, %v3141_v58  ;;  %v3181_v7 = vmul.f32 %v3180_v51, %v11129_v63  ;;  %v1951_v0 = vmul.f32 %v1950_v14, %v11039_v32  ;;  %v3215_v5 = vmul.f32 2.1237322e-06, %v11248_v50 }
 0x376   : > { %v3128_v16 = vor.u32 1.1754944e-38, %v3127_v18  ;;  %v3229_v17 = vadd.f32 0.014752088, %v3228_v55  ;;  %v1974_v34 = vadd.f32 0.4994258, %v1973_v52  ;;  %v2009_v53 = vmul.f32 %v2008_v56, %v10941_v6 }
 0x377   : > { %v3124_v32 = vsel %vm11293_vm7, %v11168_v23, %v3120_v1  ;;  %v3198_v25 = vsub.f32 1.0, %v3197_v28  ;;  %v8155_v9 = vclamps-f32 %v1951_v0, 1.0  ;;  %v2452_v29 = vadd.f32 1.0, %v8154_v20 }
 0x378   : > { %v3090_v31 = vmul.f32 %v3089_v27, %v11172_v39  ;;  %v3158_v58 = vsub.f32 1.0, %v3157_v45  ;;  %v3230_v51 = vmul.f32 %v3229_v17, %v11248_v50  ;;  %v1975_v38 = vmul.f32 %v1974_v34, %v10853_v60 }
 0x379   : > { %v3143_v18 = vmul.f32 %v3142_v4, %v11099_v19  ;;  %v3182_v11 = vadd.f32 0.18741608, %v3181_v7  ;;  %v2453_v57 = vadd.f32 1.0, %v8155_v9  ;;  %v3216_v56 = vadd.f32 0.00028619796, %v3215_v5 }
 0x37a   : > { %v3129_v21 = vsel %vm11271_vm3, %v3128_v16, %v3124_v32  ;;  %v3231_v23 = vadd.f32 0.112945676, %v3230_v51  ;;  %v11309_v1 = vadd.f32 1.0, %v1975_v38  ;;  %v2010_v28 = vadd.f32 0.014752088, %v2009_v53 }
 0x37b   : > { %v3199_v39 = vmul.f32 %v11261_v41, %v3198_v25  ;;  %v2484_v20 = vmul.f32 %v2452_v29, %v10866_v46  ;;  %v2485_v52 = vmul.f32 %v2453_v57, %v10882_v10  ;;  %v11315_v60 = vadd.f32 %v2621_v12, %v10028_v8  ;;  %v4114_v46 = vpop.xlane.xlu2 %4113 }
 0x37c   : > { %v8224_v19 = vclamps-f32 %v3090_v31, 1.0  ;;  %v3159_v27 = vmul.f32 %v11269_v35, %v3158_v58  ;;  %v3232_v45 = vmul.f32 %v3231_v23, %v11248_v50  ;;  %8580 = vrcp.f32 %v11309_v1 }
 0x37d   : > { %v11321_v44 = vmul.f32 %v3129_v21, %v11186_v43  ;;  %v3144_v14 = vadd.f32 1.1283791, %v3143_v18  ;;  %v2524_v55 = vpack.c.bf16 %v2485_v52, %v2484_v20  ;;  %v3217_v4 = vmul.f32 %v3216_v56, %v11248_v50 }
 0x37e   : > { %vm3162_vm9 = vweird.f32 %v11269_v35  ;;  %v3183_v10 = vmul.f32 %v3182_v11, %v11129_v63  ;;  %v3233_v7 = vadd.f32 0.4994258, %v3232_v45  ;;  %v2011_v0 = vmul.f32 %v2010_v28, %v10941_v6 }
 0x37f   : > { %v3200_v5 = vadd.f32 %v11261_v41, %v3199_v39  ;;  %vm3202_vm10 = vweird.f32 %v11261_v41  ;;  %v3207_v22 = vand.u32 2147483648, %v11210_v42  ;;  %2633 = vmatmul.bf16.gmra.mxu1 %v2524_v55  ;;  %v11331_v43 = vmul.f32 0.70710677, %v11315_v60  ;;  %v437_v55 = vpop.xlane.xlu0 %436 }
 0x380   : > { %v3160_v16 = vadd.f32 %v11269_v35, %v3159_v27  ;;  %v3234_v17 = vmul.f32 %v3233_v7, %v11248_v50  ;;  %v4176_v34 = vmul.f32 %v4114_v46, %v8928_v13  ;;  %v2012_v63 = vadd.f32 0.112945676, %v2011_v0  ;;  %v11385_v0 = vpop.f32.mrf.mxu0 }
 0x381   : > { %v3167_v53 = vand.u32 2147483648, %v11205_v49  ;;  %vm3201_vm11 = vweird.f32 %v11210_v42  ;;  %v3205_v32 = vand.u32 2147483647, %v11210_v42  ;;  %v3218_v25 = vadd.f32 0.0036580483, %v3217_v4 }
 0x382   : > { %v11339_v9 = vpop.eup %8580  ;;  %vm3161_vm12 = vweird.f32 %v11205_v49  ;;  %v3165_v29 = vand.u32 2147483647, %v11205_v49  ;;  %vm11345_vm8 = vmor %vm3201_vm11, %vm3202_vm10  ;;  %v11349_v58 = vadd.f32 1.0, %v3234_v17  ;;  %v2013_v51 = vmul.f32 %v2012_v63, %v10941_v6  ;;  %v16385_v17 = vld [vmem:[#allocation8_spill] sm:$0xff] }
 0x383   : > { %vm11354_vm14 = vmor %vm3161_vm12, %vm3162_vm9  ;;  %v3184_v12 = vadd.f32 1.1283791, %v3183_v10  ;;  %v3204_v49 = vsel %vm11345_vm8, %v11261_v41, %v3200_v5  ;;  %v3253_v38 = vmul.f32 %v11331_v43, %v11331_v43  ;;  %v1978_v18 = vmul.f32 %v11339_v9, %v11309_v1  ;;  %v8847_v10 = vld [vmem:[%s8919_s18 + $0x38] sm:$0xff] }
 0x384   : > { %v3164_v11 = vsel %vm11354_vm14, %v11269_v35, %v3160_v16  ;;  %v3208_v57 = vor.u32 1.1754944e-38, %v3207_v22  ;;  %8582 = vrcp.f32 %v11349_v58  ;;  %v11370_v56 = vsub.f32 %v10432_v15, %v4176_v34 }
 0x385   : > { %v3168_v21 = vor.u32 1.1754944e-38, %v3167_v53  ;;  %vm3206_vm15 = vcmp.eq.f32.partialorder %v3205_v32, 8.507059e+37  ;;  %v3219_v41 = vmul.f32 %v3218_v25, %v11248_v50  ;;  %v1979_v23 = vsub.f32 1.0, %v1978_v18  ;;  %v16388_v25 = vld [vmem:[#allocation17_spill] sm:$0xff] }
 0x386   : > { %v4021_v28 = vadd.f32 1.0, %v8224_v19  ;;  %vm3166_vm0 = vcmp.eq.f32.partialorder %v3165_v29, 8.507059e+37  ;;  %v3209_v39 = vsel %vm3206_vm15, %v3208_v57, %v3204_v49  ;;  %v2014_v20 = vadd.f32 0.4994258, %v2013_v51  ;;  %v4118_v51 = vpop.xlane.xlu1 %4117 }
 0x387   : > { %v8225_v52 = vclamps-f32 %v11321_v44, 1.0  ;;  %v3169_v27 = vsel %vm3166_vm0, %v3168_v21, %v3164_v11  ;;  %v3185_v35 = vmul.f32 %v3184_v12, %v11116_v24  ;;  %v11375_v45 = vmin.f32 %v3253_v38, 16.0  ;;  %v8848_v11 = vld [vmem:[%s8919_s18 + $0x40] sm:$0xff] }
 0x388   : > { %v2015_v4 = vmul.f32 %v2014_v20, %v10941_v6  ;;  %v4240_v46 = vmul.f32 %v11370_v56, %v11370_v56  ;;  %v11382_v7 = vadd.f32 %v8847_v10, %v11176_v54  ;;  %v469_v19 = vmul.f32 %v437_v55, %v8928_v13  ;;  %v16384_v6 = vld [vmem:[#allocation10_spill] sm:$0xff] }
 0x389   : > { %v3145_v44 = vmul.f32 %v3144_v14, %v11065_v48  ;;  %v3210_v5 = vmul.f32 %v3209_v39, %v3185_v35  ;;  %v3220_v24 = vadd.f32 0.05243302, %v3219_v41  ;;  %v1980_v22 = vmul.f32 %v11339_v9, %v1979_v23  ;;  %v16387_v14 = vld [vmem:[#allocation9_spill] sm:$0xff]  ;;  %v4116_v39 = vpop.xlane.xlu0 %4115  ;;  %v16393_v35 = vld [vmem:[#allocation12_spill] sm:$0xff] }
 0x38a   : > { %16383 = vst [vmem:[#allocation20_spill] sm:$0xff] %v11382_v7  ;;  %v11389_v16 = vpop.eup %8582  ;;  %v16386_v34 = vsel %vm10877_vm13, %v10768_v30, %v16385_v17  ;;  %v4053_v63 = vmul.f32 %v4021_v28, %v11143_v2  ;;  %v11400_v53 = vadd.f32 1.0, %v2015_v4  ;;  %4273 = vadd.xlane.f32.xlu2 %v4240_v46  ;;  %4125 = vadd.xlane.f32.xlu1 %v11382_v7  ;;  %v11403_v48 = vadd.f32 1e-05, %v469_v19  ;;  %v16389_v30 = vld [vmem:[#allocation18_spill] sm:$0xff]  ;;  %v11442_v19 = vpop.f32.mrf.mxu0 }
 0x38b   : > { %v11397_v54 = vmul.f32 %v16386_v34, %v16384_v6  ;;  %v1966_v32 = vmul.f32 %v11050_v37, %v16387_v14  ;;  %v11409_v62 = vmul.f32 %v11161_v3, %v16388_v25  ;;  %v2678_v29 = vmul.f32 0.5, %v16389_v30  ;;  %v4120_v3 = vpop.xlane.xlu2 %4119 }
 0x38c   : > { %v3170_v31 = vmul.f32 %v3169_v27, %v3145_v44  ;;  %v4022_v2 = vadd.f32 1.0, %v8225_v52  ;;  %v3237_v42 = vmul.f32 %v11389_v16, %v11349_v58  ;;  %v3266_v12 = vmul.f32 3.8918573e-05, %v11375_v45 }
 0x38d   : > { %8584 = vrcp.f32 %v11400_v53  ;;  %v8227_v49 = vclamps-f32 %v3210_v5, 1.0  ;;  %v3221_v37 = vmul.f32 %v3220_v24, %v11248_v50  ;;  %v1981_v38 = vadd.f32 %v11339_v9, %v1980_v22 }
 0x38e   : > { %vm1983_vm13 = vweird.f32 %v11339_v9  ;;  %v1988_v18 = vand.u32 2147483648, %v11309_v1  ;;  %8586 = vrsqrt.f32 %v11403_v48  ;;  %v11422_v57 = vadd.f32 %v8848_v11, %v4053_v63 }
 0x38f   : > { %v4178_v21 = vmul.f32 %v4118_v51, %v8928_v13  ;;  %v11426_v41 = vmul.f32 0.5, %v11048_v61  ;;  %v8226_v23 = vclamps-f32 %v3170_v31, 1.0  ;;  %vm1982_vm1 = vweird.f32 %v11309_v1 }
 0x390   : > { %16390 = vst [vmem:[#allocation10_spill] sm:$0xff] %v11422_v57  ;;  %v1986_v28 = vand.u32 2147483647, %v11309_v1  ;;  %v3238_v20 = vsub.f32 1.0, %v3237_v42  ;;  %v3267_v52 = vadd.f32 0.001143296, %v3266_v12  ;;  %vm11430_vm2 = vmor %vm1982_vm1, %vm1983_vm13  ;;  %v4179_v4 = vmul.f32 %v4120_v3, %v8928_v13 }
 0x391   : > { %v11435_v55 = vsub.f32 %v16393_v35, %v4178_v21  ;;  %v4024_v46 = vadd.f32 1.0, %v8227_v49  ;;  %v3222_v61 = vadd.f32 0.18741608, %v3221_v37  ;;  %v1985_v10 = vsel %vm11430_vm2, %v11339_v9, %v1981_v38  ;;  %v16395_v9 = vld [vmem:[#allocation13_spill] sm:$0xff]  ;;  %v4122_v21 = vpop.xlane.xlu0 %4121 }
 0x392   : > { %v4177_v1 = vmul.f32 %v4116_v39, %v8928_v13  ;;  %v4054_v5 = vmul.f32 %v4022_v2, %v2678_v29  ;;  %v2680_v24 = vmul.f32 0.5, %v11108_v26  ;;  %v1989_v22 = vor.u32 1.1754944e-38, %v1988_v18  ;;  %4127 = vadd.xlane.f32.xlu1 %v11422_v57  ;;  %v16397_v29 = vld [vmem:[#allocation14_spill] sm:$0xff] }
 0x393   : > { %16394 = vst [vmem:[#allocation8_spill] sm:$0xff] %v11435_v55  ;;  %v8585_v44 = vpop.eup %8584  ;;  %v4242_v6 = vmul.f32 %v11435_v55, %v11435_v55  ;;  %v11448_v17 = vadd.f32 1.0, %v8226_v23  ;;  %vm1987_vm3 = vcmp.eq.f32.partialorder %v1986_v28, 8.507059e+37  ;;  %v3239_v25 = vmul.f32 %v11389_v16, %v3238_v20 }
 0x394   : > { %v2018_v34 = vmul.f32 %v8585_v44, %v11400_v53  ;;  %v11452_v63 = vsub.f32 %v16395_v9, %v4177_v1  ;;  %v8587_v14 = vpop.eup %8586  ;;  %v3268_v30 = vmul.f32 %v3267_v52, %v11375_v45  ;;  %v1990_v26 = vsel %vm1987_vm3, %v1989_v22, %v1985_v10 }
 0x395   : > { %4277 = vadd.xlane.f32.xlu0 %v4242_v6  ;;  %v11457_v31 = vsub.f32 %v16397_v29, %v4179_v4  ;;  %v4056_v51 = vmul.f32 %v4024_v46, %v2680_v24  ;;  %v3223_v2 = vmul.f32 %v3222_v61, %v11248_v50  ;;  %v813_v12 = vmul.f32 %v8587_v14, %v11403_v48  ;;  %v16399_v4 = vld [vmem:[#allocation15_spill] sm:$0xff] }
 0x396   : > { %16396 = vst [vmem:[#allocation9_spill] sm:$0xff] %v11452_v63  ;;  %v2019_v42 = vsub.f32 1.0, %v2018_v34  ;;  %vm3241_vm4 = vweird.f32 %v11349_v58  ;;  %v2026_v49 = vand.u32 2147483647, %v11400_v53  ;;  %v2028_v37 = vand.u32 2147483648, %v11400_v53 }
 0x397   : > { %16398 = vst [vmem:[#allocation17_spill] sm:$0xff] %v11457_v31  ;;  %v4241_v38 = vmul.f32 %v11452_v63, %v11452_v63  ;;  %v1991_v3 = vmul.f32 %v1990_v26, %v1966_v32  ;;  %vm2023_vm5 = vweird.f32 %v8585_v44  ;;  %v814_v11 = vmul.f32 %v8587_v14, %v813_v12 }
 0x398   : > { %v2020_v18 = vmul.f32 %v8585_v44, %v2019_v42  ;;  %v3240_v23 = vadd.f32 %v11389_v16, %v3239_v25  ;;  %vm3242_vm6 = vweird.f32 %v11389_v16  ;;  %v4243_v50 = vmul.f32 %v11457_v31, %v11457_v31 }
 0x399   : > { %4275 = vadd.xlane.f32.xlu2 %v4241_v38  ;;  %v4180_v28 = vmul.f32 %v4122_v21, %v8928_v13  ;;  %v3247_v39 = vand.u32 2147483648, %v11349_v58  ;;  %vm2022_vm7 = vweird.f32 %v11400_v53  ;;  %v815_v32 = vmul.f32 0.5, %v814_v11  ;;  %vm11479_vm11 = vmor %vm3241_vm4, %vm3242_vm6  ;;  %v1070_v53 = vpop.f32.mrf.mxu0  ;;  %v16405_v11 = vld [vmem:[#allocation6_spill] sm:$0xff] }
 0x39a   : > { %v2021_v20 = vadd.f32 %v8585_v44, %v2020_v18  ;;  %v3245_v52 = vand.u32 2147483647, %v11349_v58  ;;  %vm2024_vm9 = vmor %vm2022_vm7, %vm2023_vm5  ;;  %vm2027_vm10 = vcmp.eq.f32.partialorder %v2026_v49, 8.507059e+37  ;;  %v2029_v27 = vor.u32 1.1754944e-38, %v2028_v37 }
 0x39b   : > { %v11475_v46 = vsub.f32 %v16399_v4, %v4180_v28  ;;  %v8156_v10 = vclamps-f32 %v1991_v3, 1.0  ;;  %v816_v24 = vsub.f32 1.5, %v815_v32  ;;  %vm819_vm12 = vweird.f32 %v8587_v14 }
 0x39c   : > { %v2025_v1 = vsel %vm2024_vm9, %v8585_v44, %v2021_v20  ;;  %v3224_v22 = vadd.f32 1.1283791, %v3223_v2  ;;  %v3244_v6 = vsel %vm11479_vm11, %v11389_v16, %v3240_v23  ;;  %v3248_v25 = vor.u32 1.1754944e-38, %v3247_v39  ;;  %v8849_v2 = vld [vmem:[%s8919_s18 + $0x48] sm:$0xff]  ;;  %v16404_v16 = vld [vmem:[#allocation4_spill] sm:$0xff] }
 0x39d   : > { %16400 = vst [vmem:[#allocation18_spill] sm:$0xff] %v11475_v46  ;;  %v2030_v34 = vsel %vm2027_vm10, %v2029_v27, %v2025_v1  ;;  %4279 = vadd.xlane.f32.xlu0 %v4243_v50  ;;  %v4244_v58 = vmul.f32 %v11475_v46, %v11475_v46  ;;  %v817_v42 = vmul.f32 %v8587_v14, %v816_v24  ;;  %vm818_vm8 = vweird.f32 %v11403_v48  ;;  %v8850_v48 = vld [vmem:[%s8919_s18 + $0x58] sm:$0xff]  ;;  %v16408_v50 = vld [vmem:[#allocation7_spill] sm:$0xff]  ;;  %v16409_v39 = vld [vmem:[#allocation16_spill] sm:$0xff] }
 0x39e   : > { %v2031_v26 = vmul.f32 %v2030_v34, %v11409_v62  ;;  %vm3246_vm14 = vcmp.eq.f32.partialorder %v3245_v52, 8.507059e+37  ;;  %v3269_v44 = vadd.f32 0.014752088, %v3268_v30  ;;  %vm820_vm15 = vmor %vm818_vm8, %vm819_vm12  ;;  %v11491_v12 = vadd.f32 %v8849_v2, %v4054_v5  ;;  %v16407_v5 = vld [vmem:[#allocation2_spill] sm:$0xff]  ;;  %v16410_v1 = vld [vmem:[#allocation3_spill] sm:$0xff] }
 0x39f   : > { %4281 = vadd.xlane.f32.xlu1 %v4244_v58  ;;  %v11494_v49 = vadd.f32 %v1070_v53, %v16404_v16  ;;  %v3249_v37 = vsel %vm3246_vm14, %v3248_v25, %v3244_v6  ;;  %v2454_v3 = vadd.f32 1.0, %v8156_v10  ;;  %v821_v18 = vsel %vm820_vm15, %v8587_v14, %v817_v42  ;;  %v8851_v58 = vld [vmem:[%s8919_s18 + $0x50] sm:$0xff] }
 0x3a0   : > { %16403 = vst [vmem:[#allocation21_spill] sm:$0xff] %v11491_v12  ;;  %v8157_v38 = vclamps-f32 %v2031_v26, 1.0  ;;  %v3225_v62 = vmul.f32 %v3224_v22, %v11217_v33  ;;  %v853_v21 = vmul.f32 %v821_v18, %v16405_v11  ;;  %v11500_v30 = vadd.f32 %v8850_v48, %v4056_v51  ;;  %v8852_v48 = vld [vmem:[%s8919_s18 + $0x60] sm:$0xff] }
 0x3a1   : > { %4129 = vadd.xlane.f32.xlu2 %v11491_v12  ;;  %v885_v23 = vmul.f32 %v16407_v5, %v11397_v54  ;;  %v1110_v28 = vmul.f32 0.5, %v16408_v50  ;;  %v1111_v20 = vmul.f32 0.5, %v16409_v39  ;;  %v11507_v52 = vmul.f32 0.70710677, %v11494_v49 }
 0x3a2   : > { %16406 = vst [vmem:[#allocation4_spill] sm:$0xff] %v11500_v30  ;;  %v2455_v32 = vadd.f32 1.0, %v8157_v38  ;;  %v4055_v33 = vmul.f32 %v11448_v17, %v11426_v41  ;;  %v3250_v14 = vmul.f32 %v3249_v37, %v3225_v62  ;;  %v3270_v27 = vmul.f32 %v3269_v44, %v11375_v45 }
 0x3a3   : > { %v886_v51 = vmul.f32 %v16407_v5, %v853_v21  ;;  %v2486_v61 = vmul.f32 %v2454_v3, %v1110_v28  ;;  %v2114_v54 = vmul.f32 %v11507_v52, %v11507_v52  ;;  %v918_v24 = vadd.f32 %v16410_v1, %v885_v23  ;;  %v1072_v23 = vpop.f32.mrf.mxu0 }
 0x3a4   : > { %v2487_v10 = vmul.f32 %v2455_v32, %v1111_v20  ;;  %v8228_v41 = vclamps-f32 %v3250_v14, 1.0  ;;  %v3271_v17 = vadd.f32 0.112945676, %v3270_v27  ;;  %v11521_v25 = vadd.f32 %v8851_v58, %v4055_v33 }
 0x3a5   : > { %4133 = vadd.xlane.f32.xlu0 %v11500_v30  ;;  %v919_v53 = vadd.f32 %v16410_v1, %v886_v51  ;;  %v11518_v6 = vmin.f32 %v2114_v54, 16.0  ;;  %v2681_v37 = vmul.f32 0.5, %v11194_v59  ;;  %v3255_v62 = vmul.f32 2.1237322e-06, %v11375_v45 }
 0x3a6   : > { %v2525_v22 = vpack.c.bf16 %v2487_v10, %v2486_v61  ;;  %16411 = vst [vmem:[#allocation6_spill] sm:$0xff] %v11521_v25  ;;  %v4025_v44 = vadd.f32 1.0, %v8228_v41  ;;  %v3272_v2 = vmul.f32 %v3271_v17, %v11375_v45  ;;  %v11535_v28 = vadd.f32 %v11385_v0, %v16404_v16 }
 0x3a7   : > { %v951_v34 = vpack.c.bf16 %v919_v53, %v918_v24  ;;  %v2127_v26 = vmul.f32 3.8918573e-05, %v11518_v6  ;;  %v3256_v50 = vadd.f32 0.00028619796, %v3255_v62  ;;  %v11538_v59 = vadd.f32 %v1072_v23, %v16404_v16 }
 0x3a8   : > { %2638 = vmatmul.bf16.gmra.mxu1 %v2525_v22  ;;  %v4057_v3 = vmul.f32 %v4025_v44, %v2681_v37  ;;  %v3273_v18 = vadd.f32 0.4994258, %v3272_v2  ;;  %v11542_v39 = vadd.f32 %v11442_v19, %v16404_v16  ;;  %v11553_v0 = vmul.f32 0.70710677, %v11535_v28 }
 0x3a9   : > { %1084 = vmatmul.bf16.gmra.mxu0 %v951_v34  ;;  %4131 = vadd.xlane.f32.xlu2 %v11521_v25  ;;  %v2128_v42 = vadd.f32 0.001143296, %v2127_v26  ;;  %v11549_v33 = vmul.f32 0.70710677, %v11538_v59  ;;  %v3257_v14 = vmul.f32 %v3256_v50, %v11375_v45  ;;  %v2116_v44 = vmul.f32 2.1237322e-06, %v11518_v6 }
 0x3aa   : > { %v3274_v21 = vmul.f32 %v3273_v18, %v11375_v45  ;;  %v11531_v5 = vadd.f32 %v8852_v48, %v4057_v3  ;;  %v11556_v27 = vmul.f32 0.70710677, %v11542_v39  ;;  %v2034_v54 = vmul.f32 %v11553_v0, %v11553_v0 }
 0x3ab   : > { %v2129_v38 = vmul.f32 %v2128_v42, %v11518_v6  ;;  %v2154_v19 = vmul.f32 %v11549_v33, %v11549_v33  ;;  %v3258_v10 = vadd.f32 0.0036580483, %v3257_v14  ;;  %v2117_v48 = vadd.f32 0.00028619796, %v2116_v44 }
 0x3ac   : > { %16412 = vst [vmem:[#allocation2_spill] sm:$0xff] %v11531_v5  ;;  %v11546_v32 = vadd.f32 1.0, %v3274_v21  ;;  %v2074_v1 = vmul.f32 %v11556_v27, %v11556_v27  ;;  %v11570_v17 = vmin.f32 %v2034_v54, 16.0 }
 0x3ad   : > { %v2130_v11 = vadd.f32 0.014752088, %v2129_v38  ;;  %4135 = vadd.xlane.f32.xlu0 %v11531_v5  ;;  %v11561_v61 = vmin.f32 %v2154_v19, 16.0  ;;  %v3259_v41 = vmul.f32 %v3258_v10, %v11375_v45  ;;  %v1075_v19 = vpop.f32.mrf.mxu0 }
 0x3ae   : > { %8588 = vrcp.f32 %v11546_v32  ;;  %v11574_v58 = vmin.f32 %v2074_v1, 16.0  ;;  %v2036_v3 = vmul.f32 2.1237322e-06, %v11570_v17  ;;  %v2047_v21 = vmul.f32 3.8918573e-05, %v11570_v17 }
 0x3af   : > { %v2131_v20 = vmul.f32 %v2130_v11, %v11518_v6  ;;  %v2167_v53 = vmul.f32 3.8918573e-05, %v11561_v61  ;;  %v3260_v37 = vadd.f32 0.05243302, %v3259_v41  ;;  %vm3281_vm13 = vweird.f32 %v11546_v32 }
 0x3b0   : > { %v2076_v18 = vmul.f32 2.1237322e-06, %v11574_v58  ;;  %v2048_v50 = vadd.f32 0.001143296, %v2047_v21 }
 0x3b1   : > { %v2132_v51 = vadd.f32 0.112945676, %v2131_v20  ;;  %v2168_v22 = vadd.f32 0.001143296, %v2167_v53  ;;  %v3261_v20 = vmul.f32 %v3260_v37, %v11375_v45 }
 0x3b2   : > { %v2077_v10 = vadd.f32 0.00028619796, %v2076_v18  ;;  %v2049_v53 = vmul.f32 %v2048_v50, %v11570_v17 }
 0x3b3   : > { %v2133_v24 = vmul.f32 %v2132_v51, %v11518_v6  ;;  %v2169_v42 = vmul.f32 %v2168_v22, %v11561_v61  ;;  %v2037_v51 = vadd.f32 0.00028619796, %v2036_v3  ;;  %v2118_v22 = vmul.f32 %v2117_v48, %v11518_v6 }
 0x3b4   : > { %v11572_v34 = vpop.eup %8588  ;;  %v3262_v41 = vadd.f32 0.18741608, %v3261_v20  ;;  %v2050_v18 = vadd.f32 0.014752088, %v2049_v53 }
 0x3b5   : > { %v2134_v26 = vadd.f32 0.4994258, %v2133_v24  ;;  %v2170_v2 = vadd.f32 0.014752088, %v2169_v42  ;;  %v3277_v38 = vmul.f32 %v11572_v34, %v11546_v32  ;;  %v11590_v24 = vadd.f32 %v1075_v19, %v16404_v16 }
 0x3b6   : > { %v2038_v42 = vmul.f32 %v2037_v51, %v11570_v17  ;;  %v3263_v48 = vmul.f32 %v3262_v41, %v11375_v45  ;;  %vm3282_vm0 = vweird.f32 %v11572_v34  ;;  %v3285_v19 = vand.u32 2147483647, %v11546_v32 }
 0x3b7   : > { %v2135_v62 = vmul.f32 %v2134_v26, %v11518_v6  ;;  %v2171_v11 = vmul.f32 %v2170_v2, %v11561_v61  ;;  %v3278_v14 = vsub.f32 1.0, %v3277_v38  ;;  %v11597_v44 = vmul.f32 0.70710677, %v11590_v24  ;;  %vm3283_vm1 = vmor %vm3281_vm13, %vm3282_vm0 }
 0x3b8   : > { %v2078_v2 = vmul.f32 %v2077_v10, %v11574_v58  ;;  %v2087_v38 = vmul.f32 3.8918573e-05, %v11574_v58  ;;  %v3287_v10 = vand.u32 2147483648, %v11546_v32  ;;  %vm3286_vm2 = vcmp.eq.f32.partialorder %v3285_v19, 8.507059e+37 }
 0x3b9   : > { %v2172_v23 = vadd.f32 0.112945676, %v2171_v11  ;;  %v11586_v54 = vadd.f32 1.0, %v2135_v62  ;;  %v3279_v26 = vmul.f32 %v11572_v34, %v3278_v14  ;;  %v2194_v3 = vmul.f32 %v11597_v44, %v11597_v44 }
 0x3ba   : > { %v2119_v62 = vadd.f32 0.0036580483, %v2118_v22  ;;  %v2156_v11 = vmul.f32 2.1237322e-06, %v11561_v61  ;;  %v2088_v21 = vadd.f32 0.001143296, %v2087_v38 }
 0x3bb   : > { %v2173_v1 = vmul.f32 %v2172_v23, %v11561_v61  ;;  %8590 = vrcp.f32 %v11586_v54  ;;  %v2039_v23 = vadd.f32 0.0036580483, %v2038_v42  ;;  %v11606_v50 = vmin.f32 %v2194_v3, 16.0 }
 0x3bc   : > { %v3280_v20 = vadd.f32 %v11572_v34, %v3279_v26  ;;  %v2079_v14 = vadd.f32 0.0036580483, %v2078_v2  ;;  %v2120_v45 = vmul.f32 %v2119_v62, %v11518_v6  ;;  %v2157_v22 = vadd.f32 0.00028619796, %v2156_v11 }
 0x3bd   : > { %v2174_v37 = vadd.f32 0.4994258, %v2173_v1  ;;  %v2051_v1 = vmul.f32 %v2050_v18, %v11570_v17  ;;  %v2207_v41 = vmul.f32 3.8918573e-05, %v11606_v50  ;;  %v2089_v26 = vmul.f32 %v2088_v21, %v11574_v58 }
 0x3be   : > { %v3264_v42 = vadd.f32 1.1283791, %v3263_v48  ;;  %v2040_v2 = vmul.f32 %v2039_v23, %v11570_v17  ;;  %v2080_v38 = vmul.f32 %v2079_v14, %v11574_v58  ;;  %v3288_v18 = vor.u32 1.1754944e-38, %v3287_v10 }
 0x3bf   : > { %v2175_v51 = vmul.f32 %v2174_v37, %v11561_v61  ;;  %v3284_v37 = vsel %vm3283_vm1, %v11572_v34, %v3280_v20  ;;  %v2208_v3 = vadd.f32 0.001143296, %v2207_v41  ;;  %v2052_v11 = vadd.f32 0.112945676, %v2051_v1 }
 0x3c0   : > { %v2090_v4 = vadd.f32 0.014752088, %v2089_v26  ;;  %v2121_v29 = vadd.f32 0.05243302, %v2120_v45  ;;  %v2158_v21 = vmul.f32 %v2157_v22, %v11561_v61  ;;  %v3289_v23 = vsel %vm3286_vm2, %v3288_v18, %v3284_v37 }
 0x3c1   : > { %v11615_v53 = vpop.eup %8590  ;;  %v11623_v32 = vadd.f32 1.0, %v2175_v51  ;;  %v2209_v48 = vmul.f32 %v2208_v3, %v11606_v50  ;;  %v2041_v35 = vadd.f32 0.05243302, %v2040_v2  ;;  %v2081_v34 = vadd.f32 0.05243302, %v2080_v38 }
 0x3c2   : > { %v2138_v62 = vmul.f32 %v11615_v53, %v11586_v54  ;;  %v2196_v20 = vmul.f32 2.1237322e-06, %v11606_v50  ;;  %v3265_v51 = vmul.f32 %v3264_v42, %v11331_v43  ;;  %v2053_v1 = vmul.f32 %v2052_v11, %v11570_v17  ;;  %v1077_v43 = vpop.f32.mrf.mxu0 }
 0x3c3   : > { %8592 = vrcp.f32 %v11623_v32  ;;  %v2210_v14 = vadd.f32 0.014752088, %v2209_v48  ;;  %v2091_v19 = vmul.f32 %v2090_v4, %v11574_v58  ;;  %v2122_v45 = vmul.f32 %v2121_v29, %v11518_v6 }
 0x3c4   : > { %v2139_v10 = vsub.f32 1.0, %v2138_v62  ;;  %v2159_v22 = vadd.f32 0.0036580483, %v2158_v21  ;;  %v3290_v26 = vmul.f32 %v3289_v23, %v3265_v51  ;;  %v2042_v2 = vmul.f32 %v2041_v35, %v11570_v17 }
 0x3c5   : > { %v2211_v41 = vmul.f32 %v2210_v14, %v11606_v50  ;;  %v2082_v37 = vmul.f32 %v2081_v34, %v11574_v58  ;;  %v2197_v38 = vadd.f32 0.00028619796, %v2196_v20  ;;  %v2054_v42 = vadd.f32 0.4994258, %v2053_v1 }
 0x3c6   : > { %v2140_v18 = vmul.f32 %v11615_v53, %v2139_v10  ;;  %v2092_v62 = vadd.f32 0.112945676, %v2091_v19  ;;  %v2123_v4 = vadd.f32 0.18741608, %v2122_v45  ;;  %v2160_v29 = vmul.f32 %v2159_v22, %v11561_v61 }
 0x3c7   : > { %v2212_v3 = vadd.f32 0.112945676, %v2211_v41  ;;  %v11643_v21 = vadd.f32 %v1077_v43, %v16404_v16  ;;  %v8229_v48 = vclamps-f32 %v3290_v26, 1.0  ;;  %v2043_v23 = vadd.f32 0.18741608, %v2042_v2 }
 0x3c8   : > { %v2083_v34 = vadd.f32 0.18741608, %v2082_v37  ;;  %vm2143_vm3 = vweird.f32 %v11615_v53  ;;  %v2198_v20 = vmul.f32 %v2197_v38, %v11606_v50  ;;  %v2141_v51 = vadd.f32 %v11615_v53, %v2140_v18 }
 0x3c9   : > { %v11639_v11 = vpop.eup %8592  ;;  %v2213_v35 = vmul.f32 %v2212_v3, %v11606_v50  ;;  %v11649_v14 = vmul.f32 0.70710677, %v11643_v21  ;;  %v2055_v1 = vmul.f32 %v2054_v42, %v11570_v17  ;;  %v2093_v19 = vmul.f32 %v2092_v62, %v11574_v58 }
 0x3ca   : > { %v2178_v10 = vmul.f32 %v11639_v11, %v11623_v32  ;;  %v2124_v45 = vmul.f32 %v2123_v4, %v11518_v6  ;;  %v2148_v22 = vand.u32 2147483648, %v11586_v54  ;;  %v2161_v41 = vadd.f32 0.05243302, %v2160_v29 }
 0x3cb   : > { %v2234_v26 = vmul.f32 %v11649_v14, %v11649_v14  ;;  %v2044_v2 = vmul.f32 %v2043_v23, %v11570_v17  ;;  %vm2142_vm4 = vweird.f32 %v11586_v54  ;;  %v2146_v37 = vand.u32 2147483647, %v11586_v54 }
 0x3cc   : > { %v2214_v38 = vadd.f32 0.4994258, %v2213_v35  ;;  %v2682_v3 = vmul.f32 0.5, %v11315_v60  ;;  %v2084_v18 = vmul.f32 %v2083_v34, %v11574_v58  ;;  %vm11667_vm5 = vmor %vm2142_vm4, %vm2143_vm3  ;;  %v2199_v43 = vadd.f32 0.0036580483, %v2198_v20 }
 0x3cd   : > { %v11671_v42 = vmin.f32 %v2234_v26, 16.0  ;;  %v2145_v17 = vsel %vm11667_vm5, %v11615_v53, %v2141_v51  ;;  %v2179_v62 = vsub.f32 1.0, %v2178_v10  ;;  %v11676_v54 = vadd.f32 1.0, %v2055_v1 }
 0x3ce   : > { %v2094_v4 = vadd.f32 0.4994258, %v2093_v19  ;;  %v4026_v60 = vadd.f32 1.0, %v8229_v48  ;;  %v2125_v29 = vadd.f32 1.1283791, %v2124_v45  ;;  %v2149_v23 = vor.u32 1.1754944e-38, %v2148_v22 }
 0x3cf   : > { %v2162_v35 = vmul.f32 %v2161_v41, %v11561_v61  ;;  %v2045_v34 = vadd.f32 1.1283791, %v2044_v2  ;;  %vm2147_vm6 = vcmp.eq.f32.partialorder %v2146_v37, 8.507059e+37  ;;  %v2215_v9 = vmul.f32 %v2214_v38, %v11606_v50 }
 0x3d0   : > { %v2247_v20 = vmul.f32 3.8918573e-05, %v11671_v42  ;;  %v11682_v26 = vmul.f32 0.5, %v11535_v28  ;;  %v2085_v6 = vadd.f32 1.1283791, %v2084_v18  ;;  %v2150_v53 = vsel %vm2147_vm6, %v2149_v23, %v2145_v17  ;;  %v1080_v18 = vpop.f32.mrf.mxu0 }
 0x3d1   : > { %v2200_v51 = vmul.f32 %v2199_v43, %v11606_v50  ;;  %v2180_v10 = vmul.f32 %v11639_v11, %v2179_v62  ;;  %8594 = vrcp.f32 %v11676_v54  ;;  %v2095_v1 = vmul.f32 %v2094_v4, %v11574_v58  ;;  %v2624_v62 = vpop.f32.mrf.mxu1 }
 0x3d2   : > { %v2248_v48 = vadd.f32 0.001143296, %v2247_v20  ;;  %v11688_v19 = vmul.f32 %v4026_v60, %v2682_v3  ;;  %v11691_v45 = vmul.f32 0.5, %v11542_v39  ;;  %v2126_v22 = vmul.f32 %v2125_v29, %v11507_v52 }
 0x3d3   : > { %v2163_v28 = vadd.f32 0.18741608, %v2162_v35  ;;  %v11695_v41 = vmul.f32 %v2045_v34, %v11553_v0  ;;  %v1114_v2 = vmul.f32 0.5, %v11494_v49  ;;  %v11698_v37 = vadd.f32 1.0, %v2215_v9 }
 0x3d4   : > { %v2249_v38 = vmul.f32 %v2248_v48, %v11671_v42  ;;  %v11702_v58 = vmul.f32 %v2085_v6, %v11556_v27  ;;  %v2151_v3 = vmul.f32 %v2150_v53, %v2126_v22  ;;  %v2201_v43 = vadd.f32 0.05243302, %v2200_v51 }
 0x3d5   : > { %v11705_v39 = vadd.f32 %v1080_v18, %v16404_v16  ;;  %v2181_v52 = vadd.f32 %v11639_v11, %v2180_v10  ;;  %vm2183_vm7 = vweird.f32 %v11639_v11  ;;  %v11709_v17 = vadd.f32 1.0, %v2095_v1 }
 0x3d6   : > { %v2250_v0 = vadd.f32 0.014752088, %v2249_v38  ;;  %v2164_v9 = vmul.f32 %v2163_v28, %v11561_v61  ;;  %vm2182_vm9 = vweird.f32 %v11623_v32  ;;  %v2236_v49 = vmul.f32 2.1237322e-06, %v11671_v42 }
 0x3d7   : > { %v11715_v27 = vmul.f32 0.70710677, %v11705_v39  ;;  %v11717_v4 = vpop.eup %8594  ;;  %v2188_v60 = vand.u32 2147483648, %v11623_v32  ;;  %8596 = vrcp.f32 %v11698_v37  ;;  %v11723_v23 = vadd.f32 %v2624_v62, %v10028_v8  ;;  %vm11728_vm10 = vmor %vm2182_vm9, %vm2183_vm7 }
 0x3d8   : > { %v2251_v29 = vmul.f32 %v2250_v0, %v11671_v42  ;;  %v11726_v61 = vmul.f32 0.5, %v11538_v59  ;;  %v2186_v34 = vand.u32 2147483647, %v11623_v32  ;;  %v2202_v20 = vmul.f32 %v2201_v43, %v11606_v50 }
 0x3d9   : > { %v2274_v6 = vmul.f32 %v11715_v27, %v11715_v27  ;;  %v8160_v53 = vclamps-f32 %v2151_v3, 1.0  ;;  %v2185_v51 = vsel %vm11728_vm10, %v11639_v11, %v2181_v52  ;;  %8598 = vrcp.f32 %v11709_v17  ;;  %v1082_v11 = vpop.f32.mrf.mxu0 }
 0x3da   : > { %v2252_v10 = vadd.f32 0.112945676, %v2251_v29  ;;  %v2237_v59 = vadd.f32 0.00028619796, %v2236_v49  ;;  %v11743_v1 = vmul.f32 0.70710677, %v11723_v23  ;;  %v2058_v32 = vmul.f32 %v11717_v4, %v11676_v54 }
 0x3db   : > { %v11740_v48 = vmin.f32 %v2274_v6, 16.0  ;;  %v2165_v22 = vadd.f32 1.1283791, %v2164_v9  ;;  %v2189_v28 = vor.u32 1.1754944e-38, %v2188_v60  ;;  %v11748_v38 = vmul.f32 0.5, %v11590_v24 }
 0x3dc   : > { %v2253_v18 = vmul.f32 %v2252_v10, %v11671_v42  ;;  %vm2187_vm11 = vcmp.eq.f32.partialorder %v2186_v34, 8.507059e+37  ;;  %v2203_v3 = vadd.f32 0.18741608, %v2202_v20  ;;  %v3293_v52 = vmul.f32 %v11743_v1, %v11743_v1 }
 0x3dd   : > { %v2287_v43 = vmul.f32 3.8918573e-05, %v11740_v48  ;;  %v11754_v0 = vpop.eup %8596  ;;  %v2458_v49 = vadd.f32 1.0, %v8160_v53  ;;  %v2190_v62 = vsel %vm2187_vm11, %v2189_v28, %v2185_v51  ;;  %v11757_v9 = vadd.f32 %v1082_v11, %v16404_v16 }
 0x3de   : > { %v2254_v29 = vadd.f32 0.4994258, %v2253_v18  ;;  %v2238_v24 = vmul.f32 %v2237_v59, %v11671_v42  ;;  %v11760_v35 = vmin.f32 %v3293_v52, 16.0  ;;  %v2059_v34 = vsub.f32 1.0, %v2058_v32 }
 0x3df   : > { %v2288_v60 = vadd.f32 0.001143296, %v2287_v43  ;;  %v11762_v20 = vpop.eup %8598  ;;  %v2166_v6 = vmul.f32 %v2165_v22, %v11549_v33  ;;  %v2276_v15 = vmul.f32 2.1237322e-06, %v11740_v48  ;;  %v2068_v53 = vand.u32 2147483648, %v11676_v54 }
 0x3e0   : > { %v2255_v10 = vmul.f32 %v2254_v29, %v11671_v42  ;;  %v2204_v51 = vmul.f32 %v2203_v3, %v11606_v50  ;;  %v2218_v28 = vmul.f32 %v11754_v0, %v11698_v37  ;;  %v2066_v18 = vand.u32 2147483647, %v11676_v54  ;;  %v2626_v29 = vpop.f32.mrf.mxu1 }
 0x3e1   : > { %v2289_v59 = vmul.f32 %v2288_v60, %v11740_v48  ;;  %v11773_v32 = vmul.f32 %v2458_v49, %v1114_v2  ;;  %v11775_v11 = vmul.f32 %v2190_v62, %v2166_v6  ;;  %v3306_v33 = vmul.f32 3.8918573e-05, %v11760_v35 }
 0x3e2   : > { %v11779_v22 = vmul.f32 0.70710677, %v11757_v9  ;;  %v2239_v43 = vadd.f32 0.0036580483, %v2238_v24  ;;  %v2060_v50 = vmul.f32 %v11717_v4, %v2059_v34  ;;  %v2098_v3 = vmul.f32 %v11762_v20, %v11709_v17 }
 0x3e3   : > { %v2290_v52 = vadd.f32 0.014752088, %v2289_v59  ;;  %v11784_v60 = vadd.f32 1.0, %v2255_v10  ;;  %v2277_v40 = vadd.f32 0.00028619796, %v2276_v15  ;;  %vm2062_vm12 = vweird.f32 %v11676_v54 }
 0x3e4   : > { %v2069_v2 = vor.u32 1.1754944e-38, %v2068_v53  ;;  %v2205_v49 = vadd.f32 1.1283791, %v2204_v51  ;;  %v2219_v62 = vsub.f32 1.0, %v2218_v28  ;;  %vm2063_vm8 = vweird.f32 %v11717_v4 }
 0x3e5   : > { %v2291_v6 = vmul.f32 %v2290_v52, %v11740_v48  ;;  %vm11789_vm14 = vcmp.eq.f32.partialorder %v2066_v18, 8.507059e+37  ;;  %v3307_v59 = vadd.f32 0.001143296, %v3306_v33  ;;  %v2314_v10 = vmul.f32 %v11779_v22, %v11779_v22  ;;  %vm11819_vm13 = vmor %vm2062_vm12, %vm2063_vm8 }
 0x3e6   : > { %v11797_v15 = vadd.f32 %v2626_v29, %v10028_v8  ;;  %v2240_v53 = vmul.f32 %v2239_v43, %v11671_v42  ;;  %v2061_v28 = vadd.f32 %v11717_v4, %v2060_v50  ;;  %v2099_v52 = vsub.f32 1.0, %v2098_v3 }
 0x3e7   : > { %v2292_v51 = vadd.f32 0.112945676, %v2291_v6  ;;  %8600 = vrcp.f32 %v11784_v60  ;;  %v2278_v18 = vmul.f32 %v2277_v40, %v11740_v48  ;;  %v3308_v31 = vmul.f32 %v3307_v59, %v11760_v35 }
 0x3e8   : > { %v11804_v34 = vmin.f32 %v2314_v10, 16.0  ;;  %v2206_v33 = vmul.f32 %v2205_v49, %v11597_v44  ;;  %v2220_v46 = vmul.f32 %v11754_v0, %v2219_v62  ;;  %vm2102_vm15 = vweird.f32 %v11709_v17 }
 0x3e9   : > { %v2293_v29 = vmul.f32 %v2292_v51, %v11740_v48  ;;  %vm2222_vm0 = vweird.f32 %v11698_v37  ;;  %v3309_v43 = vadd.f32 0.014752088, %v3308_v31  ;;  %v11813_v3 = vmul.f32 0.70710677, %v11797_v15 }
 0x3ea   : > { %v2327_v50 = vmul.f32 3.8918573e-05, %v11804_v34  ;;  %v2241_v44 = vadd.f32 0.05243302, %v2240_v53  ;;  %v3295_v49 = vmul.f32 2.1237322e-06, %v11760_v35  ;;  %v2065_v31 = vsel %vm11819_vm13, %v11717_v4, %v2061_v28 }
 0x3eb   : > { %v2100_v62 = vmul.f32 %v11762_v20, %v2099_v52  ;;  %v2226_v6 = vand.u32 2147483647, %v11698_v37  ;;  %v2279_v59 = vadd.f32 0.0036580483, %v2278_v18  ;;  %v3310_v10 = vmul.f32 %v3309_v43, %v11760_v35 }
 0x3ec   : > { %v2328_v51 = vadd.f32 0.001143296, %v2327_v50  ;;  %v2221_v54 = vadd.f32 %v11754_v0, %v2220_v46  ;;  %vm2223_vm1 = vweird.f32 %v11754_v0  ;;  %v2228_v53 = vand.u32 2147483648, %v11698_v37 }
 0x3ed   : > { %v2294_v55 = vadd.f32 0.4994258, %v2293_v29  ;;  %v11833_v63 = vpop.eup %8600  ;;  %v3333_v4 = vmul.f32 %v11813_v3, %v11813_v3  ;;  %v2070_v28 = vsel %vm11789_vm14, %v2069_v2, %v2065_v31  ;;  %v2108_v52 = vand.u32 2147483648, %v11709_v17  ;;  %vm11846_vm3 = vmor %vm2222_vm0, %vm2223_vm1 }
 0x3ee   : > { %v2329_v40 = vmul.f32 %v2328_v51, %v11804_v34  ;;  %v2242_v18 = vmul.f32 %v2241_v44, %v11671_v42  ;;  %v3296_v46 = vadd.f32 0.00028619796, %v3295_v49  ;;  %v2101_v43 = vadd.f32 %v11762_v20, %v2100_v62 }
 0x3ef   : > { %vm2103_vm2 = vweird.f32 %v11762_v20  ;;  %v2280_v50 = vmul.f32 %v2279_v59, %v11740_v48  ;;  %v3311_v51 = vadd.f32 0.112945676, %v3310_v10  ;;  %v2106_v2 = vand.u32 2147483647, %v11709_v17 }
 0x3f0   : > { %v2330_v24 = vadd.f32 0.014752088, %v2329_v40  ;;  %v2225_v44 = vsel %vm11846_vm3, %v11754_v0, %v2221_v54  ;;  %vm2227_vm4 = vcmp.eq.f32.partialorder %v2226_v6, 8.507059e+37  ;;  %v2258_v49 = vmul.f32 %v11833_v63, %v11784_v60  ;;  %vm11863_vm5 = vmor %vm2102_vm15, %vm2103_vm2 }
 0x3f1   : > { %v2295_v37 = vmul.f32 %v2294_v55, %v11740_v48  ;;  %v2229_v31 = vor.u32 1.1754944e-38, %v2228_v53  ;;  %v11858_v62 = vmin.f32 %v3333_v4, 16.0  ;;  %v2071_v5 = vmul.f32 %v2070_v28, %v11695_v41 }
 0x3f2   : > { %v2109_v10 = vor.u32 1.1754944e-38, %v2108_v52  ;;  %v2243_v40 = vadd.f32 0.18741608, %v2242_v18  ;;  %v3297_v0 = vmul.f32 %v3296_v46, %v11760_v35  ;;  %v2331_v6 = vmul.f32 %v2330_v24, %v11804_v34  ;;  %v2629_v52 = vpop.f32.mrf.mxu1 }
 0x3f3   : > { %v2105_v55 = vsel %vm11863_vm5, %v11762_v20, %v2101_v43  ;;  %v2230_v54 = vsel %vm2227_vm4, %v2229_v31, %v2225_v44  ;;  %v2281_v53 = vadd.f32 0.05243302, %v2280_v50  ;;  %v3312_v41 = vmul.f32 %v3311_v51, %v11760_v35 }
 0x3f4   : > { %v2316_v17 = vmul.f32 2.1237322e-06, %v11804_v34  ;;  %v2259_v4 = vsub.f32 1.0, %v2258_v49  ;;  %v11874_v28 = vadd.f32 1.0, %v2295_v37  ;;  %v2332_v29 = vadd.f32 0.112945676, %v2331_v6 }
 0x3f5   : > { %vm2107_vm6 = vcmp.eq.f32.partialorder %v2106_v2, 8.507059e+37  ;;  %v16425_v18 = vclamps-f32 %v11775_v11, 1.0  ;;  %v3346_v24 = vmul.f32 3.8918573e-05, %v11858_v62  ;;  %v8158_v25 = vclamps-f32 %v2071_v5, 1.0 }
 0x3f6   : > { %v2110_v59 = vsel %vm2107_vm6, %v2109_v10, %v2105_v55  ;;  %v2231_v20 = vmul.f32 %v2230_v54, %v2206_v33  ;;  %v2244_v43 = vmul.f32 %v2243_v40, %v11671_v42  ;;  %v3298_v50 = vadd.f32 0.0036580483, %v3297_v0  ;;  %v8853_v40 = vld [vmem:[%s8919_s18 + $0x68] sm:$0xff] }
 0x3f7   : > { %v2459_v46 = vadd.f32 1.0, %v16425_v18  ;;  %v2333_v51 = vmul.f32 %v2332_v29, %v11804_v34  ;;  %v2282_v44 = vmul.f32 %v2281_v53, %v11740_v48  ;;  %v3313_v49 = vadd.f32 0.4994258, %v3312_v41 }
 0x3f8   : > { %v2317_v37 = vadd.f32 0.00028619796, %v2316_v17  ;;  %v3347_v2 = vadd.f32 0.001143296, %v3346_v24  ;;  %v11883_v31 = vmul.f32 0.5, %v11643_v21  ;;  %v2260_v11 = vmul.f32 %v11833_v63, %v2259_v4 }
 0x3f9   : > { %8602 = vrcp.f32 %v11874_v28  ;;  %v2111_v5 = vmul.f32 %v2110_v59, %v11702_v58  ;;  %v11889_v33 = vmul.f32 %v2459_v46, %v11726_v61  ;;  %v2334_v42 = vadd.f32 0.4994258, %v2333_v51 }
 0x3fa   : > { %v2456_v10 = vadd.f32 1.0, %v8158_v25  ;;  %v11893_v0 = vadd.f32 %v8853_v40, %v11688_v19  ;;  %v8162_v6 = vclamps-f32 %v2231_v20, 1.0  ;;  %v2245_v55 = vadd.f32 1.1283791, %v2244_v43 }
 0x3fb   : > { %v3299_v21 = vmul.f32 %v3298_v50, %v11760_v35  ;;  %v3348_v54 = vmul.f32 %v3347_v2, %v11858_v62  ;;  %v2268_v53 = vand.u32 2147483648, %v11784_v60  ;;  %v2283_v41 = vadd.f32 0.18741608, %v2282_v44  ;;  %v2631_v50 = vpop.f32.mrf.mxu1 }
 0x3fc   : > { %16426 = vst [vmem:[#allocation7_spill] sm:$0xff] %v11893_v0  ;;  %v3314_v58 = vmul.f32 %v3313_v49, %v11760_v35  ;;  %v2318_v61 = vmul.f32 %v2317_v37, %v11804_v34  ;;  %v2261_v17 = vadd.f32 %v11833_v63, %v2260_v11  ;;  %vm2263_vm7 = vweird.f32 %v11833_v63 }
 0x3fd   : > { %v3349_v25 = vadd.f32 0.014752088, %v3348_v54  ;;  %v8159_v19 = vclamps-f32 %v2111_v5, 1.0  ;;  %vm2262_vm9 = vweird.f32 %v11784_v60  ;;  %v11904_v4 = vmul.f32 0.5, %v11705_v39 }
 0x3fe   : > { %v2335_v29 = vmul.f32 %v2334_v42, %v11804_v34  ;;  %v2488_v18 = vmul.f32 %v2456_v10, %v11682_v26  ;;  %v3300_v24 = vadd.f32 0.05243302, %v3299_v21  ;;  %v11912_v43 = vadd.f32 %v2629_v52, %v10028_v8  ;;  %vm11914_vm10 = vmor %vm2262_vm9, %vm2263_vm7 }
 0x3ff   : > { %v11908_v46 = vpop.eup %8602  ;;  %v3350_v59 = vmul.f32 %v3349_v25, %v11858_v62  ;;  %v2457_v20 = vadd.f32 1.0, %v8159_v19  ;;  %v2266_v39 = vand.u32 2147483647, %v11784_v60  ;;  %v2284_v44 = vmul.f32 %v2283_v41, %v11740_v48 }
 0x400   : > { %v11920_v49 = vadd.f32 1.0, %v3314_v58  ;;  %v2319_v26 = vadd.f32 0.0036580483, %v2318_v61  ;;  %v2460_v37 = vadd.f32 1.0, %v8162_v6  ;;  %v2246_v2 = vmul.f32 %v2245_v55, %v11649_v14 }
 0x401   : > { %v2265_v52 = vsel %vm11914_vm10, %v11833_v63, %v2261_v17  ;;  %v2269_v11 = vor.u32 1.1754944e-38, %v2268_v53  ;;  %v2298_v5 = vmul.f32 %v11908_v46, %v11874_v28  ;;  %v11928_v42 = vadd.f32 1.0, %v2335_v29 }
 0x402   : > { %v3335_v60 = vmul.f32 2.1237322e-06, %v11858_v62  ;;  %v11932_v48 = vadd.f32 %v2631_v50, %v10028_v8  ;;  %v3301_v10 = vmul.f32 %v3300_v24, %v11760_v35  ;;  %v3351_v40 = vadd.f32 0.112945676, %v3350_v59 }
 0x403   : > { %v2489_v14 = vmul.f32 %v2457_v20, %v11691_v45  ;;  %v11937_v6 = vmul.f32 0.70710677, %v11912_v43  ;;  %vm2267_vm11 = vcmp.eq.f32.partialorder %v2266_v39, 8.507059e+37  ;;  %v2285_v63 = vadd.f32 1.1283791, %v2284_v44 }
 0x404   : > { %8604 = vrcp.f32 %v11920_v49  ;;  %v2320_v55 = vmul.f32 %v2319_v26, %v11804_v34  ;;  %v2270_v21 = vsel %vm2267_vm11, %v2269_v11, %v2265_v52  ;;  %v3352_v54 = vmul.f32 %v3351_v40, %v11858_v62 }
 0x405   : > { %v2526_v53 = vpack.c.bf16 %v2489_v14, %v2488_v18  ;;  %v3373_v41 = vmul.f32 %v11937_v6, %v11937_v6  ;;  %v2299_v58 = vsub.f32 1.0, %v2298_v5  ;;  %8606 = vrcp.f32 %v11928_v42 }
 0x406   : > { %v3336_v45 = vadd.f32 0.00028619796, %v3335_v60  ;;  %v11946_v61 = vmul.f32 0.70710677, %v11932_v48  ;;  %v11949_v17 = vmul.f32 0.5, %v11723_v23  ;;  %v11954_v18 = vmul.f32 %v2460_v37, %v11748_v38  ;;  %v8434_v38 = vld [vmem:[%s16192_s2 + $0xb8] sm:$0xff] }
 0x407   : > { %v3302_v25 = vadd.f32 0.18741608, %v3301_v10  ;;  %v3353_v19 = vadd.f32 0.4994258, %v3352_v54  ;;  %2643 = vmatmul.bf16.gmra.mxu1 %v2526_v53  ;;  %v11951_v29 = vmin.f32 %v3373_v41, 16.0  ;;  %v2271_v24 = vmul.f32 %v2270_v21, %v2246_v2  ;;  %v2634_v2 = vpop.f32.mrf.mxu1  ;;  %4899 = vmatpush.bf16.msra.mxu2 %v8434_v38 }
 0x408   : > { %v11957_v59 = vmul.f32 0.5, %v11757_v9  ;;  %v2321_v20 = vadd.f32 0.05243302, %v2320_v55  ;;  %v11960_v50 = vmul.f32 %v2285_v63, %v11715_v27  ;;  %v2306_v51 = vand.u32 2147483647, %v11874_v28 }
 0x409   : > { %v11964_v23 = vmul.f32 0.5, %v11797_v15  ;;  %v3354_v39 = vmul.f32 %v3353_v19, %v11858_v62  ;;  %v2300_v9 = vmul.f32 %v11908_v46, %v2299_v58  ;;  %v3337_v26 = vmul.f32 %v3336_v45, %v11858_v62  ;;  %v8433_v58 = vld [vmem:[%s16192_s2 + $0xb0] sm:$0xff] }
 0x40a   : > { %v11970_v44 = vpop.eup %8604  ;;  %v3386_v27 = vmul.f32 3.8918573e-05, %v11951_v29  ;;  %v3413_v37 = vmul.f32 %v11946_v61, %v11946_v61  ;;  %vm2302_vm12 = vweird.f32 %v11874_v28  ;;  %v2308_v15 = vand.u32 2147483648, %v11874_v28 }
 0x40b   : > { %v3303_v52 = vmul.f32 %v3302_v25, %v11760_v35  ;;  %v3375_v11 = vmul.f32 2.1237322e-06, %v11951_v29  ;;  %v11981_v5 = vpop.eup %8606  ;;  %v8163_v60 = vclamps-f32 %v2271_v24, 1.0  ;;  %v2322_v10 = vmul.f32 %v2321_v20, %v11804_v34  ;;  %4900 = vmatpush.bf16.msra.mxu2 %v8433_v58 }
 0x40c   : > { %v3387_v40 = vadd.f32 0.001143296, %v3386_v27  ;;  %v11984_v14 = vmin.f32 %v3413_v37, 16.0  ;;  %vm11986_vm8 = vcmp.eq.f32.partialorder %v2306_v51, 8.507059e+37  ;;  %v3317_v55 = vmul.f32 %v11970_v44, %v11920_v49 }
 0x40d   : > { %v11992_v21 = vadd.f32 1.0, %v3354_v39  ;;  %v11995_v35 = vadd.f32 %v2634_v2, %v10028_v8  ;;  %v2301_v54 = vadd.f32 %v11908_v46, %v2300_v9  ;;  %vm2303_vm14 = vweird.f32 %v11908_v46 }
 0x40e   : > { %v3338_v53 = vadd.f32 0.0036580483, %v3337_v26  ;;  %v3388_v41 = vmul.f32 %v3387_v40, %v11951_v29  ;;  %v3304_v45 = vadd.f32 1.1283791, %v3303_v52  ;;  %v2338_v25 = vmul.f32 %v11981_v5, %v11928_v42  ;;  %vm12008_vm15 = vmor %vm2302_vm12, %vm2303_vm14 }
 0x40f   : > { %v3376_v19 = vadd.f32 0.00028619796, %v3375_v11  ;;  %v3426_v24 = vmul.f32 3.8918573e-05, %v11984_v14  ;;  %v2461_v20 = vadd.f32 1.0, %v8163_v60  ;;  %v2309_v51 = vor.u32 1.1754944e-38, %v2308_v15 }
 0x410   : > { %v2323_v39 = vadd.f32 0.18741608, %v2322_v10  ;;  %v3389_v38 = vadd.f32 0.014752088, %v3388_v41  ;;  %v3318_v26 = vsub.f32 1.0, %v3317_v55  ;;  %8608 = vrcp.f32 %v11992_v21 }
 0x411   : > { %v3427_v27 = vadd.f32 0.001143296, %v3426_v24  ;;  %v12014_v37 = vmul.f32 0.70710677, %v11995_v35  ;;  %v2305_v2 = vsel %vm12008_vm15, %v11908_v46, %v2301_v54  ;;  %v3339_v15 = vmul.f32 %v3338_v53, %v11858_v62 }
 0x412   : > { %v3390_v52 = vmul.f32 %v3389_v38, %v11951_v29  ;;  %v2527_v28 = vpack.c.bf16 %v11889_v33, %v11773_v32  ;;  %v2339_v11 = vsub.f32 1.0, %v2338_v25  ;;  %v3377_v60 = vmul.f32 %v3376_v19, %v11951_v29  ;;  %v8432_v32 = vld [vmem:[%s16192_s2 + $0xa8] sm:$0xff] }
 0x413   : > { %v3428_v10 = vmul.f32 %v3427_v27, %v11984_v14  ;;  %v3453_v40 = vmul.f32 %v12014_v37, %v12014_v37  ;;  %v12028_v55 = vmul.f32 %v3304_v45, %v11743_v1  ;;  %v3325_v46 = vand.u32 2147483647, %v11920_v49  ;;  %4901 = vmatpush.bf16.msra.mxu2 %v8432_v32 }
 0x414   : > { %v3327_v54 = vand.u32 2147483648, %v11920_v49  ;;  %v3415_v53 = vmul.f32 2.1237322e-06, %v11984_v14  ;;  %v3319_v33 = vmul.f32 %v11970_v44, %v3318_v26  ;;  %vm3321_vm0 = vweird.f32 %v11920_v49 }
 0x415   : > { %v3391_v41 = vadd.f32 0.112945676, %v3390_v52  ;;  %v3429_v58 = vadd.f32 0.014752088, %v3428_v10  ;;  %v2310_v1 = vsel %vm11986_vm8, %v2309_v51, %v2305_v2  ;;  %v2324_v45 = vmul.f32 %v2323_v39, %v11804_v34  ;;  %v8431_v39 = vld [vmem:[%s16192_s2 + $0xa0] sm:$0xff] }
 0x416   : > { %v3340_v25 = vadd.f32 0.05243302, %v3339_v15  ;;  %v12041_v19 = vmin.f32 %v3453_v40, 16.0  ;;  %v12043_v24 = vpop.eup %8608  ;;  %v2340_v38 = vmul.f32 %v11981_v5, %v2339_v11  ;;  %v3378_v9 = vadd.f32 0.0036580483, %v3377_v60 }
 0x417   : > { %v3392_v26 = vmul.f32 %v3391_v41, %v11951_v29  ;;  %v3430_v27 = vmul.f32 %v3429_v58, %v11984_v14  ;;  %2648 = vmatmul.bf16.gmra.mxu1 %v2527_v28  ;;  %v12049_v52 = vmul.f32 %v2461_v20, %v11883_v31  ;;  %vm12051_vm13 = vcmp.eq.f32.partialorder %v3325_v46, 8.507059e+37  ;;  %4902 = vmatpush.bf16.msra.mxu2 %v8431_v39 }
 0x418   : > { %v3328_v34 = vor.u32 1.1754944e-38, %v3327_v54  ;;  %v3416_v51 = vadd.f32 0.00028619796, %v3415_v53  ;;  %v3320_v2 = vadd.f32 %v11970_v44, %v3319_v33  ;;  %vm3322_vm1 = vweird.f32 %v11970_v44 }
 0x419   : > { %v3393_v15 = vadd.f32 0.4994258, %v3392_v26  ;;  %v3431_v11 = vadd.f32 0.112945676, %v3430_v27  ;;  %v2311_v28 = vmul.f32 %v2310_v1, %v11960_v50  ;;  %v3341_v31 = vmul.f32 %v3340_v25, %v11858_v62  ;;  %vm12070_vm3 = vmor %vm3321_vm0, %vm3322_vm1  ;;  %v4124_v1 = vpop.xlane.xlu0 %4123  ;;  %v4272_v27 = vpop.xlane.xlu1 %4271 }
 0x41a   : > { %v3357_v20 = vmul.f32 %v12043_v24, %v11992_v21  ;;  %v3466_v60 = vmul.f32 3.8918573e-05, %v12041_v19  ;;  %v2325_v10 = vadd.f32 1.1283791, %v2324_v45  ;;  %v2341_v40 = vadd.f32 %v11981_v5, %v2340_v38 }
 0x41b   : > { %vm2343_vm2 = vweird.f32 %v11981_v5  ;;  %v3379_v46 = vmul.f32 %v3378_v9, %v11951_v29  ;;  %vm2342_vm4 = vweird.f32 %v11928_v42  ;;  %v2348_v50 = vand.u32 2147483648, %v11928_v42 }
 0x41c   : > { %v3417_v53 = vmul.f32 %v3416_v51, %v11984_v14  ;;  %v3467_v32 = vadd.f32 0.001143296, %v3466_v60  ;;  %v3324_v33 = vsel %vm12070_vm3, %v11970_v44, %v3320_v2  ;;  %v2346_v41 = vand.u32 2147483647, %v11928_v42  ;;  %vm12083_vm5 = vmor %vm2342_vm4, %vm2343_vm2  ;;  %v2636_v60 = vpop.f32.mrf.mxu1 }
 0x41d   : > { %v3394_v58 = vmul.f32 %v3393_v15, %v11951_v29  ;;  %v3432_v49 = vmul.f32 %v3431_v11, %v11984_v14  ;;  %v8164_v45 = vclamps-f32 %v2311_v28, 1.0  ;;  %v3342_v38 = vadd.f32 0.18741608, %v3341_v31  ;;  %v8430_v31 = vld [vmem:[%s16192_s2 + $0x98] sm:$0xff] }
 0x41e   : > { %v3358_v9 = vsub.f32 1.0, %v3357_v20  ;;  %v3468_v26 = vmul.f32 %v3467_v32, %v12041_v19  ;;  %v2326_v51 = vmul.f32 %v2325_v10, %v11779_v22  ;;  %v2345_v42 = vsel %vm12083_vm5, %v11981_v5, %v2341_v40  ;;  %4903 = vmatpush.bf16.msra.mxu2 %v8430_v31 }
 0x41f   : > { %v12093_v44 = vmul.f32 0.5, %v11912_v43  ;;  %v3380_v39 = vadd.f32 0.05243302, %v3379_v46  ;;  %v3329_v2 = vsel %vm12051_vm13, %v3328_v34, %v3324_v33  ;;  %v2349_v15 = vor.u32 1.1754944e-38, %v2348_v50 }
 0x420   : > { %v3418_v11 = vadd.f32 0.0036580483, %v3417_v53  ;;  %v4181_v28 = vmul.f32 %v4124_v1, %v8928_v13  ;;  %vm2347_vm6 = vcmp.eq.f32.partialorder %v2346_v41, 8.507059e+37  ;;  %v12101_v22 = vadd.f32 1.0, %v3394_v58 }
 0x421   : > { %v3433_v20 = vadd.f32 0.4994258, %v3432_v49  ;;  %v3469_v5 = vadd.f32 0.014752088, %v3468_v26  ;;  %v12103_v43 = vadd.f32 1.0, %v8164_v45  ;;  %v2350_v10 = vsel %vm2347_vm6, %v2349_v15, %v2345_v42  ;;  %v8429_v26 = vld [vmem:[%s16192_s2 + $0x90] sm:$0xff] }
 0x422   : > { %v3343_v63 = vmul.f32 %v3342_v38, %v11858_v62  ;;  %v3359_v34 = vmul.f32 %v12043_v24, %v3358_v9  ;;  %v3330_v40 = vmul.f32 %v3329_v2, %v12028_v55  ;;  %v3381_v46 = vmul.f32 %v3380_v39, %v11951_v29  ;;  %v4126_v2 = vpop.xlane.xlu1 %4125  ;;  %4904 = vmatpush.bf16.msra.mxu2 %v8429_v26  ;;  %v8427_v26 = vld [vmem:[%s16192_s2 + $0x80] sm:$0xff] }
 0x423   : > { %v3470_v54 = vmul.f32 %v3469_v5, %v12041_v19  ;;  %v4335_v50 = vmul.f32 %v4272_v27, %v8928_v13  ;;  %v3419_v53 = vmul.f32 %v3418_v11, %v11984_v14  ;;  %v3455_v32 = vmul.f32 2.1237322e-06, %v12041_v19 }
 0x424   : > { %v12114_v33 = vsub.f32 %v11224_v36, %v4181_v28  ;;  %v12117_v62 = vadd.f32 %v2636_v60, %v10028_v8  ;;  %v2351_v41 = vmul.f32 %v2350_v10, %v2326_v51  ;;  %8610 = vrcp.f32 %v12101_v22 }
 0x425   : > { %v3434_v55 = vmul.f32 %v3433_v20, %v11984_v14  ;;  %v3471_v58 = vadd.f32 0.112945676, %v3470_v54  ;;  %v3360_v49 = vadd.f32 %v12043_v24, %v3359_v34  ;;  %vm3361_vm7 = vweird.f32 %v11992_v21 }
 0x426   : > { %vm3362_vm9 = vweird.f32 %v12043_v24  ;;  %v3365_v1 = vand.u32 2147483647, %v11992_v21  ;;  %v3367_v45 = vand.u32 2147483648, %v11992_v21  ;;  %v3382_v25 = vadd.f32 0.18741608, %v3381_v46 }
 0x427   : > { %v3472_v38 = vmul.f32 %v3471_v58, %v12041_v19  ;;  %v12127_v9 = vadd.f32 1e-05, %v4335_v50  ;;  %v3420_v27 = vadd.f32 0.05243302, %v3419_v53  ;;  %v3456_v51 = vadd.f32 0.00028619796, %v3455_v32  ;;  %vm12141_vm10 = vmor %vm3361_vm7, %vm3362_vm9 }
 0x428   : > { %v12133_v42 = vmul.f32 0.70710677, %v12117_v62  ;;  %v4245_v39 = vmul.f32 %v12114_v33, %v12114_v33  ;;  %v8230_v15 = vclamps-f32 %v3330_v40, 1.0  ;;  %v8165_v11 = vclamps-f32 %v2351_v41, 1.0 }
 0x429   : > { %v3344_v28 = vadd.f32 1.1283791, %v3343_v63  ;;  %v12145_v20 = vadd.f32 1.0, %v3434_v55  ;;  %v3364_v5 = vsel %vm12141_vm10, %v12043_v24, %v3360_v49  ;;  %v3473_v60 = vadd.f32 0.4994258, %v3472_v38  ;;  %v8428_v24 = vld [vmem:[%s16192_s2 + $0x88] sm:$0xff] }
 0x42a   : > { %v3493_v10 = vmul.f32 %v12133_v42, %v12133_v42  ;;  %4283 = vadd.xlane.f32.xlu1 %v4245_v39  ;;  %v2528_v63 = vpack.c.bf16 %v12049_v52, %v11954_v18  ;;  %v12154_v21 = vpop.eup %8610  ;;  %vm3366_vm11 = vcmp.eq.f32.partialorder %v3365_v1, 8.507059e+37  ;;  %v3368_v34 = vor.u32 1.1754944e-38, %v3367_v45  ;;  %v2639_v18 = vpop.f32.mrf.mxu1  ;;  %4905 = vmatpush.bf16.msra.mxu2 %v8428_v24 }
 0x42b   : > { %8612 = vrsqrt.f32 %v12127_v9  ;;  %v4182_v40 = vmul.f32 %v4126_v2, %v8928_v13  ;;  %v3383_v46 = vmul.f32 %v3382_v25, %v11951_v29  ;;  %v3421_v54 = vmul.f32 %v3420_v27, %v11984_v14  ;;  %v4274_v25 = vpop.xlane.xlu2 %4273 }
 0x42c   : > { %v3457_v50 = vmul.f32 %v3456_v51, %v12041_v19  ;;  %v12164_v53 = vmin.f32 %v3493_v10, 16.0  ;;  %2653 = vmatmul.bf16.gmra.mxu1 %v2528_v63  ;;  %v4027_v52 = vadd.f32 1.0, %v8230_v15  ;;  %v3345_v32 = vmul.f32 %v3344_v28, %v11813_v3 }
 0x42d   : > { %v3369_v41 = vsel %vm3366_vm11, %v3368_v34, %v3364_v5  ;;  %8614 = vrcp.f32 %v12145_v20  ;;  %v2463_v55 = vadd.f32 1.0, %v8165_v11  ;;  %v3397_v58 = vmul.f32 %v12154_v21, %v12101_v22 }
 0x42e   : > { %v3474_v29 = vmul.f32 %v3473_v60, %v12041_v19  ;;  %v3506_v49 = vmul.f32 3.8918573e-05, %v12164_v53  ;;  %v12173_v1 = vmul.f32 0.5, %v11932_v48  ;;  %v3495_v45 = vmul.f32 2.1237322e-06, %v12164_v53  ;;  %4906 = vmatpush.bf16.msra.mxu2 %v8427_v26 }
 0x42f   : > { %v12177_v3 = vsub.f32 %v11382_v7, %v4182_v40  ;;  %v12180_v38 = vadd.f32 %v2639_v18, %v10028_v8  ;;  %v3370_v27 = vmul.f32 %v3369_v41, %v3345_v32  ;;  %v3384_v51 = vadd.f32 1.1283791, %v3383_v46 }
 0x430   : > { %v3422_v39 = vadd.f32 0.18741608, %v3421_v54  ;;  %v3458_v2 = vadd.f32 0.0036580483, %v3457_v50  ;;  %v12189_v48 = vmul.f32 %v12103_v43, %v11904_v4  ;;  %v12192_v11 = vmul.f32 %v4027_v52, %v11949_v17  ;;  %v4128_v4 = vpop.xlane.xlu1 %4127 }
 0x431   : > { %v12185_v15 = vpop.eup %8612  ;;  %v12195_v28 = vmul.f32 0.5, %v11995_v35  ;;  %v3507_v31 = vadd.f32 0.001143296, %v3506_v49  ;;  %v12198_v5 = vmul.f32 %v2463_v55, %v11957_v59  ;;  %v3398_v60 = vsub.f32 1.0, %v3397_v58 }
 0x432   : > { %v12200_v10 = vadd.f32 1.0, %v3474_v29  ;;  %v4336_v63 = vmul.f32 %v4274_v25, %v8928_v13  ;;  %4137 = vadd.xlane.f32.xlu1 %v11893_v0  ;;  %v3496_v17 = vadd.f32 0.00028619796, %v3495_v45  ;;  %v12208_v35 = vmul.f32 0.70710677, %v12180_v38 }
 0x433   : > { %v12204_v43 = vpop.eup %8614  ;;  %v3508_v34 = vmul.f32 %v3507_v31, %v12164_v53  ;;  %v4246_v59 = vmul.f32 %v12177_v3, %v12177_v3  ;;  %v8231_v40 = vclamps-f32 %v3370_v27, 1.0  ;;  %v12213_v24 = vmul.f32 %v3384_v51, %v11937_v6 }
 0x434   : > { %v3423_v46 = vmul.f32 %v3422_v39, %v11984_v14  ;;  %v3459_v54 = vmul.f32 %v3458_v2, %v12041_v19  ;;  %v3405_v50 = vand.u32 2147483647, %v12101_v22  ;;  %v4400_v18 = vmul.f32 %v12185_v15, %v12127_v9 }
 0x435   : > { %v3509_v52 = vadd.f32 0.014752088, %v3508_v34  ;;  %4285 = vadd.xlane.f32.xlu2 %v4246_v59  ;;  %v4183_v32 = vmul.f32 %v4128_v4, %v8928_v13  ;;  %v3399_v41 = vmul.f32 %v12154_v21, %v3398_v60  ;;  %v3437_v55 = vmul.f32 %v12204_v43, %v12145_v20 }
 0x436   : > { %8616 = vrcp.f32 %v12200_v10  ;;  %v12225_v6 = vadd.f32 1e-05, %v4336_v63  ;;  %v3407_v14 = vand.u32 2147483648, %v12101_v22  ;;  %v3497_v58 = vmul.f32 %v3496_v17, %v12164_v53 }
 0x437   : > { %v3510_v29 = vmul.f32 %v3509_v52, %v12164_v53  ;;  %v3533_v49 = vmul.f32 %v12208_v35, %v12208_v35  ;;  %v4028_v45 = vadd.f32 1.0, %v8231_v40  ;;  %vm3401_vm12 = vweird.f32 %v12101_v22  ;;  %v4278_v22 = vpop.xlane.xlu0 %4277 }
 0x438   : > { %v3424_v25 = vadd.f32 1.1283791, %v3423_v46  ;;  %v3460_v26 = vadd.f32 0.05243302, %v3459_v54  ;;  %vm12233_vm8 = vcmp.eq.f32.partialorder %v3405_v50, 8.507059e+37  ;;  %v4401_v51 = vmul.f32 %v12185_v15, %v4400_v18 }
 0x439   : > { %v3511_v39 = vadd.f32 0.112945676, %v3510_v29  ;;  %v12238_v2 = vmin.f32 %v3533_v49, 16.0  ;;  %v12241_v31 = vsub.f32 %v11422_v57, %v4183_v32  ;;  %v3400_v60 = vadd.f32 %v12154_v21, %v3399_v41 }
 0x43a   : > { %vm3402_vm14 = vweird.f32 %v12154_v21  ;;  %v3438_v63 = vsub.f32 1.0, %v3437_v55  ;;  %8618 = vrsqrt.f32 %v12225_v6  ;;  %v3408_v4 = vor.u32 1.1754944e-38, %v3407_v14 }
 0x43b   : > { %v3498_v17 = vadd.f32 0.0036580483, %v3497_v58  ;;  %v3512_v34 = vmul.f32 %v3511_v39, %v12164_v53  ;;  %v3535_v59 = vmul.f32 2.1237322e-06, %v12238_v2  ;;  %v12251_v46 = vmul.f32 %v4028_v45, %v11964_v23  ;;  %vm12260_vm15 = vmor %vm3401_vm12, %vm3402_vm14 }
 0x43c   : > { %v12248_v40 = vpop.eup %8616  ;;  %v12254_v54 = vmul.f32 %v3424_v25, %v11946_v61  ;;  %v3461_v50 = vmul.f32 %v3460_v26, %v12041_v19  ;;  %v3546_v18 = vmul.f32 3.8918573e-05, %v12238_v2  ;;  %vm3441_vm0 = vweird.f32 %v12145_v20  ;;  %v8854_v25 = vld [vmem:[%s8919_s18 + $0x70] sm:$0xff] }
 0x43d   : > { %v4402_v32 = vmul.f32 0.5, %v4401_v51  ;;  %v3513_v41 = vadd.f32 0.4994258, %v3512_v34  ;;  %v4247_v23 = vmul.f32 %v12241_v31, %v12241_v31  ;;  %v3404_v61 = vsel %vm12260_vm15, %v12154_v21, %v3400_v60 }
 0x43e   : > { %v3439_v55 = vmul.f32 %v12204_v43, %v3438_v63  ;;  %v3536_v14 = vadd.f32 0.00028619796, %v3535_v59  ;;  %v3547_v58 = vadd.f32 0.001143296, %v3546_v18  ;;  %v3477_v29 = vmul.f32 %v12248_v40, %v12200_v10 }
 0x43f   : > { %v3499_v49 = vmul.f32 %v3498_v17, %v12164_v53  ;;  %v3514_v45 = vmul.f32 %v3513_v41, %v12164_v53  ;;  %4287 = vadd.xlane.f32.xlu2 %v4247_v23  ;;  %v12277_v26 = vadd.f32 %v8854_v25, %v12192_v11  ;;  %v3445_v21 = vand.u32 2147483647, %v12145_v20 }
 0x440   : > { %v12279_v51 = vpop.eup %8618  ;;  %v3447_v39 = vand.u32 2147483648, %v12145_v20  ;;  %v3462_v60 = vadd.f32 0.18741608, %v3461_v50  ;;  %v3548_v63 = vmul.f32 %v3547_v58, %v12238_v2  ;;  %vm3442_vm13 = vweird.f32 %v12204_v43  ;;  %v2641_v58 = vpop.f32.mrf.mxu1 }
 0x441   : > { %16445 = vst [vmem:[#allocation16_spill] sm:$0xff] %v12277_v26  ;;  %v4403_v34 = vsub.f32 1.5, %v4402_v32  ;;  %v12285_v17 = vadd.f32 1.0, %v3514_v45  ;;  %4139 = vadd.xlane.f32.xlu1 %v12277_v26  ;;  %v4338_v59 = vmul.f32 %v4278_v22, %v8928_v13  ;;  %v3409_v11 = vsel %vm12233_vm8, %v3408_v4, %v3404_v61  ;;  %vm12310_vm2 = vmor %vm3441_vm0, %vm3442_vm13 }
 0x442   : > { %v3440_v18 = vadd.f32 %v12204_v43, %v3439_v55  ;;  %v3537_v52 = vmul.f32 %v3536_v14, %v12238_v2  ;;  %v3549_v41 = vadd.f32 0.014752088, %v3548_v63  ;;  %v3478_v50 = vsub.f32 1.0, %v3477_v29 }
 0x443   : > { %v3500_v23 = vadd.f32 0.05243302, %v3499_v49  ;;  %8620 = vrcp.f32 %v12285_v17  ;;  %v4410_v32 = vmul.f32 %v12279_v51, %v12225_v6  ;;  %vm12296_vm1 = vcmp.eq.f32.partialorder %v3445_v21, 8.507059e+37 }
 0x444   : > { %v3463_v27 = vmul.f32 %v3462_v60, %v12041_v19  ;;  %v12302_v4 = vmul.f32 0.5, %v12117_v62  ;;  %v3550_v61 = vmul.f32 %v3549_v41, %v12238_v2  ;;  %v3410_v55 = vmul.f32 %v3409_v11, %v12213_v24  ;;  %v4276_v62 = vpop.xlane.xlu2 %4275  ;;  %v8855_v41 = vld [vmem:[%s8919_s18 + $0x78] sm:$0xff] }
 0x445   : > { %v3448_v22 = vor.u32 1.1754944e-38, %v3447_v39  ;;  %v12315_v29 = vmul.f32 %v12185_v15, %v4403_v34  ;;  %v12317_v19 = vadd.f32 1e-05, %v4338_v59  ;;  %v3444_v49 = vsel %vm12310_vm2, %v12204_v43, %v3440_v18 }
 0x446   : > { %v3538_v24 = vadd.f32 0.0036580483, %v3537_v52  ;;  %v3551_v25 = vadd.f32 0.112945676, %v3550_v61  ;;  %v12323_v20 = vadd.f32 %v2641_v58, %v10028_v8  ;;  %v3479_v21 = vmul.f32 %v12248_v40, %v3478_v50 }
 0x447   : > { %v3501_v39 = vmul.f32 %v3500_v23, %v12164_v53  ;;  %v4411_v60 = vmul.f32 %v12279_v51, %v4410_v32  ;;  %v2529_v63 = vpack.c.bf16 %v12198_v5, %v12189_v48  ;;  %v3464_v34 = vadd.f32 1.1283791, %v3463_v27 }
 0x448   : > { %v3552_v59 = vmul.f32 %v3551_v25, %v12238_v2  ;;  %8622 = vrsqrt.f32 %v12317_v19  ;;  %v4337_v43 = vmul.f32 %v4276_v62, %v8928_v13  ;;  %v8232_v18 = vclamps-f32 %v3410_v55, 1.0 }
 0x449   : > { %v12333_v11 = vpop.eup %8620  ;;  %v3449_v52 = vsel %vm12296_vm1, %v3448_v22, %v3444_v49  ;;  %vm3482_vm3 = vweird.f32 %v12248_v40  ;;  %2658 = vmatmul.bf16.gmra.mxu1 %v2529_v63  ;;  %v12340_v50 = vadd.f32 %v8855_v41, %v12251_v46  ;;  %vm4406_vm4 = vweird.f32 %v12185_v15  ;;  %v4280_v46 = vpop.xlane.xlu0 %4279 }
 0x44a   : > { %v3517_v48 = vmul.f32 %v12333_v11, %v12285_v17  ;;  %v3539_v5 = vmul.f32 %v3538_v24, %v12238_v2  ;;  %v3553_v23 = vadd.f32 0.4994258, %v3552_v59  ;;  %v12347_v32 = vmul.f32 0.70710677, %v12323_v20 }
 0x44b   : > { %16450 = vst [vmem:[#allocation3_spill] sm:$0xff] %v12340_v50  ;;  %v3480_v58 = vadd.f32 %v12248_v40, %v3479_v21  ;;  %v3502_v45 = vadd.f32 0.18741608, %v3501_v39  ;;  %v4412_v27 = vmul.f32 0.5, %v4411_v60  ;;  %v12350_v61 = vadd.f32 1e-05, %v4337_v43  ;;  %4141 = vadd.xlane.f32.xlu2 %v12340_v50 }
 0x44c   : > { %v3465_v55 = vmul.f32 %v3464_v34, %v12014_v37  ;;  %v3487_v14 = vand.u32 2147483648, %v12200_v10  ;;  %vm4405_vm5 = vweird.f32 %v12127_v9  ;;  %v3518_v22 = vsub.f32 1.0, %v3517_v48 }
 0x44d   : > { %v3554_v62 = vmul.f32 %v3553_v23, %v12238_v2  ;;  %v3450_v49 = vmul.f32 %v3449_v52, %v12254_v54  ;;  %vm3481_vm6 = vweird.f32 %v12200_v10  ;;  %v3485_v24 = vand.u32 2147483647, %v12200_v10  ;;  %vm12407_vm8 = vmor %vm4405_vm5, %vm4406_vm4 }
 0x44e   : > { %8624 = vrsqrt.f32 %v12350_v61  ;;  %v12361_v25 = vpop.eup %8622  ;;  %v4029_v21 = vadd.f32 1.0, %v8232_v18  ;;  %vm12365_vm7 = vmor %vm3481_vm6, %vm3482_vm3  ;;  %v3540_v39 = vadd.f32 0.05243302, %v3539_v5  ;;  %v3573_v54 = vmul.f32 %v12347_v32, %v12347_v32 }
 0x44f   : > { %v12369_v60 = vadd.f32 1.0, %v3554_v62  ;;  %v3484_v10 = vsel %vm12365_vm7, %v12248_v40, %v3480_v58  ;;  %v3503_v63 = vmul.f32 %v3502_v45, %v12164_v53  ;;  %v4413_v34 = vsub.f32 1.5, %v4412_v27 }
 0x450   : > { %v4339_v59 = vmul.f32 %v4280_v46, %v8928_v13  ;;  %v3488_v43 = vor.u32 1.1754944e-38, %v3487_v14  ;;  %v3519_v18 = vmul.f32 %v12333_v11, %v3518_v22  ;;  %vm4415_vm9 = vweird.f32 %v12225_v6  ;;  %v4130_v14 = vpop.xlane.xlu2 %4129 }
 0x451   : > { %8626 = vrcp.f32 %v12369_v60  ;;  %v8233_v52 = vclamps-f32 %v3450_v49, 1.0  ;;  %vm3486_vm10 = vcmp.eq.f32.partialorder %v3485_v24, 8.507059e+37  ;;  %vm4416_vm11 = vweird.f32 %v12279_v51 }
 0x452   : > { %v4430_v41 = vmul.f32 %v12361_v25, %v12317_v19  ;;  %v4061_v40 = vmul.f32 %v4029_v21, %v12093_v44  ;;  %v3489_v53 = vsel %vm3486_vm10, %v3488_v43, %v3484_v10  ;;  %v3541_v48 = vmul.f32 %v3540_v39, %v12238_v2  ;;  %v4134_v39 = vpop.xlane.xlu0 %4133  ;;  %vm12419_vm15 = vmor %vm4415_vm9, %vm4416_vm11  ;;  %v1085_v21 = vpop.f32.mrf.mxu0 }
 0x453   : > { %v12386_v5 = vmin.f32 %v3573_v54, 16.0  ;;  %v3504_v58 = vadd.f32 1.1283791, %v3503_v63  ;;  %v3525_v45 = vand.u32 2147483647, %v12285_v17  ;;  %v4414_v27 = vmul.f32 %v12279_v51, %v4413_v34 }
 0x454   : > { %v12388_v23 = vpop.eup %8624  ;;  %v12392_v46 = vadd.f32 1e-05, %v4339_v59  ;;  %v3520_v22 = vadd.f32 %v12333_v11, %v3519_v18  ;;  %vm3522_vm12 = vweird.f32 %v12333_v11  ;;  %v3527_v44 = vand.u32 2147483648, %v12285_v17 }
 0x455   : > { %v4420_v62 = vmul.f32 %v12388_v23, %v12350_v61  ;;  %v12399_v49 = vadd.f32 1.0, %v8233_v52  ;;  %v12401_v24 = vmul.f32 %v3489_v53, %v3465_v55  ;;  %vm3521_vm14 = vweird.f32 %v12285_v17 }
 0x456   : > { %v4431_v37 = vmul.f32 %v12361_v25, %v4430_v41  ;;  %v3542_v9 = vadd.f32 0.18741608, %v3541_v48  ;;  %v4184_v63 = vmul.f32 %v4130_v14, %v8928_v13  ;;  %v4408_v17 = vsel %vm12407_vm8, %v12185_v15, %v12315_v29  ;;  %vm12431_vm0 = vmor %vm3521_vm14, %vm3522_vm12  ;;  %v8248_v41 = vld [vmem:[%s16191_s1 + $0x8] sm:$0xff] }
 0x457   : > { %v12413_v54 = vpop.eup %8626  ;;  %v4421_v10 = vmul.f32 %v12388_v23, %v4420_v62  ;;  %v12438_v59 = vmul.f32 3.8918573e-05, %v12386_v5  ;;  %8628 = vrsqrt.f32 %v12392_v46  ;;  %v4418_v43 = vsel %vm12419_vm15, %v12279_v51, %v4414_v27 }
 0x458   : > { %v3557_v6 = vmul.f32 %v12413_v54, %v12369_v60  ;;  %v3505_v15 = vmul.f32 %v3504_v58, %v12133_v42  ;;  %v3524_v29 = vsel %vm12431_vm0, %v12333_v11, %v3520_v22  ;;  %vm12448_vm13 = vcmp.eq.f32.partialorder %v3525_v45, 8.507059e+37  ;;  %v4282_v42 = vpop.xlane.xlu1 %4281 }
 0x459   : > { %v3528_v52 = vor.u32 1.1754944e-38, %v3527_v44  ;;  %v4432_v48 = vmul.f32 0.5, %v4431_v37  ;;  %v4422_v14 = vmul.f32 0.5, %v4421_v10  ;;  %v4719_v51 = vmul.f32 %v4408_v17, %v11241_v47  ;;  %v8856_v44 = vld [vmem:[%s8919_s18 + $0x80] sm:$0xff] }
 0x45a   : > { %v3558_v53 = vsub.f32 1.0, %v3557_v6  ;;  %v3543_v58 = vmul.f32 %v3542_v9, %v12238_v2  ;;  %vm4435_vm1 = vweird.f32 %v12317_v19  ;;  %v12459_v11 = vsub.f32 %v11491_v12, %v4184_v63  ;;  %v16467_v19 = vld [vmem:[#allocation2_spill] sm:$0xff] }
 0x45b   : > { %v4720_v45 = vmul.f32 %v4418_v43, %v11370_v56  ;;  %vm3561_vm2 = vweird.f32 %v12369_v60  ;;  %vm4436_vm3 = vweird.f32 %v12361_v25  ;;  %vm4425_vm4 = vweird.f32 %v12350_v61 }
 0x45c   : > { %v3559_v27 = vmul.f32 %v12413_v54, %v3558_v53  ;;  %v12466_v22 = vperm.slane %v8248_v41, 0  ;;  %v3529_v47 = vsel %vm12448_vm13, %v3528_v52, %v3524_v29  ;;  %v12470_v2 = vperm.slane %v8248_v41, 1  ;;  %v4132_v52 = vpop.xlane.xlu2 %4131  ;;  %v4136_v41 = vpop.xlane.xlu0 %4135  ;;  %vm12519_vm9 = vmor %vm4435_vm1, %vm4436_vm3 }
 0x45d   : > { %v12473_v62 = vadd.f32 %v8856_v44, %v4061_v40  ;;  %v4340_v56 = vmul.f32 %v4282_v42, %v8928_v13  ;;  %v12476_v37 = vpop.eup %8628  ;;  %v4433_v55 = vsub.f32 1.5, %v4432_v48  ;;  %v4423_v9 = vsub.f32 1.5, %v4422_v14 }
 0x45e   : > { %v4752_v10 = vmul.f32 %v12466_v22, %v4719_v51  ;;  %v4753_v63 = vmul.f32 %v12466_v22, %v4720_v45  ;;  %v3565_v17 = vand.u32 2147483647, %v12369_v60  ;;  %v4186_v40 = vmul.f32 %v4134_v39, %v8928_v13 }
 0x45f   : > { %16461 = vst [vmem:[#allocation22_spill] sm:$0xff] %v12473_v62  ;;  %4143 = vadd.xlane.f32.xlu2 %v12473_v62  ;;  %v12482_v34 = vadd.f32 1e-05, %v4340_v56  ;;  %v4248_v6 = vmul.f32 %v12459_v11, %v12459_v11  ;;  %v3530_v43 = vmul.f32 %v3529_v47, %v3505_v15  ;;  %v3560_v29 = vadd.f32 %v12413_v54, %v3559_v27 }
 0x460   : > { %vm3562_vm5 = vweird.f32 %v12413_v54  ;;  %v3567_v18 = vand.u32 2147483648, %v12369_v60  ;;  %v4440_v53 = vmul.f32 %v12476_v37, %v12392_v46  ;;  %v4785_v48 = vadd.f32 %v12470_v2, %v4752_v10 }
 0x461   : > { %v4786_v14 = vadd.f32 %v12470_v2, %v4753_v63  ;;  %8630 = vrsqrt.f32 %v12482_v34  ;;  %4289 = vadd.xlane.f32.xlu0 %v4248_v6  ;;  %v4434_v39 = vmul.f32 %v12361_v25, %v4433_v55  ;;  %v4424_v15 = vmul.f32 %v12388_v23, %v4423_v9  ;;  %vm12503_vm7 = vmor %vm3561_vm2, %vm3562_vm5 }
 0x462   : > { %vm4426_vm6 = vweird.f32 %v12388_v23  ;;  %v12499_v51 = vsub.f32 %v11500_v30, %v4186_v40  ;;  %v4185_v27 = vmul.f32 %v4132_v52, %v8928_v13  ;;  %v4187_v47 = vmul.f32 %v4136_v41, %v8928_v13 }
 0x463   : > { %v4834_v45 = vpack.c.bf16 %v4786_v14, %v4785_v48  ;;  %v12510_v44 = vadd.f32 %v1085_v21, %v16404_v16  ;;  %v8235_v56 = vclamps-f32 %v3530_v43, 1.0  ;;  %v3544_v55 = vadd.f32 1.1283791, %v3543_v58  ;;  %vm4427_vm10 = vmor %vm4425_vm4, %vm4426_vm6  ;;  %v16466_v21 = vld [vmem:[#allocation6_spill] sm:$0xff]  ;;  %v1087_v48 = vpop.f32.mrf.mxu0 }
 0x464   : > { %v3564_v9 = vsel %vm12503_vm7, %v12413_v54, %v3560_v29  ;;  %v4250_v10 = vmul.f32 %v12499_v51, %v12499_v51  ;;  %v3568_v63 = vor.u32 1.1754944e-38, %v3567_v18  ;;  %v4441_v58 = vmul.f32 %v12476_v37, %v4440_v53 }
 0x465   : > { %4907 = vmatmul.bf16.vlgmr.msra.gmra.mxu2 %v4834_v45  ;;  %v12529_v54 = vsub.f32 %v16466_v21, %v4185_v27  ;;  %v12532_v40 = vmul.f32 0.70710677, %v12510_v44  ;;  %vm3566_vm11 = vcmp.eq.f32.partialorder %v3565_v17, 8.507059e+37  ;;  %v12535_v6 = vsub.f32 %v16467_v19, %v4187_v47  ;;  %v16469_v17 = vld [vmem:[#allocation9_spill] sm:$0xff]  ;;  %v16470_v45 = vld [vmem:[#allocation8_spill] sm:$0xff] }
 0x466   : > { %4293 = vadd.xlane.f32.xlu1 %v4250_v10  ;;  %v4428_v43 = vsel %vm4427_vm10, %v12388_v23, %v4424_v15  ;;  %v4438_v61 = vsel %vm12519_vm9, %v12361_v25, %v4434_v39  ;;  %v3569_v18 = vsel %vm3566_vm11, %v3568_v63, %v3564_v9  ;;  %v8234_v14 = vclamps-f32 %v12401_v24, 1.0 }
 0x467   : > { %16468 = vst [vmem:[#allocation23_spill] sm:$0xff] %v12535_v6  ;;  %v12541_v29 = vpop.eup %8630  ;;  %v4249_v52 = vmul.f32 %v12529_v54, %v12529_v54  ;;  %v2354_v41 = vmul.f32 %v12532_v40, %v12532_v40  ;;  %v4721_v53 = vmul.f32 %v4428_v43, %v16469_v17  ;;  %v4032_v42 = vadd.f32 1.0, %v8235_v56 }
 0x468   : > { %v3545_v23 = vmul.f32 %v3544_v55, %v12208_v35  ;;  %v4450_v25 = vmul.f32 %v12541_v29, %v12482_v34  ;;  %v4442_v39 = vmul.f32 0.5, %v4441_v58  ;;  %v4722_v27 = vmul.f32 %v4438_v61, %v16470_v45 }
 0x469   : > { %4291 = vadd.xlane.f32.xlu0 %v4249_v52  ;;  %v12552_v15 = vmin.f32 %v2354_v41, 16.0  ;;  %v4754_v47 = vmul.f32 %v12466_v22, %v4721_v53  ;;  %v4251_v24 = vmul.f32 %v12535_v6, %v12535_v6  ;;  %v12560_v56 = vadd.f32 %v1087_v48, %v16404_v16 }
 0x46a   : > { %v3570_v9 = vmul.f32 %v3569_v18, %v3545_v23  ;;  %v4451_v60 = vmul.f32 %v12541_v29, %v4450_v25  ;;  %v4062_v35 = vmul.f32 %v12399_v49, %v12173_v1  ;;  %v4755_v63 = vmul.f32 %v12466_v22, %v4722_v27  ;;  %v8857_v23 = vld [vmem:[%s8919_s18 + $0x88] sm:$0xff] }
 0x46b   : > { %v2356_v55 = vmul.f32 2.1237322e-06, %v12552_v15  ;;  %v2367_v10 = vmul.f32 3.8918573e-05, %v12552_v15  ;;  %v4031_v58 = vadd.f32 1.0, %v8234_v14  ;;  %v4443_v52 = vsub.f32 1.5, %v4442_v39 }
 0x46c   : > { %v3587_v43 = vadd.f32 0.001143296, %v12438_v59  ;;  %v4452_v61 = vmul.f32 0.5, %v4451_v60  ;;  %v12569_v18 = vmul.f32 0.70710677, %v12560_v56  ;;  %v4787_v17 = vadd.f32 %v12470_v2, %v4754_v47 }
 0x46d   : > { %v2357_v16 = vadd.f32 0.00028619796, %v2356_v55  ;;  %v2368_v41 = vadd.f32 0.001143296, %v2367_v10  ;;  %v4064_v1 = vmul.f32 %v4032_v42, %v12302_v4  ;;  %v8236_v49 = vclamps-f32 %v3570_v9, 1.0 }
 0x46e   : > { %v4453_v53 = vsub.f32 1.5, %v4452_v61  ;;  %4295 = vadd.xlane.f32.xlu1 %v4251_v24  ;;  %v2394_v48 = vmul.f32 %v12569_v18, %v12569_v18  ;;  %v12578_v25 = vadd.f32 %v8857_v23, %v4062_v35  ;;  %v4788_v39 = vadd.f32 %v12470_v2, %v4755_v63  ;;  %v8858_v35 = vld [vmem:[%s8919_s18 + $0x98] sm:$0xff] }
 0x46f   : > { %v2358_v14 = vmul.f32 %v2357_v16, %v12552_v15  ;;  %v2369_v59 = vmul.f32 %v2368_v41, %v12552_v15  ;;  %vm4446_vm12 = vweird.f32 %v12476_v37  ;;  %vm4456_vm8 = vweird.f32 %v12541_v29 }
 0x470   : > { %16471 = vst [vmem:[#allocation9_spill] sm:$0xff] %v12578_v25  ;;  %v4454_v4 = vmul.f32 %v12541_v29, %v4453_v53  ;;  %v12584_v42 = vmin.f32 %v2394_v48, 16.0  ;;  %v4444_v45 = vmul.f32 %v12476_v37, %v4443_v52  ;;  %vm4455_vm14 = vweird.f32 %v12482_v34  ;;  %v8859_v48 = vld [vmem:[%s8919_s18 + $0x90] sm:$0xff] }
 0x471   : > { %v2370_v27 = vadd.f32 0.014752088, %v2369_v59  ;;  %4145 = vadd.xlane.f32.xlu0 %v12578_v25  ;;  %v4835_v47 = vpack.c.bf16 %v4788_v39, %v4787_v17  ;;  %v4033_v9 = vadd.f32 1.0, %v8236_v49  ;;  %v12592_v55 = vadd.f32 %v8858_v35, %v4064_v1  ;;  %vm12596_vm15 = vmor %vm4455_vm14, %vm4456_vm8  ;;  %v16478_v59 = vld [vmem:[#allocation18_spill] sm:$0xff] }
 0x472   : > { %v2396_v60 = vmul.f32 2.1237322e-06, %v12584_v42  ;;  %v2407_v24 = vmul.f32 3.8918573e-05, %v12584_v42  ;;  %v4063_v10 = vmul.f32 %v4031_v58, %v12195_v28  ;;  %v2689_v63 = vmul.f32 0.5, %v12180_v38 }
 0x473   : > { %16472 = vst [vmem:[#allocation8_spill] sm:$0xff] %v12592_v55  ;;  %v2359_v34 = vadd.f32 0.0036580483, %v2358_v14  ;;  %v2371_v52 = vmul.f32 %v2370_v27, %v12552_v15  ;;  %vm4445_vm0 = vweird.f32 %v12392_v46  ;;  %v4458_v17 = vsel %vm12596_vm15, %v12541_v29, %v4454_v4 }
 0x474   : > { %v2397_v16 = vadd.f32 0.00028619796, %v2396_v60  ;;  %v2408_v41 = vadd.f32 0.001143296, %v2407_v24  ;;  %v3588_v28 = vmul.f32 %v3587_v43, %v12386_v5  ;;  %vm12608_vm13 = vmor %vm4445_vm0, %vm4446_vm12  ;;  %v4065_v1 = vmul.f32 %v4033_v9, %v2689_v63 }
 0x475   : > { %v2372_v58 = vadd.f32 0.112945676, %v2371_v52  ;;  %4912 = vmatmul.bf16.gmra.mxu2 %v4835_v47  ;;  %v4448_v29 = vsel %vm12608_vm13, %v12476_v37, %v4444_v45  ;;  %v2360_v43 = vmul.f32 %v2359_v34, %v12552_v15  ;;  %v12621_v14 = vadd.f32 %v8859_v48, %v4063_v10  ;;  %v16479_v47 = vld [vmem:[#allocation17_spill] sm:$0xff]  ;;  %v8860_v37 = vld [vmem:[%s8919_s18 + $0xa0] sm:$0xff] }
 0x476   : > { %v2398_v49 = vmul.f32 %v2397_v16, %v12584_v42  ;;  %v2409_v46 = vmul.f32 %v2408_v41, %v12584_v42  ;;  %4149 = vadd.xlane.f32.xlu1 %v12592_v55  ;;  %v4724_v23 = vmul.f32 %v4458_v17, %v16478_v59  ;;  %v4723_v9 = vmul.f32 %v4448_v29, %v16479_v47 }
 0x477   : > { %v2373_v53 = vmul.f32 %v2372_v58, %v12552_v15  ;;  %16477 = vst [vmem:[#allocation24_spill] sm:$0xff] %v12621_v14  ;;  %v3589_v60 = vadd.f32 0.014752088, %v3588_v28  ;;  %v12628_v45 = vadd.f32 %v8860_v37, %v4065_v1  ;;  %v2361_v35 = vadd.f32 0.05243302, %v2360_v43 }
 0x478   : > { %v2399_v39 = vadd.f32 0.0036580483, %v2398_v49  ;;  %v2410_v4 = vadd.f32 0.014752088, %v2409_v46  ;;  %v4757_v10 = vmul.f32 %v12466_v22, %v4724_v23  ;;  %v4756_v16 = vmul.f32 %v12466_v22, %v4723_v9 }
 0x479   : > { %v2374_v27 = vadd.f32 0.4994258, %v2373_v53  ;;  %4147 = vadd.xlane.f32.xlu0 %v12621_v14  ;;  %16480 = vst [vmem:[#allocation18_spill] sm:$0xff] %v12628_v45  ;;  %v3590_v41 = vmul.f32 %v3589_v60, %v12386_v5  ;;  %v2362_v28 = vmul.f32 %v2361_v35, %v12552_v15  ;;  %v3575_v37 = vmul.f32 2.1237322e-06, %v12386_v5 }
 0x47a   : > { %v2411_v24 = vmul.f32 %v2410_v4, %v12584_v42  ;;  %v2400_v61 = vmul.f32 %v2399_v39, %v12584_v42  ;;  %v4790_v38 = vadd.f32 %v12470_v2, %v4757_v10  ;;  %v4789_v49 = vadd.f32 %v12470_v2, %v4756_v16 }
 0x47b   : > { %v2375_v63 = vmul.f32 %v2374_v27, %v12552_v15  ;;  %v3591_v46 = vadd.f32 0.112945676, %v3590_v41  ;;  %v2363_v43 = vadd.f32 0.18741608, %v2362_v28 }
 0x47c   : > { %v2412_v34 = vadd.f32 0.112945676, %v2411_v24  ;;  %v2401_v58 = vadd.f32 0.05243302, %v2400_v61  ;;  %v4836_v53 = vpack.c.bf16 %v4790_v38, %v4789_v49  ;;  %v3576_v49 = vadd.f32 0.00028619796, %v3575_v37 }
 0x47d   : > { %v2376_v52 = vadd.f32 1.0, %v2375_v63  ;;  %v3592_v4 = vmul.f32 %v3591_v46, %v12386_v5  ;;  %v2364_v47 = vmul.f32 %v2363_v43, %v12552_v15 }
 0x47e   : > { %v2413_v17 = vmul.f32 %v2412_v34, %v12584_v42  ;;  %4151 = vadd.xlane.f32.xlu1 %v12628_v45  ;;  %v2402_v48 = vmul.f32 %v2401_v58, %v12584_v42 }
 0x47f   : > { %8632 = vrcp.f32 %v2376_v52  ;;  %v2388_v35 = vand.u32 2147483648, %v2376_v52  ;;  %v3593_v10 = vadd.f32 0.4994258, %v3592_v4  ;;  %v2386_v34 = vand.u32 2147483647, %v2376_v52 }
 0x480   : > { %v2414_v1 = vadd.f32 0.4994258, %v2413_v17  ;;  %v2403_v24 = vadd.f32 0.18741608, %v2402_v48  ;;  %v2365_v16 = vadd.f32 1.1283791, %v2364_v47  ;;  %vm2382_vm2 = vweird.f32 %v2376_v52 }
 0x481   : > { %v2389_v38 = vor.u32 1.1754944e-38, %v2388_v35  ;;  %v3594_v46 = vmul.f32 %v3593_v10, %v12386_v5  ;;  %vm2387_vm4 = vcmp.eq.f32.partialorder %v2386_v34, 8.507059e+37 }
 0x482   : > { %v2415_v29 = vmul.f32 %v2414_v1, %v12584_v42  ;;  %v2404_v28 = vmul.f32 %v2403_v24, %v12584_v42  ;;  %v2366_v43 = vmul.f32 %v2365_v16, %v12532_v40  ;;  %v3577_v24 = vmul.f32 %v3576_v49, %v12386_v5 }
 0x483   : > { %v12660_v37 = vadd.f32 1.0, %v3594_v46 }
 0x484   : > { %v2416_v59 = vadd.f32 1.0, %v2415_v29  ;;  %v2644_v39 = vpop.f32.mrf.mxu1  ;;  %v2405_v4 = vadd.f32 1.1283791, %v2404_v28 }
 0x485   : > { %v8633_v23 = vpop.eup %8632  ;;  %4917 = vmatmul.bf16.gmra.mxu2 %v4836_v53  ;;  %v12645_v9 = vadd.f32 %v2644_v39, %v10028_v8  ;;  %vm3601_vm11 = vweird.f32 %v12660_v37 }
 0x486   : > { %v2378_v27 = vmul.f32 %v8633_v23, %v2376_v52  ;;  %8634 = vrcp.f32 %v2416_v59  ;;  %vm2383_vm1 = vweird.f32 %v8633_v23  ;;  %v2426_v52 = vand.u32 2147483647, %v2416_v59 }
 0x487   : > { %v12649_v63 = vmul.f32 0.70710677, %v12645_v9  ;;  %vm2384_vm3 = vmor %vm2382_vm2, %vm2383_vm1  ;;  %vm2422_vm6 = vweird.f32 %v2416_v59  ;;  %v2406_v40 = vmul.f32 %v2405_v4, %v12569_v18  ;;  %8636 = vrcp.f32 %v12660_v37 }
 0x488   : > { %v2379_v60 = vsub.f32 1.0, %v2378_v27  ;;  %v2428_v27 = vand.u32 2147483648, %v2416_v59  ;;  %vm2427_vm9 = vcmp.eq.f32.partialorder %v2426_v52, 8.507059e+37 }
 0x489   : > { %v3613_v41 = vmul.f32 %v12649_v63, %v12649_v63 }
 0x48a   : > { %v2380_v61 = vmul.f32 %v8633_v23, %v2379_v60  ;;  %v2429_v10 = vor.u32 1.1754944e-38, %v2428_v27 }
 0x48b   : > { %v12654_v1 = vmin.f32 %v3613_v41, 16.0  ;;  %v3578_v41 = vadd.f32 0.0036580483, %v3577_v24 }
 0x48c   : > { %v8635_v15 = vpop.eup %8634  ;;  %v2381_v17 = vadd.f32 %v8633_v23, %v2380_v61  ;;  %v2646_v28 = vpop.f32.mrf.mxu1 }
 0x48d   : > { %v2418_v58 = vmul.f32 %v8635_v15, %v2416_v59  ;;  %v3626_v39 = vmul.f32 3.8918573e-05, %v12654_v1  ;;  %vm2423_vm5 = vweird.f32 %v8635_v15  ;;  %v12667_v59 = vadd.f32 %v2646_v28, %v10028_v8 }
 0x48e   : > { %v2385_v29 = vsel %vm2384_vm3, %v8633_v23, %v2381_v17  ;;  %vm2424_vm7 = vmor %vm2422_vm6, %vm2423_vm5  ;;  %v3615_v49 = vmul.f32 2.1237322e-06, %v12654_v1 }
 0x48f   : > { %v2390_v53 = vsel %vm2387_vm4, %v2389_v38, %v2385_v29  ;;  %v2419_v48 = vsub.f32 1.0, %v2418_v58  ;;  %v3627_v60 = vadd.f32 0.001143296, %v3626_v39 }
 0x490   : > { %v2391_v42 = vmul.f32 %v2390_v53, %v2366_v43  ;;  %v12672_v43 = vmul.f32 0.70710677, %v12667_v59  ;;  %v1120_v53 = vmul.f32 0.5, %v12510_v44  ;;  %v3616_v52 = vadd.f32 0.00028619796, %v3615_v49 }
 0x491   : > { %v2420_v47 = vmul.f32 %v8635_v15, %v2419_v48  ;;  %v3628_v23 = vmul.f32 %v3627_v60, %v12654_v1  ;;  %v1121_v48 = vmul.f32 0.5, %v12560_v56 }
 0x492   : > { %v8166_v61 = vclamps-f32 %v2391_v42, 1.0  ;;  %v3653_v27 = vmul.f32 %v12672_v43, %v12672_v43  ;;  %v12679_v42 = vpop.eup %8636 }
 0x493   : > { %v2421_v35 = vadd.f32 %v8635_v15, %v2420_v47  ;;  %v3629_v16 = vadd.f32 0.014752088, %v3628_v23  ;;  %vm3602_vm10 = vweird.f32 %v12679_v42 }
 0x494   : > { %v2464_v18 = vadd.f32 1.0, %v8166_v61  ;;  %v12681_v23 = vmin.f32 %v3653_v27, 16.0  ;;  %v3597_v61 = vmul.f32 %v12679_v42, %v12660_v37  ;;  %vm12733_vm12 = vmor %vm3601_vm11, %vm3602_vm10 }
 0x495   : > { %v2425_v34 = vsel %vm2424_vm7, %v8635_v15, %v2421_v35  ;;  %v3630_v58 = vmul.f32 %v3629_v16, %v12654_v1  ;;  %v3579_v15 = vmul.f32 %v3578_v41, %v12386_v5 }
 0x496   : > { %v2430_v17 = vsel %vm2427_vm9, %v2429_v10, %v2425_v34  ;;  %v2496_v47 = vmul.f32 %v2464_v18, %v1120_v53  ;;  %v3617_v34 = vmul.f32 %v3616_v52, %v12654_v1  ;;  %v3666_v16 = vmul.f32 3.8918573e-05, %v12681_v23 }
 0x497   : > { %v2431_v38 = vmul.f32 %v2430_v17, %v2406_v40  ;;  %v3631_v29 = vadd.f32 0.112945676, %v3630_v58  ;;  %v3580_v35 = vadd.f32 0.05243302, %v3579_v15  ;;  %v2649_v40 = vpop.f32.mrf.mxu1  ;;  %v3655_v17 = vmul.f32 2.1237322e-06, %v12681_v23 }
 0x498   : > { %v12685_v56 = vadd.f32 %v2649_v40, %v10028_v8  ;;  %v3667_v58 = vadd.f32 0.001143296, %v3666_v16  ;;  %v3598_v49 = vsub.f32 1.0, %v3597_v61  ;;  %v3618_v18 = vadd.f32 0.0036580483, %v3617_v34 }
 0x499   : > { %v8167_v46 = vclamps-f32 %v2431_v38, 1.0  ;;  %v3632_v4 = vmul.f32 %v3631_v29, %v12654_v1  ;;  %v3581_v38 = vmul.f32 %v3580_v35, %v12386_v5  ;;  %v3656_v53 = vadd.f32 0.00028619796, %v3655_v17 }
 0x49a   : > { %v12695_v28 = vmul.f32 0.70710677, %v12685_v56 }
 0x49b   : > { %v2465_v39 = vadd.f32 1.0, %v8167_v46  ;;  %v3633_v24 = vadd.f32 0.4994258, %v3632_v4  ;;  %v3668_v46 = vmul.f32 %v3667_v58, %v12681_v23  ;;  %v3657_v40 = vmul.f32 %v3656_v53, %v12681_v23 }
 0x49c   : > { %v3693_v29 = vmul.f32 %v12695_v28, %v12695_v28 }
 0x49d   : > { %v2497_v60 = vmul.f32 %v2465_v39, %v1121_v48  ;;  %v3634_v44 = vmul.f32 %v3633_v24, %v12654_v1  ;;  %v4284_v15 = vpop.xlane.xlu1 %4283  ;;  %v3582_v48 = vadd.f32 0.18741608, %v3581_v38  ;;  %v3669_v39 = vadd.f32 0.014752088, %v3668_v46 }
 0x49e   : > { %v12702_v4 = vmin.f32 %v3693_v29, 16.0  ;;  %v4341_v38 = vmul.f32 %v4284_v15, %v8928_v13  ;;  %v3658_v29 = vadd.f32 0.0036580483, %v3657_v40 }
 0x49f   : > { %v2530_v10 = vpack.c.bf16 %v2497_v60, %v2496_v47  ;;  %v12691_v41 = vadd.f32 1.0, %v3634_v44  ;;  %v2651_v52 = vpop.f32.mrf.mxu1  ;;  %v3599_v47 = vmul.f32 %v12679_v42, %v3598_v49  ;;  %v3619_v60 = vmul.f32 %v3618_v18, %v12654_v1 }
 0x4a0   : > { %v12705_v27 = vadd.f32 %v2651_v52, %v10028_v8  ;;  %v3670_v24 = vmul.f32 %v3669_v39, %v12681_v23  ;;  %v3706_v35 = vmul.f32 3.8918573e-05, %v12702_v4  ;;  %v3695_v16 = vmul.f32 2.1237322e-06, %v12702_v4 }
 0x4a1   : > { %2663 = vmatmul.bf16.gmra.mxu1 %v2530_v10  ;;  %8638 = vrcp.f32 %v12691_v41  ;;  %v3583_v10 = vmul.f32 %v3582_v48, %v12386_v5  ;;  %v3600_v49 = vadd.f32 %v12679_v42, %v3599_v47  ;;  %v3620_v18 = vadd.f32 0.05243302, %v3619_v60 }
 0x4a2   : > { %v12713_v44 = vmul.f32 0.70710677, %v12705_v27  ;;  %v3671_v61 = vadd.f32 0.112945676, %v3670_v24  ;;  %v3707_v17 = vadd.f32 0.001143296, %v3706_v35  ;;  %vm3641_vm15 = vweird.f32 %v12691_v41 }
 0x4a3   : > { %v3605_v5 = vand.u32 2147483647, %v12660_v37  ;;  %v3607_v48 = vand.u32 2147483648, %v12660_v37  ;;  %v3696_v24 = vadd.f32 0.00028619796, %v3695_v16  ;;  %v3604_v37 = vsel %vm12733_vm12, %v12679_v42, %v3600_v49 }
 0x4a4   : > { %v3733_v58 = vmul.f32 %v12713_v44, %v12713_v44  ;;  %v3672_v46 = vmul.f32 %v3671_v61, %v12681_v23  ;;  %v3708_v53 = vmul.f32 %v3707_v17, %v12702_v4  ;;  %v12737_v61 = vadd.f32 1e-05, %v4341_v38 }
 0x4a5   : > { %v4138_v47 = vpop.xlane.xlu1 %4137  ;;  %v3584_v40 = vadd.f32 1.1283791, %v3583_v10  ;;  %v3621_v17 = vmul.f32 %v3620_v18, %v12654_v1  ;;  %v3608_v21 = vor.u32 1.1754944e-38, %v3607_v48  ;;  %vm3606_vm8 = vcmp.eq.f32.partialorder %v3605_v5, 8.507059e+37 }
 0x4a6   : > { %v3673_v39 = vadd.f32 0.4994258, %v3672_v46  ;;  %v12731_v52 = vmin.f32 %v3733_v58, 16.0  ;;  %v3709_v35 = vadd.f32 0.014752088, %v3708_v53  ;;  %v3659_v46 = vmul.f32 %v3658_v29, %v12681_v23 }
 0x4a7   : > { %v12716_v34 = vpop.eup %8638  ;;  %v4188_v30 = vmul.f32 %v4138_v47, %v8928_v13  ;;  %v3697_v10 = vmul.f32 %v3696_v24, %v12702_v4  ;;  %8640 = vrsqrt.f32 %v12737_v61  ;;  %v3585_v42 = vmul.f32 %v3584_v40, %v12347_v32 }
 0x4a8   : > { %v3637_v15 = vmul.f32 %v12716_v34, %v12691_v41  ;;  %v3674_v58 = vmul.f32 %v3673_v39, %v12681_v23  ;;  %v3710_v19 = vmul.f32 %v3709_v35, %v12702_v4  ;;  %v3746_v38 = vmul.f32 3.8918573e-05, %v12731_v52 }
 0x4a9   : > { %v3609_v49 = vsel %vm3606_vm8, %v3608_v21, %v3604_v37  ;;  %v3622_v18 = vadd.f32 0.18741608, %v3621_v17  ;;  %v3660_v29 = vadd.f32 0.05243302, %v3659_v46  ;;  %v12755_v48 = vsub.f32 %v11893_v0, %v4188_v30  ;;  %v2654_v37 = vpop.f32.mrf.mxu1 }
 0x4aa   : > { %v3638_v16 = vsub.f32 1.0, %v3637_v15  ;;  %v3711_v53 = vadd.f32 0.112945676, %v3710_v19  ;;  %v12751_v39 = vadd.f32 1.0, %v3674_v58  ;;  %v3735_v5 = vmul.f32 2.1237322e-06, %v12731_v52  ;;  %v4286_v19 = vpop.xlane.xlu2 %4285 }
 0x4ab   : > { %16483 = vst [vmem:[#allocation17_spill] sm:$0xff] %v12755_v48  ;;  %v3747_v47 = vadd.f32 0.001143296, %v3746_v38  ;;  %v3610_v24 = vmul.f32 %v3609_v49, %v3585_v42  ;;  %v3698_v35 = vadd.f32 0.0036580483, %v3697_v10  ;;  %v3623_v32 = vmul.f32 %v3622_v18, %v12654_v1 }
 0x4ac   : > { %v3712_v60 = vmul.f32 %v3711_v53, %v12702_v4  ;;  %v3639_v15 = vmul.f32 %v12716_v34, %v3638_v16  ;;  %v3647_v21 = vand.u32 2147483648, %v12691_v41  ;;  %v3661_v30 = vmul.f32 %v3660_v29, %v12681_v23 }
 0x4ad   : > { %v3748_v40 = vmul.f32 %v3747_v47, %v12731_v52  ;;  %v12762_v17 = vpop.eup %8640  ;;  %8642 = vrcp.f32 %v12751_v39  ;;  %v4252_v58 = vmul.f32 %v12755_v48, %v12755_v48  ;;  %vm3642_vm14 = vweird.f32 %v12716_v34 }
 0x4ae   : > { %v3713_v46 = vadd.f32 0.4994258, %v3712_v60  ;;  %v3640_v16 = vadd.f32 %v12716_v34, %v3639_v15  ;;  %v3736_v1 = vadd.f32 0.00028619796, %v3735_v5  ;;  %v8237_v10 = vclamps-f32 %v3610_v24, 1.0  ;;  %vm12779_vm0 = vmor %vm3641_vm15, %vm3642_vm14 }
 0x4af   : > { %v3749_v38 = vadd.f32 0.014752088, %v3748_v40  ;;  %v3699_v53 = vmul.f32 %v3698_v35, %v12702_v4  ;;  %v12772_v42 = vadd.f32 %v2654_v37, %v10028_v8  ;;  %4297 = vadd.xlane.f32.xlu2 %v4252_v58  ;;  %v3645_v49 = vand.u32 2147483647, %v12691_v41 }
 0x4b0   : > { %v4460_v18 = vmul.f32 %v12762_v17, %v12737_v61  ;;  %v3624_v15 = vadd.f32 1.1283791, %v3623_v32  ;;  %v3662_v47 = vadd.f32 0.18741608, %v3661_v30  ;;  %v3714_v24 = vmul.f32 %v3713_v46, %v12702_v4 }
 0x4b1   : > { %v3750_v29 = vmul.f32 %v3749_v38, %v12731_v52  ;;  %v3644_v35 = vsel %vm12779_vm0, %v12716_v34, %v3640_v16  ;;  %v3648_v40 = vor.u32 1.1754944e-38, %v3647_v21  ;;  %v3737_v41 = vmul.f32 %v3736_v1, %v12731_v52 }
 0x4b2   : > { %v4342_v37 = vmul.f32 %v4286_v19, %v8928_v13  ;;  %v3700_v38 = vadd.f32 0.05243302, %v3699_v53  ;;  %v12792_v0 = vmul.f32 0.70710677, %v12772_v42  ;;  %v2690_v46 = vmul.f32 0.5, %v12323_v20  ;;  %v12797_v21 = vpop.xlane.xlu2 %4287 }
 0x4b3   : > { %v12789_v58 = vpop.eup %8642  ;;  %v3751_v32 = vadd.f32 0.112945676, %v3750_v29  ;;  %v4034_v12 = vadd.f32 1.0, %v8237_v10  ;;  %vm3646_vm13 = vcmp.eq.f32.partialorder %v3645_v49, 8.507059e+37  ;;  %v4461_v34 = vmul.f32 %v12762_v17, %v4460_v18 }
 0x4b4   : > { %v4140_v60 = vpop.xlane.xlu1 %4139  ;;  %v3649_v16 = vsel %vm3646_vm13, %v3648_v40, %v3644_v35  ;;  %v3663_v19 = vmul.f32 %v3662_v47, %v12681_v23  ;;  %v12800_v1 = vadd.f32 1.0, %v3714_v24  ;;  %v3625_v29 = vmul.f32 %v3624_v15, %v12649_v63  ;;  %v2656_v47 = vpop.f32.mrf.mxu1 }
 0x4b5   : > { %v4189_v30 = vmul.f32 %v4140_v60, %v8928_v13  ;;  %v3752_v53 = vmul.f32 %v3751_v32, %v12731_v52  ;;  %v3677_v60 = vmul.f32 %v12789_v58, %v12751_v39  ;;  %v3738_v5 = vadd.f32 0.0036580483, %v3737_v41 }
 0x4b6   : > { %v3773_v20 = vmul.f32 %v12792_v0, %v12792_v0  ;;  %v3701_v10 = vmul.f32 %v3700_v38, %v12702_v4  ;;  %v12809_v18 = vadd.f32 1e-05, %v4342_v37  ;;  %v4066_v24 = vmul.f32 %v4034_v12, %v2690_v46 }
 0x4b7   : > { %v3753_v49 = vadd.f32 0.4994258, %v3752_v53  ;;  %v12812_v23 = vsub.f32 %v12277_v26, %v4189_v30  ;;  %v3650_v35 = vmul.f32 %v3649_v16, %v3625_v29  ;;  %v4462_v63 = vmul.f32 0.5, %v4461_v34 }
 0x4b8   : > { %v3664_v15 = vadd.f32 1.1283791, %v3663_v19  ;;  %8644 = vrcp.f32 %v12800_v1  ;;  %v12816_v41 = vmin.f32 %v3773_v20, 16.0  ;;  %v3678_v32 = vsub.f32 1.0, %v3677_v60  ;;  %v8861_v19 = vld [vmem:[%s8919_s18 + $0xa8] sm:$0xff] }
 0x4b9   : > { %16486 = vst [vmem:[#allocation25_spill] sm:$0xff] %v12812_v23  ;;  %v3754_v40 = vmul.f32 %v3753_v49, %v12731_v52  ;;  %v3739_v38 = vmul.f32 %v3738_v5, %v12731_v52  ;;  %v12820_v37 = vadd.f32 %v2656_v47, %v10028_v8  ;;  %v4253_v30 = vmul.f32 %v12812_v23, %v12812_v23 }
 0x4ba   : > { %v3702_v12 = vadd.f32 0.18741608, %v3701_v10  ;;  %8646 = vrsqrt.f32 %v12809_v18  ;;  %v8238_v46 = vclamps-f32 %v3650_v35, 1.0  ;;  %v4463_v34 = vsub.f32 1.5, %v4462_v63 }
 0x4bb   : > { %v3786_v16 = vmul.f32 3.8918573e-05, %v12816_v41  ;;  %4299 = vadd.xlane.f32.xlu2 %v4253_v30  ;;  %v12827_v53 = vadd.f32 %v8861_v19, %v4066_v24  ;;  %v2691_v29 = vmul.f32 0.5, %v12645_v9  ;;  %v12831_v60 = vmul.f32 0.5, %v12667_v59 }
 0x4bc   : > { %v12833_v5 = vadd.f32 1.0, %v3754_v40  ;;  %v12836_v20 = vmul.f32 0.70710677, %v12820_v37  ;;  %v12839_v10 = vmul.f32 %v3664_v15, %v12672_v43  ;;  %v3679_v49 = vmul.f32 %v12789_v58, %v3678_v32 }
 0x4bd   : > { %16487 = vst [vmem:[#allocation26_spill] sm:$0xff] %v12827_v53  ;;  %v3740_v47 = vadd.f32 0.05243302, %v3739_v38  ;;  %v3775_v35 = vmul.f32 2.1237322e-06, %v12816_v41  ;;  %vm3681_vm1 = vweird.f32 %v12751_v39  ;;  %v3703_v59 = vmul.f32 %v3702_v12, %v12702_v4 }
 0x4be   : > { %v4142_v24 = vpop.xlane.xlu2 %4141  ;;  %v12843_v63 = vpop.eup %8644  ;;  %v3685_v9 = vand.u32 2147483647, %v12751_v39  ;;  %v3787_v40 = vadd.f32 0.001143296, %v3786_v16  ;;  %v4035_v30 = vadd.f32 1.0, %v8238_v46  ;;  %vm3682_vm2 = vweird.f32 %v12789_v58 }
 0x4bf   : > { %v3687_v43 = vand.u32 2147483648, %v12751_v39  ;;  %v12851_v15 = vmul.f32 %v12762_v17, %v4463_v34  ;;  %8648 = vrcp.f32 %v12833_v5  ;;  %v3813_v19 = vmul.f32 %v12836_v20, %v12836_v20  ;;  %vm12882_vm4 = vmor %vm3681_vm1, %vm3682_vm2 }
 0x4c0   : > { %v12853_v32 = vpop.eup %8646  ;;  %v3788_v38 = vmul.f32 %v3787_v40, %v12816_v41  ;;  %v4190_v4 = vmul.f32 %v4142_v24, %v8928_v13  ;;  %v3680_v46 = vadd.f32 %v12789_v58, %v3679_v49  ;;  %v3717_v16 = vmul.f32 %v12843_v63, %v12800_v1 }
 0x4c1   : > { %v3741_v34 = vmul.f32 %v3740_v47, %v12731_v52  ;;  %v3776_v26 = vadd.f32 0.00028619796, %v3775_v35  ;;  %v3704_v57 = vadd.f32 1.1283791, %v3703_v59  ;;  %v4343_v36 = vmul.f32 %v12797_v21, %v8928_v13 }
 0x4c2   : > { %v3789_v7 = vadd.f32 0.014752088, %v3788_v38  ;;  %v12866_v40 = vmin.f32 %v3813_v19, 16.0  ;;  %v4067_v23 = vmul.f32 %v4035_v30, %v2691_v29  ;;  %vm12868_vm3 = vcmp.eq.f32.partialorder %v3685_v9, 8.507059e+37 }
 0x4c3   : > { %v4470_v49 = vmul.f32 %v12853_v32, %v12809_v18  ;;  %4153 = vadd.xlane.f32.xlu2 %v12827_v53  ;;  %v3688_v29 = vor.u32 1.1754944e-38, %v3687_v43  ;;  %v12889_v9 = vsub.f32 %v12340_v50, %v4190_v4  ;;  %v3684_v59 = vsel %vm12882_vm4, %v12789_v58, %v3680_v46  ;;  %v8862_v46 = vld [vmem:[%s8919_s18 + $0xb0] sm:$0xff] }
 0x4c4   : > { %v3790_v47 = vmul.f32 %v3789_v7, %v12816_v41  ;;  %v3826_v35 = vmul.f32 3.8918573e-05, %v12866_v40  ;;  %v3718_v30 = vsub.f32 1.0, %v3717_v16  ;;  %v3742_v38 = vadd.f32 0.18741608, %v3741_v34 }
 0x4c5   : > { %16492 = vst [vmem:[#allocation27_spill] sm:$0xff] %v12889_v9  ;;  %v3777_v39 = vmul.f32 %v3776_v26, %v12816_v41  ;;  %v12895_v19 = vpop.eup %8648  ;;  %v12898_v43 = vmul.f32 %v3704_v57, %v12695_v28  ;;  %vm3721_vm5 = vweird.f32 %v12800_v1  ;;  %v4471_v4 = vmul.f32 %v12853_v32, %v4470_v49 }
 0x4c6   : > { %v2659_v12 = vpop.f32.mrf.mxu1  ;;  %v3791_v7 = vadd.f32 0.112945676, %v3790_v47  ;;  %v3827_v53 = vadd.f32 0.001143296, %v3826_v35  ;;  %v3815_v21 = vmul.f32 2.1237322e-06, %v12866_v40  ;;  %v12909_v26 = vadd.f32 %v8862_v46, %v4067_v23 }
 0x4c7   : > { %v12875_v24 = vadd.f32 %v2659_v12, %v10028_v8  ;;  %v12900_v12 = vadd.f32 1e-05, %v4343_v36  ;;  %v3689_v57 = vsel %vm12868_vm3, %v3688_v29, %v3684_v59  ;;  %v4254_v16 = vmul.f32 %v12889_v9, %v12889_v9 }
 0x4c8   : > { %16493 = vst [vmem:[#allocation28_spill] sm:$0xff] %v12909_v26  ;;  %v3792_v28 = vmul.f32 %v3791_v7, %v12816_v41  ;;  %v3828_v36 = vmul.f32 %v3827_v53, %v12866_v40  ;;  %v3719_v34 = vmul.f32 %v12843_v63, %v3718_v30  ;;  %v3757_v49 = vmul.f32 %v12895_v19, %v12833_v5 }
 0x4c9   : > { %v12906_v58 = vmul.f32 0.70710677, %v12875_v24  ;;  %v3778_v47 = vadd.f32 0.0036580483, %v3777_v39  ;;  %v3725_v35 = vand.u32 2147483647, %v12800_v1  ;;  %8650 = vrsqrt.f32 %v12900_v12  ;;  %4301 = vadd.xlane.f32.xlu0 %v4254_v16 }
 0x4ca   : > { %v3793_v48 = vadd.f32 0.4994258, %v3792_v28  ;;  %v3829_v29 = vadd.f32 0.014752088, %v3828_v36  ;;  %v3727_v53 = vand.u32 2147483648, %v12800_v1  ;;  %v3743_v59 = vmul.f32 %v3742_v38, %v12731_v52 }
 0x4cb   : > { %v3853_v23 = vmul.f32 %v12906_v58, %v12906_v58  ;;  %v3816_v7 = vadd.f32 0.00028619796, %v3815_v21  ;;  %4155 = vadd.xlane.f32.xlu2 %v12909_v26  ;;  %v12930_v39 = vmul.f32 %v3689_v57, %v12839_v10  ;;  %vm3722_vm6 = vweird.f32 %v12843_v63 }
 0x4cc   : > { %v4472_v28 = vmul.f32 0.5, %v4471_v4  ;;  %v3830_v50 = vmul.f32 %v3829_v29, %v12866_v40  ;;  %v3720_v36 = vadd.f32 %v12843_v63, %v3719_v34  ;;  %vm4466_vm7 = vweird.f32 %v12762_v17  ;;  %vm12954_vm12 = vmor %vm3721_vm5, %vm3722_vm6 }
 0x4cd   : > { %v12926_v30 = vmin.f32 %v3853_v23, 16.0  ;;  %v3758_v16 = vsub.f32 1.0, %v3757_v49  ;;  %v3779_v52 = vmul.f32 %v3778_v47, %v12816_v41  ;;  %vm12938_vm9 = vcmp.eq.f32.partialorder %v3725_v35, 8.507059e+37 }
 0x4ce   : > { %v3794_v10 = vmul.f32 %v3793_v48, %v12816_v41  ;;  %v3831_v57 = vadd.f32 0.112945676, %v3830_v50  ;;  %v3728_v23 = vor.u32 1.1754944e-38, %v3727_v53  ;;  %vm4465_vm10 = vweird.f32 %v12737_v61  ;;  %v2661_v47 = vpop.f32.mrf.mxu1 }
 0x4cf   : > { %v3866_v38 = vmul.f32 3.8918573e-05, %v12926_v30  ;;  %vm4476_vm11 = vweird.f32 %v12853_v32  ;;  %v3817_v34 = vmul.f32 %v3816_v7, %v12866_v40  ;;  %v12947_v29 = vpop.eup %8650  ;;  %v12958_v48 = vadd.f32 1.1283791, %v3743_v59  ;;  %vm13002_vm15 = vmor %vm4465_vm10, %vm4466_vm7 }
 0x4d0   : > { %v4473_v53 = vsub.f32 1.5, %v4472_v28  ;;  %v3724_v7 = vsel %vm12954_vm12, %v12843_v63, %v3720_v36  ;;  %vm4475_vm8 = vweird.f32 %v12809_v18  ;;  %v3780_v35 = vadd.f32 0.05243302, %v3779_v52 }
 0x4d1   : > { %v3867_v49 = vadd.f32 0.001143296, %v3866_v38  ;;  %v3759_v38 = vmul.f32 %v12895_v19, %v3758_v16  ;;  %v3832_v1 = vmul.f32 %v3831_v57, %v12866_v40  ;;  %v12967_v9 = vadd.f32 1.0, %v3794_v10  ;;  %vm13027_vm2 = vmor %vm4475_vm8, %vm4476_vm11 }
 0x4d2   : > { %v4144_v46 = vpop.xlane.xlu2 %4143  ;;  %v12974_v28 = vadd.f32 %v2661_v47, %v10028_v8  ;;  %v3765_v50 = vand.u32 2147483647, %v12833_v5  ;;  %v4480_v63 = vmul.f32 %v12947_v29, %v12900_v12  ;;  %v3818_v36 = vadd.f32 0.0036580483, %v3817_v34 }
 0x4d3   : > { %v4191_v4 = vmul.f32 %v4144_v46, %v8928_v13  ;;  %v3855_v46 = vmul.f32 2.1237322e-06, %v12926_v30  ;;  %v3868_v26 = vmul.f32 %v3867_v49, %v12926_v30  ;;  %v3833_v16 = vadd.f32 0.4994258, %v3832_v1 }
 0x4d4   : > { %v3729_v52 = vsel %vm12938_vm9, %v3728_v23, %v3724_v7  ;;  %v3767_v10 = vand.u32 2147483648, %v12833_v5  ;;  %vm3762_vm14 = vweird.f32 %v12895_v19  ;;  %v3781_v47 = vmul.f32 %v3780_v35, %v12816_v41  ;;  %v4290_v6 = vpop.xlane.xlu0 %4289 }
 0x4d5   : > { %v12971_v59 = vsub.f32 %v12473_v62, %v4191_v4  ;;  %v3856_v57 = vadd.f32 0.00028619796, %v3855_v46  ;;  %v3869_v49 = vadd.f32 0.014752088, %v3868_v26  ;;  %v3760_v4 = vadd.f32 %v12895_v19, %v3759_v38 }
 0x4d6   : > { %v3834_v62 = vmul.f32 %v3833_v16, %v12866_v40  ;;  %8652 = vrcp.f32 %v12967_v9  ;;  %v12989_v21 = vmul.f32 0.70710677, %v12974_v28  ;;  %v4474_v26 = vmul.f32 %v12853_v32, %v4473_v53 }
 0x4d7   : > { %16498 = vst [vmem:[#allocation29_spill] sm:$0xff] %v12971_v59  ;;  %v3870_v34 = vmul.f32 %v3869_v49, %v12926_v30  ;;  %v4255_v23 = vmul.f32 %v12971_v59, %v12971_v59  ;;  %v4481_v46 = vmul.f32 %v12947_v29, %v4480_v63  ;;  %v3819_v7 = vmul.f32 %v3818_v36, %v12866_v40 }
 0x4d8   : > { %v12996_v35 = vadd.f32 1.0, %v3834_v62  ;;  %vm3761_vm0 = vweird.f32 %v12833_v5  ;;  %v3857_v1 = vmul.f32 %v3856_v57, %v12926_v30  ;;  %v4344_v53 = vmul.f32 %v4290_v6, %v8928_v13 }
 0x4d9   : > { %v3871_v16 = vadd.f32 0.112945676, %v3870_v34  ;;  %4303 = vadd.xlane.f32.xlu0 %v4255_v23  ;;  %v3730_v63 = vmul.f32 %v3729_v52, %v12898_v43  ;;  %vm13012_vm13 = vmor %vm3761_vm0, %vm3762_vm14  ;;  %vm13016_vm1 = vcmp.eq.f32.partialorder %v3765_v50, 8.507059e+37  ;;  %v3768_v36 = vor.u32 1.1754944e-38, %v3767_v10  ;;  %v4294_v38 = vpop.xlane.xlu1 %4293 }
 0x4da   : > { %v3782_v5 = vadd.f32 0.18741608, %v3781_v47  ;;  %v3764_v57 = vsel %vm13012_vm13, %v12895_v19, %v3760_v4  ;;  %8654 = vrcp.f32 %v12996_v35  ;;  %v3893_v50 = vmul.f32 %v12989_v21, %v12989_v21 }
 0x4db   : > { %v3872_v43 = vmul.f32 %v3871_v16, %v12926_v30  ;;  %v4482_v52 = vmul.f32 0.5, %v4481_v46  ;;  %v3820_v10 = vadd.f32 0.05243302, %v3819_v7  ;;  %v4468_v19 = vsel %vm13002_vm15, %v12762_v17, %v12851_v15 }
 0x4dc   : > { %v4478_v18 = vsel %vm13027_vm2, %v12853_v32, %v4474_v26  ;;  %v13042_v49 = vpop.eup %8652  ;;  %v3858_v4 = vadd.f32 0.0036580483, %v3857_v1  ;;  %v13044_v34 = vadd.f32 1e-05, %v4344_v53  ;;  %v2693_v23 = vmul.f32 0.5, %v12685_v56 }
 0x4dd   : > { %v3873_v47 = vadd.f32 0.4994258, %v3872_v43  ;;  %v8240_v16 = vclamps-f32 %v3730_v63, 1.0  ;;  %v3769_v46 = vsel %vm13016_vm1, %v3768_v36, %v3764_v57  ;;  %v3783_v7 = vmul.f32 %v3782_v5, %v12816_v41 }
 0x4de   : > { %v13051_v15 = vmin.f32 %v3893_v50, 16.0  ;;  %v4725_v32 = vmul.f32 %v4468_v19, %v12114_v33  ;;  %v4726_v26 = vmul.f32 %v4478_v18, %v12177_v3  ;;  %v16507_v1 = vclamps-f32 %v12930_v39, 1.0 }
 0x4df   : > { %v3874_v17 = vmul.f32 %v3873_v47, %v12926_v30  ;;  %v13058_v56 = vmul.f32 0.5, %v12705_v27  ;;  %v3745_v63 = vmul.f32 %v12958_v48, %v12713_v44  ;;  %v3797_v41 = vmul.f32 %v13042_v49, %v12967_v9  ;;  %v4292_v47 = vpop.xlane.xlu0 %4291 }
 0x4e0   : > { %v4036_v53 = vadd.f32 1.0, %v16507_v1  ;;  %v13064_v62 = vpop.eup %8654  ;;  %v4483_v61 = vsub.f32 1.5, %v4482_v52  ;;  %v3821_v36 = vmul.f32 %v3820_v10, %v12866_v40  ;;  %v3859_v33 = vmul.f32 %v3858_v4, %v12926_v30 }
 0x4e1   : > { %8656 = vrsqrt.f32 %v13044_v34  ;;  %v4037_v3 = vadd.f32 1.0, %v8240_v16  ;;  %v3770_v39 = vmul.f32 %v3769_v46, %v3745_v63  ;;  %v3784_v5 = vadd.f32 1.1283791, %v3783_v7 }
 0x4e2   : > { %v13069_v27 = vadd.f32 1.0, %v3874_v17  ;;  %v13072_v57 = vmul.f32 0.5, %v12772_v42  ;;  %v3906_v44 = vmul.f32 3.8918573e-05, %v13051_v15  ;;  %v4758_v48 = vmul.f32 %v12466_v22, %v4725_v32 }
 0x4e3   : > { %v4759_v6 = vmul.f32 %v12466_v22, %v4726_v26  ;;  %v3798_v50 = vsub.f32 1.0, %v3797_v41  ;;  %v13080_v52 = vmul.f32 0.5, %v12820_v37  ;;  %v3837_v10 = vmul.f32 %v13064_v62, %v12996_v35 }
 0x4e4   : > { %8658 = vrcp.f32 %v13069_v27  ;;  %v4068_v42 = vmul.f32 %v4036_v53, %v12831_v60  ;;  %v13087_v19 = vmul.f32 %v12947_v29, %v4483_v61  ;;  %v3822_v18 = vadd.f32 0.18741608, %v3821_v36 }
 0x4e5   : > { %v3860_v4 = vadd.f32 0.05243302, %v3859_v33  ;;  %v4069_v16 = vmul.f32 %v4037_v3, %v2693_v23  ;;  %v8241_v46 = vclamps-f32 %v3770_v39, 1.0  ;;  %v13090_v7 = vmul.f32 %v3784_v5, %v12792_v0  ;;  %v13101_v0 = vpop.xlane.xlu1 %4295  ;;  %v8863_v3 = vld [vmem:[%s8919_s18 + $0xb8] sm:$0xff] }
 0x4e6   : > { %v3895_v37 = vmul.f32 2.1237322e-06, %v13051_v15  ;;  %v3805_v32 = vand.u32 2147483647, %v12967_v9  ;;  %v3907_v26 = vadd.f32 0.001143296, %v3906_v44  ;;  %v4791_v60 = vadd.f32 %v12470_v2, %v4758_v48 }
 0x4e7   : > { %v13093_v17 = vpop.eup %8656  ;;  %v4792_v1 = vadd.f32 %v12470_v2, %v4759_v6  ;;  %v3799_v53 = vmul.f32 %v13042_v49, %v3798_v50  ;;  %v3838_v63 = vsub.f32 1.0, %v3837_v10  ;;  %v4346_v23 = vmul.f32 %v4294_v38, %v8928_v13 }
 0x4e8   : > { %v13077_v43 = vpop.f32.mrf.mxu2  ;;  %v4345_v41 = vmul.f32 %v4292_v47, %v8928_v13  ;;  %v3823_v61 = vmul.f32 %v3822_v18, %v12866_v40  ;;  %v3861_v36 = vmul.f32 %v3860_v4, %v12926_v30  ;;  %v13106_v39 = vadd.f32 %v8863_v3, %v4068_v42 }
 0x4e9   : > { %v4837_v33 = vpack.c.bf16 %v4792_v1, %v4791_v60  ;;  %v4490_v44 = vmul.f32 %v13093_v17, %v13044_v34  ;;  %v3896_v48 = vadd.f32 0.00028619796, %v3895_v37  ;;  %v13112_v6 = vadd.f32 1e-05, %v4346_v23 }
 0x4ea   : > { %16508 = vst [vmem:[#allocation30_spill] sm:$0xff] %v13106_v39  ;;  %v13108_v5 = vpop.eup %8658  ;;  %v13114_v38 = vadd.f32 1e-05, %v4345_v41  ;;  %vm3801_vm3 = vweird.f32 %v12967_v9  ;;  %v3807_v40 = vand.u32 2147483648, %v12967_v9  ;;  %v3908_v10 = vmul.f32 %v3907_v26, %v13051_v15  ;;  %4157 = vadd.xlane.f32.xlu0 %v13106_v39 }
 0x4eb   : > { %v3877_v50 = vmul.f32 %v13108_v5, %v13069_v27  ;;  %4922 = vmatmul.bf16.gmra.mxu2 %v4837_v33  ;;  %v3800_v42 = vadd.f32 %v13042_v49, %v3799_v53  ;;  %vm3802_vm4 = vweird.f32 %v13042_v49  ;;  %v3839_v18 = vmul.f32 %v13064_v62, %v3838_v63  ;;  %v8864_v63 = vld [vmem:[%s16191_s1 + $0x8] sm:$0xff] }
 0x4ec   : > { %8660 = vrsqrt.f32 %v13112_v6  ;;  %v4038_v4 = vadd.f32 1.0, %v8241_v46  ;;  %vm13126_vm5 = vcmp.eq.f32.partialorder %v3805_v32, 8.507059e+37  ;;  %v3862_v37 = vadd.f32 0.18741608, %v3861_v36  ;;  %vm13140_vm6 = vmor %vm3801_vm3, %vm3802_vm4  ;;  %v8865_v36 = vld [vmem:[%s8919_s18 + $0xc0] sm:$0xff] }
 0x4ed   : > { %8662 = vrsqrt.f32 %v13114_v38  ;;  %v3824_v60 = vadd.f32 1.1283791, %v3823_v61  ;;  %v4491_v1 = vmul.f32 %v13093_v17, %v4490_v44  ;;  %v3897_v53 = vmul.f32 %v3896_v48, %v13051_v15  ;;  %v4146_v48 = vpop.xlane.xlu0 %4145 }
 0x4ee   : > { %v13136_v23 = vperm.slane %v8864_v63, 2  ;;  %v3845_v32 = vand.u32 2147483647, %v12996_v35  ;;  %v3878_v41 = vsub.f32 1.0, %v3877_v50  ;;  %v3909_v61 = vadd.f32 0.014752088, %v3908_v10 }
 0x4ef   : > { %v13146_v33 = vadd.f32 %v8865_v36, %v4069_v16  ;;  %v3804_v3 = vsel %vm13140_vm6, %v13042_v49, %v3800_v42  ;;  %v3840_v44 = vadd.f32 %v13064_v62, %v3839_v18  ;;  %vm3842_vm7 = vweird.f32 %v13064_v62 }
 0x4f0   : > { %v4910_v26 = vpop.f32.mrf.mxu2  ;;  %v13155_v9 = vadd.f32 %v13077_v43, %v13136_v23  ;;  %v13158_v63 = vmul.f32 %v4038_v4, %v13058_v56  ;;  %v3808_v50 = vor.u32 1.1754944e-38, %v3807_v40  ;;  %v3847_v16 = vand.u32 2147483648, %v12996_v35  ;;  %v4150_v43 = vpop.xlane.xlu1 %4149 }
 0x4f1   : > { %16513 = vst [vmem:[#allocation31_spill] sm:$0xff] %v13146_v33  ;;  %v3863_v10 = vmul.f32 %v3862_v37, %v12926_v30  ;;  %vm3841_vm9 = vweird.f32 %v12996_v35  ;;  %v4492_v49 = vmul.f32 0.5, %v4491_v1  ;;  %v3898_v42 = vadd.f32 0.0036580483, %v3897_v53 }
 0x4f2   : > { %v13162_v36 = vpop.eup %8660  ;;  %v13166_v18 = vmul.f32 0.70710677, %v13155_v9  ;;  %v3809_v56 = vsel %vm13126_vm5, %v3808_v50, %v3804_v3  ;;  %v3825_v40 = vmul.f32 %v3824_v60, %v12836_v20  ;;  %vm13175_vm10 = vmor %vm3841_vm9, %vm3842_vm7  ;;  %v3879_v35 = vmul.f32 %v13108_v5, %v3878_v41  ;;  %4159 = vadd.xlane.f32.xlu0 %v13146_v33 }
 0x4f3   : > { %v13168_v46 = vpop.eup %8662  ;;  %v3910_v4 = vmul.f32 %v3909_v61, %v13051_v15  ;;  %vm4486_vm11 = vweird.f32 %v12947_v29  ;;  %v3844_v47 = vsel %vm13175_vm10, %v13064_v62, %v3840_v44  ;;  %vm3846_vm12 = vcmp.eq.f32.partialorder %v3845_v32, 8.507059e+37 }
 0x4f4   : > { %v4510_v20 = vmul.f32 %v13162_v36, %v13112_v6  ;;  %v13189_v37 = vadd.f32 %v4910_v26, %v13136_v23  ;;  %v3848_v60 = vor.u32 1.1754944e-38, %v3847_v16  ;;  %v3864_v1 = vadd.f32 1.1283791, %v3863_v10 }
 0x4f5   : > { %vm4496_vm8 = vweird.f32 %v13093_v17  ;;  %v4500_v53 = vmul.f32 %v13168_v46, %v13114_v38  ;;  %v4192_v41 = vmul.f32 %v4146_v48, %v8928_v13  ;;  %v13198_v62 = vmul.f32 %v3809_v56, %v13090_v7 }
 0x4f6   : > { %vm4485_vm14 = vweird.f32 %v12900_v12  ;;  %v4493_v32 = vsub.f32 1.5, %v4492_v49  ;;  %v3899_v26 = vmul.f32 %v3898_v42, %v13051_v15  ;;  %v5052_v3 = vmul.f32 %v13166_v18, %v13166_v18 }
 0x4f7   : > { %v3849_v44 = vsel %vm3846_vm12, %v3848_v60, %v3844_v47  ;;  %v3880_v50 = vadd.f32 %v13108_v5, %v3879_v35  ;;  %vm3882_vm15 = vweird.f32 %v13108_v5  ;;  %vm4495_vm0 = vweird.f32 %v13044_v34  ;;  %v4148_v60 = vpop.xlane.xlu0 %4147  ;;  %vm13251_vm3 = vmor %vm4485_vm14, %vm4486_vm11 }
 0x4f8   : > { %v13195_v61 = vpop.f32.mrf.mxu2  ;;  %v3911_v48 = vadd.f32 0.112945676, %v3910_v4  ;;  %v4511_v16 = vmul.f32 %v13162_v36, %v4510_v20  ;;  %v4501_v7 = vmul.f32 %v13168_v46, %v4500_v53  ;;  %v13210_v10 = vmul.f32 0.70710677, %v13189_v37  ;;  %vm4497_vm4 = vmor %vm4495_vm0, %vm4496_vm8 }
 0x4f9   : > { %v4194_v49 = vmul.f32 %v4150_v43, %v8928_v13  ;;  %vm3881_vm13 = vweird.f32 %v13069_v27  ;;  %v3885_v42 = vand.u32 2147483647, %v13069_v27  ;;  %v13215_v56 = vmin.f32 %v5052_v3, 16.0  ;;  %v4152_v43 = vpop.xlane.xlu1 %4151 }
 0x4fa   : > { %v13218_v30 = vsub.f32 %v12578_v25, %v4192_v41  ;;  %v3850_v35 = vmul.f32 %v3849_v44, %v3825_v40  ;;  %v3887_v4 = vand.u32 2147483648, %v13069_v27  ;;  %v5092_v47 = vmul.f32 %v13210_v10, %v13210_v10  ;;  %vm13230_vm1 = vmor %vm3881_vm13, %vm3882_vm15 }
 0x4fb   : > { %v13224_v20 = vsub.f32 %v12592_v55, %v4194_v49  ;;  %v3865_v53 = vmul.f32 %v3864_v1, %v12906_v58  ;;  %v3900_v40 = vadd.f32 0.05243302, %v3899_v26  ;;  %v3912_v27 = vmul.f32 %v3911_v48, %v13051_v15 }
 0x4fc   : > { %v3884_v41 = vsel %vm13230_vm1, %v13108_v5, %v3880_v50  ;;  %v4494_v44 = vmul.f32 %v13093_v17, %v4493_v32  ;;  %v4512_v49 = vmul.f32 0.5, %v4511_v16  ;;  %v4502_v55 = vmul.f32 0.5, %v4501_v7 }
 0x4fd   : > { %16516 = vst [vmem:[#allocation32_spill] sm:$0xff] %v13224_v20  ;;  %v5054_v58 = vmul.f32 2.1237322e-06, %v13215_v56  ;;  %v4256_v1 = vmul.f32 %v13218_v30, %v13218_v30  ;;  %v4193_v25 = vmul.f32 %v4148_v60, %v8928_v13  ;;  %v4258_v26 = vmul.f32 %v13224_v20, %v13224_v20 }
 0x4fe   : > { %v8243_v48 = vclamps-f32 %v3850_v35, 1.0  ;;  %vm3886_vm2 = vcmp.eq.f32.partialorder %v3885_v42, 8.507059e+37  ;;  %v3888_v59 = vor.u32 1.1754944e-38, %v3887_v4  ;;  %v13245_v3 = vmin.f32 %v5092_v47, 16.0 }
 0x4ff   : > { %v3901_v32 = vmul.f32 %v3900_v40, %v13051_v15  ;;  %v3913_v50 = vadd.f32 0.4994258, %v3912_v27  ;;  %4305 = vadd.xlane.f32.xlu1 %v4256_v1  ;;  %v13257_v16 = vsub.f32 %v12621_v14, %v4193_v25  ;;  %4309 = vadd.xlane.f32.xlu2 %v4258_v26  ;;  %v4195_v7 = vmul.f32 %v4152_v43, %v8928_v13 }
 0x500   : > { %v4915_v42 = vpop.f32.mrf.mxu2  ;;  %v3889_v35 = vsel %vm3886_vm2, %v3888_v59, %v3884_v41  ;;  %v4513_v12 = vsub.f32 1.5, %v4512_v49  ;;  %vm4515_vm5 = vweird.f32 %v13112_v6  ;;  %v4488_v4 = vsel %vm13251_vm3, %v12947_v29, %v13087_v19 }
 0x501   : > { %16521 = vst [vmem:[#allocation33_spill] sm:$0xff] %v13257_v16  ;;  %v4503_v25 = vsub.f32 1.5, %v4502_v55  ;;  %v5055_v47 = vadd.f32 0.00028619796, %v5054_v58  ;;  %v4498_v60 = vsel %vm4497_vm4, %v13093_v17, %v4494_v44  ;;  %v4727_v43 = vmul.f32 %v4488_v4, %v12241_v31  ;;  %v8442_v31 = vld [vmem:[%s16192_s2 + $0xf8] sm:$0xff] }
 0x502   : > { %v4040_v59 = vadd.f32 1.0, %v8243_v48  ;;  %v5094_v40 = vmul.f32 2.1237322e-06, %v13245_v3  ;;  %v13273_v34 = vsub.f32 %v12628_v45, %v4195_v7  ;;  %v4728_v27 = vmul.f32 %v4498_v60, %v12459_v11  ;;  %6478 = vmatpush.bf16.msra.mxu3 %v8442_v31 }
 0x503   : > { %v3914_v41 = vmul.f32 %v3913_v50, %v13051_v15  ;;  %v4760_v49 = vmul.f32 %v12466_v22, %v4727_v43  ;;  %v4257_v55 = vmul.f32 %v13257_v16, %v13257_v16  ;;  %v13282_v29 = vadd.f32 %v13195_v61, %v13136_v23 }
 0x504   : > { %16522 = vst [vmem:[#allocation34_spill] sm:$0xff] %v13273_v34  ;;  %v3890_v19 = vmul.f32 %v3889_v35, %v3865_v53  ;;  %vm4516_vm6 = vweird.f32 %v13162_v36  ;;  %vm4506_vm7 = vweird.f32 %v13168_v46  ;;  %v4761_v11 = vmul.f32 %v12466_v22, %v4728_v27 }
 0x505   : > { %v4514_v17 = vmul.f32 %v13162_v36, %v4513_v12  ;;  %v4504_v44 = vmul.f32 %v13168_v46, %v4503_v25  ;;  %v5056_v58 = vmul.f32 %v5055_v47, %v13215_v56  ;;  %v13294_v61 = vmul.f32 0.70710677, %v13282_v29  ;;  %vm13313_vm10 = vmor %vm4515_vm5, %vm4516_vm6 }
 0x506   : > { %v5095_v1 = vadd.f32 0.00028619796, %v5094_v40  ;;  %v4793_v26 = vadd.f32 %v12470_v2, %v4760_v49  ;;  %v4794_v53 = vadd.f32 %v12470_v2, %v4761_v11  ;;  %v4259_v48 = vmul.f32 %v13273_v34, %v13273_v34 }
 0x507   : > { %v3902_v5 = vadd.f32 0.18741608, %v3901_v32  ;;  %vm4505_vm9 = vweird.f32 %v13114_v38  ;;  %4307 = vadd.xlane.f32.xlu1 %v4257_v55  ;;  %v5132_v50 = vmul.f32 %v13294_v61, %v13294_v61  ;;  %v13304_v7 = vadd.f32 %v4915_v42, %v13136_v23 }
 0x508   : > { %v4918_v35 = vpop.f32.mrf.mxu2  ;;  %v4072_v12 = vmul.f32 %v4040_v59, %v13080_v52  ;;  %v8244_v4 = vclamps-f32 %v3890_v19, 1.0  ;;  %v13307_v25 = vadd.f32 1.0, %v3914_v41  ;;  %v4838_v38 = vpack.c.bf16 %v4794_v53, %v4793_v26  ;;  %4311 = vadd.xlane.f32.xlu2 %v4259_v48  ;;  %vm4507_vm11 = vmor %vm4505_vm9, %vm4506_vm7 }
 0x509   : > { %v16525_v47 = vclamps-f32 %v13198_v62, 1.0  ;;  %v4347_v52 = vmul.f32 %v13101_v0, %v8928_v13  ;;  %v13323_v60 = vmin.f32 %v5132_v50, 16.0  ;;  %v13326_v6 = vmul.f32 0.70710677, %v13304_v7  ;;  %v8441_v0 = vld [vmem:[%s16192_s2 + $0xf0] sm:$0xff] }
 0x50a   : > { %v5057_v43 = vadd.f32 0.0036580483, %v5056_v58  ;;  %v5096_v59 = vmul.f32 %v5095_v1, %v13245_v3  ;;  %4927 = vmatmul.bf16.gmra.mxu2 %v4838_v38  ;;  %v4508_v62 = vsel %vm4507_vm11, %v13168_v46, %v4504_v44  ;;  %v4518_v40 = vsel %vm13313_vm10, %v13162_v36, %v4514_v17  ;;  %v8866_v46 = vld [vmem:[%s8919_s18 + $0xd8] sm:$0xff]  ;;  %6479 = vmatpush.bf16.msra.mxu3 %v8441_v0  ;;  %v8440_v36 = vld [vmem:[%s16192_s2 + $0xe8] sm:$0xff]  ;;  %v8868_v0 = vld [vmem:[%s8919_s18 + $0xd0] sm:$0xff] }
 0x50b   : > { %v4039_v42 = vadd.f32 1.0, %v16525_v47  ;;  %v3903_v27 = vmul.f32 %v3902_v5, %v13051_v15  ;;  %v5134_v41 = vmul.f32 2.1237322e-06, %v13323_v60  ;;  %v5172_v49 = vmul.f32 %v13326_v6, %v13326_v6  ;;  %v8867_v17 = vld [vmem:[%s8919_s18 + $0xc8] sm:$0xff] }
 0x50c   : > { %v4729_v55 = vmul.f32 %v4508_v62, %v12529_v54  ;;  %v4041_v31 = vadd.f32 1.0, %v8244_v4  ;;  %8664 = vrcp.f32 %v13307_v25  ;;  %v13343_v19 = vadd.f32 %v8866_v46, %v4072_v12  ;;  %v8438_v46 = vld [vmem:[%s16192_s2 + $0xd8] sm:$0xff] }
 0x50d   : > { %v5065_v15 = vmul.f32 3.8918573e-05, %v13215_v56  ;;  %v5135_v11 = vadd.f32 0.00028619796, %v5134_v41  ;;  %v13351_v44 = vadd.f32 %v8867_v17, %v13158_v63  ;;  %v13353_v58 = vmin.f32 %v5172_v49, 16.0 }
 0x50e   : > { %16526 = vst [vmem:[#allocation35_spill] sm:$0xff] %v13343_v19  ;;  %v4730_v54 = vmul.f32 %v4518_v40, %v12499_v51  ;;  %v2697_v1 = vmul.f32 0.5, %v12875_v24  ;;  %v5058_v26 = vmul.f32 %v5057_v43, %v13215_v56  ;;  %v13358_v53 = vadd.f32 1e-05, %v4347_v52  ;;  %6480 = vmatpush.bf16.msra.mxu3 %v8440_v36  ;;  %v8439_v24 = vld [vmem:[%s16192_s2 + $0xe0] sm:$0xff] }
 0x50f   : > { %16527 = vst [vmem:[#allocation36_spill] sm:$0xff] %v13351_v44  ;;  %v5097_v48 = vadd.f32 0.0036580483, %v5096_v59  ;;  %v4071_v5 = vmul.f32 %v4039_v42, %v13072_v57  ;;  %v5136_v50 = vmul.f32 %v5135_v11, %v13323_v60  ;;  %4161 = vadd.xlane.f32.xlu1 %v13351_v44  ;;  %v5174_v63 = vmul.f32 2.1237322e-06, %v13353_v58 }
 0x510   : > { %v4762_v12 = vmul.f32 %v12466_v22, %v4729_v55  ;;  %v4073_v4 = vmul.f32 %v4041_v31, %v2697_v1  ;;  %v3904_v51 = vadd.f32 1.1283791, %v3903_v27  ;;  %4165 = vadd.xlane.f32.xlu2 %v13343_v19  ;;  %v4763_v38 = vmul.f32 %v12466_v22, %v4730_v54  ;;  %v4920_v47 = vpop.f32.mrf.mxu2  ;;  %v8869_v55 = vld [vmem:[%s8919_s18 + $0xe0] sm:$0xff] }
 0x511   : > { %v5137_v57 = vadd.f32 0.0036580483, %v5136_v50  ;;  %v5175_v32 = vadd.f32 0.00028619796, %v5174_v63  ;;  %v5066_v42 = vadd.f32 0.001143296, %v5065_v15  ;;  %8666 = vrsqrt.f32 %v13358_v53 }
 0x512   : > { %v13370_v52 = vpop.eup %8664  ;;  %v13373_v43 = vmul.f32 0.5, %v13155_v9  ;;  %v5059_v59 = vadd.f32 0.05243302, %v5058_v26  ;;  %v5098_v62 = vmul.f32 %v5097_v48, %v13245_v3  ;;  %v4795_v40 = vadd.f32 %v12470_v2, %v4762_v12  ;;  %6481 = vmatpush.bf16.msra.mxu3 %v8439_v24 }
 0x513   : > { %v13379_v27 = vadd.f32 %v8868_v0, %v4071_v5  ;;  %v13382_v41 = vadd.f32 %v4918_v35, %v13136_v23  ;;  %v5067_v49 = vmul.f32 %v5066_v42, %v13215_v56  ;;  %v13386_v31 = vadd.f32 %v8869_v55, %v4073_v4 }
 0x514   : > { %v13389_v9 = vadd.f32 %v4920_v47, %v13136_v23  ;;  %v5105_v36 = vmul.f32 3.8918573e-05, %v13245_v3  ;;  %v5145_v15 = vmul.f32 3.8918573e-05, %v13323_v60  ;;  %v5138_v35 = vmul.f32 %v5137_v57, %v13323_v60 }
 0x515   : > { %16528 = vst [vmem:[#allocation37_spill] sm:$0xff] %v13379_v27  ;;  %v5176_v11 = vmul.f32 %v5175_v32, %v13353_v58  ;;  %v4796_v17 = vadd.f32 %v12470_v2, %v4763_v38  ;;  %v5068_v54 = vadd.f32 0.014752088, %v5067_v49  ;;  %v3917_v1 = vmul.f32 %v13370_v52, %v13307_v25  ;;  %v8437_v32 = vld [vmem:[%s16192_s2 + $0xd0] sm:$0xff] }
 0x516   : > { %16529 = vst [vmem:[#allocation38_spill] sm:$0xff] %v13386_v31  ;;  %v3925_v26 = vand.u32 2147483647, %v13307_v25  ;;  %v5106_v48 = vadd.f32 0.001143296, %v5105_v36  ;;  %6482 = vmatpush.bf16.msra.mxu3 %v8438_v46  ;;  %v13422_v55 = vmul.f32 %v3904_v51, %v12989_v21  ;;  %v8436_v21 = vld [vmem:[%s16192_s2 + $0xc8] sm:$0xff]  ;;  %vm3921_vm12 = vweird.f32 %v13307_v25 }
 0x517   : > { %v5146_v5 = vadd.f32 0.001143296, %v5145_v15  ;;  %v5099_v50 = vadd.f32 0.05243302, %v5098_v62  ;;  %v4839_v63 = vpack.c.bf16 %v4796_v17, %v4795_v40  ;;  %4163 = vadd.xlane.f32.xlu1 %v13379_v27  ;;  %v13404_v12 = vmul.f32 0.70710677, %v13382_v41  ;;  %v13407_v24 = vpop.eup %8666 }
 0x518   : > { %v5069_v4 = vmul.f32 %v5068_v54, %v13215_v56  ;;  %4167 = vadd.xlane.f32.xlu2 %v13386_v31  ;;  %v13411_v57 = vmul.f32 0.70710677, %v13389_v9  ;;  %v5107_v38 = vmul.f32 %v5106_v48, %v13245_v3  ;;  %v5185_v42 = vmul.f32 3.8918573e-05, %v13353_v58 }
 0x519   : > { %v5147_v47 = vmul.f32 %v5146_v5, %v13323_v60  ;;  %v3927_v62 = vand.u32 2147483648, %v13307_v25  ;;  %v5060_v40 = vmul.f32 %v5059_v59, %v13215_v56  ;;  %v5139_v0 = vadd.f32 0.05243302, %v5138_v35 }
 0x51a   : > { %v5177_v49 = vadd.f32 0.0036580483, %v5176_v11  ;;  %4932 = vmatmul.bf16.gmra.mxu2 %v4839_v63  ;;  %v5070_v46 = vadd.f32 0.112945676, %v5069_v4  ;;  %v5108_v36 = vadd.f32 0.014752088, %v5107_v38  ;;  %v5100_v54 = vmul.f32 %v5099_v50, %v13245_v3  ;;  %6483 = vmatpush.bf16.msra.mxu3 %v8437_v32 }
 0x51b   : > { %v5148_v15 = vadd.f32 0.014752088, %v5147_v47  ;;  %v3918_v17 = vsub.f32 1.0, %v3917_v1  ;;  %v5212_v48 = vmul.f32 %v13404_v12, %v13404_v12  ;;  %v5186_v5 = vadd.f32 0.001143296, %v5185_v42 }
 0x51c   : > { %v5252_v45 = vmul.f32 %v13411_v57, %v13411_v57  ;;  %v5071_v51 = vmul.f32 %v5070_v46, %v13215_v56  ;;  %v5109_v59 = vmul.f32 %v5108_v36, %v13245_v3  ;;  %v5061_v11 = vadd.f32 0.18741608, %v5060_v40  ;;  %v8435_v40 = vld [vmem:[%s16192_s2 + $0xc0] sm:$0xff] }
 0x51d   : > { %v5149_v35 = vmul.f32 %v5148_v15, %v13323_v60  ;;  %v5140_v1 = vmul.f32 %v5139_v0, %v13323_v60  ;;  %v5178_v50 = vmul.f32 %v5177_v49, %v13353_v58  ;;  %v5187_v63 = vmul.f32 %v5186_v5, %v13353_v58 }
 0x51e   : > { %v4520_v4 = vmul.f32 %v13407_v24, %v13358_v53  ;;  %v5072_v32 = vadd.f32 0.4994258, %v5071_v51  ;;  %v5110_v38 = vadd.f32 0.112945676, %v5109_v59  ;;  %v3919_v42 = vmul.f32 %v13370_v52, %v3918_v17  ;;  %6484 = vmatpush.bf16.msra.mxu3 %v8436_v21 }
 0x51f   : > { %v5150_v47 = vadd.f32 0.112945676, %v5149_v35  ;;  %v5101_v46 = vadd.f32 0.18741608, %v5100_v54  ;;  %v13441_v14 = vmin.f32 %v5212_v48, 16.0  ;;  %v13443_v15 = vmin.f32 %v5252_v45, 16.0 }
 0x520   : > { %v5188_v36 = vadd.f32 0.014752088, %v5187_v63  ;;  %v5073_v0 = vmul.f32 %v5072_v32, %v13215_v56  ;;  %v5111_v49 = vmul.f32 %v5110_v38, %v13245_v3  ;;  %v5141_v17 = vadd.f32 0.18741608, %v5140_v1 }
 0x521   : > { %v5151_v5 = vmul.f32 %v5150_v47, %v13323_v60  ;;  %v5179_v54 = vadd.f32 0.05243302, %v5178_v50  ;;  %vm13453_vm8 = vcmp.eq.f32.partialorder %v3925_v26, 8.507059e+37  ;;  %v3928_v21 = vor.u32 1.1754944e-38, %v3927_v62  ;;  %v2664_v62 = vpop.f32.mrf.mxu1 }
 0x522   : > { %v5189_v48 = vmul.f32 %v5188_v36, %v13353_v58  ;;  %v13457_v51 = vadd.f32 1.0, %v5073_v0  ;;  %v5112_v59 = vadd.f32 0.4994258, %v5111_v49  ;;  %vm3922_vm14 = vweird.f32 %v13370_v52  ;;  %6485 = vmatpush.bf16.msra.mxu3 %v8435_v40 }
 0x523   : > { %v5152_v35 = vadd.f32 0.4994258, %v5151_v5  ;;  %v5062_v63 = vmul.f32 %v5061_v11, %v13215_v56  ;;  %v4521_v32 = vmul.f32 %v13407_v24, %v4520_v4  ;;  %v5102_v1 = vmul.f32 %v5101_v46, %v13245_v3  ;;  %vm13482_vm15 = vmor %vm3921_vm12, %vm3922_vm14 }
 0x524   : > { %v3920_v50 = vadd.f32 %v13370_v52, %v3919_v42  ;;  %v5214_v26 = vmul.f32 2.1237322e-06, %v13441_v14  ;;  %v5254_v38 = vmul.f32 2.1237322e-06, %v13443_v15  ;;  %8668 = vrcp.f32 %v13457_v51 }
 0x525   : > { %v5142_v47 = vmul.f32 %v5141_v17, %v13323_v60  ;;  %v5113_v36 = vmul.f32 %v5112_v59, %v13245_v3  ;;  %v13470_v56 = vadd.f32 %v2664_v62, %v10028_v8  ;;  %v5190_v11 = vadd.f32 0.112945676, %v5189_v48 }
 0x526   : > { %v13473_v4 = vmul.f32 0.5, %v13189_v37  ;;  %v5180_v42 = vmul.f32 %v5179_v54, %v13353_v58  ;;  %v5153_v46 = vmul.f32 %v5152_v35, %v13323_v60  ;;  %v5225_v40 = vmul.f32 3.8918573e-05, %v13441_v14 }
 0x527   : > { %v5063_v3 = vadd.f32 1.1283791, %v5062_v63  ;;  %v13486_v49 = vmul.f32 0.5, %v4521_v32  ;;  %v5103_v5 = vadd.f32 1.1283791, %v5102_v1  ;;  %v13488_v37 = vadd.f32 1.0, %v5113_v36 }
 0x528   : > { %v3924_v60 = vsel %vm13482_vm15, %v13370_v52, %v3920_v50  ;;  %v5215_v17 = vadd.f32 0.00028619796, %v5214_v26  ;;  %v13494_v54 = vmul.f32 0.70710677, %v13470_v56  ;;  %v13496_v48 = vadd.f32 1.0, %v5153_v46 }
 0x529   : > { %v5143_v25 = vadd.f32 1.1283791, %v5142_v47  ;;  %v5255_v59 = vadd.f32 0.00028619796, %v5254_v38  ;;  %8670 = vrcp.f32 %v13488_v37  ;;  %v5191_v35 = vmul.f32 %v5190_v11, %v13353_v58 }
 0x52a   : > { %v8669_v63 = vpop.eup %8668  ;;  %v5181_v32 = vadd.f32 0.18741608, %v5180_v42  ;;  %v3933_v1 = vmul.f32 %v13494_v54, %v13494_v54  ;;  %8672 = vrcp.f32 %v13496_v48  ;;  %v5226_v52 = vadd.f32 0.001143296, %v5225_v40 }
 0x52b   : > { %v13505_v50 = vsel %vm13453_vm8, %v3928_v21, %v3924_v60  ;;  %v5064_v26 = vmul.f32 %v5063_v3, %v13166_v18  ;;  %v5076_v62 = vmul.f32 %v8669_v63, %v13457_v51  ;;  %v5104_v47 = vmul.f32 %v5103_v5, %v13210_v10 }
 0x52c   : > { %v5084_v36 = vand.u32 2147483647, %v13457_v51  ;;  %v5086_v11 = vand.u32 2147483648, %v13457_v51  ;;  %v13513_v42 = vmin.f32 %v3933_v1, 16.0  ;;  %v13516_v46 = vmul.f32 %v5215_v17, %v13441_v14 }
 0x52d   : > { %v13519_v45 = vmul.f32 %v5255_v59, %v13443_v15  ;;  %v5077_v21 = vsub.f32 1.0, %v5076_v62  ;;  %v5192_v18 = vadd.f32 0.4994258, %v5191_v35  ;;  %v13522_v40 = vmul.f32 %v5143_v25, %v13294_v61 }
 0x52e   : > { %v5182_v0 = vmul.f32 %v5181_v32, %v13353_v58  ;;  %v3946_v10 = vmul.f32 3.8918573e-05, %v13513_v42  ;;  %v5227_v3 = vmul.f32 %v5226_v52, %v13441_v14  ;;  %vm5080_vm0 = vweird.f32 %v13457_v51 }
 0x52f   : > { %v8671_v5 = vpop.eup %8670  ;;  %v5078_v60 = vmul.f32 %v8669_v63, %v5077_v21  ;;  %vm5081_vm13 = vweird.f32 %v8669_v63  ;;  %v5193_v17 = vmul.f32 %v5192_v18, %v13353_v58  ;;  %vm13531_vm1 = vcmp.eq.f32.partialorder %v5084_v36, 8.507059e+37 }
 0x530   : > { %v13529_v59 = vpop.eup %8672  ;;  %v5087_v61 = vor.u32 1.1754944e-38, %v5086_v11  ;;  %v5116_v25 = vmul.f32 %v8671_v5, %v13488_v37  ;;  %v3947_v32 = vadd.f32 0.001143296, %v3946_v10  ;;  %v5124_v52 = vand.u32 2147483647, %v13488_v37  ;;  %vm5082_vm2 = vmor %vm5080_vm0, %vm5081_vm13 }
 0x531   : > { %v5079_v1 = vadd.f32 %v8669_v63, %v5078_v60  ;;  %v5156_v62 = vmul.f32 %v13529_v59, %v13496_v48  ;;  %v13539_v51 = vadd.f32 1.0, %v5193_v17  ;;  %v5126_v21 = vand.u32 2147483648, %v13488_v37 }
 0x532   : > { %v5117_v58 = vsub.f32 1.0, %v5116_v25  ;;  %v3948_v36 = vmul.f32 %v3947_v32, %v13513_v42  ;;  %v5228_v18 = vadd.f32 0.014752088, %v5227_v3  ;;  %v3935_v11 = vmul.f32 2.1237322e-06, %v13513_v42 }
 0x533   : > { %v5083_v38 = vsel %vm5082_vm2, %v8669_v63, %v5079_v1  ;;  %v5157_v34 = vsub.f32 1.0, %v5156_v62  ;;  %8674 = vrcp.f32 %v13539_v51  ;;  %vm5121_vm3 = vweird.f32 %v8671_v5 }
 0x534   : > { %v5088_v10 = vsel %vm13531_vm1, %v5087_v61, %v5083_v38  ;;  %v5118_v60 = vmul.f32 %v8671_v5, %v5117_v58  ;;  %v3949_v17 = vadd.f32 0.014752088, %v3948_v36  ;;  %vm5120_vm4 = vweird.f32 %v13488_v37 }
 0x535   : > { %v5089_v20 = vmul.f32 %v5088_v10, %v5064_v26  ;;  %v5158_v25 = vmul.f32 %v13529_v59, %v5157_v34  ;;  %v5164_v32 = vand.u32 2147483647, %v13496_v48  ;;  %v5127_v63 = vor.u32 1.1754944e-38, %v5126_v21  ;;  %vm5122_vm5 = vmor %vm5120_vm4, %vm5121_vm3  ;;  %v2666_v21 = vpop.f32.mrf.mxu1 }
 0x536   : > { %v5119_v3 = vadd.f32 %v8671_v5, %v5118_v60  ;;  %v3950_v1 = vmul.f32 %v3949_v17, %v13513_v42  ;;  %v5229_v62 = vmul.f32 %v5228_v18, %v13441_v14  ;;  %v3936_v16 = vadd.f32 0.00028619796, %v3935_v11 }
 0x537   : > { %v5159_v38 = vadd.f32 %v13529_v59, %v5158_v25  ;;  %vm5161_vm6 = vweird.f32 %v13529_v59  ;;  %v5166_v26 = vand.u32 2147483648, %v13496_v48  ;;  %v8297_v35 = vclamps-f32 %v5089_v20, 1.0 }
 0x538   : > { %v5123_v37 = vsel %vm5122_vm5, %v8671_v5, %v5119_v3  ;;  %vm5125_vm7 = vcmp.eq.f32.partialorder %v5124_v52, 8.507059e+37  ;;  %v3951_v34 = vadd.f32 0.112945676, %v3950_v1  ;;  %v5183_v58 = vadd.f32 1.1283791, %v5182_v0 }
 0x539   : > { %v8675_v61 = vpop.eup %8674  ;;  %v5128_v36 = vsel %vm5125_vm7, %v5127_v63, %v5123_v37  ;;  %vm5160_vm9 = vweird.f32 %v13496_v48  ;;  %vm13556_vm10 = vcmp.eq.f32.partialorder %v5164_v32, 8.507059e+37  ;;  %v13562_v60 = vadd.f32 %v2666_v21, %v10028_v8  ;;  %v4298_v32 = vpop.xlane.xlu2 %4297 }
 0x53a   : > { %v5129_v11 = vmul.f32 %v5128_v36, %v5104_v47  ;;  %v3952_v10 = vmul.f32 %v3951_v34, %v13513_v42  ;;  %vm13566_vm11 = vmor %vm5160_vm9, %vm5161_vm6  ;;  %v5230_v0 = vadd.f32 0.112945676, %v5229_v62  ;;  %v3937_v5 = vmul.f32 %v3936_v16, %v13513_v42 }
 0x53b   : > { %v5163_v48 = vsel %vm13566_vm11, %v13529_v59, %v5159_v38  ;;  %v5167_v52 = vor.u32 1.1754944e-38, %v5166_v26  ;;  %v5196_v47 = vmul.f32 %v8675_v61, %v13539_v51  ;;  %v6332_v25 = vadd.f32 1.0, %v8297_v35 }
 0x53c   : > { %v8298_v17 = vclamps-f32 %v5129_v11, 1.0  ;;  %v3953_v8 = vadd.f32 0.4994258, %v3952_v10  ;;  %vm5200_vm12 = vweird.f32 %v13539_v51  ;;  %v13577_v3 = vmul.f32 0.70710677, %v13562_v60 }
 0x53d   : > { %v4348_v63 = vmul.f32 %v4298_v32, %v8928_v13  ;;  %v5197_v1 = vsub.f32 1.0, %v5196_v47  ;;  %v5206_v16 = vand.u32 2147483648, %v13539_v51  ;;  %v5168_v38 = vsel %vm13556_vm10, %v5167_v52, %v5163_v48 }
 0x53e   : > { %v6333_v62 = vadd.f32 1.0, %v8298_v17  ;;  %v3954_v59 = vmul.f32 %v3953_v8, %v13513_v42  ;;  %v5231_v26 = vmul.f32 %v5230_v0, %v13441_v14  ;;  %v3973_v35 = vmul.f32 %v13577_v3, %v13577_v3 }
 0x53f   : > { %v5198_v37 = vmul.f32 %v8675_v61, %v5197_v1  ;;  %vm5201_vm8 = vweird.f32 %v8675_v61  ;;  %v5204_v34 = vand.u32 2147483647, %v13539_v51  ;;  %v6364_v36 = vmul.f32 %v6332_v25, %v13373_v43 }
 0x540   : > { %v6365_v21 = vmul.f32 %v6333_v62, %v13473_v4  ;;  %v3938_v11 = vadd.f32 0.0036580483, %v3937_v5  ;;  %v13590_v10 = vadd.f32 1.0, %v3954_v59  ;;  %v13592_v20 = vmin.f32 %v3973_v35, 16.0  ;;  %vm5202_vm14 = vmor %vm5200_vm12, %vm5201_vm8 }
 0x541   : > { %v13594_v18 = vadd.f32 1e-05, %v4348_v63  ;;  %v5169_v0 = vmul.f32 %v5168_v38, %v13522_v40  ;;  %v5199_v48 = vadd.f32 %v8675_v61, %v5198_v37  ;;  %v5207_v47 = vor.u32 1.1754944e-38, %v5206_v16  ;;  %v4300_v63 = vpop.xlane.xlu2 %4299 }
 0x542   : > { %v6413_v52 = vpack.c.bf16 %v6365_v21, %v6364_v36  ;;  %8676 = vrcp.f32 %v13590_v10  ;;  %v5232_v43 = vadd.f32 0.4994258, %v5231_v26  ;;  %v5184_v4 = vmul.f32 %v5183_v58, %v13326_v6 }
 0x543   : > { %v3975_v5 = vmul.f32 2.1237322e-06, %v13592_v20  ;;  %v5203_v17 = vsel %vm5202_vm14, %v8675_v61, %v5199_v48  ;;  %vm5205_vm15 = vcmp.eq.f32.partialorder %v5204_v34, 8.507059e+37  ;;  %v5217_v25 = vadd.f32 0.0036580483, %v13516_v46 }
 0x544   : > { %6486 = vmatmul.bf16.vlgmr.msra.gmra.mxu3 %v6413_v52  ;;  %v3939_v40 = vmul.f32 %v3938_v11, %v13513_v42  ;;  %v3986_v8 = vmul.f32 3.8918573e-05, %v13592_v20  ;;  %v5208_v32 = vsel %vm5205_vm15, %v5207_v47, %v5203_v17  ;;  %8678 = vrsqrt.f32 %v13594_v18 }
 0x545   : > { %v3976_v1 = vadd.f32 0.00028619796, %v3975_v5  ;;  %v8299_v51 = vclamps-f32 %v5169_v0, 1.0  ;;  %v5209_v16 = vmul.f32 %v5208_v32, %v5184_v4  ;;  %vm4526_vm0 = vweird.f32 %v13407_v24 }
 0x546   : > { %v3987_v6 = vadd.f32 0.001143296, %v3986_v8  ;;  %v4349_v61 = vmul.f32 %v4300_v63, %v8928_v13  ;;  %v5233_v58 = vmul.f32 %v5232_v43, %v13441_v14  ;;  %v3930_v46 = vmul.f32 %v13505_v50, %v13422_v55 }
 0x547   : > { %v5257_v62 = vadd.f32 0.0036580483, %v13519_v45  ;;  %v3977_v59 = vmul.f32 %v3976_v1, %v13592_v20  ;;  %v8300_v38 = vclamps-f32 %v5209_v16, 1.0  ;;  %v16540_v35 = vsub.f32 1.5, %v13486_v49 }
 0x548   : > { %v13613_v26 = vpop.eup %8676  ;;  %v5218_v34 = vmul.f32 %v5217_v25, %v13441_v14  ;;  %v3988_v36 = vmul.f32 %v3987_v6, %v13592_v20  ;;  %v13620_v21 = vadd.f32 1e-05, %v4349_v61  ;;  %v3940_v11 = vadd.f32 0.05243302, %v3939_v40  ;;  %v4302_v40 = vpop.xlane.xlu0 %4301 }
 0x549   : > { %v4524_v37 = vmul.f32 %v13407_v24, %v16540_v35  ;;  %v3957_v55 = vmul.f32 %v13613_v26, %v13590_v10  ;;  %v6334_v50 = vadd.f32 1.0, %v8299_v51  ;;  %v6335_v45 = vadd.f32 1.0, %v8300_v38 }
 0x54a   : > { %v4990_v0 = vmul.f32 0.5, %v13282_v29  ;;  %v4991_v48 = vmul.f32 0.5, %v13304_v7  ;;  %v3989_v52 = vadd.f32 0.014752088, %v3988_v36  ;;  %v13626_v49 = vadd.f32 1.0, %v5233_v58  ;;  %v13628_v47 = vpop.eup %8678 }
 0x54b   : > { %v8245_v43 = vclamps-f32 %v3930_v46, 1.0  ;;  %v5258_v4 = vmul.f32 %v5257_v62, %v13443_v15  ;;  %v3978_v5 = vadd.f32 0.0036580483, %v3977_v59  ;;  %8680 = vrsqrt.f32 %v13620_v21 }
 0x54c   : > { %vm4525_vm13 = vweird.f32 %v13358_v53  ;;  %v3990_v17 = vmul.f32 %v3989_v52, %v13592_v20  ;;  %v6367_v25 = vmul.f32 %v6335_v45, %v4991_v48  ;;  %v5265_v29 = vmul.f32 3.8918573e-05, %v13443_v15  ;;  %v16543_v48 = vld [vmem:[#allocation23_spill] sm:$0xff] }
 0x54d   : > { %v5219_v7 = vadd.f32 0.05243302, %v5218_v34  ;;  %v3941_v8 = vmul.f32 %v3940_v11, %v13513_v42  ;;  %v3958_v32 = vsub.f32 1.0, %v3957_v55  ;;  %v6366_v63 = vmul.f32 %v6334_v50, %v4990_v0  ;;  %vm13638_vm1 = vmor %vm4525_vm13, %vm4526_vm0 }
 0x54e   : > { %v3991_v51 = vadd.f32 0.112945676, %v3990_v17  ;;  %v4530_v53 = vmul.f32 %v13628_v47, %v13594_v18  ;;  %v4350_v16 = vmul.f32 %v4302_v40, %v8928_v13  ;;  %8682 = vrcp.f32 %v13626_v49 }
 0x54f   : > { %v4042_v6 = vadd.f32 1.0, %v8245_v43  ;;  %v5259_v61 = vadd.f32 0.05243302, %v5258_v4  ;;  %v3979_v58 = vmul.f32 %v3978_v5, %v13592_v20  ;;  %v4528_v46 = vsel %vm13638_vm1, %v13407_v24, %v4524_v37 }
 0x550   : > { %v3992_v62 = vmul.f32 %v3991_v51, %v13592_v20  ;;  %v6414_v59 = vpack.c.bf16 %v6367_v25, %v6366_v63  ;;  %v13651_v38 = vadd.f32 1e-05, %v4350_v16  ;;  %v5266_v35 = vadd.f32 0.001143296, %v5265_v29  ;;  %v4154_v63 = vpop.xlane.xlu2 %4153 }
 0x551   : > { %v13653_v34 = vpop.eup %8680  ;;  %v2698_v36 = vmul.f32 0.5, %v12974_v28  ;;  %v5220_v11 = vmul.f32 %v5219_v7, %v13441_v14  ;;  %v3942_v55 = vadd.f32 0.18741608, %v3941_v8  ;;  %v3959_v50 = vmul.f32 %v13613_v26, %v3958_v32 }
 0x552   : > { %v3993_v45 = vadd.f32 0.4994258, %v3992_v62  ;;  %v4531_v0 = vmul.f32 %v13628_v47, %v4530_v53  ;;  %8684 = vrsqrt.f32 %v13651_v38  ;;  %v5260_v37 = vmul.f32 %v5259_v61, %v13443_v15 }
 0x553   : > { %v13660_v24 = vmul.f32 %v4042_v6, %v2698_v36  ;;  %v4731_v52 = vmul.f32 %v4528_v46, %v16543_v48  ;;  %v3980_v4 = vadd.f32 0.05243302, %v3979_v58  ;;  %v4540_v5 = vmul.f32 %v13653_v34, %v13620_v21 }
 0x554   : > { %v13664_v43 = vpop.eup %8682  ;;  %v3994_v28 = vmul.f32 %v3993_v45, %v13592_v20  ;;  %6491 = vmatmul.bf16.gmra.mxu3 %v6414_v59  ;;  %v5267_v17 = vmul.f32 %v5266_v35, %v13443_v15  ;;  %v5221_v25 = vadd.f32 0.18741608, %v5220_v11  ;;  %v3943_v40 = vmul.f32 %v3942_v55, %v13513_v42 }
 0x555   : > { %v3960_v29 = vadd.f32 %v13613_v26, %v3959_v50  ;;  %vm3962_vm2 = vweird.f32 %v13613_v26  ;;  %v3967_v7 = vand.u32 2147483648, %v13590_v10  ;;  %v4532_v32 = vmul.f32 0.5, %v4531_v0 }
 0x556   : > { %v13674_v8 = vadd.f32 1.0, %v3994_v28  ;;  %v5268_v1 = vadd.f32 0.014752088, %v5267_v17  ;;  %v5261_v51 = vadd.f32 0.18741608, %v5260_v37  ;;  %vm3961_vm3 = vweird.f32 %v13590_v10 }
 0x557   : > { %v3965_v53 = vand.u32 2147483647, %v13590_v10  ;;  %v5236_v16 = vmul.f32 %v13664_v43, %v13626_v49  ;;  %vm13682_vm4 = vmor %vm3961_vm3, %vm3962_vm2  ;;  %v3981_v61 = vmul.f32 %v3980_v4, %v13592_v20  ;;  %v4541_v58 = vmul.f32 %v13653_v34, %v4540_v5 }
 0x558   : > { %v13680_v42 = vpop.eup %8684  ;;  %8686 = vrcp.f32 %v13674_v8  ;;  %v4764_v46 = vmul.f32 %v12466_v22, %v4731_v52  ;;  %v3944_v62 = vadd.f32 1.1283791, %v3943_v40  ;;  %v3964_v10 = vsel %vm13682_vm4, %v13613_v26, %v3960_v29 }
 0x559   : > { %v4196_v59 = vmul.f32 %v4154_v63, %v8928_v13  ;;  %v4550_v35 = vmul.f32 %v13680_v42, %v13651_v38  ;;  %v13697_v36 = vmul.f32 %v5221_v25, %v13441_v14  ;;  %v3968_v11 = vor.u32 1.1754944e-38, %v3967_v7  ;;  %v16546_v14 = vld [vmem:[#allocation26_spill] sm:$0xff] }
 0x55a   : > { %v4533_v55 = vsub.f32 1.5, %v4532_v32  ;;  %v5269_v50 = vmul.f32 %v5268_v1, %v13443_v15  ;;  %v13701_v45 = vmul.f32 %v5261_v51, %v13443_v15  ;;  %vm3966_vm5 = vcmp.eq.f32.partialorder %v3965_v53, 8.507059e+37 }
 0x55b   : > { %v4551_v0 = vmul.f32 %v13680_v42, %v4550_v35  ;;  %v5237_v37 = vsub.f32 1.0, %v5236_v16  ;;  %v3969_v26 = vsel %vm3966_vm5, %v3968_v11, %v3964_v10  ;;  %v3982_v48 = vadd.f32 0.18741608, %v3981_v61 }
 0x55c   : > { %v4542_v52 = vmul.f32 0.5, %v4541_v58  ;;  %v5270_v4 = vadd.f32 0.112945676, %v5269_v50  ;;  %v3945_v28 = vmul.f32 %v3944_v62, %v13494_v54  ;;  %vm4535_vm6 = vweird.f32 %v13594_v18  ;;  %v4304_v62 = vpop.xlane.xlu0 %4303  ;;  %v16547_v50 = vld [vmem:[#allocation17_spill] sm:$0xff] }
 0x55d   : > { %v13707_v5 = vsub.f32 %v16546_v14, %v4196_v59  ;;  %v13710_v17 = vadd.f32 %v12470_v2, %v4764_v46  ;;  %v4534_v40 = vmul.f32 %v13628_v47, %v4533_v55  ;;  %vm4536_vm7 = vweird.f32 %v13628_v47  ;;  %v4156_v46 = vpop.xlane.xlu2 %4155 }
 0x55e   : > { %v8687_v25 = vpop.eup %8686  ;;  %vm5241_vm9 = vweird.f32 %v13664_v43  ;;  %v5271_v29 = vmul.f32 %v5270_v4, %v13443_v15  ;;  %v13716_v7 = vmul.f32 %v3969_v26, %v3945_v28  ;;  %vm4546_vm10 = vweird.f32 %v13653_v34  ;;  %vm4537_vm12 = vmor %vm4535_vm6, %vm4536_vm7 }
 0x55f   : > { %v3997_v54 = vmul.f32 %v8687_v25, %v13674_v8  ;;  %v4552_v32 = vmul.f32 0.5, %v4551_v0  ;;  %vm5240_vm11 = vweird.f32 %v13626_v49  ;;  %v3983_v63 = vmul.f32 %v3982_v48, %v13592_v20  ;;  %v16548_v48 = vld [vmem:[#allocation28_spill] sm:$0xff] }
 0x560   : > { %v4543_v1 = vsub.f32 1.5, %v4542_v52  ;;  %v5238_v51 = vmul.f32 %v13664_v43, %v5237_v37  ;;  %v5272_v53 = vadd.f32 0.4994258, %v5271_v29  ;;  %v4005_v6 = vand.u32 2147483647, %v13674_v8  ;;  %vm13758_vm2 = vmor %vm5240_vm11, %vm5241_vm9 }
 0x561   : > { %v3998_v16 = vsub.f32 1.0, %v3997_v54  ;;  %v4007_v61 = vand.u32 2147483648, %v13674_v8  ;;  %v4260_v58 = vmul.f32 %v13707_v5, %v13707_v5  ;;  %vm4002_vm8 = vweird.f32 %v8687_v25 }
 0x562   : > { %v5273_v20 = vmul.f32 %v5272_v53, %v13443_v15  ;;  %v4197_v10 = vmul.f32 %v4156_v46, %v8928_v13  ;;  %v4538_v59 = vsel %vm4537_vm12, %v13628_v47, %v4534_v40  ;;  %v4553_v11 = vsub.f32 1.5, %v4552_v32 }
 0x563   : > { %v3999_v35 = vmul.f32 %v8687_v25, %v3998_v16  ;;  %4313 = vadd.xlane.f32.xlu0 %v4260_v58  ;;  %v4351_v55 = vmul.f32 %v4304_v62, %v8928_v13  ;;  %v4732_v18 = vmul.f32 %v4538_v59, %v16547_v50  ;;  %v3984_v0 = vadd.f32 1.1283791, %v3983_v63 }
 0x564   : > { %v5239_v37 = vadd.f32 %v13664_v43, %v5238_v51  ;;  %v13737_v26 = vadd.f32 1.0, %v5273_v20  ;;  %v13740_v52 = vsub.f32 %v16548_v48, %v4197_v10  ;;  %vm4001_vm14 = vweird.f32 %v13674_v8 }
 0x565   : > { %v4000_v15 = vadd.f32 %v8687_v25, %v3999_v35  ;;  %v4544_v47 = vmul.f32 %v13653_v34, %v4543_v1  ;;  %v4765_v4 = vmul.f32 %v12466_v22, %v4732_v18  ;;  %vm4003_vm15 = vmor %vm4001_vm14, %vm4002_vm8  ;;  %vm4006_vm0 = vcmp.eq.f32.partialorder %v4005_v6, 8.507059e+37  ;;  %v4158_v6 = vpop.xlane.xlu0 %4157 }
 0x566   : > { %v4008_v28 = vor.u32 1.1754944e-38, %v4007_v61  ;;  %vm4556_vm13 = vweird.f32 %v13680_v42  ;;  %8688 = vrcp.f32 %v13737_v26  ;;  %v4554_v29 = vmul.f32 %v13680_v42, %v4553_v11 }
 0x567   : > { %v4004_v40 = vsel %vm4003_vm15, %v8687_v25, %v4000_v15  ;;  %v13749_v54 = vadd.f32 1e-05, %v4351_v55  ;;  %v4261_v8 = vmul.f32 %v13740_v52, %v13740_v52  ;;  %vm4545_vm1 = vweird.f32 %v13620_v21 }
 0x568   : > { %v4009_v32 = vsel %vm4006_vm0, %v4008_v28, %v4004_v40  ;;  %v5246_v25 = vand.u32 2147483648, %v13626_v49  ;;  %v4798_v1 = vadd.f32 %v12470_v2, %v4765_v4  ;;  %v5223_v51 = vadd.f32 1.1283791, %v13697_v36  ;;  %vm13768_vm3 = vmor %vm4545_vm1, %vm4546_vm10  ;;  %v8870_v4 = vld [vmem:[%s8919_s18 + $0xe8] sm:$0xff] }
 0x569   : > { %v3985_v53 = vmul.f32 %v3984_v0, %v13577_v3  ;;  %vm4555_vm4 = vweird.f32 %v13651_v38  ;;  %v5244_v16 = vand.u32 2147483647, %v13626_v49  ;;  %v8246_v61 = vclamps-f32 %v13716_v7, 1.0 }
 0x56a   : > { %vm4557_vm5 = vmor %vm4555_vm4, %vm4556_vm13  ;;  %v5243_v3 = vsel %vm13758_vm2, %v13664_v43, %v5239_v37  ;;  %v4840_v36 = vpack.c.bf16 %v4798_v1, %v13710_v17  ;;  %v4198_v58 = vmul.f32 %v4158_v6, %v8928_v13  ;;  %8690 = vrsqrt.f32 %v13749_v54  ;;  %v16553_v17 = vld [vmem:[#allocation27_spill] sm:$0xff] }
 0x56b   : > { %v4010_v46 = vmul.f32 %v4009_v32, %v3985_v53  ;;  %4315 = vadd.xlane.f32.xlu0 %v4261_v8  ;;  %v4548_v49 = vsel %vm13768_vm3, %v13653_v34, %v4544_v47  ;;  %v4558_v38 = vsel %vm4557_vm5, %v13680_v42, %v4554_v29  ;;  %v5263_v62 = vadd.f32 1.1283791, %v13701_v45  ;;  %v16554_v45 = vld [vmem:[#allocation25_spill] sm:$0xff] }
 0x56c   : > { %v8689_v7 = vpop.eup %8688  ;;  %v5247_v20 = vor.u32 1.1754944e-38, %v5246_v25  ;;  %4937 = vmatmul.bf16.gmra.mxu2 %v4840_v36  ;;  %v13789_v43 = vsub.f32 %v13106_v39, %v4198_v58  ;;  %v4734_v10 = vmul.f32 %v4558_v38, %v16553_v17  ;;  %v2699_v59 = vmul.f32 0.5, %v13470_v56 }
 0x56d   : > { %vm5245_vm6 = vcmp.eq.f32.partialorder %v5244_v16, 8.507059e+37  ;;  %v5276_v35 = vmul.f32 %v8689_v7, %v13737_v26  ;;  %v4043_v11 = vadd.f32 1.0, %v8246_v61  ;;  %v4733_v50 = vmul.f32 %v4548_v49, %v16554_v45  ;;  %v4160_v63 = vpop.xlane.xlu0 %4159 }
 0x56e   : > { %v5248_v34 = vsel %vm5245_vm6, %v5247_v20, %v5243_v3  ;;  %v4262_v42 = vmul.f32 %v13789_v43, %v13789_v43  ;;  %v4923_v55 = vpop.f32.mrf.mxu2  ;;  %v5224_v18 = vmul.f32 %v5223_v51, %v13404_v12  ;;  %v8247_v0 = vclamps-f32 %v4010_v46, 1.0 }
 0x56f   : > { %v5277_v37 = vsub.f32 1.0, %v5276_v35  ;;  %v5286_v15 = vand.u32 2147483648, %v13737_v26  ;;  %v5264_v47 = vmul.f32 %v5263_v62, %v13411_v57  ;;  %v2700_v56 = vmul.f32 0.5, %v13562_v60 }
 0x570   : > { %v13803_v28 = vadd.f32 %v8870_v4, %v13660_v24  ;;  %4317 = vadd.xlane.f32.xlu1 %v4262_v42  ;;  %v4767_v40 = vmul.f32 %v12466_v22, %v4734_v10  ;;  %v13806_v29 = vpop.eup %8690  ;;  %v5249_v8 = vmul.f32 %v5248_v34, %v5224_v18  ;;  %vm5281_vm7 = vweird.f32 %v8689_v7  ;;  %v8871_v10 = vld [vmem:[%s8919_s18 + $0xf0] sm:$0xff] }
 0x571   : > { %v5278_v32 = vmul.f32 %v8689_v7, %v5277_v37  ;;  %v5284_v12 = vand.u32 2147483647, %v13737_v26  ;;  %v4075_v25 = vmul.f32 %v4043_v11, %v2699_v59  ;;  %vm5280_vm9 = vweird.f32 %v13737_v26 }
 0x572   : > { %16555 = vst [vmem:[#allocation23_spill] sm:$0xff] %v13803_v28  ;;  %v4199_v57 = vmul.f32 %v4160_v63, %v8928_v13  ;;  %v4306_v60 = vpop.xlane.xlu1 %4305  ;;  %v4766_v24 = vmul.f32 %v12466_v22, %v4733_v50  ;;  %v4044_v1 = vadd.f32 1.0, %v8247_v0  ;;  %v5287_v53 = vor.u32 1.1754944e-38, %v5286_v15  ;;  %vm5282_vm10 = vmor %vm5280_vm9, %vm5281_vm7  ;;  %v4310_v3 = vpop.xlane.xlu2 %4309 }
 0x573   : > { %v5279_v51 = vadd.f32 %v8689_v7, %v5278_v32  ;;  %4169 = vadd.xlane.f32.xlu0 %v13803_v28  ;;  %v4352_v21 = vmul.f32 %v4306_v60, %v8928_v13  ;;  %v4560_v16 = vmul.f32 %v13806_v29, %v13749_v54  ;;  %v13817_v6 = vadd.f32 %v4923_v55, %v13136_v23 }
 0x574   : > { %v13820_v26 = vsub.f32 %v13146_v33, %v4199_v57  ;;  %v4800_v61 = vadd.f32 %v12470_v2, %v4767_v40  ;;  %v8301_v36 = vclamps-f32 %v5249_v8, 1.0  ;;  %vm5285_vm11 = vcmp.eq.f32.partialorder %v5284_v12, 8.507059e+37  ;;  %v8872_v8 = vld [vmem:[%s8919_s18 + $0xf8] sm:$0xff] }
 0x575   : > { %v5283_v58 = vsel %vm5282_vm10, %v8689_v7, %v5279_v51  ;;  %v13823_v46 = vadd.f32 1e-05, %v4352_v21  ;;  %v4799_v38 = vadd.f32 %v12470_v2, %v4766_v24  ;;  %v4354_v20 = vmul.f32 %v4310_v3, %v8928_v13 }
 0x576   : > { %v5288_v49 = vsel %vm5285_vm11, %v5287_v53, %v5283_v58  ;;  %v4263_v62 = vmul.f32 %v13820_v26, %v13820_v26  ;;  %v13831_v59 = vadd.f32 %v8871_v10, %v4075_v25  ;;  %v4925_v35 = vpop.f32.mrf.mxu2  ;;  %v4076_v11 = vmul.f32 %v4044_v1, %v2700_v56 }
 0x577   : > { %v5289_v17 = vmul.f32 %v5288_v49, %v5264_v47  ;;  %8692 = vrsqrt.f32 %v13823_v46  ;;  %v4561_v7 = vmul.f32 %v13806_v29, %v4560_v16  ;;  %v13835_v34 = vmul.f32 0.70710677, %v13817_v6 }
 0x578   : > { %16556 = vst [vmem:[#allocation17_spill] sm:$0xff] %v13831_v59  ;;  %v4841_v42 = vpack.c.bf16 %v4800_v61, %v4799_v38  ;;  %4319 = vadd.xlane.f32.xlu1 %v4263_v62  ;;  %v6336_v45 = vadd.f32 1.0, %v8301_v36  ;;  %v13838_v50 = vadd.f32 %v4925_v35, %v13136_v23  ;;  %v13840_v18 = vadd.f32 1e-05, %v4354_v20 }
 0x579   : > { %v8302_v55 = vclamps-f32 %v5289_v17, 1.0  ;;  %v4992_v37 = vmul.f32 0.5, %v13382_v41  ;;  %v4993_v15 = vmul.f32 0.5, %v13389_v9  ;;  %v4562_v4 = vmul.f32 0.5, %v4561_v7 }
 0x57a   : > { %v4308_v0 = vpop.xlane.xlu1 %4307  ;;  %v5292_v40 = vmul.f32 %v13835_v34, %v13835_v34  ;;  %v13849_v32 = vadd.f32 %v8872_v8, %v4076_v11  ;;  %v13857_v60 = vmul.f32 0.70710677, %v13838_v50  ;;  %8694 = vrsqrt.f32 %v13840_v18 }
 0x57b   : > { %v6337_v47 = vadd.f32 1.0, %v8302_v55  ;;  %4171 = vadd.xlane.f32.xlu0 %v13831_v59  ;;  %v4353_v56 = vmul.f32 %v4308_v0, %v8928_v13  ;;  %v13851_v12 = vpop.xlane.xlu2 %4311  ;;  %v6368_v25 = vmul.f32 %v6336_v45, %v4992_v37  ;;  %v4563_v1 = vsub.f32 1.5, %v4562_v4 }
 0x57c   : > { %4942 = vmatmul.bf16.gmra.mxu2 %v4841_v42  ;;  %16557 = vst [vmem:[#allocation27_spill] sm:$0xff] %v13849_v32  ;;  %v13861_v51 = vmin.f32 %v5292_v40, 16.0  ;;  %v5332_v16 = vmul.f32 %v13857_v60, %v13857_v60  ;;  %vm4566_vm12 = vweird.f32 %v13806_v29  ;;  %vm4565_vm8 = vweird.f32 %v13749_v54 }
 0x57d   : > { %v8693_v63 = vpop.eup %8692  ;;  %v6369_v41 = vmul.f32 %v6337_v47, %v4993_v15  ;;  %v13853_v57 = vadd.f32 1e-05, %v4353_v56  ;;  %v4564_v58 = vmul.f32 %v13806_v29, %v4563_v1  ;;  %vm13881_vm15 = vmor %vm4565_vm8, %vm4566_vm12  ;;  %vm4575_vm0 = vweird.f32 %v13823_v46 }
 0x57e   : > { %v4570_v9 = vmul.f32 %v8693_v63, %v13823_v46  ;;  %v5294_v49 = vmul.f32 2.1237322e-06, %v13861_v51  ;;  %vm4576_vm14 = vweird.f32 %v8693_v63  ;;  %v13879_v11 = vmin.f32 %v5332_v16, 16.0  ;;  %v16560_v46 = vld [vmem:[#allocation29_spill] sm:$0xff] }
 0x57f   : > { %v6415_v24 = vpack.c.bf16 %v6369_v41, %v6368_v25  ;;  %8696 = vrsqrt.f32 %v13853_v57  ;;  %v4568_v37 = vsel %vm13881_vm15, %v13806_v29, %v4564_v58  ;;  %vm4577_vm13 = vmor %vm4575_vm0, %vm4576_vm14  ;;  %v5305_v16 = vmul.f32 3.8918573e-05, %v13861_v51 }
 0x580   : > { %v4571_v53 = vmul.f32 %v8693_v63, %v4570_v9  ;;  %4173 = vadd.xlane.f32.xlu1 %v13849_v32  ;;  %v13867_v36 = vpop.eup %8694  ;;  %v5295_v0 = vadd.f32 0.00028619796, %v5294_v49  ;;  %v5334_v15 = vmul.f32 2.1237322e-06, %v13879_v11  ;;  %v4735_v41 = vmul.f32 %v4568_v37, %v16560_v46 }
 0x581   : > { %6496 = vmatmul.bf16.gmra.mxu3 %v6415_v24  ;;  %v4590_v42 = vmul.f32 %v13867_v36, %v13840_v18  ;;  %vm4596_vm1 = vweird.f32 %v13867_v36  ;;  %vm4595_vm3 = vweird.f32 %v13840_v18  ;;  %vm4585_vm5 = vweird.f32 %v13853_v57 }
 0x582   : > { %v4572_v21 = vmul.f32 0.5, %v4571_v53  ;;  %v4162_v61 = vpop.xlane.xlu1 %4161  ;;  %v5296_v9 = vmul.f32 %v5295_v0, %v13861_v51  ;;  %vm4597_vm4 = vmor %vm4595_vm3, %vm4596_vm1 }
 0x583   : > { %v4200_v3 = vmul.f32 %v4162_v61, %v8928_v13  ;;  %v4166_v62 = vpop.xlane.xlu2 %4165  ;;  %v4591_v40 = vmul.f32 %v13867_v36, %v4590_v42  ;;  %v5335_v61 = vadd.f32 0.00028619796, %v5334_v15 }
 0x584   : > { %v4573_v38 = vsub.f32 1.5, %v4572_v21  ;;  %v4202_v10 = vmul.f32 %v4166_v62, %v8928_v13  ;;  %v4768_v21 = vmul.f32 %v12466_v22, %v4735_v41  ;;  %v5297_v42 = vadd.f32 0.0036580483, %v5296_v9 }
 0x585   : > { %v13872_v20 = vpop.eup %8696  ;;  %v13875_v17 = vsub.f32 %v13351_v44, %v4200_v3  ;;  %v4592_v49 = vmul.f32 0.5, %v4591_v40  ;;  %v5345_v40 = vmul.f32 3.8918573e-05, %v13879_v11 }
 0x586   : > { %v4574_v35 = vmul.f32 %v8693_v63, %v4573_v38  ;;  %v4580_v55 = vmul.f32 %v13872_v20, %v13853_v57  ;;  %v13890_v45 = vsub.f32 %v13343_v19, %v4202_v10  ;;  %vm4586_vm2 = vweird.f32 %v13872_v20 }
 0x587   : > { %v4264_v54 = vmul.f32 %v13875_v17, %v13875_v17  ;;  %v5346_v41 = vadd.f32 0.001143296, %v5345_v40  ;;  %vm4587_vm6 = vmor %vm4585_vm5, %vm4586_vm2 }
 0x588   : > { %v4266_v56 = vmul.f32 %v13890_v45, %v13890_v45  ;;  %v4578_v4 = vsel %vm4577_vm13, %v8693_v63, %v4574_v35  ;;  %v4581_v8 = vmul.f32 %v13872_v20, %v4580_v55  ;;  %v4801_v35 = vadd.f32 %v12470_v2, %v4768_v21 }
 0x589   : > { %4321 = vadd.xlane.f32.xlu2 %v4264_v54  ;;  %v4736_v24 = vmul.f32 %v4578_v4, %v13218_v30  ;;  %v5306_v55 = vadd.f32 0.001143296, %v5305_v16  ;;  %v5336_v54 = vmul.f32 %v5335_v61, %v13879_v11  ;;  %v5347_v16 = vmul.f32 %v5346_v41, %v13879_v11 }
 0x58a   : > { %v4164_v47 = vpop.xlane.xlu1 %4163  ;;  %4325 = vadd.xlane.f32.xlu0 %v4266_v56  ;;  %v4582_v38 = vmul.f32 0.5, %v4581_v8  ;;  %v5298_v8 = vmul.f32 %v5297_v42, %v13861_v51 }
 0x58b   : > { %v4201_v25 = vmul.f32 %v4164_v47, %v8928_v13  ;;  %v4168_v29 = vpop.xlane.xlu2 %4167  ;;  %v4769_v58 = vmul.f32 %v12466_v22, %v4736_v24  ;;  %v4593_v47 = vsub.f32 1.5, %v4592_v49  ;;  %v5307_v4 = vmul.f32 %v5306_v55, %v13861_v51 }
 0x58c   : > { %v4203_v63 = vmul.f32 %v4168_v29, %v8928_v13  ;;  %v4583_v56 = vsub.f32 1.5, %v4582_v38  ;;  %v5337_v9 = vadd.f32 0.0036580483, %v5336_v54  ;;  %v5348_v49 = vadd.f32 0.014752088, %v5347_v16 }
 0x58d   : > { %v4928_v1 = vpop.f32.mrf.mxu2  ;;  %v13908_v53 = vsub.f32 %v13379_v27, %v4201_v25  ;;  %v4802_v7 = vadd.f32 %v12470_v2, %v4769_v58  ;;  %v5308_v46 = vadd.f32 0.014752088, %v5307_v4  ;;  %v5299_v38 = vadd.f32 0.05243302, %v5298_v8 }
 0x58e   : > { %v13914_v3 = vadd.f32 %v4928_v1, %v13136_v23  ;;  %v13918_v30 = vsub.f32 %v13386_v31, %v4203_v63  ;;  %v4594_v1 = vmul.f32 %v13867_v36, %v4593_v47  ;;  %v4584_v63 = vmul.f32 %v13872_v20, %v4583_v56 }
 0x58f   : > { %v4265_v62 = vmul.f32 %v13908_v53, %v13908_v53  ;;  %v4842_v37 = vpack.c.bf16 %v4802_v7, %v4801_v35  ;;  %v5309_v21 = vmul.f32 %v5308_v46, %v13861_v51  ;;  %v5349_v57 = vmul.f32 %v5348_v49, %v13879_v11 }
 0x590   : > { %v13923_v10 = vmul.f32 0.70710677, %v13914_v3  ;;  %v4267_v15 = vmul.f32 %v13918_v30, %v13918_v30  ;;  %v4588_v18 = vsel %vm4587_vm6, %v13872_v20, %v4584_v63  ;;  %v4598_v42 = vsel %vm4597_vm4, %v13867_v36, %v4594_v1 }
 0x591   : > { %4323 = vadd.xlane.f32.xlu2 %v4265_v62  ;;  %4947 = vmatmul.bf16.gmra.mxu2 %v4842_v37  ;;  %v5310_v58 = vadd.f32 0.112945676, %v5309_v21  ;;  %v5338_v62 = vmul.f32 %v5337_v9, %v13879_v11  ;;  %v5350_v40 = vadd.f32 0.112945676, %v5349_v57  ;;  %v5300_v8 = vmul.f32 %v5299_v38, %v13861_v51 }
 0x592   : > { %v5372_v0 = vmul.f32 %v13923_v10, %v13923_v10  ;;  %4327 = vadd.xlane.f32.xlu1 %v4267_v15  ;;  %v16562_v15 = vld [vmem:[#allocation32_spill] sm:$0xff] }
 0x593   : > { %v5311_v55 = vmul.f32 %v5310_v58, %v13861_v51  ;;  %v4738_v47 = vmul.f32 %v4598_v42, %v16562_v15  ;;  %v5351_v9 = vmul.f32 %v5350_v40, %v13879_v11  ;;  %v5301_v38 = vadd.f32 0.18741608, %v5300_v8 }
 0x594   : > { %v13937_v29 = vmin.f32 %v5372_v0, 16.0  ;;  %v16561_v0 = vld [vmem:[#allocation33_spill] sm:$0xff] }
 0x595   : > { %v4930_v25 = vpop.f32.mrf.mxu2  ;;  %v4737_v37 = vmul.f32 %v4588_v18, %v16561_v0  ;;  %v5312_v4 = vadd.f32 0.4994258, %v5311_v55  ;;  %v4771_v36 = vmul.f32 %v12466_v22, %v4738_v47  ;;  %v5352_v49 = vadd.f32 0.4994258, %v5351_v9 }
 0x596   : > { %v13940_v24 = vadd.f32 %v4930_v25, %v13136_v23  ;;  %v5374_v35 = vmul.f32 2.1237322e-06, %v13937_v29  ;;  %v5339_v25 = vadd.f32 0.05243302, %v5338_v62  ;;  %v5302_v0 = vmul.f32 %v5301_v38, %v13861_v51 }
 0x597   : > { %v4770_v20 = vmul.f32 %v12466_v22, %v4737_v37  ;;  %v5313_v41 = vmul.f32 %v5312_v4, %v13861_v51  ;;  %v4804_v16 = vadd.f32 %v12470_v2, %v4771_v36  ;;  %v5353_v42 = vmul.f32 %v5352_v49, %v13879_v11 }
 0x598   : > { %v13948_v61 = vmul.f32 0.70710677, %v13940_v24  ;;  %v5375_v46 = vadd.f32 0.00028619796, %v5374_v35  ;;  %v5340_v62 = vmul.f32 %v5339_v25, %v13879_v11  ;;  %v5385_v4 = vmul.f32 3.8918573e-05, %v13937_v29 }
 0x599   : > { %v4803_v63 = vadd.f32 %v12470_v2, %v4770_v20  ;;  %v5314_v58 = vadd.f32 1.0, %v5313_v41  ;;  %v5354_v47 = vadd.f32 1.0, %v5353_v42 }
 0x59a   : > { %v5412_v7 = vmul.f32 %v13948_v61, %v13948_v61  ;;  %v5376_v35 = vmul.f32 %v5375_v46, %v13937_v29  ;;  %v5341_v37 = vadd.f32 0.18741608, %v5340_v62  ;;  %v5303_v46 = vadd.f32 1.1283791, %v5302_v0 }
 0x59b   : > { %8698 = vrcp.f32 %v5314_v58  ;;  %v5324_v49 = vand.u32 2147483647, %v5314_v58  ;;  %v5326_v38 = vand.u32 2147483648, %v5314_v58  ;;  %vm5320_vm9 = vweird.f32 %v5314_v58 }
 0x59c   : > { %v13961_v54 = vmin.f32 %v5412_v7, 16.0  ;;  %v4843_v7 = vpack.c.bf16 %v4804_v16, %v4803_v63  ;;  %v5377_v15 = vadd.f32 0.0036580483, %v5376_v35  ;;  %8700 = vrcp.f32 %v5354_v47 }
 0x59d   : > { %v4933_v56 = vpop.f32.mrf.mxu2  ;;  %v5342_v36 = vmul.f32 %v5341_v37, %v13879_v11  ;;  %v5304_v11 = vmul.f32 %v5303_v46, %v13835_v34  ;;  %vm5325_vm11 = vcmp.eq.f32.partialorder %v5324_v49, 8.507059e+37  ;;  %vm5360_vm8 = vweird.f32 %v5354_v47 }
 0x59e   : > { %v5414_v1 = vmul.f32 2.1237322e-06, %v13961_v54  ;;  %v13973_v21 = vadd.f32 %v4933_v56, %v13136_v23  ;;  %v5378_v51 = vmul.f32 %v5377_v15, %v13937_v29 }
 0x59f   : > { %v5343_v42 = vadd.f32 1.1283791, %v5342_v36 }
 0x5a0   : > { %v5415_v18 = vadd.f32 0.00028619796, %v5414_v1  ;;  %v13980_v55 = vmul.f32 0.70710677, %v13973_v21  ;;  %v5386_v1 = vadd.f32 0.001143296, %v5385_v4 }
 0x5a1   : > { %4952 = vmatmul.bf16.gmra.mxu2 %v4843_v7  ;;  %v8699_v40 = vpop.eup %8698  ;;  %v5425_v7 = vmul.f32 3.8918573e-05, %v13961_v54  ;;  %v5379_v0 = vadd.f32 0.05243302, %v5378_v51  ;;  %v5366_v51 = vand.u32 2147483648, %v5354_v47  ;;  %v5344_v49 = vmul.f32 %v5343_v42, %v13857_v60 }
 0x5a2   : > { %v5416_v56 = vmul.f32 %v5415_v18, %v13961_v54  ;;  %v5452_v8 = vmul.f32 %v13980_v55, %v13980_v55  ;;  %v5316_v20 = vmul.f32 %v8699_v40, %v5314_v58  ;;  %vm5321_vm7 = vweird.f32 %v8699_v40  ;;  %v8701_v18 = vpop.eup %8700 }
 0x5a3   : > { %v5387_v35 = vmul.f32 %v5386_v1, %v13937_v29  ;;  %vm5322_vm10 = vmor %vm5320_vm9, %vm5321_vm7  ;;  %v5426_v36 = vadd.f32 0.001143296, %v5425_v7  ;;  %vm5361_vm12 = vweird.f32 %v8701_v18 }
 0x5a4   : > { %v5417_v41 = vadd.f32 0.0036580483, %v5416_v56  ;;  %v5317_v9 = vsub.f32 1.0, %v5316_v20  ;;  %v13992_v63 = vmin.f32 %v5452_v8, 16.0  ;;  %v5356_v56 = vmul.f32 %v8701_v18, %v5354_v47  ;;  %vm5362_vm14 = vmor %vm5360_vm8, %vm5361_vm12 }
 0x5a5   : > { %v4935_v57 = vpop.f32.mrf.mxu2  ;;  %v5327_v8 = vor.u32 1.1754944e-38, %v5326_v38  ;;  %v5388_v20 = vadd.f32 0.014752088, %v5387_v35  ;;  %v5427_v31 = vmul.f32 %v5426_v36, %v13961_v54 }
 0x5a6   : > { %v13988_v25 = vadd.f32 %v4935_v57, %v13136_v23  ;;  %v5318_v62 = vmul.f32 %v8699_v40, %v5317_v9  ;;  %v4355_v57 = vmul.f32 %v13851_v12, %v8928_v13  ;;  %v5418_v37 = vmul.f32 %v5417_v41, %v13961_v54 }
 0x5a7   : > { %v5454_v4 = vmul.f32 2.1237322e-06, %v13992_v63  ;;  %v5357_v46 = vsub.f32 1.0, %v5356_v56  ;;  %v5364_v12 = vand.u32 2147483647, %v5354_v47  ;;  %v5389_v41 = vmul.f32 %v5388_v20, %v13937_v29 }
 0x5a8   : > { %v13995_v16 = vmul.f32 0.70710677, %v13988_v25  ;;  %v5319_v15 = vadd.f32 %v8699_v40, %v5318_v62  ;;  %v5419_v38 = vadd.f32 0.05243302, %v5418_v37  ;;  %v5465_v7 = vmul.f32 3.8918573e-05, %v13992_v63 }
 0x5a9   : > { %v5358_v58 = vmul.f32 %v8701_v18, %v5357_v46  ;;  %v5455_v35 = vadd.f32 0.00028619796, %v5454_v4  ;;  %v5390_v19 = vadd.f32 0.112945676, %v5389_v41  ;;  %vm5365_vm15 = vcmp.eq.f32.partialorder %v5364_v12, 8.507059e+37 }
 0x5aa   : > { %v5492_v9 = vmul.f32 %v13995_v16, %v13995_v16  ;;  %v5323_v34 = vsel %vm5322_vm10, %v8699_v40, %v5319_v15  ;;  %v5428_v40 = vadd.f32 0.014752088, %v5427_v31  ;;  %v5367_v56 = vor.u32 1.1754944e-38, %v5366_v51 }
 0x5ab   : > { %v5328_v1 = vsel %vm5325_vm11, %v5327_v8, %v5323_v34  ;;  %v5359_v27 = vadd.f32 %v8701_v18, %v5358_v58  ;;  %v5466_v60 = vadd.f32 0.001143296, %v5465_v7  ;;  %v14014_v42 = vadd.f32 1e-05, %v4355_v57 }
 0x5ac   : > { %v5329_v62 = vmul.f32 %v5328_v1, %v5304_v11  ;;  %v14010_v15 = vmin.f32 %v5492_v9, 16.0  ;;  %v5391_v11 = vmul.f32 %v5390_v19, %v13937_v29  ;;  %v5429_v34 = vmul.f32 %v5428_v40, %v13961_v54 }
 0x5ad   : > { %v5363_v20 = vsel %vm5362_vm14, %v8701_v18, %v5359_v27  ;;  %v5380_v37 = vmul.f32 %v5379_v0, %v13937_v29  ;;  %v4994_v4 = vmul.f32 0.5, %v13817_v6  ;;  %v5467_v36 = vmul.f32 %v5466_v60, %v13992_v63 }
 0x5ae   : > { %v8303_v8 = vclamps-f32 %v5329_v62, 1.0  ;;  %v5368_v47 = vsel %vm5365_vm15, %v5367_v56, %v5363_v20  ;;  %v5392_v31 = vadd.f32 0.4994258, %v5391_v11  ;;  %v5430_v46 = vadd.f32 0.112945676, %v5429_v34 }
 0x5af   : > { %v5369_v9 = vmul.f32 %v5368_v47, %v5344_v49  ;;  %v5420_v1 = vmul.f32 %v5419_v38, %v13961_v54  ;;  %v5456_v19 = vmul.f32 %v5455_v35, %v13992_v63  ;;  %v5494_v27 = vmul.f32 2.1237322e-06, %v14010_v15 }
 0x5b0   : > { %v5393_v18 = vmul.f32 %v5392_v31, %v13937_v29  ;;  %v6338_v12 = vadd.f32 1.0, %v8303_v8  ;;  %v5431_v0 = vmul.f32 %v5430_v46, %v13961_v54  ;;  %v5468_v51 = vadd.f32 0.014752088, %v5467_v36 }
 0x5b1   : > { %v8304_v57 = vclamps-f32 %v5369_v9, 1.0  ;;  %v4995_v41 = vmul.f32 0.5, %v13838_v50  ;;  %8702 = vrsqrt.f32 %v14014_v42  ;;  %v5381_v6 = vadd.f32 0.18741608, %v5380_v37 }
 0x5b2   : > { %v14026_v62 = vadd.f32 1.0, %v5393_v18  ;;  %v5432_v49 = vadd.f32 0.4994258, %v5431_v0  ;;  %v5469_v38 = vmul.f32 %v5468_v51, %v13992_v63  ;;  %v5505_v35 = vmul.f32 3.8918573e-05, %v14010_v15 }
 0x5b3   : > { %v6339_v58 = vadd.f32 1.0, %v8304_v57  ;;  %v5421_v40 = vadd.f32 0.18741608, %v5420_v1  ;;  %v5457_v7 = vadd.f32 0.0036580483, %v5456_v19  ;;  %v6370_v11 = vmul.f32 %v6338_v12, %v4994_v4 }
 0x5b4   : > { %v5495_v56 = vadd.f32 0.00028619796, %v5494_v27  ;;  %8704 = vrcp.f32 %v14026_v62  ;;  %v5433_v50 = vmul.f32 %v5432_v49, %v13961_v54  ;;  %v5470_v20 = vadd.f32 0.112945676, %v5469_v38 }
 0x5b5   : > { %v6371_v8 = vmul.f32 %v6339_v58, %v4995_v41  ;;  %v5382_v34 = vmul.f32 %v5381_v6, %v13937_v29  ;;  %v5506_v60 = vadd.f32 0.001143296, %v5505_v35  ;;  %v5422_v46 = vmul.f32 %v5421_v40, %v13961_v54  ;;  %v8873_v29 = vld [vmem:[%s16191_s1 + $0x8] sm:$0xff] }
 0x5b6   : > { %v14033_v47 = vadd.f32 1.0, %v5433_v50  ;;  %v5471_v31 = vmul.f32 %v5470_v20, %v13992_v63  ;;  %v5458_v36 = vmul.f32 %v5457_v7, %v13992_v63  ;;  %v5496_v1 = vmul.f32 %v5495_v56, %v14010_v15 }
 0x5b7   : > { %v6416_v37 = vpack.c.bf16 %v6371_v8, %v6370_v11  ;;  %v14036_v9 = vpop.eup %8702  ;;  %v5507_v4 = vmul.f32 %v5506_v60, %v14010_v15  ;;  %v14045_v19 = vperm.slane %v8873_v29, 3  ;;  %v5383_v18 = vadd.f32 1.1283791, %v5382_v34 }
 0x5b8   : > { %8706 = vrcp.f32 %v14033_v47  ;;  %v5472_v57 = vadd.f32 0.4994258, %v5471_v31  ;;  %v5423_v0 = vadd.f32 1.1283791, %v5422_v46  ;;  %v5459_v51 = vadd.f32 0.05243302, %v5458_v36 }
 0x5b9   : > { %6501 = vmatmul.bf16.gmra.mxu3 %v6416_v37  ;;  %v5508_v12 = vadd.f32 0.014752088, %v5507_v4  ;;  %v4600_v49 = vmul.f32 %v14036_v9, %v14014_v42  ;;  %v5497_v38 = vadd.f32 0.0036580483, %v5496_v1  ;;  %v5384_v7 = vmul.f32 %v5383_v18, %v13923_v10 }
 0x5ba   : > { %v8705_v27 = vpop.eup %8704  ;;  %v5473_v6 = vmul.f32 %v5472_v57, %v13992_v63  ;;  %v5406_v56 = vand.u32 2147483648, %v14026_v62  ;;  %v5404_v60 = vand.u32 2147483647, %v14026_v62  ;;  %v5424_v37 = vmul.f32 %v5423_v0, %v13948_v61 }
 0x5bb   : > { %v5396_v54 = vmul.f32 %v8705_v27, %v14026_v62  ;;  %v5509_v58 = vmul.f32 %v5508_v12, %v14010_v15  ;;  %vm5401_vm0 = vweird.f32 %v8705_v27  ;;  %v5460_v31 = vmul.f32 %v5459_v51, %v13992_v63 }
 0x5bc   : > { %v14058_v11 = vadd.f32 1.0, %v5473_v6  ;;  %v5498_v10 = vmul.f32 %v5497_v38, %v14010_v15  ;;  %vm5400_vm13 = vweird.f32 %v14026_v62  ;;  %v5407_v1 = vor.u32 1.1754944e-38, %v5406_v56 }
 0x5bd   : > { %v5397_v40 = vsub.f32 1.0, %v5396_v54  ;;  %v5510_v8 = vadd.f32 0.112945676, %v5509_v58  ;;  %vm5402_vm1 = vmor %vm5400_vm13, %vm5401_vm0  ;;  %v5444_v18 = vand.u32 2147483647, %v14033_v47  ;;  %vm5405_vm2 = vcmp.eq.f32.partialorder %v5404_v60, 8.507059e+37 }
 0x5be   : > { %v8707_v50 = vpop.eup %8706  ;;  %8708 = vrcp.f32 %v14058_v11  ;;  %v5446_v54 = vand.u32 2147483648, %v14033_v47  ;;  %v5499_v6 = vadd.f32 0.05243302, %v5498_v10  ;;  %vm5440_vm4 = vweird.f32 %v14033_v47 }
 0x5bf   : > { %v5398_v34 = vmul.f32 %v8705_v27, %v5397_v40  ;;  %v5436_v46 = vmul.f32 %v8707_v50, %v14033_v47  ;;  %v5511_v61 = vmul.f32 %v5510_v8, %v14010_v15  ;;  %vm5441_vm3 = vweird.f32 %v8707_v50 }
 0x5c0   : > { %vm5445_vm5 = vcmp.eq.f32.partialorder %v5444_v18, 8.507059e+37  ;;  %vm5442_vm6 = vmor %vm5440_vm4, %vm5441_vm3  ;;  %v4601_v47 = vmul.f32 %v14036_v9, %v4600_v49  ;;  %vm5480_vm9 = vweird.f32 %v14058_v11  ;;  %vm4606_vm3 = vweird.f32 %v14036_v9 }
 0x5c1   : > { %v5399_v4 = vadd.f32 %v8705_v27, %v5398_v34  ;;  %v5437_v29 = vsub.f32 1.0, %v5436_v46  ;;  %v5447_v46 = vor.u32 1.1754944e-38, %v5446_v54 }
 0x5c3   : > { %v5403_v12 = vsel %vm5402_vm1, %v8705_v27, %v5399_v4  ;;  %v5438_v51 = vmul.f32 %v8707_v50, %v5437_v29 }
 0x5c4   : > { %v5408_v0 = vsel %vm5405_vm2, %v5407_v1, %v5403_v12  ;;  %v14079_v40 = vpop.eup %8708  ;;  %v5461_v12 = vadd.f32 0.18741608, %v5460_v31 }
 0x5c5   : > { %v5409_v38 = vmul.f32 %v5408_v0, %v5384_v7  ;;  %v5439_v56 = vadd.f32 %v8707_v50, %v5438_v51  ;;  %v5476_v10 = vmul.f32 %v14079_v40, %v14058_v11  ;;  %vm5481_vm7 = vweird.f32 %v14079_v40 }
 0x5c6   : > { %vm14124_vm10 = vmor %vm5480_vm9, %vm5481_vm7  ;;  %vm4605_vm9 = vweird.f32 %v14014_v42 }
 0x5c7   : > { %v6487_v41 = vpop.f32.mrf.mxu3  ;;  %v8305_v7 = vclamps-f32 %v5409_v38, 1.0  ;;  %v5443_v4 = vsel %vm5442_vm6, %v8707_v50, %v5439_v56  ;;  %v5477_v51 = vsub.f32 1.0, %v5476_v10  ;;  %v4602_v56 = vmul.f32 0.5, %v4601_v47 }
 0x5c8   : > { %v14054_v35 = vadd.f32 %v6487_v41, %v14045_v19  ;;  %v5512_v41 = vadd.f32 0.4994258, %v5511_v61  ;;  %v5448_v61 = vsel %vm5445_vm5, %v5447_v46, %v5443_v4  ;;  %v5462_v46 = vmul.f32 %v5461_v12, %v13992_v63 }
 0x5c9   : > { %v5449_v0 = vmul.f32 %v5448_v61, %v5424_v37  ;;  %v6340_v38 = vadd.f32 1.0, %v8305_v7  ;;  %v4996_v37 = vmul.f32 0.5, %v13914_v3 }
 0x5ca   : > { %v14061_v20 = vmul.f32 0.70710677, %v14054_v35  ;;  %v5513_v27 = vmul.f32 %v5512_v41, %v14010_v15  ;;  %v5500_v41 = vmul.f32 %v5499_v6, %v14010_v15  ;;  %v4997_v6 = vmul.f32 0.5, %v13940_v24 }
 0x5cb   : > { %v8306_v50 = vclamps-f32 %v5449_v0, 1.0 }
 0x5cc   : > { %v6631_v36 = vmul.f32 %v14061_v20, %v14061_v20  ;;  %v14088_v1 = vadd.f32 1.0, %v5513_v27  ;;  %v5501_v10 = vadd.f32 0.18741608, %v5500_v41 }
 0x5ce   : > { %v14074_v57 = vmin.f32 %v6631_v36, 16.0  ;;  %8710 = vrcp.f32 %v14088_v1  ;;  %vm5520_vm12 = vweird.f32 %v14088_v1 }
 0x5cf   : > { %v6489_v60 = vpop.f32.mrf.mxu3 }
 0x5d0   : > { %v6633_v62 = vmul.f32 2.1237322e-06, %v14074_v57  ;;  %v6644_v58 = vmul.f32 3.8918573e-05, %v14074_v57  ;;  %v14086_v36 = vadd.f32 %v6489_v60, %v14045_v19  ;;  %v6341_v60 = vadd.f32 1.0, %v8306_v50 }
 0x5d2   : > { %v6634_v8 = vadd.f32 0.00028619796, %v6633_v62  ;;  %v6645_v34 = vadd.f32 0.001143296, %v6644_v58  ;;  %v14094_v54 = vmul.f32 0.70710677, %v14086_v36  ;;  %v6373_v61 = vmul.f32 %v6341_v60, %v4997_v6 }
 0x5d3   : > { %v5502_v60 = vmul.f32 %v5501_v10, %v14010_v15 }
 0x5d4   : > { %v6635_v29 = vmul.f32 %v6634_v8, %v14074_v57  ;;  %v6646_v18 = vmul.f32 %v6645_v34, %v14074_v57  ;;  %v6671_v49 = vmul.f32 %v14094_v54, %v14094_v54  ;;  %v5478_v8 = vmul.f32 %v14079_v40, %v5477_v51  ;;  %v14110_v0 = vpop.eup %8710 }
 0x5d5   : > { %v5516_v6 = vmul.f32 %v14110_v0, %v14088_v1  ;;  %vm5521_vm14 = vweird.f32 %v14110_v0 }
 0x5d6   : > { %v6636_v62 = vadd.f32 0.0036580483, %v6635_v29  ;;  %v6647_v58 = vadd.f32 0.014752088, %v6646_v18  ;;  %v14105_v34 = vmin.f32 %v6671_v49, 16.0  ;;  %v6372_v18 = vmul.f32 %v6340_v38, %v4996_v37  ;;  %vm14196_vm15 = vmor %vm5520_vm12, %vm5521_vm14 }
 0x5d7   : > { %v5479_v51 = vadd.f32 %v14079_v40, %v5478_v8  ;;  %v6492_v50 = vpop.f32.mrf.mxu3  ;;  %v5484_v38 = vand.u32 2147483647, %v14058_v11 }
 0x5d8   : > { %v6637_v27 = vmul.f32 %v6636_v62, %v14074_v57  ;;  %v6648_v31 = vmul.f32 %v6647_v58, %v14074_v57  ;;  %v6673_v7 = vmul.f32 2.1237322e-06, %v14105_v34  ;;  %v6684_v47 = vmul.f32 3.8918573e-05, %v14105_v34 }
 0x5d9   : > { %v6417_v41 = vpack.c.bf16 %v6373_v61, %v6372_v18  ;;  %v5486_v62 = vand.u32 2147483648, %v14058_v11  ;;  %v5463_v58 = vadd.f32 1.1283791, %v5462_v46  ;;  %v14122_v8 = vadd.f32 %v6492_v50, %v14045_v19 }
 0x5da   : > { %v6638_v4 = vadd.f32 0.05243302, %v6637_v27  ;;  %v6649_v29 = vadd.f32 0.112945676, %v6648_v31  ;;  %v6674_v63 = vadd.f32 0.00028619796, %v6673_v7 }
 0x5db   : > { %v6685_v12 = vadd.f32 0.001143296, %v6684_v47  ;;  %6506 = vmatmul.bf16.gmra.mxu3 %v6417_v41  ;;  %v5487_v47 = vor.u32 1.1754944e-38, %v5486_v62  ;;  %v4603_v18 = vsub.f32 1.5, %v4602_v56  ;;  %vm5485_vm11 = vcmp.eq.f32.partialorder %v5484_v38, 8.507059e+37  ;;  %v4314_v56 = vpop.xlane.xlu0 %4313 }
 0x5dc   : > { %v6639_v3 = vmul.f32 %v6638_v4, %v14074_v57  ;;  %v6650_v24 = vmul.f32 %v6649_v29, %v14074_v57  ;;  %v6675_v27 = vmul.f32 %v6674_v63, %v14105_v34  ;;  %v5483_v4 = vsel %vm14124_vm10, %v14079_v40, %v5479_v51  ;;  %vm14257_vm10 = vmor %vm4605_vm9, %vm4606_vm3 }
 0x5dd   : > { %v6686_v31 = vmul.f32 %v6685_v12, %v14105_v34  ;;  %v5488_v10 = vsel %vm5485_vm11, %v5487_v47, %v5483_v4  ;;  %v5464_v12 = vmul.f32 %v5463_v58, %v13980_v55  ;;  %v5503_v41 = vadd.f32 1.1283791, %v5502_v60 }
 0x5de   : > { %v6651_v49 = vadd.f32 0.4994258, %v6650_v24  ;;  %v6640_v46 = vadd.f32 0.18741608, %v6639_v3  ;;  %v6676_v29 = vadd.f32 0.0036580483, %v6675_v27  ;;  %v14149_v38 = vmul.f32 %v14036_v9, %v4603_v18 }
 0x5df   : > { %v6687_v7 = vadd.f32 0.014752088, %v6686_v31  ;;  %v14138_v24 = vmul.f32 0.70710677, %v14122_v8  ;;  %v5517_v3 = vsub.f32 1.0, %v5516_v6  ;;  %v14152_v27 = vmul.f32 0.5, %v13973_v21  ;;  %v6494_v55 = vpop.f32.mrf.mxu3 }
 0x5e0   : > { %v6652_v11 = vmul.f32 %v6651_v49, %v14074_v57  ;;  %v6677_v63 = vmul.f32 %v6676_v29, %v14105_v34  ;;  %v6641_v40 = vmul.f32 %v6640_v46, %v14074_v57  ;;  %v5524_v50 = vand.u32 2147483647, %v14088_v1 }
 0x5e1   : > { %v6688_v15 = vmul.f32 %v6687_v7, %v14105_v34  ;;  %v6711_v49 = vmul.f32 %v14138_v24, %v14138_v24  ;;  %v5489_v58 = vmul.f32 %v5488_v10, %v5464_v12  ;;  %v5526_v57 = vand.u32 2147483648, %v14088_v1 }
 0x5e2   : > { %v14135_v61 = vadd.f32 1.0, %v6652_v11  ;;  %v6678_v51 = vadd.f32 0.05243302, %v6677_v63  ;;  %v4356_v6 = vmul.f32 %v4314_v56, %v8928_v13  ;;  %v5518_v60 = vmul.f32 %v14110_v0, %v5517_v3 }
 0x5e3   : > { %v6689_v62 = vadd.f32 0.112945676, %v6688_v15  ;;  %v14156_v37 = vmin.f32 %v6711_v49, 16.0  ;;  %v14161_v46 = vmul.f32 %v5503_v41, %v13995_v16  ;;  %v6642_v11 = vadd.f32 1.1283791, %v6641_v40 }
 0x5e4   : > { %8712 = vrcp.f32 %v14135_v61  ;;  %v14164_v4 = vadd.f32 %v6494_v55, %v14045_v19  ;;  %v6679_v21 = vmul.f32 %v6678_v51, %v14105_v34  ;;  %vm14169_vm8 = vcmp.eq.f32.partialorder %v5524_v50, 8.507059e+37 }
 0x5e5   : > { %v6690_v31 = vmul.f32 %v6689_v62, %v14105_v34  ;;  %v6713_v7 = vmul.f32 2.1237322e-06, %v14156_v37  ;;  %v6724_v63 = vmul.f32 3.8918573e-05, %v14156_v37  ;;  %v8307_v16 = vclamps-f32 %v5489_v58, 1.0 }
 0x5e6   : > { %v5527_v15 = vor.u32 1.1754944e-38, %v5526_v57  ;;  %v14177_v12 = vadd.f32 1e-05, %v4356_v6  ;;  %v5519_v41 = vadd.f32 %v14110_v0, %v5518_v60  ;;  %v6643_v40 = vmul.f32 %v6642_v11, %v14061_v20 }
 0x5e7   : > { %v6691_v29 = vadd.f32 0.4994258, %v6690_v31  ;;  %v6714_v56 = vadd.f32 0.00028619796, %v6713_v7  ;;  %v6725_v51 = vadd.f32 0.001143296, %v6724_v63  ;;  %vm6659_vm13 = vweird.f32 %v14135_v61 }
 0x5e8   : > { %v14182_v62 = vmul.f32 0.70710677, %v14164_v4  ;;  %v6663_v50 = vand.u32 2147483647, %v14135_v61  ;;  %v6680_v55 = vadd.f32 0.18741608, %v6679_v21  ;;  %v4316_v21 = vpop.xlane.xlu0 %4315 }
 0x5e9   : > { %v6692_v3 = vmul.f32 %v6691_v29, %v14105_v34  ;;  %v6665_v57 = vand.u32 2147483648, %v14135_v61  ;;  %v6715_v31 = vmul.f32 %v6714_v56, %v14156_v37  ;;  %v6726_v6 = vmul.f32 %v6725_v51, %v14156_v37 }
 0x5ea   : > { %v8713_v18 = vpop.eup %8712  ;;  %v6751_v20 = vmul.f32 %v14182_v62, %v14182_v62  ;;  %v5523_v29 = vsel %vm14196_vm15, %v14110_v0, %v5519_v41  ;;  %vm6664_vm1 = vcmp.eq.f32.partialorder %v6663_v50, 8.507059e+37  ;;  %v6567_v50 = vmul.f32 0.5, %v14054_v35 }
 0x5eb   : > { %v6655_v10 = vmul.f32 %v8713_v18, %v14135_v61  ;;  %v14185_v58 = vadd.f32 1.0, %v6692_v3  ;;  %vm6660_vm0 = vweird.f32 %v8713_v18  ;;  %v6716_v7 = vadd.f32 0.0036580483, %v6715_v31 }
 0x5ec   : > { %v14206_v63 = vmin.f32 %v6751_v20, 16.0  ;;  %v6727_v3 = vadd.f32 0.014752088, %v6726_v6  ;;  %vm6661_vm2 = vmor %vm6659_vm13, %vm6660_vm0  ;;  %v6666_v56 = vor.u32 1.1754944e-38, %v6665_v57  ;;  %v5528_v0 = vsel %vm14169_vm8, %v5527_v15, %v5523_v29 }
 0x5ed   : > { %v6656_v49 = vsub.f32 1.0, %v6655_v10  ;;  %8714 = vrcp.f32 %v14185_v58  ;;  %v6681_v10 = vmul.f32 %v6680_v55, %v14105_v34  ;;  %v6717_v41 = vmul.f32 %v6716_v7, %v14156_v37 }
 0x5ee   : > { %8716 = vrsqrt.f32 %v14177_v12  ;;  %v6753_v51 = vmul.f32 2.1237322e-06, %v14206_v63  ;;  %v6728_v31 = vmul.f32 %v6727_v3, %v14156_v37  ;;  %v6764_v20 = vmul.f32 3.8918573e-05, %v14206_v63 }
 0x5ef   : > { %v6657_v11 = vmul.f32 %v8713_v18, %v6656_v49  ;;  %v4357_v49 = vmul.f32 %v4316_v21, %v8928_v13  ;;  %v6342_v6 = vadd.f32 1.0, %v8307_v16  ;;  %v5529_v29 = vmul.f32 %v5528_v0, %v14161_v46 }
 0x5f0   : > { %v6754_v55 = vadd.f32 0.00028619796, %v6753_v51  ;;  %v6729_v44 = vadd.f32 0.112945676, %v6728_v31  ;;  %v6765_v21 = vadd.f32 0.001143296, %v6764_v20  ;;  %vm6699_vm5 = vweird.f32 %v14185_v58 }
 0x5f1   : > { %v6658_v1 = vadd.f32 %v8713_v18, %v6657_v11  ;;  %v6682_v11 = vadd.f32 1.1283791, %v6681_v10  ;;  %v14221_v15 = vadd.f32 1e-05, %v4357_v49  ;;  %v6718_v7 = vadd.f32 0.05243302, %v6717_v41 }
 0x5f2   : > { %v6730_v16 = vmul.f32 %v6729_v44, %v14156_v37  ;;  %v6703_v10 = vand.u32 2147483647, %v14185_v58  ;;  %v6705_v3 = vand.u32 2147483648, %v14185_v58  ;;  %v8308_v44 = vclamps-f32 %v5529_v29, 1.0 }
 0x5f3   : > { %v6662_v61 = vsel %vm6661_vm2, %v8713_v18, %v6658_v1  ;;  %v8715_v57 = vpop.eup %8714  ;;  %v6755_v18 = vmul.f32 %v6754_v55, %v14206_v63  ;;  %v6719_v20 = vmul.f32 %v6718_v7, %v14156_v37  ;;  %vm4615_vm0 = vweird.f32 %v14177_v12 }
 0x5f4   : > { %v6667_v34 = vsel %vm6664_vm1, %v6666_v56, %v6662_v61  ;;  %v14217_v33 = vpop.eup %8716  ;;  %v6695_v47 = vmul.f32 %v8715_v57, %v14185_v58  ;;  %v6731_v49 = vadd.f32 0.4994258, %v6730_v16  ;;  %vm6700_vm4 = vweird.f32 %v8715_v57 }
 0x5f5   : > { %v6668_v60 = vmul.f32 %v6667_v34, %v6643_v40  ;;  %v6766_v40 = vmul.f32 %v6765_v21, %v14206_v63  ;;  %v6756_v56 = vadd.f32 0.0036580483, %v6755_v18  ;;  %v4610_v46 = vmul.f32 %v14217_v33, %v14177_v12  ;;  %vm6701_vm6 = vmor %vm6699_vm5, %vm6700_vm4 }
 0x5f6   : > { %v6696_v1 = vsub.f32 1.0, %v6695_v47  ;;  %v6732_v34 = vmul.f32 %v6731_v49, %v14156_v37  ;;  %v6706_v47 = vor.u32 1.1754944e-38, %v6705_v3  ;;  %vm6704_vm7 = vcmp.eq.f32.partialorder %v6703_v10, 8.507059e+37  ;;  %v4170_v49 = vpop.xlane.xlu0 %4169 }
 0x5f7   : > { %v8377_v35 = vclamps-f32 %v6668_v60, 1.0  ;;  %v6767_v0 = vadd.f32 0.014752088, %v6766_v40  ;;  %v6757_v41 = vmul.f32 %v6756_v56, %v14206_v63  ;;  %v6683_v60 = vmul.f32 %v6682_v11, %v14094_v54  ;;  %v4318_v56 = vpop.xlane.xlu1 %4317 }
 0x5f8   : > { %v6697_v61 = vmul.f32 %v8715_v57, %v6696_v1  ;;  %v14245_v29 = vadd.f32 1.0, %v6732_v34  ;;  %v4611_v40 = vmul.f32 %v14217_v33, %v4610_v46  ;;  %v6343_v1 = vadd.f32 1.0, %v8308_v44 }
 0x5f9   : > { %v7911_v51 = vadd.f32 1.0, %v8377_v35  ;;  %v6768_v55 = vmul.f32 %v6767_v0, %v14206_v63  ;;  %v6758_v35 = vadd.f32 0.05243302, %v6757_v41  ;;  %v6720_v11 = vadd.f32 0.18741608, %v6719_v20 }
 0x5fa   : > { %v6698_v21 = vadd.f32 %v8715_v57, %v6697_v61  ;;  %8718 = vrcp.f32 %v14245_v29  ;;  %v6374_v10 = vmul.f32 %v6342_v6, %v14152_v27  ;;  %v4612_v61 = vmul.f32 0.5, %v4611_v40 }
 0x5fb   : > { %v7943_v31 = vmul.f32 %v7911_v51, %v6567_v50  ;;  %v16569_v50 = vld [vmem:[#allocation5_spill] sm:$0xff]  ;;  %v6769_v7 = vadd.f32 0.112945676, %v6768_v55  ;;  %v4999_v51 = vmul.f32 0.5, %v13988_v25  ;;  %8720 = vrsqrt.f32 %v14221_v15 }
 0x5fc   : > { %v6702_v16 = vsel %vm6701_vm6, %v8715_v57, %v6698_v21  ;;  %v6759_v57 = vmul.f32 %v6758_v35, %v14206_v63  ;;  %v6721_v44 = vmul.f32 %v6720_v11, %v14156_v37  ;;  %v4204_v42 = vmul.f32 %v4170_v49, %v8928_v13  ;;  %v16572_v35 = vld [vmem:[#allocation34_spill] sm:$0xff] }
 0x5fd   : > { %v7975_v18 = vadd.f32 %v7943_v31, %v16569_v50  ;;  %v6707_v54 = vsel %vm6704_vm7, %v6706_v47, %v6702_v16  ;;  %v6770_v3 = vmul.f32 %v6769_v7, %v14206_v63  ;;  %v6375_v46 = vmul.f32 %v6343_v1, %v4999_v51  ;;  %v16573_v1 = vld [vmem:[#allocation11_spill] sm:$0xff] }
 0x5fe   : > { %v6708_v58 = vmul.f32 %v6707_v54, %v6683_v60  ;;  %v4608_v27 = vsel %vm14257_vm10, %v14036_v9, %v14149_v38  ;;  %v6568_v6 = vmul.f32 0.5, %v14086_v36  ;;  %v6760_v21 = vadd.f32 0.18741608, %v6759_v57 }
 0x5ff   : > { %8007 = vst [vmem:[%s14240_s25] sm:$0xff] %v7975_v18  ;;  %v6771_v41 = vadd.f32 0.4994258, %v6770_v3  ;;  %v6418_v31 = vpack.c.bf16 %v6375_v46, %v6374_v10  ;;  %v4613_v18 = vsub.f32 1.5, %v4612_v61  ;;  %v14275_v7 = vmul.f32 %v4608_v27, %v16572_v35  ;;  %v4320_v3 = vpop.xlane.xlu1 %4319 }
 0x600   : > { %v8378_v0 = vclamps-f32 %v6708_v58, 1.0  ;;  %v8719_v60 = vpop.eup %8718  ;;  %v6722_v9 = vadd.f32 1.1283791, %v6721_v44  ;;  %v14283_v16 = vsub.f32 %v13803_v28, %v4204_v42  ;;  %v14289_v54 = vmul.f32 0.5, %v14122_v8 }
 0x601   : > { %v6772_v34 = vmul.f32 %v6771_v41, %v14206_v63  ;;  %6511 = vmatmul.bf16.gmra.mxu3 %v6418_v31  ;;  %v6735_v50 = vmul.f32 %v8719_v60, %v14245_v29  ;;  %v14285_v40 = vpop.eup %8720  ;;  %v4358_v58 = vmul.f32 %v4318_v56, %v8928_v13  ;;  %v6743_v49 = vand.u32 2147483647, %v14245_v29 }
 0x602   : > { %v7912_v20 = vadd.f32 1.0, %v8378_v0  ;;  %v6745_v57 = vand.u32 2147483648, %v14245_v29  ;;  %v6761_v10 = vmul.f32 %v6760_v21, %v14206_v63  ;;  %vm6740_vm11 = vweird.f32 %v8719_v60  ;;  %v4938_v0 = vpop.f32.mrf.mxu2 }
 0x603   : > { %v14277_v36 = vadd.f32 1.0, %v6772_v34  ;;  %v6736_v11 = vsub.f32 1.0, %v6735_v50  ;;  %v4268_v8 = vmul.f32 %v14283_v16, %v14283_v16  ;;  %v6723_v56 = vmul.f32 %v6722_v9, %v14138_v24 }
 0x604   : > { %v6497_v55 = vpop.f32.mrf.mxu3  ;;  %v7944_v37 = vmul.f32 %v7912_v20, %v6568_v6  ;;  %v14303_v61 = vmul.f32 %v14217_v33, %v4613_v18  ;;  %v4620_v63 = vmul.f32 %v14285_v40, %v14221_v15  ;;  %v4359_v41 = vmul.f32 %v4320_v3, %v8928_v13 }
 0x605   : > { %v14271_v47 = vadd.f32 %v6497_v55, %v14045_v19  ;;  %8722 = vrcp.f32 %v14277_v36  ;;  %v6737_v46 = vmul.f32 %v8719_v60, %v6736_v11  ;;  %vm6739_vm12 = vweird.f32 %v14245_v29  ;;  %4329 = vadd.xlane.f32.xlu2 %v4268_v8 }
 0x606   : > { %v7976_v51 = vadd.f32 %v7944_v37, %v16573_v1  ;;  %v14311_v42 = vadd.f32 1e-05, %v4358_v58  ;;  %vm6741_vm8 = vmor %vm6739_vm12, %vm6740_vm11  ;;  %v6746_v6 = vor.u32 1.1754944e-38, %v6745_v57  ;;  %v6762_v24 = vadd.f32 1.1283791, %v6761_v10 }
 0x607   : > { %v14280_v38 = vmul.f32 0.70710677, %v14271_v47  ;;  %v6738_v44 = vadd.f32 %v8719_v60, %v6737_v46  ;;  %v14317_v34 = vadd.f32 %v4938_v0, %v13136_v23  ;;  %vm6744_vm14 = vcmp.eq.f32.partialorder %v6743_v49, 8.507059e+37 }
 0x608   : > { %8008 = vst [vmem:[%s14240_s25 + $0x8] sm:$0xff] %v7976_v51  ;;  %vm4616_vm15 = vweird.f32 %v14217_v33  ;;  %v4621_v18 = vmul.f32 %v14285_v40, %v4620_v63  ;;  %v14326_v9 = vadd.f32 1e-05, %v4359_v41  ;;  %8724 = vrsqrt.f32 %v14311_v42 }
 0x609   : > { %v6791_v25 = vmul.f32 %v14280_v38, %v14280_v38  ;;  %v6742_v55 = vsel %vm6741_vm8, %v8719_v60, %v6738_v44  ;;  %v6763_v11 = vmul.f32 %v6762_v24, %v14182_v62  ;;  %v14335_v49 = vmul.f32 0.70710677, %v14317_v34  ;;  %vm14361_vm4 = vmor %vm4615_vm0, %vm4616_vm15 }
 0x60a   : > { %v6747_v50 = vsel %vm6744_vm14, %v6746_v6, %v6742_v55  ;;  %v6783_v46 = vand.u32 2147483647, %v14277_v36  ;;  %v6785_v8 = vand.u32 2147483648, %v14277_v36  ;;  %8726 = vrsqrt.f32 %v14326_v9 }
 0x60b   : > { %v14309_v31 = vmin.f32 %v6791_v25, 16.0  ;;  %v8723_v37 = vpop.eup %8722  ;;  %v6748_v1 = vmul.f32 %v6747_v50, %v6723_v56  ;;  %vm6779_vm1 = vweird.f32 %v14277_v36  ;;  %v5532_v50 = vmul.f32 %v14335_v49, %v14335_v49 }
 0x60c   : > { %v6499_v27 = vpop.f32.mrf.mxu3  ;;  %v6775_v60 = vmul.f32 %v8723_v37, %v14277_v36  ;;  %vm6780_vm13 = vweird.f32 %v8723_v37  ;;  %vm6784_vm3 = vcmp.eq.f32.partialorder %v6783_v46, 8.507059e+37  ;;  %v4618_v12 = vsel %vm14361_vm4, %v14217_v33, %v14303_v61 }
 0x60d   : > { %v14314_v20 = vadd.f32 %v6499_v27, %v14045_v19  ;;  %v6793_v29 = vmul.f32 2.1237322e-06, %v14309_v31  ;;  %v6804_v21 = vmul.f32 3.8918573e-05, %v14309_v31  ;;  %v8379_v57 = vclamps-f32 %v6748_v1, 1.0  ;;  %vm6781_vm2 = vmor %vm6779_vm1, %vm6780_vm13 }
 0x60e   : > { %v6776_v10 = vsub.f32 1.0, %v6775_v60  ;;  %v14347_v24 = vpop.eup %8724  ;;  %v6786_v1 = vor.u32 1.1754944e-38, %v6785_v8  ;;  %v4740_v61 = vmul.f32 %v4618_v12, %v13707_v5  ;;  %vm4625_vm5 = vweird.f32 %v14221_v15 }
 0x60f   : > { %v14324_v35 = vmul.f32 0.70710677, %v14314_v20  ;;  %v6794_v51 = vadd.f32 0.00028619796, %v6793_v29  ;;  %v6805_v58 = vadd.f32 0.001143296, %v6804_v21  ;;  %v4630_v46 = vmul.f32 %v14347_v24, %v14311_v42 }
 0x610   : > { %v7913_v62 = vadd.f32 1.0, %v8379_v57  ;;  %v6777_v63 = vmul.f32 %v8723_v37, %v6776_v10  ;;  %vm4626_vm6 = vweird.f32 %v14285_v40  ;;  %vm4635_vm7 = vweird.f32 %v14311_v42 }
 0x611   : > { %v6831_v3 = vmul.f32 %v14324_v35, %v14324_v35  ;;  %v6795_v25 = vmul.f32 %v6794_v51, %v14309_v31  ;;  %v6806_v0 = vmul.f32 %v6805_v58, %v14309_v31  ;;  %v16574_v58 = vld [vmem:[#allocation13_spill] sm:$0xff]  ;;  %vm4636_vm9 = vweird.f32 %v14347_v24  ;;  %vm14436_vm10 = vmor %vm4625_vm5, %vm4626_vm6 }
 0x612   : > { %v7945_v55 = vmul.f32 %v7913_v62, %v14289_v54  ;;  %v6778_v29 = vadd.f32 %v8723_v37, %v6777_v63  ;;  %vm4637_vm12 = vmor %vm4635_vm7, %vm4636_vm9  ;;  %vm4645_vm1 = vweird.f32 %v14326_v9 }
 0x613   : > { %v14341_v56 = vmin.f32 %v6831_v3, 16.0  ;;  %v6796_v41 = vadd.f32 0.0036580483, %v6795_v25  ;;  %v6807_v44 = vadd.f32 0.014752088, %v6806_v0  ;;  %v14355_v25 = vpop.eup %8726 }
 0x614   : > { %v7977_v3 = vadd.f32 %v7945_v55, %v16574_v58  ;;  %v6782_v57 = vsel %vm6781_vm2, %v8723_v37, %v6778_v29  ;;  %vm4646_vm13 = vweird.f32 %v14355_v25 }
 0x615   : > { %v6833_v27 = vmul.f32 2.1237322e-06, %v14341_v56  ;;  %v6844_v6 = vmul.f32 3.8918573e-05, %v14341_v56  ;;  %v6797_v21 = vmul.f32 %v6796_v41, %v14309_v31  ;;  %v6808_v36 = vmul.f32 %v6807_v44, %v14309_v31  ;;  %v4940_v44 = vpop.f32.mrf.mxu2  ;;  %vm14534_vm6 = vmor %vm4645_vm1, %vm4646_vm13 }
 0x616   : > { %v6787_v8 = vsel %vm6784_vm3, %v6786_v1, %v6782_v57  ;;  %8009 = vst [vmem:[%s14240_s25 + $0x10] sm:$0xff] %v7977_v3  ;;  %v4772_v41 = vmul.f32 %v12466_v22, %v14275_v7  ;;  %v4631_v3 = vmul.f32 %v14347_v24, %v4630_v46 }
 0x617   : > { %v6834_v60 = vadd.f32 0.00028619796, %v6833_v27  ;;  %v6845_v51 = vadd.f32 0.001143296, %v6844_v6  ;;  %v6798_v10 = vadd.f32 0.05243302, %v6797_v21  ;;  %v6788_v37 = vmul.f32 %v6787_v8, %v6763_v11  ;;  %v4172_v21 = vpop.xlane.xlu0 %4171 }
 0x618   : > { %v6809_v0 = vadd.f32 0.112945676, %v6808_v36  ;;  %v4622_v27 = vmul.f32 0.5, %v4621_v18  ;;  %v14378_v36 = vmin.f32 %v5532_v50, 16.0  ;;  %v6570_v18 = vmul.f32 0.5, %v14164_v4 }
 0x619   : > { %v6835_v62 = vmul.f32 %v6834_v60, %v14341_v56  ;;  %v6846_v63 = vmul.f32 %v6845_v51, %v14341_v56  ;;  %v8380_v1 = vclamps-f32 %v6788_v37, 1.0  ;;  %v6799_v11 = vmul.f32 %v6798_v10, %v14309_v31 }
 0x61a   : > { %v6810_v6 = vmul.f32 %v6809_v0, %v14309_v31  ;;  %v4640_v60 = vmul.f32 %v14355_v25, %v14326_v9  ;;  %v4205_v57 = vmul.f32 %v4172_v21, %v8928_v13  ;;  %v4773_v8 = vmul.f32 %v12466_v22, %v4740_v61  ;;  %v4322_v61 = vpop.xlane.xlu2 %4321 }
 0x61b   : > { %v6836_v55 = vadd.f32 0.0036580483, %v6835_v62  ;;  %v6847_v29 = vadd.f32 0.014752088, %v6846_v63  ;;  %v7914_v58 = vadd.f32 1.0, %v8380_v1  ;;  %v4623_v62 = vsub.f32 1.5, %v4622_v27 }
 0x61c   : > { %v6811_v51 = vadd.f32 0.4994258, %v6810_v6  ;;  %v6800_v63 = vadd.f32 0.18741608, %v6799_v11  ;;  %v5534_v37 = vmul.f32 2.1237322e-06, %v14378_v36  ;;  %v4641_v46 = vmul.f32 %v14355_v25, %v4640_v60  ;;  %v4174_v11 = vpop.xlane.xlu1 %4173 }
 0x61d   : > { %v6837_v33 = vmul.f32 %v6836_v55, %v14341_v56  ;;  %v6848_v7 = vmul.f32 %v6847_v29, %v14341_v56  ;;  %v7946_v0 = vmul.f32 %v7914_v58, %v6570_v18  ;;  %v4806_v12 = vadd.f32 %v12470_v2, %v4773_v8  ;;  %v16577_v6 = vld [vmem:[#allocation12_spill] sm:$0xff] }
 0x61e   : > { %v6812_v50 = vmul.f32 %v6811_v51, %v14309_v31  ;;  %v4632_v29 = vmul.f32 0.5, %v4631_v3  ;;  %v14398_v21 = vsub.f32 %v13831_v59, %v4205_v57  ;;  %v4805_v1 = vadd.f32 %v12470_v2, %v4772_v41 }
 0x61f   : > { %v6838_v10 = vadd.f32 0.05243302, %v6837_v33  ;;  %v6849_v54 = vadd.f32 0.112945676, %v6848_v7  ;;  %v7978_v55 = vadd.f32 %v7946_v0, %v16577_v6  ;;  %v4624_v60 = vmul.f32 %v14285_v40, %v4623_v62  ;;  %v4943_v7 = vpop.f32.mrf.mxu2 }
 0x620   : > { %v14391_v5 = vadd.f32 1.0, %v6812_v50  ;;  %v5535_v33 = vadd.f32 0.00028619796, %v5534_v37  ;;  %v6801_v18 = vmul.f32 %v6800_v63, %v14309_v31  ;;  %v4642_v58 = vmul.f32 0.5, %v4641_v46 }
 0x621   : > { %v6850_v4 = vmul.f32 %v6849_v54, %v14341_v56  ;;  %v6839_v27 = vmul.f32 %v6838_v10, %v14341_v56  ;;  %8010 = vst [vmem:[%s14240_s25 + $0x18] sm:$0xff] %v7978_v55  ;;  %v4844_v3 = vpack.c.bf16 %v4806_v12, %v4805_v1  ;;  %v14410_v57 = vmul.f32 0.5, %v14271_v47 }
 0x622   : > { %8728 = vrcp.f32 %v14391_v5  ;;  %v4633_v41 = vsub.f32 1.5, %v4632_v29  ;;  %v4269_v10 = vmul.f32 %v14398_v21, %v14398_v21  ;;  %v14416_v8 = vadd.f32 %v4940_v44, %v13136_v23 }
 0x623   : > { %v6851_v51 = vadd.f32 0.4994258, %v6850_v4  ;;  %v6840_v54 = vadd.f32 0.18741608, %v6839_v27  ;;  %4957 = vmatmul.bf16.gmra.mxu2 %v4844_v3  ;;  %v4206_v31 = vmul.f32 %v4174_v11, %v8928_v13  ;;  %v4360_v0 = vmul.f32 %v4322_v61, %v8928_v13 }
 0x624   : > { %v5536_v47 = vmul.f32 %v5535_v33, %v14378_v36  ;;  %4331 = vadd.xlane.f32.xlu0 %v4269_v10  ;;  %v14425_v63 = vadd.f32 %v4943_v7, %v13136_v23  ;;  %v6802_v4 = vadd.f32 1.1283791, %v6801_v18  ;;  %v4643_v46 = vsub.f32 1.5, %v4642_v58 }
 0x625   : > { %v6852_v50 = vmul.f32 %v6851_v51, %v14341_v56  ;;  %v14428_v44 = vsub.f32 %v13849_v32, %v4206_v31  ;;  %v14430_v12 = vadd.f32 1e-05, %v4360_v0  ;;  %v6823_v29 = vand.u32 2147483647, %v14391_v5 }
 0x626   : > { %v4634_v27 = vmul.f32 %v14347_v24, %v4633_v41  ;;  %v6825_v1 = vand.u32 2147483648, %v14391_v5  ;;  %v6841_v11 = vmul.f32 %v6840_v54, %v14341_v56  ;;  %v14447_v51 = vmul.f32 0.70710677, %v14416_v8  ;;  %v4326_v54 = vpop.xlane.xlu0 %4325 }
 0x627   : > { %v14421_v62 = vadd.f32 1.0, %v6852_v50  ;;  %v4628_v15 = vsel %vm14436_vm10, %v14285_v40, %v4624_v60  ;;  %v4270_v7 = vmul.f32 %v14428_v44, %v14428_v44  ;;  %v14455_v61 = vmul.f32 0.70710677, %v14425_v63 }
 0x628   : > { %v8729_v37 = vpop.eup %8728  ;;  %v6803_v18 = vmul.f32 %v6802_v4, %v14280_v38  ;;  %vm6819_vm11 = vweird.f32 %v14391_v5  ;;  %v14464_v56 = vadd.f32 0.0036580483, %v5536_v47  ;;  %v14467_v40 = vmul.f32 %v14355_v25, %v4643_v46  ;;  %v4945_v38 = vpop.f32.mrf.mxu2 }
 0x629   : > { %v6815_v55 = vmul.f32 %v8729_v37, %v14391_v5  ;;  %8730 = vrcp.f32 %v14421_v62  ;;  %vm6820_vm8 = vweird.f32 %v8729_v37  ;;  %4333 = vadd.xlane.f32.xlu1 %v4270_v7  ;;  %v4638_v58 = vsel %vm4637_vm12, %v14347_v24, %v4634_v27  ;;  %v4324_v7 = vpop.xlane.xlu2 %4323 }
 0x62a   : > { %8732 = vrsqrt.f32 %v14430_v12  ;;  %v4741_v3 = vmul.f32 %v4628_v15, %v13740_v52  ;;  %vm14471_vm14 = vcmp.eq.f32.partialorder %v6823_v29, 8.507059e+37  ;;  %v6826_v50 = vor.u32 1.1754944e-38, %v6825_v1  ;;  %vm6821_vm15 = vmor %vm6819_vm11, %vm6820_vm8 }
 0x62b   : > { %v6816_v33 = vsub.f32 1.0, %v6815_v55  ;;  %v5572_v42 = vmul.f32 %v14447_v51, %v14447_v51  ;;  %v4742_v10 = vmul.f32 %v4638_v58, %v13789_v43  ;;  %v6842_v47 = vadd.f32 1.1283791, %v6841_v11 }
 0x62c   : > { %v5612_v24 = vmul.f32 %v14455_v61, %v14455_v61  ;;  %v4774_v52 = vmul.f32 %v12466_v22, %v4741_v3  ;;  %vm6859_vm0 = vweird.f32 %v14421_v62  ;;  %v14489_v46 = vadd.f32 %v4945_v38, %v13136_v23 }
 0x62d   : > { %v6817_v60 = vmul.f32 %v8729_v37, %v6816_v33  ;;  %v4775_v43 = vmul.f32 %v12466_v22, %v4742_v10  ;;  %v6863_v29 = vand.u32 2147483647, %v14421_v62  ;;  %v6865_v27 = vand.u32 2147483648, %v14421_v62 }
 0x62e   : > { %v4362_v5 = vmul.f32 %v4326_v54, %v8928_v13  ;;  %v14499_v15 = vmin.f32 %v5572_v42, 16.0  ;;  %v4807_v58 = vadd.f32 %v12470_v2, %v4774_v52  ;;  %vm4655_vm7 = vweird.f32 %v14430_v12 }
 0x62f   : > { %v8731_v31 = vpop.eup %8730  ;;  %v6818_v0 = vadd.f32 %v8729_v37, %v6817_v60  ;;  %v4808_v3 = vadd.f32 %v12470_v2, %v4775_v43  ;;  %vm6864_vm4 = vcmp.eq.f32.partialorder %v6863_v29, 8.507059e+37  ;;  %v6572_v9 = vmul.f32 0.5, %v14314_v20 }
 0x630   : > { %v6855_v4 = vmul.f32 %v8731_v31, %v14421_v62  ;;  %v14491_v6 = vpop.eup %8732  ;;  %vm6860_vm2 = vweird.f32 %v8731_v31  ;;  %v14511_v54 = vadd.f32 1e-05, %v4362_v5  ;;  %v4948_v43 = vpop.f32.mrf.mxu2 }
 0x631   : > { %v6822_v55 = vsel %vm6821_vm15, %v8729_v37, %v6818_v0  ;;  %v4650_v33 = vmul.f32 %v14491_v6, %v14430_v12  ;;  %v14503_v37 = vmin.f32 %v5612_v24, 16.0  ;;  %v4845_v10 = vpack.c.bf16 %v4808_v3, %v4807_v58  ;;  %vm6861_vm3 = vmor %vm6859_vm0, %vm6860_vm2 }
 0x632   : > { %v6827_v1 = vsel %vm14471_vm14, %v6826_v50, %v6822_v55  ;;  %v6856_v11 = vsub.f32 1.0, %v6855_v4  ;;  %v14509_v50 = vmul.f32 0.70710677, %v14489_v46  ;;  %v4361_v0 = vmul.f32 %v4324_v7, %v8928_v13 }
 0x633   : > { %v6828_v60 = vmul.f32 %v6827_v1, %v6803_v18  ;;  %v4651_v41 = vmul.f32 %v14491_v6, %v4650_v33  ;;  %v5574_v24 = vmul.f32 2.1237322e-06, %v14499_v15  ;;  %v6843_v1 = vmul.f32 %v6842_v47, %v14324_v35  ;;  %4962 = vmatmul.bf16.gmra.mxu2 %v4845_v10 }
 0x634   : > { %v6857_v38 = vmul.f32 %v8731_v31, %v6856_v11  ;;  %v5652_v52 = vmul.f32 %v14509_v50, %v14509_v50  ;;  %v6866_v11 = vor.u32 1.1754944e-38, %v6865_v27  ;;  %8734 = vrsqrt.f32 %v14511_v54 }
 0x635   : > { %v8381_v42 = vclamps-f32 %v6828_v60, 1.0  ;;  %v4652_v4 = vmul.f32 0.5, %v4651_v41  ;;  %vm4656_vm5 = vweird.f32 %v14491_v6  ;;  %v14525_v3 = vadd.f32 1e-05, %v4361_v0 }
 0x636   : > { %v6858_v18 = vadd.f32 %v8731_v31, %v6857_v38  ;;  %v14521_v7 = vmin.f32 %v5652_v52, 16.0  ;;  %v5575_v62 = vadd.f32 0.00028619796, %v5574_v24  ;;  %v5614_v47 = vmul.f32 2.1237322e-06, %v14503_v37  ;;  %v16582_v38 = vld [vmem:[#allocation14_spill] sm:$0xff]  ;;  %vm4657_vm9 = vmor %vm4655_vm7, %vm4656_vm5 }
 0x637   : > { %v7915_v55 = vadd.f32 1.0, %v8381_v42  ;;  %v4653_v33 = vsub.f32 1.5, %v4652_v4  ;;  %8736 = vrsqrt.f32 %v14525_v3  ;;  %v4648_v41 = vsel %vm14534_vm6, %v14355_v25, %v14467_v40 }
 0x638   : > { %v6862_v5 = vsel %vm6861_vm3, %v8731_v31, %v6858_v18  ;;  %v5654_v42 = vmul.f32 2.1237322e-06, %v14521_v7  ;;  %v5538_v0 = vmul.f32 %v14464_v56, %v14378_v36  ;;  %v14553_v18 = vadd.f32 %v4948_v43, %v13136_v23 }
 0x639   : > { %v7947_v60 = vmul.f32 %v7915_v55, %v14410_v57  ;;  %v6867_v58 = vsel %vm6864_vm4, %v6866_v11, %v6862_v5  ;;  %v4654_v27 = vmul.f32 %v14491_v6, %v4653_v33  ;;  %v5576_v4 = vmul.f32 %v5575_v62, %v14499_v15  ;;  %v16585_v5 = vld [vmem:[#allocation15_spill] sm:$0xff] }
 0x63a   : > { %v6868_v35 = vmul.f32 %v6867_v58, %v6843_v1  ;;  %v14545_v10 = vpop.eup %8734  ;;  %v5615_v25 = vadd.f32 0.00028619796, %v5614_v47  ;;  %v4743_v52 = vmul.f32 %v4648_v41, %v13820_v26  ;;  %v5655_v1 = vadd.f32 0.00028619796, %v5654_v42 }
 0x63b   : > { %v7979_v31 = vadd.f32 %v7947_v60, %v16582_v38  ;;  %v4658_v12 = vsel %vm4657_vm9, %v14491_v6, %v4654_v27  ;;  %v4670_v40 = vmul.f32 %v14545_v10, %v14511_v54  ;;  %v4950_v6 = vpop.f32.mrf.mxu2  ;;  %v14564_v43 = vmul.f32 0.70710677, %v14553_v18 }
 0x63c   : > { %v8382_v29 = vclamps-f32 %v6868_v35, 1.0  ;;  %v4744_v20 = vmul.f32 %v4658_v12, %v13875_v17  ;;  %v5539_v60 = vadd.f32 0.05243302, %v5538_v0  ;;  %v5577_v58 = vadd.f32 0.0036580483, %v5576_v4 }
 0x63d   : > { %8011 = vst [vmem:[%s14240_s25 + $0x20] sm:$0xff] %v7979_v31  ;;  %v4671_v56 = vmul.f32 %v14545_v10, %v4670_v40  ;;  %v14561_v11 = vpop.eup %8736  ;;  %v5616_v35 = vmul.f32 %v5615_v25, %v14503_v37  ;;  %v5692_v17 = vmul.f32 %v14564_v43, %v14564_v43  ;;  %v5656_v47 = vmul.f32 %v5655_v1, %v14521_v7 }
 0x63e   : > { %v7916_v24 = vadd.f32 1.0, %v8382_v29  ;;  %v4660_v26 = vmul.f32 %v14561_v11, %v14525_v3  ;;  %v4776_v27 = vmul.f32 %v12466_v22, %v4743_v52  ;;  %v4777_v38 = vmul.f32 %v12466_v22, %v4744_v20 }
 0x63f   : > { %v4672_v62 = vmul.f32 0.5, %v4671_v56  ;;  %v14577_v57 = vmin.f32 %v5692_v17, 16.0  ;;  %v14580_v29 = vadd.f32 %v4950_v6, %v13136_v23  ;;  %v5540_v41 = vmul.f32 %v5539_v60, %v14378_v36 }
 0x640   : > { %v7948_v55 = vmul.f32 %v7916_v24, %v6572_v9  ;;  %v4661_v31 = vmul.f32 %v14561_v11, %v4660_v26  ;;  %v5578_v42 = vmul.f32 %v5577_v58, %v14499_v15  ;;  %v5617_v9 = vadd.f32 0.0036580483, %v5616_v35 }
 0x641   : > { %v4810_v0 = vadd.f32 %v12470_v2, %v4777_v38  ;;  %v4673_v12 = vsub.f32 1.5, %v4672_v62  ;;  %v4809_v4 = vadd.f32 %v12470_v2, %v4776_v27  ;;  %v14587_v25 = vmul.f32 0.70710677, %v14580_v29 }
 0x642   : > { %v7980_v33 = vadd.f32 %v7948_v55, %v16585_v5  ;;  %v4662_v24 = vmul.f32 0.5, %v4661_v31  ;;  %v5657_v40 = vadd.f32 0.0036580483, %v5656_v47  ;;  %v5694_v52 = vmul.f32 2.1237322e-06, %v14577_v57 }
 0x643   : > { %v4846_v20 = vpack.c.bf16 %v4810_v0, %v4809_v4  ;;  %v5541_v1 = vadd.f32 0.18741608, %v5540_v41  ;;  %v5579_v56 = vadd.f32 0.05243302, %v5578_v42  ;;  %v5618_v6 = vmul.f32 %v5617_v9, %v14503_v37 }
 0x644   : > { %8012 = vst [vmem:[%s14240_s25 + $0x28] sm:$0xff] %v7980_v33  ;;  %v4663_v55 = vsub.f32 1.5, %v4662_v24  ;;  %v5732_v5 = vmul.f32 %v14587_v25, %v14587_v25  ;;  %v4953_v33 = vpop.f32.mrf.mxu2  ;;  %v4674_v60 = vmul.f32 %v14545_v10, %v4673_v12  ;;  %vm4675_vm10 = vweird.f32 %v14511_v54  ;;  %v4328_v54 = vpop.xlane.xlu1 %4327 }
 0x645   : > { %vm4676_vm11 = vweird.f32 %v14545_v10  ;;  %4967 = vmatmul.bf16.gmra.mxu2 %v4846_v20  ;;  %v5545_v58 = vmul.f32 3.8918573e-05, %v14378_v36  ;;  %v5658_v35 = vmul.f32 %v5657_v40, %v14521_v7  ;;  %v5695_v62 = vadd.f32 0.00028619796, %v5694_v52 }
 0x646   : > { %v14598_v26 = vmin.f32 %v5732_v5, 16.0  ;;  %v5585_v17 = vmul.f32 3.8918573e-05, %v14499_v15  ;;  %v4664_v47 = vmul.f32 %v14561_v11, %v4663_v55  ;;  %vm4666_vm12 = vweird.f32 %v14561_v11  ;;  %vm14612_vm8 = vmor %vm4675_vm10, %vm4676_vm11 }
 0x647   : > { %v14604_v27 = vadd.f32 %v4953_v33, %v13136_v23  ;;  %v5546_v38 = vadd.f32 0.001143296, %v5545_v58  ;;  %v14607_v31 = vmul.f32 %v5541_v1, %v14378_v36  ;;  %v5580_v41 = vmul.f32 %v5579_v56, %v14499_v15 }
 0x648   : > { %v5619_v42 = vadd.f32 0.05243302, %v5618_v6  ;;  %v5734_v0 = vmul.f32 2.1237322e-06, %v14598_v26  ;;  %v4678_v12 = vsel %vm14612_vm8, %v14545_v10, %v4674_v60  ;;  %vm4665_vm14 = vweird.f32 %v14525_v3 }
 0x649   : > { %v5547_v24 = vmul.f32 %v5546_v38, %v14378_v36  ;;  %v5586_v4 = vadd.f32 0.001143296, %v5585_v17  ;;  %v5659_v40 = vadd.f32 0.05243302, %v5658_v35  ;;  %vm14622_vm15 = vmor %vm4665_vm14, %vm4666_vm12  ;;  %v5696_v55 = vmul.f32 %v5695_v62, %v14577_v57 }
 0x64a   : > { %v5625_v20 = vmul.f32 3.8918573e-05, %v14503_v37  ;;  %v5665_v1 = vmul.f32 3.8918573e-05, %v14521_v7  ;;  %v4668_v10 = vsel %vm14622_vm15, %v14561_v11, %v4664_v47  ;;  %v14633_v3 = vmul.f32 0.70710677, %v14604_v27 }
 0x64b   : > { %v5548_v56 = vadd.f32 0.014752088, %v5547_v24  ;;  %v5587_v6 = vmul.f32 %v5586_v4, %v14499_v15  ;;  %v4746_v5 = vmul.f32 %v4678_v12, %v13890_v45  ;;  %v5735_v33 = vadd.f32 0.00028619796, %v5734_v0 }
 0x64c   : > { %v5626_v60 = vadd.f32 0.001143296, %v5625_v20  ;;  %v5666_v58 = vadd.f32 0.001143296, %v5665_v1  ;;  %v5581_v35 = vadd.f32 0.18741608, %v5580_v41  ;;  %v5620_v62 = vmul.f32 %v5619_v42, %v14503_v37 }
 0x64d   : > { %v4363_v17 = vmul.f32 %v4328_v54, %v8928_v13  ;;  %v5549_v38 = vmul.f32 %v5548_v56, %v14378_v36  ;;  %v5660_v11 = vmul.f32 %v5659_v40, %v14521_v7  ;;  %v4745_v47 = vmul.f32 %v4668_v10, %v13908_v53 }
 0x64e   : > { %v5588_v9 = vadd.f32 0.014752088, %v5587_v6  ;;  %v5627_v24 = vmul.f32 %v5626_v60, %v14503_v37  ;;  %v5697_v4 = vadd.f32 0.0036580483, %v5696_v55  ;;  %v5772_v45 = vmul.f32 %v14633_v3, %v14633_v3 }
 0x64f   : > { %v5550_v0 = vadd.f32 0.112945676, %v5549_v38  ;;  %v5667_v41 = vmul.f32 %v5666_v58, %v14521_v7  ;;  %v5736_v42 = vmul.f32 %v5735_v33, %v14598_v26  ;;  %v4779_v52 = vmul.f32 %v12466_v22, %v4746_v5 }
 0x650   : > { %v5589_v12 = vmul.f32 %v5588_v9, %v14499_v15  ;;  %v5628_v54 = vadd.f32 0.014752088, %v5627_v24  ;;  %v5621_v40 = vadd.f32 0.18741608, %v5620_v62  ;;  %v14649_v20 = vadd.f32 1e-05, %v4363_v17 }
 0x651   : > { %v5551_v53 = vmul.f32 %v5550_v0, %v14378_v36  ;;  %v5668_v1 = vadd.f32 0.014752088, %v5667_v41  ;;  %v5661_v55 = vadd.f32 0.18741608, %v5660_v11  ;;  %v4778_v56 = vmul.f32 %v12466_v22, %v4745_v47 }
 0x652   : > { %v5590_v10 = vadd.f32 0.112945676, %v5589_v12  ;;  %v5629_v6 = vmul.f32 %v5628_v54, %v14503_v37  ;;  %v5698_v60 = vmul.f32 %v5697_v4, %v14577_v57  ;;  %v14655_v33 = vmin.f32 %v5772_v45, 16.0 }
 0x653   : > { %v5552_v58 = vadd.f32 0.4994258, %v5551_v53  ;;  %v5669_v5 = vmul.f32 %v5668_v1, %v14521_v7  ;;  %v5737_v38 = vadd.f32 0.0036580483, %v5736_v42  ;;  %v4811_v17 = vadd.f32 %v12470_v2, %v4778_v56 }
 0x654   : > { %v5591_v62 = vmul.f32 %v5590_v10, %v14499_v15  ;;  %v4812_v9 = vadd.f32 %v12470_v2, %v4779_v52  ;;  %v5582_v11 = vmul.f32 %v5581_v35, %v14499_v15  ;;  %v5622_v47 = vmul.f32 %v5621_v40, %v14503_v37  ;;  %v6502_v52 = vpop.f32.mrf.mxu3 }
 0x655   : > { %8738 = vrsqrt.f32 %v14649_v20  ;;  %v5553_v24 = vmul.f32 %v5552_v58, %v14378_v36  ;;  %v5630_v0 = vadd.f32 0.112945676, %v5629_v6  ;;  %v5670_v41 = vadd.f32 0.112945676, %v5669_v5 }
 0x656   : > { %v5592_v4 = vadd.f32 0.4994258, %v5591_v62  ;;  %v4847_v45 = vpack.c.bf16 %v4812_v9, %v4811_v17  ;;  %v5662_v42 = vmul.f32 %v5661_v55, %v14521_v7  ;;  %v5699_v12 = vadd.f32 0.05243302, %v5698_v60 }
 0x657   : > { %v5774_v54 = vmul.f32 2.1237322e-06, %v14655_v33  ;;  %v14667_v53 = vadd.f32 1.0, %v5553_v24  ;;  %v5543_v35 = vadd.f32 1.1283791, %v14607_v31  ;;  %v5738_v40 = vmul.f32 %v5737_v38, %v14598_v26 }
 0x658   : > { %v5593_v1 = vmul.f32 %v5592_v4, %v14499_v15  ;;  %4972 = vmatmul.bf16.gmra.mxu2 %v4847_v45  ;;  %v5583_v36 = vadd.f32 1.1283791, %v5582_v11  ;;  %v5623_v10 = vadd.f32 1.1283791, %v5622_v47  ;;  %v14676_v55 = vadd.f32 %v6502_v52, %v14045_v19  ;;  %v4955_v11 = vpop.f32.mrf.mxu2 }
 0x659   : > { %8740 = vrcp.f32 %v14667_v53  ;;  %v5631_v6 = vmul.f32 %v5630_v0, %v14503_v37  ;;  %v5671_v60 = vmul.f32 %v5670_v41, %v14521_v7  ;;  %v14683_v31 = vmul.f32 0.5, %v14317_v34 }
 0x65a   : > { %v14673_v56 = vadd.f32 1.0, %v5593_v1  ;;  %v5663_v15 = vadd.f32 1.1283791, %v5662_v42  ;;  %v5700_v5 = vmul.f32 %v5699_v12, %v14577_v57  ;;  %v5775_v38 = vadd.f32 0.00028619796, %v5774_v54 }
 0x65b   : > { %v14680_v58 = vpop.eup %8738  ;;  %v5544_v62 = vmul.f32 %v5543_v35, %v14335_v49  ;;  %v14688_v17 = vmul.f32 0.5, %v14416_v8  ;;  %v5739_v9 = vadd.f32 0.05243302, %v5738_v40  ;;  %v14692_v47 = vmul.f32 %v5583_v36, %v14447_v51 }
 0x65c   : > { %8742 = vrcp.f32 %v14673_v56  ;;  %v14695_v24 = vmul.f32 0.5, %v14425_v63  ;;  %v14698_v34 = vmul.f32 %v5623_v10, %v14455_v61  ;;  %v14701_v4 = vmul.f32 0.5, %v14489_v46 }
 0x65d   : > { %v14705_v49 = vmul.f32 %v14680_v58, %v14649_v20  ;;  %v14708_v8 = vmul.f32 0.70710677, %v14676_v55  ;;  %v5632_v45 = vadd.f32 0.4994258, %v5631_v6  ;;  %v5672_v0 = vadd.f32 0.4994258, %v5671_v60 }
 0x65e   : > { %v14711_v41 = vmul.f32 %v5663_v15, %v14509_v50  ;;  %v14713_v63 = vadd.f32 0.18741608, %v5700_v5  ;;  %v14716_v61 = vmul.f32 %v5775_v38, %v14655_v33  ;;  %v14719_v46 = vadd.f32 %v4955_v11, %v13136_v23 }
 0x65f   : > { %v8741_v51 = vpop.eup %8740  ;;  %v14722_v42 = vmul.f32 %v5739_v9, %v14598_v26  ;;  %v6871_v54 = vmul.f32 %v14708_v8, %v14708_v8  ;;  %v5633_v52 = vmul.f32 %v5632_v45, %v14503_v37  ;;  %vm5560_vm0 = vweird.f32 %v14667_v53 }
 0x660   : > { %v5556_v12 = vmul.f32 %v8741_v51, %v14667_v53  ;;  %v5564_v50 = vand.u32 2147483647, %v14667_v53  ;;  %v5673_v35 = vmul.f32 %v5672_v0, %v14521_v7  ;;  %v5705_v40 = vmul.f32 3.8918573e-05, %v14577_v57 }
 0x661   : > { %v5566_v10 = vand.u32 2147483648, %v14667_v53  ;;  %v14733_v6 = vmin.f32 %v6871_v54, 16.0  ;;  %v14735_v60 = vadd.f32 1.0, %v5633_v52  ;;  %vm5561_vm13 = vweird.f32 %v8741_v51 }
 0x662   : > { %v8743_v1 = vpop.eup %8742  ;;  %v5557_v36 = vsub.f32 1.0, %v5556_v12  ;;  %v14739_v37 = vmul.f32 0.70710677, %v14719_v46  ;;  %v14741_v5 = vadd.f32 1.0, %v5673_v35  ;;  %vm14746_vm1 = vcmp.eq.f32.partialorder %v5564_v50, 8.507059e+37  ;;  %vm5562_vm2 = vmor %vm5560_vm0, %vm5561_vm13 }
 0x663   : > { %v5596_v15 = vmul.f32 %v8743_v1, %v14673_v56  ;;  %v6873_v7 = vmul.f32 2.1237322e-06, %v14733_v6  ;;  %v6884_v9 = vmul.f32 3.8918573e-05, %v14733_v6  ;;  %8744 = vrcp.f32 %v14735_v60 }
 0x664   : > { %v5558_v38 = vmul.f32 %v8741_v51, %v5557_v36  ;;  %v5604_v0 = vand.u32 2147483647, %v14673_v56  ;;  %v5606_v12 = vand.u32 2147483648, %v14673_v56  ;;  %v5567_v52 = vor.u32 1.1754944e-38, %v5566_v10 }
 0x665   : > { %v5597_v45 = vsub.f32 1.0, %v5596_v15  ;;  %v6874_v35 = vadd.f32 0.00028619796, %v6873_v7  ;;  %v6885_v32 = vadd.f32 0.001143296, %v6884_v9  ;;  %vm5600_vm3 = vweird.f32 %v14673_v56 }
 0x666   : > { %v5559_v54 = vadd.f32 %v8741_v51, %v5558_v38  ;;  %vm5601_vm4 = vweird.f32 %v8743_v1  ;;  %8746 = vrcp.f32 %v14741_v5  ;;  %v14759_v15 = vmul.f32 %v14739_v37, %v14739_v37 }
 0x667   : > { %v5598_v36 = vmul.f32 %v8743_v1, %v5597_v45  ;;  %v6875_v38 = vmul.f32 %v6874_v35, %v14733_v6  ;;  %v6886_v10 = vmul.f32 %v6885_v32, %v14733_v6  ;;  %vm5605_vm5 = vcmp.eq.f32.partialorder %v5604_v0, 8.507059e+37  ;;  %vm5602_vm6 = vmor %vm5600_vm3, %vm5601_vm4 }
 0x668   : > { %v5563_v50 = vsel %vm5562_vm2, %v8741_v51, %v5559_v54  ;;  %v5607_v9 = vor.u32 1.1754944e-38, %v5606_v12  ;;  %v5646_v51 = vand.u32 2147483648, %v14735_v60  ;;  %v5706_v48 = vadd.f32 0.001143296, %v5705_v40 }
 0x669   : > { %v5568_v7 = vsel %vm14746_vm1, %v5567_v52, %v5563_v50  ;;  %v5599_v53 = vadd.f32 %v8743_v1, %v5598_v36  ;;  %v8745_v45 = vpop.eup %8744  ;;  %v6876_v59 = vadd.f32 0.0036580483, %v6875_v38  ;;  %v6887_v28 = vadd.f32 0.014752088, %v6886_v10 }
 0x66a   : > { %v5569_v56 = vmul.f32 %v5568_v7, %v5544_v62  ;;  %v5636_v39 = vmul.f32 %v8745_v45, %v14735_v60  ;;  %v5745_v35 = vmul.f32 3.8918573e-05, %v14598_v26  ;;  %vm5640_vm7 = vweird.f32 %v14735_v60 }
 0x66b   : > { %v5603_v54 = vsel %vm5602_vm6, %v8743_v1, %v5599_v53  ;;  %v6877_v11 = vmul.f32 %v6876_v59, %v14733_v6  ;;  %v6888_v0 = vmul.f32 %v6887_v28, %v14733_v6  ;;  %v5644_v36 = vand.u32 2147483647, %v14735_v60  ;;  %v6504_v59 = vpop.f32.mrf.mxu3 }
 0x66c   : > { %v8309_v32 = vclamps-f32 %v5569_v56, 1.0  ;;  %v5608_v14 = vsel %vm5605_vm5, %v5607_v9, %v5603_v54  ;;  %v8747_v12 = vpop.eup %8746  ;;  %v5637_v52 = vsub.f32 1.0, %v5636_v39  ;;  %v5647_v38 = vor.u32 1.1754944e-38, %v5646_v51 }
 0x66d   : > { %v5609_v62 = vmul.f32 %v5608_v14, %v14692_v47  ;;  %v6878_v1 = vadd.f32 0.05243302, %v6877_v11  ;;  %v6889_v50 = vadd.f32 0.112945676, %v6888_v0  ;;  %v5676_v40 = vmul.f32 %v8747_v12, %v14741_v5 }
 0x66e   : > { %v6344_v7 = vadd.f32 1.0, %v8309_v32  ;;  %v5638_v53 = vmul.f32 %v8745_v45, %v5637_v52  ;;  %vm5641_vm9 = vweird.f32 %v8745_v45  ;;  %v5684_v39 = vand.u32 2147483647, %v14741_v5 }
 0x66f   : > { %v8310_v10 = vclamps-f32 %v5609_v62, 1.0  ;;  %v6879_v28 = vmul.f32 %v6878_v1, %v14733_v6  ;;  %v6890_v9 = vmul.f32 %v6889_v50, %v14733_v6  ;;  %v5677_v14 = vsub.f32 1.0, %v5676_v40  ;;  %vm5642_vm11 = vmor %vm5640_vm7, %vm5641_vm9 }
 0x670   : > { %v5639_v56 = vadd.f32 %v8745_v45, %v5638_v53  ;;  %vm5681_vm10 = vweird.f32 %v8747_v12  ;;  %v5686_v54 = vand.u32 2147483648, %v14741_v5  ;;  %v14781_v0 = vadd.f32 %v6504_v59, %v14045_v19 }
 0x671   : > { %v6345_v47 = vadd.f32 1.0, %v8310_v10  ;;  %v6880_v51 = vadd.f32 0.18741608, %v6879_v28  ;;  %v6891_v11 = vadd.f32 0.4994258, %v6890_v9  ;;  %v5678_v32 = vmul.f32 %v8747_v12, %v5677_v14 }
 0x672   : > { %v6376_v62 = vmul.f32 %v6344_v7, %v14683_v31  ;;  %v5643_v1 = vsel %vm5642_vm11, %v8745_v45, %v5639_v56  ;;  %vm5645_vm12 = vcmp.eq.f32.partialorder %v5644_v36, 8.507059e+37  ;;  %vm5680_vm8 = vweird.f32 %v14741_v5 }
 0x673   : > { %v6377_v52 = vmul.f32 %v6345_v47, %v14688_v17  ;;  %v6892_v50 = vmul.f32 %v6891_v11, %v14733_v6  ;;  %v5648_v40 = vsel %vm5645_vm12, %v5647_v38, %v5643_v1  ;;  %v5679_v10 = vadd.f32 %v8747_v12, %v5678_v32  ;;  %vm5682_vm14 = vmor %vm5680_vm8, %vm5681_vm10 }
 0x674   : > { %v5649_v60 = vmul.f32 %v5648_v40, %v14698_v34  ;;  %vm5685_vm15 = vcmp.eq.f32.partialorder %v5684_v39, 8.507059e+37  ;;  %v5687_v59 = vor.u32 1.1754944e-38, %v5686_v54  ;;  %v6881_v28 = vmul.f32 %v6880_v51, %v14733_v6 }
 0x675   : > { %v6419_v53 = vpack.c.bf16 %v6377_v52, %v6376_v62  ;;  %v14790_v31 = vadd.f32 1.0, %v6892_v50  ;;  %v5683_v17 = vsel %vm5682_vm14, %v8747_v12, %v5679_v10  ;;  %v14793_v45 = vmul.f32 0.70710677, %v14781_v0 }
 0x676   : > { %v5702_v36 = vmul.f32 %v14713_v63, %v14577_v57  ;;  %v5688_v5 = vsel %vm5685_vm15, %v5687_v59, %v5683_v17  ;;  %v5707_v38 = vmul.f32 %v5706_v48, %v14577_v57  ;;  %v5746_v34 = vadd.f32 0.001143296, %v5745_v35 }
 0x677   : > { %6516 = vmatmul.bf16.gmra.mxu3 %v6419_v53  ;;  %v14799_v7 = vmul.f32 0.5, %v14553_v18  ;;  %v14802_v9 = vmul.f32 0.5, %v14580_v29  ;;  %v5741_v6 = vadd.f32 0.18741608, %v14722_v42  ;;  %8748 = vrcp.f32 %v14790_v31 }
 0x678   : > { %v14808_v12 = vmul.f32 %v14680_v58, %v14705_v49  ;;  %v8311_v63 = vclamps-f32 %v5649_v60, 1.0  ;;  %v5689_v14 = vmul.f32 %v5688_v5, %v14711_v41  ;;  %v6911_v48 = vmul.f32 %v14793_v45, %v14793_v45 }
 0x679   : > { %v14814_v18 = vmin.f32 %v14759_v15, 16.0  ;;  %v6882_v35 = vadd.f32 1.1283791, %v6881_v28  ;;  %v5708_v29 = vadd.f32 0.014752088, %v5707_v38  ;;  %v5747_v39 = vmul.f32 %v5746_v34, %v14598_v26 }
 0x67a   : > { %v14817_v42 = vadd.f32 1.1283791, %v5702_v36  ;;  %v14820_v47 = vadd.f32 0.0036580483, %v14716_v61  ;;  %v8312_v49 = vclamps-f32 %v5689_v14, 1.0  ;;  %v14822_v56 = vmin.f32 %v6911_v48, 16.0  ;;  %v6507_v48 = vpop.f32.mrf.mxu3 }
 0x67b   : > { %v14825_v41 = vmul.f32 %v5741_v6, %v14598_v26  ;;  %v5709_v54 = vmul.f32 %v5708_v29, %v14577_v57  ;;  %v5748_v51 = vadd.f32 0.014752088, %v5747_v39  ;;  %v5785_v15 = vmul.f32 3.8918573e-05, %v14655_v33 }
 0x67c   : > { %v6346_v11 = vadd.f32 1.0, %v8311_v63  ;;  %v6347_v32 = vadd.f32 1.0, %v8312_v49  ;;  %v6913_v62 = vmul.f32 2.1237322e-06, %v14822_v56  ;;  %v6924_v52 = vmul.f32 3.8918573e-05, %v14822_v56 }
 0x67d   : > { %v8749_v1 = vpop.eup %8748  ;;  %v5814_v61 = vmul.f32 2.1237322e-06, %v14814_v18  ;;  %v6883_v50 = vmul.f32 %v6882_v35, %v14708_v8  ;;  %v5710_v40 = vadd.f32 0.112945676, %v5709_v54  ;;  %v5749_v10 = vmul.f32 %v5748_v51, %v14598_v26 }
 0x67e   : > { %v6895_v53 = vmul.f32 %v8749_v1, %v14790_v31  ;;  %v6903_v60 = vand.u32 2147483647, %v14790_v31  ;;  %v6379_v59 = vmul.f32 %v6347_v32, %v14701_v4  ;;  %v6914_v28 = vadd.f32 0.00028619796, %v6913_v62 }
 0x67f   : > { %v6925_v17 = vadd.f32 0.001143296, %v6924_v52  ;;  %v5711_v36 = vmul.f32 %v5710_v40, %v14577_v57  ;;  %v5750_v5 = vadd.f32 0.112945676, %v5749_v10  ;;  %v5786_v38 = vadd.f32 0.001143296, %v5785_v15 }
 0x680   : > { %v6896_v34 = vsub.f32 1.0, %v6895_v53  ;;  %v6905_v6 = vand.u32 2147483648, %v14790_v31  ;;  %v6378_v8 = vmul.f32 %v6346_v11, %v14695_v24  ;;  %v6915_v63 = vmul.f32 %v6914_v28, %v14822_v56 }
 0x681   : > { %vm6900_vm0 = vweird.f32 %v8749_v1  ;;  %v6926_v14 = vmul.f32 %v6925_v17, %v14822_v56  ;;  %v5712_v35 = vadd.f32 0.4994258, %v5711_v36  ;;  %v5751_v4 = vmul.f32 %v5750_v5, %v14598_v26 }
 0x682   : > { %v6897_v29 = vmul.f32 %v8749_v1, %v6896_v34  ;;  %v6420_v39 = vpack.c.bf16 %v6379_v59, %v6378_v8  ;;  %v6916_v49 = vadd.f32 0.0036580483, %v6915_v63  ;;  %v14844_v54 = vadd.f32 %v6507_v48, %v14045_v19 }
 0x683   : > { %v6927_v51 = vadd.f32 0.014752088, %v6926_v14  ;;  %v5713_v15 = vmul.f32 %v5712_v35, %v14577_v57  ;;  %v5752_v32 = vadd.f32 0.4994258, %v5751_v4  ;;  %v5787_v24 = vmul.f32 %v5786_v38, %v14655_v33 }
 0x684   : > { %v6898_v11 = vadd.f32 %v8749_v1, %v6897_v29  ;;  %vm6899_vm13 = vweird.f32 %v14790_v31  ;;  %v6917_v62 = vmul.f32 %v6916_v49, %v14822_v56  ;;  %v14851_v52 = vmul.f32 0.70710677, %v14844_v54 }
 0x685   : > { %vm6901_vm1 = vmor %vm6899_vm13, %vm6900_vm0  ;;  %v6906_v40 = vor.u32 1.1754944e-38, %v6905_v6  ;;  %v6928_v10 = vmul.f32 %v6927_v51, %v14822_v56  ;;  %v14855_v53 = vadd.f32 1.0, %v5713_v15  ;;  %v5753_v57 = vmul.f32 %v5752_v32, %v14598_v26 }
 0x686   : > { %v6902_v59 = vsel %vm6901_vm1, %v8749_v1, %v6898_v11  ;;  %vm6904_vm2 = vcmp.eq.f32.partialorder %v6903_v60, 8.507059e+37  ;;  %v6918_v28 = vadd.f32 0.05243302, %v6917_v62  ;;  %v6951_v31 = vmul.f32 %v14851_v52, %v14851_v52 }
 0x687   : > { %6521 = vmatmul.bf16.gmra.mxu3 %v6420_v39  ;;  %v6907_v17 = vsel %vm6904_vm2, %v6906_v40, %v6902_v59  ;;  %v6929_v36 = vadd.f32 0.112945676, %v6928_v10  ;;  %8750 = vrcp.f32 %v14855_v53  ;;  %v5788_v5 = vadd.f32 0.014752088, %v5787_v24  ;;  %v16592_v59 = vld [vmem:[#allocation19_spill] sm:$0xff] }
 0x688   : > { %v14862_v38 = vmul.f32 0.5, %v14808_v12  ;;  %v6908_v34 = vmul.f32 %v6907_v17, %v6883_v50  ;;  %v6919_v6 = vmul.f32 %v6918_v28, %v14822_v56  ;;  %v14865_v8 = vmin.f32 %v6951_v31, 16.0 }
 0x689   : > { %v5778_v26 = vmul.f32 %v14820_v47, %v14655_v33  ;;  %v5815_v1 = vadd.f32 0.00028619796, %v5814_v61  ;;  %v6930_v60 = vmul.f32 %v6929_v36, %v14822_v56  ;;  %v14870_v63 = vadd.f32 1.0, %v5753_v57 }
 0x68a   : > { %v14874_v14 = vmul.f32 %v14817_v42, %v14564_v43  ;;  %v5743_v12 = vadd.f32 1.1283791, %v14825_v41  ;;  %v8383_v48 = vclamps-f32 %v6908_v34, 1.0  ;;  %v6953_v50 = vmul.f32 2.1237322e-06, %v14865_v8 }
 0x68b   : > { %v6931_v35 = vadd.f32 0.4994258, %v6930_v60  ;;  %v6964_v4 = vmul.f32 3.8918573e-05, %v14865_v8  ;;  %8752 = vrcp.f32 %v14870_v63  ;;  %v5789_v47 = vmul.f32 %v5788_v5, %v14655_v33 }
 0x68c   : > { %v6573_v61 = vmul.f32 0.5, %v14676_v55  ;;  %v7917_v29 = vadd.f32 1.0, %v8383_v48  ;;  %v6920_v39 = vadd.f32 0.18741608, %v6919_v6  ;;  %v6954_v49 = vadd.f32 0.00028619796, %v6953_v50 }
 0x68d   : > { %v8751_v51 = vpop.eup %8750  ;;  %v14882_v43 = vadd.f32 0.05243302, %v5778_v26  ;;  %v5816_v42 = vmul.f32 %v5815_v1, %v14814_v18  ;;  %v6932_v41 = vmul.f32 %v6931_v35, %v14822_v56  ;;  %v6965_v15 = vadd.f32 0.001143296, %v6964_v4 }
 0x68e   : > { %v14887_v32 = vmul.f32 %v5743_v12, %v14587_v25  ;;  %v7949_v24 = vmul.f32 %v7917_v29, %v6573_v61  ;;  %v6955_v11 = vmul.f32 %v6954_v49, %v14865_v8  ;;  %v5716_v55 = vmul.f32 %v8751_v51, %v14855_v53  ;;  %v6509_v12 = vpop.f32.mrf.mxu3 }
 0x68f   : > { %v14891_v62 = vadd.f32 1.0, %v6932_v41  ;;  %v6966_v40 = vmul.f32 %v6965_v15, %v14865_v8  ;;  %v5724_v10 = vand.u32 2147483647, %v14855_v53  ;;  %v5790_v57 = vadd.f32 0.112945676, %v5789_v47 }
 0x690   : > { %v7981_v28 = vadd.f32 %v7949_v24, %v16592_v59  ;;  %v6921_v31 = vmul.f32 %v6920_v39, %v14822_v56  ;;  %v6956_v17 = vadd.f32 0.0036580483, %v6955_v11  ;;  %v5717_v25 = vsub.f32 1.0, %v5716_v55 }
 0x691   : > { %v8753_v36 = vpop.eup %8752  ;;  %v14897_v5 = vadd.f32 0.0036580483, %v5816_v42  ;;  %8754 = vrcp.f32 %v14891_v62  ;;  %v5726_v34 = vand.u32 2147483648, %v14855_v53  ;;  %v5764_v6 = vand.u32 2147483647, %v14870_v63 }
 0x692   : > { %8013 = vst [vmem:[%s14240_s25 + $0x30] sm:$0xff] %v7981_v28  ;;  %v6967_v26 = vadd.f32 0.014752088, %v6966_v40  ;;  %v5718_v1 = vmul.f32 %v8751_v51, %v5717_v25  ;;  %vm5721_vm3 = vweird.f32 %v8751_v51  ;;  %v5756_v60 = vmul.f32 %v8753_v36, %v14870_v63 }
 0x693   : > { %v6957_v56 = vmul.f32 %v6956_v17, %v14865_v8  ;;  %vm5720_vm4 = vweird.f32 %v14855_v53  ;;  %vm14906_vm5 = vcmp.eq.f32.partialorder %v5724_v10, 8.507059e+37  ;;  %v14911_v50 = vmul.f32 %v5790_v57, %v14655_v33 }
 0x694   : > { %v6922_v35 = vadd.f32 1.1283791, %v6921_v31  ;;  %v6968_v4 = vmul.f32 %v6967_v26, %v14865_v8  ;;  %v5719_v47 = vadd.f32 %v8751_v51, %v5718_v1  ;;  %v5757_v61 = vsub.f32 1.0, %v5756_v60  ;;  %vm5722_vm6 = vmor %vm5720_vm4, %vm5721_vm3 }
 0x695   : > { %v5727_v29 = vor.u32 1.1754944e-38, %v5726_v34  ;;  %vm5760_vm7 = vweird.f32 %v14870_v63  ;;  %v5766_v39 = vand.u32 2147483648, %v14870_v63  ;;  %v14917_v53 = vadd.f32 %v6509_v12, %v14045_v19 }
 0x696   : > { %v6969_v49 = vadd.f32 0.112945676, %v6968_v4  ;;  %v5723_v42 = vsel %vm5722_vm6, %v8751_v51, %v5719_v47  ;;  %v5758_v41 = vmul.f32 %v8753_v36, %v5757_v61  ;;  %vm14919_vm9 = vcmp.eq.f32.partialorder %v5764_v6, 8.507059e+37  ;;  %v6512_v61 = vpop.f32.mrf.mxu3 }
 0x697   : > { %v8755_v24 = vpop.eup %8754  ;;  %v6958_v11 = vadd.f32 0.05243302, %v6957_v56  ;;  %v5728_v55 = vsel %vm14906_vm5, %v5727_v29, %v5723_v42  ;;  %vm5761_vm10 = vweird.f32 %v8753_v36  ;;  %v14926_v40 = vmul.f32 0.70710677, %v14917_v53  ;;  %v4330_v56 = vpop.xlane.xlu2 %4329 }
 0x698   : > { %v6923_v10 = vmul.f32 %v6922_v35, %v14793_v45  ;;  %v6935_v57 = vmul.f32 %v8755_v24, %v14891_v62  ;;  %vm6939_vm11 = vweird.f32 %v14891_v62  ;;  %v6970_v51 = vmul.f32 %v6969_v49, %v14865_v8  ;;  %vm5762_vm12 = vmor %vm5760_vm7, %vm5761_vm10 }
 0x699   : > { %v6943_v59 = vand.u32 2147483647, %v14891_v62  ;;  %v5729_v28 = vmul.f32 %v5728_v55, %v14874_v14  ;;  %v5759_v31 = vadd.f32 %v8753_v36, %v5758_v41  ;;  %v6991_v17 = vmul.f32 %v14926_v40, %v14926_v40 }
 0x69a   : > { %v6936_v25 = vsub.f32 1.0, %v6935_v57  ;;  %v6945_v34 = vand.u32 2147483648, %v14891_v62  ;;  %v6971_v6 = vadd.f32 0.4994258, %v6970_v51  ;;  %v5767_v45 = vor.u32 1.1754944e-38, %v5766_v39 }
 0x69b   : > { %v6959_v26 = vmul.f32 %v6958_v11, %v14865_v8  ;;  %v8313_v1 = vclamps-f32 %v5729_v28, 1.0  ;;  %v5763_v60 = vsel %vm5762_vm12, %v8753_v36, %v5759_v31  ;;  %v14940_v12 = vmin.f32 %v6991_v17, 16.0 }
 0x69c   : > { %v6937_v14 = vmul.f32 %v8755_v24, %v6936_v25  ;;  %vm6940_vm8 = vweird.f32 %v8755_v24  ;;  %v6972_v48 = vmul.f32 %v6971_v6, %v14865_v8  ;;  %v5768_v35 = vsel %vm14919_vm9, %v5767_v45, %v5763_v60 }
 0x69d   : > { %vm14945_vm14 = vcmp.eq.f32.partialorder %v6943_v59, 8.507059e+37  ;;  %v5769_v63 = vmul.f32 %v5768_v35, %v14887_v32  ;;  %v6993_v47 = vmul.f32 2.1237322e-06, %v14940_v12  ;;  %v7004_v36 = vmul.f32 3.8918573e-05, %v14940_v12  ;;  %vm6941_vm15 = vmor %vm6939_vm11, %vm6940_vm8 }
 0x69e   : > { %v6938_v29 = vadd.f32 %v8755_v24, %v6937_v14  ;;  %v6946_v39 = vor.u32 1.1754944e-38, %v6945_v34  ;;  %v14952_v49 = vadd.f32 1.0, %v6972_v48  ;;  %v4364_v42 = vmul.f32 %v4330_v56, %v8928_v13 }
 0x69f   : > { %v8314_v41 = vclamps-f32 %v5769_v63, 1.0  ;;  %v6348_v15 = vadd.f32 1.0, %v8313_v1  ;;  %v6994_v11 = vadd.f32 0.00028619796, %v6993_v47  ;;  %v7005_v55 = vadd.f32 0.001143296, %v7004_v36  ;;  %v4332_v47 = vpop.xlane.xlu0 %4331 }
 0x6a0   : > { %v6942_v57 = vsel %vm6941_vm15, %v8755_v24, %v6938_v29  ;;  %v6960_v32 = vadd.f32 0.18741608, %v6959_v26  ;;  %8756 = vrcp.f32 %v14952_v49  ;;  %v14959_v51 = vadd.f32 %v6512_v61, %v14045_v19 }
 0x6a1   : > { %v5818_v59 = vmul.f32 %v14897_v5, %v14814_v18  ;;  %v6947_v28 = vsel %vm14945_vm14, %v6946_v39, %v6942_v57  ;;  %v6349_v31 = vadd.f32 1.0, %v8314_v41  ;;  %v6995_v62 = vmul.f32 %v6994_v11, %v14940_v12  ;;  %v16599_v57 = vld [vmem:[#allocation20_spill] sm:$0xff] }
 0x6a2   : > { %v4683_v17 = vsub.f32 1.5, %v14862_v38  ;;  %v6948_v25 = vmul.f32 %v6947_v28, %v6923_v10  ;;  %v7006_v24 = vmul.f32 %v7005_v55, %v14940_v12  ;;  %v5792_v34 = vadd.f32 0.4994258, %v14911_v50 }
 0x6a3   : > { %v6380_v6 = vmul.f32 %v6348_v15, %v14799_v7  ;;  %v6381_v45 = vmul.f32 %v6349_v31, %v14802_v9  ;;  %v6996_v26 = vadd.f32 0.0036580483, %v6995_v62  ;;  %v14971_v1 = vadd.f32 1e-05, %v4364_v42 }
 0x6a4   : > { %v8384_v5 = vclamps-f32 %v6948_v25, 1.0  ;;  %v6961_v60 = vmul.f32 %v6960_v32, %v14865_v8  ;;  %v7007_v56 = vadd.f32 0.014752088, %v7006_v24  ;;  %v14975_v14 = vmul.f32 0.70710677, %v14959_v51 }
 0x6a5   : > { %v5780_v10 = vmul.f32 %v14882_v43, %v14655_v33  ;;  %v5819_v48 = vadd.f32 0.05243302, %v5818_v59  ;;  %v6574_v50 = vmul.f32 0.5, %v14781_v0  ;;  %v6421_v35 = vpack.c.bf16 %v6381_v45, %v6380_v6 }
 0x6a6   : > { %v8757_v7 = vpop.eup %8756  ;;  %v7918_v4 = vadd.f32 1.0, %v8384_v5  ;;  %v7008_v9 = vmul.f32 %v7007_v56, %v14940_v12  ;;  %v7031_v63 = vmul.f32 %v14975_v14, %v14975_v14  ;;  %v5793_v8 = vmul.f32 %v5792_v34, %v14655_v33 }
 0x6a7   : > { %v6975_v36 = vmul.f32 %v8757_v7, %v14952_v49  ;;  %6526 = vmatmul.bf16.gmra.mxu3 %v6421_v35  ;;  %v6997_v61 = vmul.f32 %v6996_v26, %v14940_v12  ;;  %8758 = vrsqrt.f32 %v14971_v1  ;;  %v5825_v0 = vmul.f32 3.8918573e-05, %v14814_v18 }
 0x6a8   : > { %v7950_v43 = vmul.f32 %v7918_v4, %v6574_v50  ;;  %v6962_v29 = vadd.f32 1.1283791, %v6961_v60  ;;  %v7009_v39 = vadd.f32 0.112945676, %v7008_v9  ;;  %v14988_v42 = vmin.f32 %v7031_v63, 16.0 }
 0x6a9   : > { %v6976_v41 = vsub.f32 1.0, %v6975_v36  ;;  %v6983_v15 = vand.u32 2147483647, %v14952_v49  ;;  %v6985_v11 = vand.u32 2147483648, %v14952_v49  ;;  %v4365_v55 = vmul.f32 %v4332_v47, %v8928_v13 }
 0x6aa   : > { %vm4685_vm0 = vweird.f32 %v14649_v20  ;;  %v7982_v32 = vadd.f32 %v7950_v43, %v16599_v57  ;;  %v7010_v59 = vmul.f32 %v7009_v39, %v14940_v12  ;;  %v7033_v28 = vmul.f32 2.1237322e-06, %v14988_v42 }
 0x6ab   : > { %v14997_v31 = vadd.f32 1.0, %v5793_v8  ;;  %v6977_v62 = vmul.f32 %v8757_v7, %v6976_v41  ;;  %vm6980_vm13 = vweird.f32 %v8757_v7  ;;  %v6998_v25 = vadd.f32 0.05243302, %v6997_v61 }
 0x6ac   : > { %v7044_v24 = vmul.f32 3.8918573e-05, %v14988_v42  ;;  %v5820_v34 = vmul.f32 %v5819_v48, %v14814_v18  ;;  %8014 = vst [vmem:[%s14240_s25 + $0x38] sm:$0xff] %v7982_v32  ;;  %v6963_v6 = vmul.f32 %v6962_v29, %v14851_v52  ;;  %v7011_v45 = vadd.f32 0.4994258, %v7010_v59 }
 0x6ad   : > { %v7034_v26 = vadd.f32 0.00028619796, %v7033_v28  ;;  %v15003_v5 = vpop.eup %8758  ;;  %v6978_v60 = vadd.f32 %v8757_v7, %v6977_v62  ;;  %vm6979_vm1 = vweird.f32 %v14952_v49  ;;  %vm6984_vm2 = vcmp.eq.f32.partialorder %v6983_v15, 8.507059e+37 }
 0x6ae   : > { %v7045_v56 = vadd.f32 0.001143296, %v7044_v24  ;;  %vm6981_vm3 = vmor %vm6979_vm1, %vm6980_vm13  ;;  %v6986_v50 = vor.u32 1.1754944e-38, %v6985_v11  ;;  %v7012_v35 = vmul.f32 %v7011_v45, %v14940_v12  ;;  %8760 = vrcp.f32 %v14997_v31 }
 0x6af   : > { %v7035_v4 = vmul.f32 %v7034_v26, %v14988_v42  ;;  %v6982_v48 = vsel %vm6981_vm3, %v8757_v7, %v6978_v60  ;;  %v6999_v52 = vmul.f32 %v6998_v25, %v14940_v12  ;;  %v15011_v63 = vadd.f32 1e-05, %v4365_v55  ;;  %v16602_v60 = vld [vmem:[#allocation10_spill] sm:$0xff] }
 0x6b0   : > { %v7046_v9 = vmul.f32 %v7045_v56, %v14988_v42  ;;  %v4684_v49 = vmul.f32 %v14680_v58, %v4683_v17  ;;  %vm4686_vm4 = vweird.f32 %v14680_v58  ;;  %v6987_v47 = vsel %vm6984_vm2, %v6986_v50, %v6982_v48 }
 0x6b1   : > { %v15017_v8 = vadd.f32 1.0, %v7012_v35  ;;  %v5781_v36 = vadd.f32 0.18741608, %v5780_v10  ;;  %v6988_v61 = vmul.f32 %v6987_v47, %v6963_v6  ;;  %v7036_v43 = vadd.f32 0.0036580483, %v7035_v4  ;;  %vm15024_vm5 = vmor %vm4685_vm0, %vm4686_vm4 }
 0x6b2   : > { %v7047_v29 = vadd.f32 0.014752088, %v7046_v9  ;;  %v5821_v7 = vadd.f32 0.18741608, %v5820_v34  ;;  %v4690_v39 = vmul.f32 %v15003_v5, %v14971_v1  ;;  %v5826_v41 = vadd.f32 0.001143296, %v5825_v0 }
 0x6b3   : > { %8762 = vrcp.f32 %v15017_v8  ;;  %v8385_v17 = vclamps-f32 %v6988_v61, 1.0  ;;  %v7000_v15 = vadd.f32 0.18741608, %v6999_v52  ;;  %v4688_v55 = vsel %vm15024_vm5, %v14680_v58, %v4684_v49 }
 0x6b4   : > { %v7048_v10 = vmul.f32 %v7047_v29, %v14988_v42  ;;  %8764 = vrsqrt.f32 %v15011_v63  ;;  %v15030_v11 = vpop.eup %8760  ;;  %v6575_v0 = vmul.f32 0.5, %v14844_v54  ;;  %v7037_v20 = vmul.f32 %v7036_v43, %v14988_v42 }
 0x6b5   : > { %v7919_v57 = vadd.f32 1.0, %v8385_v17  ;;  %v5782_v59 = vmul.f32 %v5781_v36, %v14655_v33  ;;  %v5822_v28 = vmul.f32 %v5821_v7, %v14814_v18  ;;  %v4691_v62 = vmul.f32 %v15003_v5, %v4690_v39 }
 0x6b6   : > { %v7049_v32 = vadd.f32 0.112945676, %v7048_v10  ;;  %v5827_v25 = vmul.f32 %v5826_v41, %v14814_v18  ;;  %v7001_v34 = vmul.f32 %v7000_v15, %v14940_v12  ;;  %v5796_v54 = vmul.f32 %v15030_v11, %v14997_v31 }
 0x6b7   : > { %v7951_v24 = vmul.f32 %v7919_v57, %v6575_v0  ;;  %v4747_v33 = vmul.f32 %v4688_v55, %v13918_v30  ;;  %v7038_v35 = vadd.f32 0.05243302, %v7037_v20  ;;  %v5783_v4 = vadd.f32 1.1283791, %v5782_v59 }
 0x6b8   : > { %v7050_v58 = vmul.f32 %v7049_v32, %v14988_v42  ;;  %v5828_v45 = vadd.f32 0.014752088, %v5827_v25  ;;  %v5823_v48 = vadd.f32 1.1283791, %v5822_v28  ;;  %v7002_v9 = vadd.f32 1.1283791, %v7001_v34 }
 0x6b9   : > { %v8763_v6 = vpop.eup %8762  ;;  %v7983_v56 = vadd.f32 %v7951_v24, %v16602_v60  ;;  %v4692_v47 = vmul.f32 0.5, %v4691_v62  ;;  %v5797_v36 = vsub.f32 1.0, %v5796_v54  ;;  %v7025_v61 = vand.u32 2147483648, %v15017_v8 }
 0x6ba   : > { %v15045_v26 = vpop.eup %8764  ;;  %v7015_v50 = vmul.f32 %v8763_v6, %v15017_v8  ;;  %v7051_v52 = vadd.f32 0.4994258, %v7050_v58  ;;  %v5829_v12 = vmul.f32 %v5828_v45, %v14814_v18  ;;  %vm7020_vm6 = vweird.f32 %v8763_v6 }
 0x6bb   : > { %8015 = vst [vmem:[%s14240_s25 + $0x40] sm:$0xff] %v7983_v56  ;;  %v4700_v30 = vmul.f32 %v15045_v26, %v15011_v63  ;;  %v7023_v39 = vand.u32 2147483647, %v15017_v8  ;;  %v7039_v41 = vmul.f32 %v7038_v35, %v14988_v42  ;;  %v15059_v38 = vmul.f32 %v5783_v4, %v14633_v3 }
 0x6bc   : > { %v7016_v49 = vsub.f32 1.0, %v7015_v50  ;;  %v7052_v43 = vmul.f32 %v7051_v52, %v14988_v42  ;;  %v5830_v29 = vadd.f32 0.112945676, %v5829_v12  ;;  %v15062_v17 = vmul.f32 %v5823_v48, %v14739_v37 }
 0x6bd   : > { %vm7019_vm7 = vweird.f32 %v15017_v8  ;;  %v4693_v0 = vsub.f32 1.5, %v4692_v47  ;;  %v5798_v57 = vmul.f32 %v15030_v11, %v5797_v36  ;;  %v7003_v20 = vmul.f32 %v7002_v9, %v14926_v40  ;;  %v6514_v8 = vpop.f32.mrf.mxu3 }
 0x6be   : > { %v7017_v7 = vmul.f32 %v8763_v6, %v7016_v49  ;;  %v15064_v15 = vadd.f32 1.0, %v7052_v43  ;;  %v5831_v10 = vmul.f32 %v5830_v29, %v14814_v18  ;;  %vm7021_vm9 = vmor %vm7019_vm7, %vm7020_vm6  ;;  %v7026_v32 = vor.u32 1.1754944e-38, %v7025_v61  ;;  %v4334_v43 = vpop.xlane.xlu1 %4333 }
 0x6bf   : > { %v4701_v3 = vmul.f32 %v15045_v26, %v4700_v30  ;;  %vm7024_vm10 = vcmp.eq.f32.partialorder %v7023_v39, 8.507059e+37  ;;  %v7040_v59 = vadd.f32 0.18741608, %v7039_v41  ;;  %vm4696_vm11 = vweird.f32 %v15003_v5 }
 0x6c0   : > { %v7018_v55 = vadd.f32 %v8763_v6, %v7017_v7  ;;  %8766 = vrcp.f32 %v15064_v15  ;;  %v5832_v28 = vadd.f32 0.4994258, %v5831_v10  ;;  %vm5801_vm12 = vweird.f32 %v15030_v11 }
 0x6c1   : > { %v15075_v25 = vmul.f32 %v12466_v22, %v4747_v33  ;;  %v5799_v24 = vadd.f32 %v15030_v11, %v5798_v57  ;;  %v15080_v58 = vadd.f32 %v6514_v8, %v14045_v19  ;;  %v4694_v54 = vmul.f32 %v15003_v5, %v4693_v0 }
 0x6c2   : > { %v7022_v37 = vsel %vm7021_vm9, %v8763_v6, %v7018_v55  ;;  %v5833_v34 = vmul.f32 %v5832_v28, %v14814_v18  ;;  %vm5800_vm8 = vweird.f32 %v14997_v31  ;;  %v5804_v6 = vand.u32 2147483647, %v14997_v31 }
 0x6c3   : > { %v7027_v62 = vsel %vm7024_vm10, %v7026_v32, %v7022_v37  ;;  %v5806_v45 = vand.u32 2147483648, %v14997_v31  ;;  %v7041_v33 = vmul.f32 %v7040_v59, %v14988_v42  ;;  %v15087_v56 = vmul.f32 0.5, %v4701_v3  ;;  %vm15098_vm15 = vmor %vm5800_vm8, %vm5801_vm12 }
 0x6c4   : > { %v7028_v40 = vmul.f32 %v7027_v62, %v7003_v20  ;;  %v15089_v50 = vadd.f32 1.0, %v5833_v34  ;;  %v6576_v18 = vmul.f32 0.5, %v14917_v53  ;;  %vm4695_vm14 = vweird.f32 %v14971_v1 }
 0x6c5   : > { %v15094_v4 = vmul.f32 0.5, %v14959_v51  ;;  %v15103_v42 = vmul.f32 0.70710677, %v15080_v58  ;;  %vm15107_vm0 = vmor %vm4695_vm14, %vm4696_vm11  ;;  %v5803_v51 = vsel %vm15098_vm15, %v15030_v11, %v5799_v24  ;;  %vm5805_vm13 = vcmp.eq.f32.partialorder %v5804_v6, 8.507059e+37  ;;  %v4958_v6 = vpop.f32.mrf.mxu2 }
 0x6c6   : > { %v8386_v60 = vclamps-f32 %v7028_v40, 1.0  ;;  %v8767_v35 = vpop.eup %8766  ;;  %8768 = vrcp.f32 %v15089_v50  ;;  %v4698_v1 = vsel %vm15107_vm0, %v15003_v5, %v4694_v54  ;;  %v5807_v12 = vor.u32 1.1754944e-38, %v5806_v45  ;;  %v16607_v5 = vld [vmem:[#allocation21_spill] sm:$0xff] }
 0x6c7   : > { %v7055_v53 = vmul.f32 %v8767_v35, %v15064_v15  ;;  %v7071_v9 = vmul.f32 %v15103_v42, %v15103_v42  ;;  %v7042_v47 = vadd.f32 1.1283791, %v7041_v33  ;;  %v4703_v61 = vsub.f32 1.5, %v15087_v56 }
 0x6c8   : > { %v7920_v31 = vadd.f32 1.0, %v8386_v60  ;;  %v7065_v11 = vand.u32 2147483648, %v15064_v15  ;;  %v5808_v30 = vsel %vm5805_vm13, %v5807_v12, %v5803_v51  ;;  %v4366_v7 = vmul.f32 %v4334_v43, %v8928_v13 }
 0x6c9   : > { %v7056_v36 = vsub.f32 1.0, %v7055_v53  ;;  %v15123_v29 = vmin.f32 %v7071_v9, 16.0  ;;  %vm7060_vm1 = vweird.f32 %v8767_v35  ;;  %v7063_v10 = vand.u32 2147483647, %v15064_v15 }
 0x6ca   : > { %v7952_v49 = vmul.f32 %v7920_v31, %v6576_v18  ;;  %v4748_v55 = vmul.f32 %v4698_v1, %v14283_v16  ;;  %v15131_v20 = vadd.f32 1e-05, %v4366_v7  ;;  %v7043_v3 = vmul.f32 %v7042_v47, %v14975_v14 }
 0x6cb   : > { %v7057_v41 = vmul.f32 %v8767_v35, %v7056_v36  ;;  %v7073_v0 = vmul.f32 2.1237322e-06, %v15123_v29  ;;  %v7084_v57 = vmul.f32 3.8918573e-05, %v15123_v29  ;;  %vm7059_vm2 = vweird.f32 %v15064_v15 }
 0x6cc   : > { %v7984_v39 = vadd.f32 %v7952_v49, %v16607_v5  ;;  %v8769_v32 = vpop.eup %8768  ;;  %v5809_v13 = vmul.f32 %v5808_v30, %v15059_v38  ;;  %vm7061_vm3 = vmor %vm7059_vm2, %vm7060_vm1  ;;  %v7066_v59 = vor.u32 1.1754944e-38, %v7065_v11  ;;  %vm4705_vm4 = vweird.f32 %v15011_v63 }
 0x6cd   : > { %v7058_v37 = vadd.f32 %v8767_v35, %v7057_v41  ;;  %v5836_v16 = vmul.f32 %v8769_v32, %v15089_v50  ;;  %v7074_v28 = vadd.f32 0.00028619796, %v7073_v0  ;;  %v7085_v62 = vadd.f32 0.001143296, %v7084_v57 }
 0x6ce   : > { %8016 = vst [vmem:[%s14240_s25 + $0x48] sm:$0xff] %v7984_v39  ;;  %vm7064_vm5 = vcmp.eq.f32.partialorder %v7063_v10, 8.507059e+37  ;;  %v5846_v40 = vand.u32 2147483648, %v15089_v50  ;;  %8770 = vrsqrt.f32 %v15131_v20  ;;  %vm4706_vm6 = vweird.f32 %v15045_v26  ;;  %v16610_v10 = vld [vmem:[#allocation6_spill] sm:$0xff] }
 0x6cf   : > { %v7062_v8 = vsel %vm7061_vm3, %v8767_v35, %v7058_v37  ;;  %v5837_v24 = vsub.f32 1.0, %v5836_v16  ;;  %v7075_v15 = vmul.f32 %v7074_v28, %v15123_v29  ;;  %v7086_v38 = vmul.f32 %v7085_v62, %v15123_v29  ;;  %vm15164_vm12 = vmor %vm4705_vm4, %vm4706_vm6 }
 0x6d0   : > { %v7067_v14 = vsel %vm7064_vm5, %v7066_v59, %v7062_v8  ;;  %vm5841_vm7 = vweird.f32 %v8769_v32  ;;  %v5844_v54 = vand.u32 2147483647, %v15089_v50  ;;  %v15146_v56 = vadd.f32 %v4958_v6, %v13136_v23 }
 0x6d1   : > { %v7068_v34 = vmul.f32 %v7067_v14, %v7043_v3  ;;  %v5838_v45 = vmul.f32 %v8769_v32, %v5837_v24  ;;  %v7076_v60 = vadd.f32 0.0036580483, %v7075_v15  ;;  %v7087_v33 = vadd.f32 0.014752088, %v7086_v38  ;;  %v4960_v3 = vpop.f32.mrf.mxu2 }
 0x6d2   : > { %v4704_v18 = vmul.f32 %v15045_v26, %v4703_v61  ;;  %v8315_v48 = vclamps-f32 %v5809_v13, 1.0  ;;  %v4781_v31 = vmul.f32 %v12466_v22, %v4748_v55  ;;  %vm5840_vm9 = vweird.f32 %v15089_v50 }
 0x6d3   : > { %v8387_v35 = vclamps-f32 %v7068_v34, 1.0  ;;  %v5839_v52 = vadd.f32 %v8769_v32, %v5838_v45  ;;  %v5847_v53 = vor.u32 1.1754944e-38, %v5846_v40  ;;  %v7088_v51 = vmul.f32 %v7087_v33, %v15123_v29  ;;  %vm5842_vm10 = vmor %vm5840_vm9, %vm5841_vm7 }
 0x6d4   : > { %v8771_v1 = vpop.eup %8770  ;;  %v7077_v9 = vmul.f32 %v7076_v60, %v15123_v29  ;;  %v15155_v49 = vmul.f32 0.70710677, %v15146_v56  ;;  %v4814_v47 = vadd.f32 %v12470_v2, %v4781_v31  ;;  %vm5845_vm11 = vcmp.eq.f32.partialorder %v5844_v54, 8.507059e+37 }
 0x6d5   : > { %v7921_v12 = vadd.f32 1.0, %v8387_v35  ;;  %v5843_v36 = vsel %vm5842_vm10, %v8769_v32, %v5839_v52  ;;  %v7089_v61 = vadd.f32 0.112945676, %v7088_v51  ;;  %v4710_v43 = vmul.f32 %v8771_v1, %v15131_v20 }
 0x6d6   : > { %v5848_v30 = vsel %vm5845_vm11, %v5847_v53, %v5843_v36  ;;  %v5852_v7 = vmul.f32 %v15155_v49, %v15155_v49  ;;  %v4813_v5 = vadd.f32 %v12470_v2, %v15075_v25  ;;  %v7078_v0 = vadd.f32 0.05243302, %v7077_v9 }
 0x6d7   : > { %v7953_v50 = vmul.f32 %v7921_v12, %v15094_v4  ;;  %v4708_v4 = vsel %vm15164_vm12, %v15045_v26, %v4704_v18  ;;  %v5849_v39 = vmul.f32 %v5848_v30, %v15062_v17  ;;  %v7090_v63 = vmul.f32 %v7089_v61, %v15123_v29 }
 0x6d8   : > { %v4711_v41 = vmul.f32 %v8771_v1, %v4710_v43  ;;  %v15178_v57 = vmin.f32 %v5852_v7, 16.0  ;;  %v4848_v32 = vpack.c.bf16 %v4814_v47, %v4813_v5  ;;  %v6350_v13 = vadd.f32 1.0, %v8315_v48 }
 0x6d9   : > { %v7985_v55 = vadd.f32 %v7953_v50, %v16610_v10  ;;  %v8316_v37 = vclamps-f32 %v5849_v39, 1.0  ;;  %v7091_v59 = vadd.f32 0.4994258, %v7090_v63  ;;  %v5006_v16 = vmul.f32 0.5, %v14604_v27  ;;  %v4963_v31 = vpop.f32.mrf.mxu2 }
 0x6da   : > { %v4712_v25 = vmul.f32 0.5, %v4711_v41  ;;  %4977 = vmatmul.bf16.gmra.mxu2 %v4848_v32  ;;  %v15183_v26 = vadd.f32 %v4960_v3, %v13136_v23  ;;  %v5865_v17 = vmul.f32 3.8918573e-05, %v15178_v57  ;;  %v5007_v28 = vmul.f32 0.5, %v14719_v46 }
 0x6db   : > { %8017 = vst [vmem:[%s14240_s25 + $0x50] sm:$0xff] %v7985_v55  ;;  %v6351_v62 = vadd.f32 1.0, %v8316_v37  ;;  %v7092_v8 = vmul.f32 %v7091_v59, %v15123_v29  ;;  %v4749_v14 = vmul.f32 %v4708_v4, %v14398_v21  ;;  %v7079_v24 = vmul.f32 %v7078_v0, %v15123_v29 }
 0x6dc   : > { %v4713_v40 = vsub.f32 1.5, %v4712_v25  ;;  %vm4716_vm8 = vweird.f32 %v8771_v1  ;;  %v15191_v27 = vmul.f32 0.70710677, %v15183_v26  ;;  %v6382_v15 = vmul.f32 %v6350_v13, %v5006_v16 }
 0x6dd   : > { %v6383_v38 = vmul.f32 %v6351_v62, %v5007_v28  ;;  %v7093_v34 = vadd.f32 1.0, %v7092_v8  ;;  %vm4715_vm14 = vweird.f32 %v15131_v20  ;;  %v5866_v6 = vadd.f32 0.001143296, %v5865_v17 }
 0x6de   : > { %v4714_v54 = vmul.f32 %v8771_v1, %v4713_v40  ;;  %v5892_v46 = vmul.f32 %v15191_v27, %v15191_v27  ;;  %vm4717_vm15 = vmor %vm4715_vm14, %vm4716_vm8  ;;  %v7080_v21 = vadd.f32 0.18741608, %v7079_v24  ;;  %v5854_v33 = vmul.f32 2.1237322e-06, %v15178_v57 }
 0x6df   : > { %v6422_v45 = vpack.c.bf16 %v6383_v38, %v6382_v15  ;;  %8772 = vrcp.f32 %v7093_v34  ;;  %v4782_v48 = vmul.f32 %v12466_v22, %v4749_v14  ;;  %v5867_v20 = vmul.f32 %v5866_v6, %v15178_v57 }
 0x6e0   : > { %v4718_v60 = vsel %vm4717_vm15, %v8771_v1, %v4714_v54  ;;  %v15198_v18 = vmin.f32 %v5892_v46, 16.0  ;;  %v7081_v1 = vmul.f32 %v7080_v21, %v15123_v29  ;;  %v5855_v9 = vadd.f32 0.00028619796, %v5854_v33 }
 0x6e1   : > { %6531 = vmatmul.bf16.gmra.mxu3 %v6422_v45  ;;  %v4750_v35 = vmul.f32 %v4718_v60, %v14428_v44  ;;  %v5868_v53 = vadd.f32 0.014752088, %v5867_v20  ;;  %v4815_v47 = vadd.f32 %v12470_v2, %v4782_v48  ;;  %v7105_v5 = vand.u32 2147483648, %v7093_v34  ;;  %v4965_v13 = vpop.f32.mrf.mxu2  ;;  %v16611_v60 = vld [vmem:[#allocation4_spill] sm:$0xff] }
 0x6e2   : > { %v5905_v51 = vmul.f32 3.8918573e-05, %v15198_v18  ;;  %v5894_v30 = vmul.f32 2.1237322e-06, %v15198_v18  ;;  %v7082_v7 = vadd.f32 1.1283791, %v7081_v1  ;;  %v5856_v4 = vmul.f32 %v5855_v9, %v15178_v57 }
 0x6e3   : > { %v4783_v52 = vmul.f32 %v12466_v22, %v4750_v35  ;;  %v5869_v61 = vmul.f32 %v5868_v53, %v15178_v57  ;;  %v7103_v63 = vand.u32 2147483647, %v7093_v34  ;;  %vm7099_vm13 = vweird.f32 %v7093_v34 }
 0x6e4   : > { %v5906_v50 = vadd.f32 0.001143296, %v5905_v51  ;;  %v5895_v10 = vadd.f32 0.00028619796, %v5894_v30  ;;  %v7083_v32 = vmul.f32 %v7082_v7, %v15103_v42  ;;  %v7106_v3 = vor.u32 1.1754944e-38, %v7105_v5 }
 0x6e5   : > { %v8773_v12 = vpop.eup %8772  ;;  %v4816_v44 = vadd.f32 %v12470_v2, %v4783_v52  ;;  %v5870_v22 = vadd.f32 0.112945676, %v5869_v61  ;;  %v5857_v37 = vadd.f32 0.0036580483, %v5856_v4  ;;  %vm7104_vm2 = vcmp.eq.f32.partialorder %v7103_v63, 8.507059e+37 }
 0x6e6   : > { %v7095_v36 = vmul.f32 %v8773_v12, %v7093_v34  ;;  %v5907_v29 = vmul.f32 %v5906_v50, %v15198_v18  ;;  %vm7100_vm0 = vweird.f32 %v8773_v12  ;;  %v5896_v62 = vmul.f32 %v5895_v10, %v15198_v18 }
 0x6e7   : > { %v4849_v43 = vpack.c.bf16 %v4816_v44, %v4815_v47  ;;  %v5871_v2 = vmul.f32 %v5870_v22, %v15178_v57  ;;  %vm7101_vm1 = vmor %vm7099_vm13, %vm7100_vm0  ;;  %v5858_v24 = vmul.f32 %v5857_v37, %v15178_v57  ;;  %v6578_v42 = vmul.f32 0.5, %v15080_v58 }
 0x6e8   : > { %v7096_v11 = vsub.f32 1.0, %v7095_v36  ;;  %v5908_v0 = vadd.f32 0.014752088, %v5907_v29  ;;  %v5897_v38 = vadd.f32 0.0036580483, %v5896_v62  ;;  %v15225_v20 = vadd.f32 %v4963_v31, %v13136_v23 }
 0x6e9   : > { %v5872_v55 = vadd.f32 0.4994258, %v5871_v2  ;;  %v4968_v34 = vpop.f32.mrf.mxu2  ;;  %v5859_v6 = vadd.f32 0.05243302, %v5858_v24 }
 0x6ea   : > { %v7097_v39 = vmul.f32 %v8773_v12, %v7096_v11  ;;  %4982 = vmatmul.bf16.gmra.mxu2 %v4849_v43  ;;  %v5909_v16 = vmul.f32 %v5908_v0, %v15198_v18  ;;  %v5898_v35 = vmul.f32 %v5897_v38, %v15198_v18  ;;  %v15222_v48 = vadd.f32 %v4968_v34, %v13136_v23 }
 0x6eb   : > { %v5873_v25 = vmul.f32 %v5872_v55, %v15178_v57  ;;  %v5860_v52 = vmul.f32 %v5859_v6, %v15178_v57  ;;  %v15234_v47 = vmul.f32 0.70710677, %v15225_v20  ;;  %v15243_v11 = vadd.f32 %v4965_v13, %v13136_v23 }
 0x6ec   : > { %v7098_v41 = vadd.f32 %v8773_v12, %v7097_v39  ;;  %v5910_v40 = vadd.f32 0.112945676, %v5909_v16  ;;  %v15231_v1 = vmul.f32 0.70710677, %v15222_v48 }
 0x6ed   : > { %v5874_v8 = vadd.f32 1.0, %v5873_v25  ;;  %v5861_v44 = vadd.f32 0.18741608, %v5860_v52  ;;  %v5932_v43 = vmul.f32 %v15234_v47, %v15234_v47 }
 0x6ee   : > { %v7102_v59 = vsel %vm7101_vm1, %v8773_v12, %v7098_v41  ;;  %v5911_v54 = vmul.f32 %v5910_v40, %v15198_v18  ;;  %v5899_v12 = vadd.f32 0.05243302, %v5898_v35  ;;  %v6012_v61 = vmul.f32 %v15231_v1, %v15231_v1 }
 0x6ef   : > { %v7107_v17 = vsel %vm7104_vm2, %v7106_v3, %v7102_v59  ;;  %8774 = vrcp.f32 %v5874_v8  ;;  %v5862_v50 = vmul.f32 %v5861_v44, %v15178_v57  ;;  %v5886_v22 = vand.u32 2147483648, %v5874_v8 }
 0x6f0   : > { %v7108_v28 = vmul.f32 %v7107_v17, %v7083_v32  ;;  %v5912_v45 = vadd.f32 0.4994258, %v5911_v54  ;;  %v5900_v31 = vmul.f32 %v5899_v12, %v15198_v18  ;;  %v15245_v4 = vmin.f32 %v6012_v61, 16.0 }
 0x6f1   : > { %vm5880_vm4 = vweird.f32 %v5874_v8  ;;  %v5884_v29 = vand.u32 2147483647, %v5874_v8  ;;  %v15247_v39 = vmin.f32 %v5932_v43, 16.0  ;;  %v5863_v2 = vadd.f32 1.1283791, %v5862_v50  ;;  %v4970_v17 = vpop.f32.mrf.mxu2 }
 0x6f2   : > { %v8388_v14 = vclamps-f32 %v7108_v28, 1.0  ;;  %v5913_v53 = vmul.f32 %v5912_v45, %v15198_v18  ;;  %v5901_v5 = vadd.f32 0.18741608, %v5900_v31  ;;  %v15250_v41 = vmul.f32 0.70710677, %v15243_v11 }
 0x6f3   : > { %v5887_v10 = vor.u32 1.1754944e-38, %v5886_v22  ;;  %v6025_v32 = vmul.f32 3.8918573e-05, %v15245_v4  ;;  %vm5885_vm6 = vcmp.eq.f32.partialorder %v5884_v29, 8.507059e+37  ;;  %v5934_v3 = vmul.f32 2.1237322e-06, %v15247_v39 }
 0x6f4   : > { %v7922_v15 = vadd.f32 1.0, %v8388_v14  ;;  %v5914_v9 = vadd.f32 1.0, %v5913_v53  ;;  %v5902_v0 = vmul.f32 %v5901_v5, %v15198_v18  ;;  %v5864_v25 = vmul.f32 %v5863_v2, %v15155_v49 }
 0x6f5   : > { %v8775_v21 = vpop.eup %8774  ;;  %v5972_v16 = vmul.f32 %v15250_v41, %v15250_v41  ;;  %v6026_v14 = vadd.f32 0.001143296, %v6025_v32  ;;  %v15265_v49 = vadd.f32 %v4970_v17, %v13136_v23  ;;  %v5945_v6 = vmul.f32 3.8918573e-05, %v15247_v39 }
 0x6f6   : > { %v7954_v46 = vmul.f32 %v7922_v15, %v6578_v42  ;;  %v5876_v58 = vmul.f32 %v8775_v21, %v5874_v8  ;;  %8776 = vrcp.f32 %v5914_v9  ;;  %vm5881_vm3 = vweird.f32 %v8775_v21 }
 0x6f7   : > { %vm5882_vm5 = vmor %vm5880_vm4, %vm5881_vm3  ;;  %v5926_v62 = vand.u32 2147483648, %v5914_v9  ;;  %vm5920_vm9 = vweird.f32 %v5914_v9  ;;  %v5924_v8 = vand.u32 2147483647, %v5914_v9  ;;  %v5903_v40 = vadd.f32 1.1283791, %v5902_v0 }
 0x6f8   : > { %v7986_v33 = vadd.f32 %v7954_v46, %v16611_v60  ;;  %v5877_v51 = vsub.f32 1.0, %v5876_v58  ;;  %v5935_v15 = vadd.f32 0.00028619796, %v5934_v3  ;;  %v15267_v34 = vmin.f32 %v5972_v16, 16.0 }
 0x6f9   : > { %v5927_v54 = vor.u32 1.1754944e-38, %v5926_v62  ;;  %vm5925_vm11 = vcmp.eq.f32.partialorder %v5924_v8, 8.507059e+37  ;;  %v5904_v45 = vmul.f32 %v5903_v40, %v15191_v27  ;;  %v15276_v58 = vmul.f32 0.70710677, %v15265_v49  ;;  %v4973_v5 = vpop.f32.mrf.mxu2 }
 0x6fa   : > { %8018 = vst [vmem:[%s14240_s25 + $0x58] sm:$0xff] %v7986_v33  ;;  %v5878_v36 = vmul.f32 %v8775_v21, %v5877_v51  ;;  %v6517_v37 = vpop.f32.mrf.mxu3  ;;  %v5936_v35 = vmul.f32 %v5935_v15, %v15247_v39  ;;  %v5974_v53 = vmul.f32 2.1237322e-06, %v15267_v34  ;;  %v5008_v61 = vmul.f32 0.5, %v15146_v56 }
 0x6fb   : > { %v15259_v28 = vadd.f32 %v6517_v37, %v14045_v19  ;;  %v6052_v50 = vmul.f32 %v15276_v58, %v15276_v58  ;;  %v6014_v2 = vmul.f32 2.1237322e-06, %v15245_v4  ;;  %v15295_v37 = vadd.f32 %v4973_v5, %v13136_v23 }
 0x6fc   : > { %v5879_v30 = vadd.f32 %v8775_v21, %v5878_v36  ;;  %v8777_v7 = vpop.eup %8776  ;;  %v5937_v43 = vadd.f32 0.0036580483, %v5936_v35 }
 0x6fd   : > { %v5916_v63 = vmul.f32 %v8777_v7, %v5914_v9  ;;  %vm5921_vm7 = vweird.f32 %v8777_v7  ;;  %v15262_v24 = vmul.f32 0.70710677, %v15259_v28  ;;  %v5946_v9 = vadd.f32 0.001143296, %v5945_v6 }
 0x6fe   : > { %v5883_v57 = vsel %vm5882_vm5, %v8775_v21, %v5879_v30  ;;  %vm5922_vm10 = vmor %vm5920_vm9, %vm5921_vm7  ;;  %v6027_v21 = vmul.f32 %v6026_v14, %v15245_v4  ;;  %v5975_v30 = vadd.f32 0.00028619796, %v5974_v53  ;;  %v15292_v3 = vmin.f32 %v6052_v50, 16.0 }
 0x6ff   : > { %v5917_v55 = vsub.f32 1.0, %v5916_v63  ;;  %v5888_v13 = vsel %vm5885_vm6, %v5887_v10, %v5883_v57  ;;  %v7111_v46 = vmul.f32 %v15262_v24, %v15262_v24  ;;  %v5009_v63 = vmul.f32 0.5, %v15183_v26 }
 0x700   : > { %v5889_v42 = vmul.f32 %v5888_v13, %v5864_v25  ;;  %v6028_v44 = vadd.f32 0.014752088, %v6027_v21  ;;  %v5947_v10 = vmul.f32 %v5946_v9, %v15247_v39  ;;  %v5976_v25 = vmul.f32 %v5975_v30, %v15267_v34 }
 0x701   : > { %v5918_v59 = vmul.f32 %v8777_v7, %v5917_v55  ;;  %v15278_v52 = vmin.f32 %v7111_v46, 16.0  ;;  %v6015_v8 = vadd.f32 0.00028619796, %v6014_v2  ;;  %v15305_v15 = vmul.f32 0.70710677, %v15295_v37 }
 0x702   : > { %v8317_v60 = vclamps-f32 %v5889_v42, 1.0  ;;  %v6519_v29 = vpop.f32.mrf.mxu3  ;;  %v6029_v55 = vmul.f32 %v6028_v44, %v15245_v4  ;;  %v6065_v42 = vmul.f32 3.8918573e-05, %v15292_v3  ;;  %v5977_v46 = vadd.f32 0.0036580483, %v5976_v25 }
 0x703   : > { %v5919_v18 = vadd.f32 %v8777_v7, %v5918_v59  ;;  %v7113_v12 = vmul.f32 2.1237322e-06, %v15278_v52  ;;  %v7124_v27 = vmul.f32 3.8918573e-05, %v15278_v52  ;;  %v15298_v26 = vadd.f32 %v6519_v29, %v14045_v19 }
 0x704   : > { %v6352_v31 = vadd.f32 1.0, %v8317_v60  ;;  %v5938_v59 = vmul.f32 %v5937_v43, %v15247_v39  ;;  %v6030_v40 = vadd.f32 0.112945676, %v6029_v55  ;;  %v6016_v60 = vmul.f32 %v6015_v8, %v15245_v4 }
 0x705   : > { %v5923_v38 = vsel %vm5922_vm10, %v8777_v7, %v5919_v18  ;;  %v7114_v22 = vadd.f32 0.00028619796, %v7113_v12  ;;  %v7125_v7 = vadd.f32 0.001143296, %v7124_v27  ;;  %v5948_v18 = vadd.f32 0.014752088, %v5947_v10 }
 0x706   : > { %v5928_v33 = vsel %vm5925_vm11, %v5927_v54, %v5923_v38  ;;  %v6384_v32 = vmul.f32 %v6352_v31, %v5008_v61  ;;  %v15308_v38 = vmul.f32 0.70710677, %v15298_v26  ;;  %v5939_v54 = vadd.f32 0.05243302, %v5938_v59 }
 0x707   : > { %v5929_v51 = vmul.f32 %v5928_v33, %v5904_v45  ;;  %v7115_v56 = vmul.f32 %v7114_v22, %v15278_v52  ;;  %v7126_v0 = vmul.f32 %v7125_v7, %v15278_v52  ;;  %v5949_v21 = vmul.f32 %v5948_v18, %v15247_v39 }
 0x708   : > { %v6031_v33 = vmul.f32 %v6030_v40, %v15245_v4  ;;  %v7151_v53 = vmul.f32 %v15308_v38, %v15308_v38  ;;  %v6066_v12 = vadd.f32 0.001143296, %v6065_v42  ;;  %v6092_v9 = vmul.f32 %v15305_v15, %v15305_v15 }
 0x709   : > { %v8318_v36 = vclamps-f32 %v5929_v51, 1.0  ;;  %v7116_v16 = vadd.f32 0.0036580483, %v7115_v56  ;;  %v7127_v17 = vadd.f32 0.014752088, %v7126_v0  ;;  %v4975_v51 = vpop.f32.mrf.mxu2  ;;  %v5940_v44 = vmul.f32 %v5939_v54, %v15247_v39 }
 0x70a   : > { %v5978_v27 = vmul.f32 %v5977_v46, %v15267_v34  ;;  %v15321_v61 = vmin.f32 %v7151_v53, 16.0  ;;  %v15324_v43 = vadd.f32 %v4975_v51, %v13136_v23  ;;  %v5950_v50 = vadd.f32 0.112945676, %v5949_v21 }
 0x70b   : > { %v6353_v57 = vadd.f32 1.0, %v8318_v36  ;;  %v7128_v14 = vmul.f32 %v7127_v17, %v15278_v52  ;;  %v7117_v6 = vmul.f32 %v7116_v16, %v15278_v52  ;;  %v6017_v30 = vadd.f32 0.0036580483, %v6016_v60 }
 0x70c   : > { %v6032_v22 = vadd.f32 0.4994258, %v6031_v33  ;;  %v6067_v7 = vmul.f32 %v6066_v12, %v15292_v3  ;;  %v15328_v29 = vmin.f32 %v6092_v9, 16.0  ;;  %v5941_v2 = vadd.f32 0.18741608, %v5940_v44 }
 0x70d   : > { %v6385_v13 = vmul.f32 %v6353_v57, %v5009_v63  ;;  %v7129_v45 = vadd.f32 0.112945676, %v7128_v14  ;;  %v7118_v36 = vadd.f32 0.05243302, %v7117_v6  ;;  %v7153_v63 = vmul.f32 2.1237322e-06, %v15321_v61 }
 0x70e   : > { %v5979_v57 = vadd.f32 0.05243302, %v5978_v27  ;;  %v7164_v56 = vmul.f32 3.8918573e-05, %v15321_v61  ;;  %v15336_v0 = vmul.f32 0.70710677, %v15324_v43  ;;  %v6033_v59 = vmul.f32 %v6032_v22, %v15245_v4 }
 0x70f   : > { %v6423_v62 = vpack.c.bf16 %v6385_v13, %v6384_v32  ;;  %v7130_v35 = vmul.f32 %v7129_v45, %v15278_v52  ;;  %v7119_v10 = vmul.f32 %v7118_v36, %v15278_v52  ;;  %v5951_v32 = vmul.f32 %v5950_v50, %v15247_v39  ;;  %v6522_v50 = vpop.f32.mrf.mxu3 }
 0x710   : > { %v6018_v13 = vmul.f32 %v6017_v30, %v15245_v4  ;;  %v7154_v25 = vadd.f32 0.00028619796, %v7153_v63  ;;  %v6068_v16 = vadd.f32 0.014752088, %v6067_v7  ;;  %v6105_v17 = vmul.f32 3.8918573e-05, %v15328_v29 }
 0x711   : > { %6536 = vmatmul.bf16.gmra.mxu3 %v6423_v62  ;;  %v7131_v31 = vadd.f32 0.4994258, %v7130_v35  ;;  %v15344_v62 = vmul.f32 0.5, %v15225_v20  ;;  %v5942_v18 = vmul.f32 %v5941_v2, %v15247_v39  ;;  %v7120_v8 = vadd.f32 0.18741608, %v7119_v10 }
 0x712   : > { %v5980_v40 = vmul.f32 %v5979_v57, %v15267_v34  ;;  %v7165_v14 = vadd.f32 0.001143296, %v7164_v56  ;;  %v6132_v42 = vmul.f32 %v15336_v0, %v15336_v0  ;;  %v5952_v54 = vadd.f32 0.4994258, %v5951_v32 }
 0x713   : > { %v7132_v5 = vmul.f32 %v7131_v31, %v15278_v52  ;;  %v6019_v46 = vadd.f32 0.05243302, %v6018_v13  ;;  %v15350_v6 = vadd.f32 1.0, %v6033_v59  ;;  %v6054_v45 = vmul.f32 2.1237322e-06, %v15292_v3 }
 0x714   : > { %v7155_v21 = vmul.f32 %v7154_v25, %v15321_v61  ;;  %v6069_v20 = vmul.f32 %v6068_v16, %v15292_v3  ;;  %v6106_v60 = vadd.f32 0.001143296, %v6105_v17  ;;  %v7166_v33 = vmul.f32 %v7165_v14, %v15321_v61 }
 0x715   : > { %v15332_v55 = vadd.f32 1.0, %v7132_v5  ;;  %v15356_v35 = vmin.f32 %v6132_v42, 16.0  ;;  %v15358_v53 = vadd.f32 1.1283791, %v5942_v18  ;;  %v15361_v51 = vmul.f32 0.5, %v15243_v11 }
 0x716   : > { %v15364_v12 = vmul.f32 0.5, %v15222_v48  ;;  %v7121_v9 = vmul.f32 %v7120_v8, %v15278_v52  ;;  %v5981_v27 = vadd.f32 0.18741608, %v5980_v40  ;;  %v7167_v36 = vadd.f32 0.014752088, %v7166_v33 }
 0x717   : > { %8778 = vrcp.f32 %v15332_v55  ;;  %v6145_v31 = vmul.f32 3.8918573e-05, %v15356_v35  ;;  %v7156_v22 = vadd.f32 0.0036580483, %v7155_v21  ;;  %v5953_v7 = vmul.f32 %v5952_v54, %v15247_v39 }
 0x718   : > { %8780 = vrcp.f32 %v15350_v6  ;;  %v6020_v11 = vmul.f32 %v6019_v46, %v15245_v4  ;;  %v6055_v5 = vadd.f32 0.00028619796, %v6054_v45  ;;  %v6070_v48 = vadd.f32 0.112945676, %v6069_v20 }
 0x719   : > { %v6107_v63 = vmul.f32 %v6106_v60, %v15328_v29  ;;  %v7122_v52 = vadd.f32 1.1283791, %v7121_v9  ;;  %v7168_v57 = vmul.f32 %v7167_v36, %v15321_v61  ;;  %v15375_v10 = vadd.f32 %v6522_v50, %v14045_v19 }
 0x71a   : > { %v5982_v56 = vmul.f32 %v5981_v27, %v15267_v34  ;;  %v7143_v32 = vand.u32 2147483647, %v15332_v55  ;;  %v7145_v13 = vand.u32 2147483648, %v15332_v55  ;;  %v6146_v39 = vadd.f32 0.001143296, %v6145_v31 }
 0x71b   : > { %v7157_v25 = vmul.f32 %v7156_v22, %v15321_v61  ;;  %v7169_v16 = vadd.f32 0.112945676, %v7168_v57  ;;  %v6021_v17 = vadd.f32 0.18741608, %v6020_v11  ;;  %v6056_v18 = vmul.f32 %v6055_v5, %v15292_v3 }
 0x71c   : > { %v6108_v8 = vadd.f32 0.014752088, %v6107_v63  ;;  %v15382_v40 = vadd.f32 1.0, %v5953_v7  ;;  %vm7139_vm8 = vweird.f32 %v15332_v55  ;;  %v15389_v46 = vmul.f32 0.70710677, %v15375_v10 }
 0x71d   : > { %v8779_v44 = vpop.eup %8778  ;;  %v7170_v54 = vmul.f32 %v7169_v16, %v15321_v61  ;;  %v6071_v45 = vmul.f32 %v6070_v48, %v15292_v3  ;;  %v7123_v21 = vmul.f32 %v7122_v52, %v15262_v24  ;;  %v7146_v20 = vor.u32 1.1754944e-38, %v7145_v13 }
 0x71e   : > { %v7135_v30 = vmul.f32 %v8779_v44, %v15332_v55  ;;  %vm7140_vm12 = vweird.f32 %v8779_v44  ;;  %v15384_v14 = vpop.eup %8780  ;;  %v6147_v60 = vmul.f32 %v6146_v39, %v15356_v35  ;;  %vm7144_vm15 = vcmp.eq.f32.partialorder %v7143_v32, 8.507059e+37 }
 0x71f   : > { %vm7141_vm14 = vmor %vm7139_vm8, %vm7140_vm12  ;;  %v7158_v9 = vadd.f32 0.05243302, %v7157_v25  ;;  %v7171_v27 = vadd.f32 0.4994258, %v7170_v54  ;;  %v5983_v36 = vadd.f32 1.1283791, %v5982_v56  ;;  %v6036_v55 = vmul.f32 %v15384_v14, %v15350_v6 }
 0x720   : > { %v7136_v2 = vsub.f32 1.0, %v7135_v30  ;;  %v6057_v31 = vadd.f32 0.0036580483, %v6056_v18  ;;  %v6109_v22 = vmul.f32 %v6108_v8, %v15328_v29  ;;  %v7191_v24 = vmul.f32 %v15389_v46, %v15389_v46 }
 0x721   : > { %v7172_v7 = vmul.f32 %v7171_v27, %v15321_v61  ;;  %v6022_v11 = vmul.f32 %v6021_v17, %v15245_v4  ;;  %v6148_v5 = vadd.f32 0.014752088, %v6147_v60  ;;  %8782 = vrcp.f32 %v15382_v40  ;;  %v16612_v60 = vld [vmem:[#allocation2_spill] sm:$0xff] }
 0x722   : > { %v7137_v59 = vmul.f32 %v8779_v44, %v7136_v2  ;;  %v7159_v63 = vmul.f32 %v7158_v9, %v15321_v61  ;;  %v15405_v2 = vmin.f32 %v7191_v24, 16.0  ;;  %v15409_v57 = vmul.f32 %v15358_v53, %v15234_v47 }
 0x723   : > { %v15403_v52 = vadd.f32 1.0, %v7172_v7  ;;  %v6058_v56 = vmul.f32 %v6057_v31, %v15292_v3  ;;  %v6579_v32 = vmul.f32 0.5, %v15259_v28  ;;  %v6094_v4 = vmul.f32 2.1237322e-06, %v15328_v29 }
 0x724   : > { %v7138_v42 = vadd.f32 %v8779_v44, %v7137_v59  ;;  %v6037_v13 = vsub.f32 1.0, %v6036_v55  ;;  %v6110_v59 = vadd.f32 0.112945676, %v6109_v22  ;;  %v15416_v25 = vmul.f32 %v5983_v36, %v15250_v41 }
 0x725   : > { %8784 = vrcp.f32 %v15403_v52  ;;  %v6023_v16 = vadd.f32 1.1283791, %v6022_v11  ;;  %v6149_v47 = vmul.f32 %v6148_v5, %v15356_v35  ;;  %v6044_v53 = vand.u32 2147483647, %v15350_v6 }
 0x726   : > { %v7142_v33 = vsel %vm7141_vm14, %v8779_v44, %v7138_v42  ;;  %v6072_v44 = vadd.f32 0.4994258, %v6071_v45  ;;  %v7160_v8 = vadd.f32 0.18741608, %v7159_v63  ;;  %v7193_v28 = vmul.f32 2.1237322e-06, %v15405_v2 }
 0x727   : > { %v7147_v50 = vsel %vm7144_vm15, %v7146_v20, %v7142_v33  ;;  %v15422_v42 = vpop.eup %8782  ;;  %v6046_v54 = vand.u32 2147483648, %v15350_v6  ;;  %v15426_v45 = vmul.f32 0.5, %v15265_v49  ;;  %v6059_v41 = vadd.f32 0.05243302, %v6058_v56 }
 0x728   : > { %v7148_v30 = vmul.f32 %v7147_v50, %v7123_v21  ;;  %v6073_v17 = vmul.f32 %v6072_v44, %v15292_v3  ;;  %v6095_v21 = vadd.f32 0.00028619796, %v6094_v4  ;;  %v6038_v20 = vmul.f32 %v15384_v14, %v6037_v13 }
 0x729   : > { %v6111_v9 = vmul.f32 %v6110_v59, %v15328_v29  ;;  %v7204_v27 = vmul.f32 3.8918573e-05, %v15405_v2  ;;  %v15433_v36 = vmul.f32 %v6023_v16, %v15231_v1  ;;  %v6150_v31 = vadd.f32 0.112945676, %v6149_v47 }
 0x72a   : > { %v8389_v48 = vclamps-f32 %v7148_v30, 1.0  ;;  %v15435_v55 = vadd.f32 1.0, %v6073_v17  ;;  %v7194_v50 = vadd.f32 0.00028619796, %v7193_v28  ;;  %vm6040_vm0 = vweird.f32 %v15350_v6 }
 0x72b   : > { %v8785_v30 = vpop.eup %8784  ;;  %v7161_v49 = vmul.f32 %v7160_v8, %v15321_v61  ;;  %v7205_v22 = vadd.f32 0.001143296, %v7204_v27  ;;  %v5985_v7 = vmul.f32 3.8918573e-05, %v15267_v34  ;;  %vm6041_vm13 = vweird.f32 %v15384_v14 }
 0x72c   : > { %v7923_v39 = vadd.f32 1.0, %v8389_v48  ;;  %v6047_v24 = vor.u32 1.1754944e-38, %v6046_v54  ;;  %v7175_v11 = vmul.f32 %v8785_v30, %v15403_v52  ;;  %v5956_v1 = vmul.f32 %v15422_v42, %v15382_v40  ;;  %vm15464_vm3 = vmor %vm6040_vm0, %vm6041_vm13 }
 0x72d   : > { %v6039_v44 = vadd.f32 %v15384_v14, %v6038_v20  ;;  %v6060_v5 = vmul.f32 %v6059_v41, %v15292_v3  ;;  %v6096_v48 = vmul.f32 %v6095_v21, %v15328_v29  ;;  %v6112_v63 = vadd.f32 0.4994258, %v6111_v9 }
 0x72e   : > { %v7955_v18 = vmul.f32 %v7923_v39, %v6579_v32  ;;  %8786 = vrcp.f32 %v15435_v55  ;;  %v7176_v61 = vsub.f32 1.0, %v7175_v11  ;;  %v7195_v56 = vmul.f32 %v7194_v50, %v15405_v2 }
 0x72f   : > { %v7206_v32 = vmul.f32 %v7205_v22, %v15405_v2  ;;  %v7162_v4 = vadd.f32 1.1283791, %v7161_v49  ;;  %v7185_v13 = vand.u32 2147483648, %v15403_v52  ;;  %v6151_v39 = vmul.f32 %v6150_v31, %v15356_v35 }
 0x730   : > { %v7987_v33 = vadd.f32 %v7955_v18, %v16612_v60  ;;  %v5986_v59 = vadd.f32 0.001143296, %v5985_v7  ;;  %vm15453_vm1 = vcmp.eq.f32.partialorder %v6044_v53, 8.507059e+37  ;;  %v7177_v17 = vmul.f32 %v8785_v30, %v7176_v61 }
 0x731   : > { %vm7180_vm2 = vweird.f32 %v8785_v30  ;;  %v7183_v47 = vand.u32 2147483647, %v15403_v52  ;;  %v7207_v18 = vadd.f32 0.014752088, %v7206_v32  ;;  %v6061_v8 = vadd.f32 0.18741608, %v6060_v5 }
 0x732   : > { %8019 = vst [vmem:[%s14240_s25 + $0x60] sm:$0xff] %v7987_v33  ;;  %v6097_v28 = vadd.f32 0.0036580483, %v6096_v48  ;;  %v6113_v54 = vmul.f32 %v6112_v63, %v15328_v29  ;;  %v5987_v41 = vmul.f32 %v5986_v59, %v15267_v34  ;;  %v7178_v21 = vadd.f32 %v8785_v30, %v7177_v17 }
 0x733   : > { %vm7179_vm4 = vweird.f32 %v15403_v52  ;;  %v7196_v20 = vadd.f32 0.0036580483, %v7195_v56  ;;  %v7208_v60 = vmul.f32 %v7207_v18, %v15405_v2  ;;  %v6043_v33 = vsel %vm15464_vm3, %v15384_v14, %v6039_v44 }
 0x734   : > { %vm7181_vm5 = vmor %vm7179_vm4, %vm7180_vm2  ;;  %v7186_v9 = vor.u32 1.1754944e-38, %v7185_v13  ;;  %v6134_v27 = vmul.f32 2.1237322e-06, %v15356_v35  ;;  %v5988_v31 = vadd.f32 0.014752088, %v5987_v41  ;;  %v15474_v6 = vpop.eup %8786  ;;  %v7163_v50 = vmul.f32 %v7162_v4, %v15308_v38 }
 0x735   : > { %v7182_v49 = vsel %vm7181_vm5, %v8785_v30, %v7178_v21  ;;  %vm7184_vm6 = vcmp.eq.f32.partialorder %v7183_v47, 8.507059e+37  ;;  %v6152_v22 = vadd.f32 0.4994258, %v6151_v39  ;;  %v6098_v52 = vmul.f32 %v6097_v28, %v15328_v29 }
 0x736   : > { %v7187_v7 = vsel %vm7184_vm6, %v7186_v9, %v7182_v49  ;;  %v7209_v11 = vadd.f32 0.112945676, %v7208_v60  ;;  %v5989_v5 = vmul.f32 %v5988_v31, %v15267_v34  ;;  %v15479_v48 = vadd.f32 1.0, %v6113_v54  ;;  %v6524_v9 = vpop.f32.mrf.mxu3 }
 0x737   : > { %v7188_v14 = vmul.f32 %v7187_v7, %v7163_v50  ;;  %v7197_v44 = vmul.f32 %v7196_v20, %v15405_v2  ;;  %v5957_v63 = vsub.f32 1.0, %v5956_v1  ;;  %v6076_v61 = vmul.f32 %v15474_v6, %v15435_v55 }
 0x738   : > { %v6580_v38 = vmul.f32 0.5, %v15298_v26  ;;  %v7210_v30 = vmul.f32 %v7209_v11, %v15405_v2  ;;  %v5990_v56 = vadd.f32 0.112945676, %v5989_v5  ;;  %v6062_v32 = vmul.f32 %v6061_v8, %v15292_v3 }
 0x739   : > { %v8390_v4 = vclamps-f32 %v7188_v14, 1.0  ;;  %v6135_v13 = vadd.f32 0.00028619796, %v6134_v27  ;;  %v6153_v39 = vmul.f32 %v6152_v22, %v15356_v35  ;;  %vm5960_vm7 = vweird.f32 %v15382_v40  ;;  %v16617_v27 = vld [vmem:[#allocation7_spill] sm:$0xff] }
 0x73a   : > { %v6048_v59 = vsel %vm15453_vm1, %v6047_v24, %v6043_v33  ;;  %v6099_v1 = vadd.f32 0.05243302, %v6098_v52  ;;  %v7211_v17 = vadd.f32 0.4994258, %v7210_v30  ;;  %v5991_v47 = vmul.f32 %v5990_v56, %v15267_v34 }
 0x73b   : > { %8788 = vrcp.f32 %v15479_v48  ;;  %v7924_v26 = vadd.f32 1.0, %v8390_v4  ;;  %v7198_v18 = vadd.f32 0.05243302, %v7197_v44  ;;  %v5958_v28 = vmul.f32 %v15422_v42, %v5957_v63 }
 0x73c   : > { %v6077_v3 = vsub.f32 1.0, %v6076_v61  ;;  %v7212_v8 = vmul.f32 %v7211_v17, %v15405_v2  ;;  %vm5961_vm9 = vweird.f32 %v15422_v42  ;;  %v5992_v54 = vadd.f32 0.4994258, %v5991_v47 }
 0x73d   : > { %v6049_v41 = vmul.f32 %v6048_v59, %v15433_v36  ;;  %v7956_v16 = vmul.f32 %v7924_v26, %v6580_v38  ;;  %v6136_v24 = vmul.f32 %v6135_v13, %v15356_v35  ;;  %v15498_v53 = vadd.f32 1.0, %v6153_v39  ;;  %vm15531_vm10 = vmor %vm5960_vm7, %vm5961_vm9 }
 0x73e   : > { %v6063_v21 = vadd.f32 1.1283791, %v6062_v32  ;;  %v6100_v20 = vmul.f32 %v6099_v1, %v15328_v29  ;;  %v15501_v60 = vadd.f32 1.0, %v7212_v8  ;;  %v5993_v33 = vmul.f32 %v5992_v54, %v15267_v34 }
 0x73f   : > { %v7988_v31 = vadd.f32 %v7956_v16, %v16617_v27  ;;  %v7199_v50 = vmul.f32 %v7198_v18, %v15405_v2  ;;  %v5959_v36 = vadd.f32 %v15422_v42, %v5958_v28  ;;  %v15508_v49 = vadd.f32 %v6524_v9, %v14045_v19 }
 0x740   : > { %v6078_v22 = vmul.f32 %v15474_v6, %v6077_v3  ;;  %8790 = vrcp.f32 %v15501_v60  ;;  %v5964_v52 = vand.u32 2147483647, %v15382_v40  ;;  %v5966_v7 = vand.u32 2147483648, %v15382_v40 }
 0x741   : > { %v15514_v11 = vpop.eup %8788  ;;  %8020 = vst [vmem:[%s14240_s25 + $0x68] sm:$0xff] %v7988_v31  ;;  %v6137_v34 = vadd.f32 0.0036580483, %v6136_v24  ;;  %8792 = vrcp.f32 %v15498_v53  ;;  %v15518_v5 = vadd.f32 1.0, %v5993_v33  ;;  %v15521_v14 = vmul.f32 0.70710677, %v15508_v49 }
 0x742   : > { %v8321_v44 = vclamps-f32 %v6049_v41, 1.0  ;;  %v15524_v63 = vmul.f32 %v6063_v21, %v15276_v58  ;;  %v6086_v61 = vand.u32 2147483648, %v15435_v55  ;;  %v6101_v38 = vadd.f32 0.18741608, %v6100_v20 }
 0x743   : > { %vm6081_vm11 = vweird.f32 %v15474_v6  ;;  %v7200_v56 = vadd.f32 0.18741608, %v7199_v50  ;;  %v5963_v32 = vsel %vm15531_vm10, %v15422_v42, %v5959_v36  ;;  %8794 = vrcp.f32 %v15518_v5 }
 0x744   : > { %v15541_v58 = vadd.f32 %v15474_v6, %v6078_v22  ;;  %v15545_v4 = vmul.f32 %v15514_v11, %v15479_v48  ;;  %v5967_v40 = vor.u32 1.1754944e-38, %v5966_v7  ;;  %v7231_v13 = vmul.f32 %v15521_v14, %v15521_v14 }
 0x745   : > { %vm6080_vm12 = vweird.f32 %v15435_v55  ;;  %v6084_v39 = vand.u32 2147483647, %v15435_v55  ;;  %v6138_v59 = vmul.f32 %v6137_v34, %v15356_v35  ;;  %vm5965_vm8 = vcmp.eq.f32.partialorder %v5964_v52, 8.507059e+37 }
 0x746   : > { %v8791_v42 = vpop.eup %8790  ;;  %v15552_v1 = vadd.f32 1.0, %v8321_v44  ;;  %v6087_v17 = vor.u32 1.1754944e-38, %v6086_v61  ;;  %v5968_v47 = vsel %vm5965_vm8, %v5967_v40, %v5963_v32  ;;  %v15554_v26 = vmin.f32 %v7231_v13, 16.0  ;;  %vm15560_vm14 = vmor %vm6080_vm12, %vm6081_vm11 }
 0x747   : > { %v15556_v18 = vpop.eup %8792  ;;  %v15565_v55 = vmul.f32 %v6101_v38, %v15328_v29  ;;  %v15568_v3 = vmul.f32 0.5, %v15375_v10  ;;  %v7201_v8 = vmul.f32 %v7200_v56, %v15405_v2  ;;  %v7215_v54 = vmul.f32 %v8791_v42, %v15501_v60 }
 0x748   : > { %v6083_v41 = vsel %vm15560_vm14, %v15474_v6, %v15541_v58  ;;  %v6117_v16 = vsub.f32 1.0, %v15545_v4  ;;  %v7233_v24 = vmul.f32 2.1237322e-06, %v15554_v26  ;;  %v7244_v21 = vmul.f32 3.8918573e-05, %v15554_v26 }
 0x749   : > { %v8795_v29 = vpop.eup %8794  ;;  %v6139_v20 = vadd.f32 0.05243302, %v6138_v59  ;;  %v7216_v33 = vsub.f32 1.0, %v7215_v54  ;;  %v7225_v10 = vand.u32 2147483648, %v15501_v60  ;;  %v5969_v2 = vmul.f32 %v5968_v47, %v15409_v57 }
 0x74a   : > { %vm15581_vm15 = vcmp.eq.f32.partialorder %v6084_v39, 8.507059e+37  ;;  %v6156_v6 = vmul.f32 %v15556_v18, %v15498_v53  ;;  %v5996_v27 = vmul.f32 %v8795_v29, %v15518_v5  ;;  %v7234_v31 = vadd.f32 0.00028619796, %v7233_v24 }
 0x74b   : > { %v7245_v50 = vadd.f32 0.001143296, %v7244_v21  ;;  %v7202_v36 = vadd.f32 1.1283791, %v7201_v8  ;;  %v7217_v22 = vmul.f32 %v8791_v42, %v7216_v33  ;;  %vm7220_vm0 = vweird.f32 %v8791_v42 }
 0x74c   : > { %v7223_v52 = vand.u32 2147483647, %v15501_v60  ;;  %vm7219_vm13 = vweird.f32 %v15501_v60  ;;  %v5997_v7 = vsub.f32 1.0, %v5996_v27  ;;  %v7235_v57 = vmul.f32 %v7234_v31, %v15554_v26  ;;  %v6527_v31 = vpop.f32.mrf.mxu3 }
 0x74d   : > { %v7246_v34 = vmul.f32 %v7245_v50, %v15554_v26  ;;  %v7218_v44 = vadd.f32 %v8791_v42, %v7217_v22  ;;  %v7226_v61 = vor.u32 1.1754944e-38, %v7225_v10  ;;  %v6004_v38 = vand.u32 2147483647, %v15518_v5  ;;  %vm7221_vm1 = vmor %vm7219_vm13, %vm7220_vm0 }
 0x74e   : > { %v6006_v30 = vand.u32 2147483648, %v15518_v5  ;;  %v5998_v56 = vmul.f32 %v8795_v29, %v5997_v7  ;;  %vm6001_vm2 = vweird.f32 %v8795_v29  ;;  %v7236_v32 = vadd.f32 0.0036580483, %v7235_v57 }
 0x74f   : > { %v7247_v58 = vadd.f32 0.014752088, %v7246_v34  ;;  %v6140_v4 = vmul.f32 %v6139_v20, %v15356_v35  ;;  %v7203_v60 = vmul.f32 %v7202_v36, %v15389_v46  ;;  %v7222_v40 = vsel %vm7221_vm1, %v8791_v42, %v7218_v44 }
 0x750   : > { %vm7224_vm3 = vcmp.eq.f32.partialorder %v7223_v52, 8.507059e+37  ;;  %v5999_v39 = vadd.f32 %v8795_v29, %v5998_v56  ;;  %vm6000_vm4 = vweird.f32 %v15518_v5  ;;  %v8319_v28 = vclamps-f32 %v5969_v2, 1.0 }
 0x751   : > { %v7227_v13 = vsel %vm7224_vm3, %v7226_v61, %v7222_v40  ;;  %v7248_v59 = vmul.f32 %v7247_v58, %v15554_v26  ;;  %vm6002_vm5 = vmor %vm6000_vm4, %vm6001_vm2  ;;  %v6007_v8 = vor.u32 1.1754944e-38, %v6006_v30  ;;  %v7237_v54 = vmul.f32 %v7236_v32, %v15554_v26  ;;  %v16624_v61 = vld [vmem:[#allocation16_spill] sm:$0xff] }
 0x752   : > { %v7228_v47 = vmul.f32 %v7227_v13, %v7203_v60  ;;  %v6157_v24 = vsub.f32 1.0, %v6156_v6  ;;  %v6003_v21 = vsel %vm6002_vm5, %v8795_v29, %v5999_v39  ;;  %vm6005_vm6 = vcmp.eq.f32.partialorder %v6004_v38, 8.507059e+37 }
 0x753   : > { %v7249_v20 = vadd.f32 0.112945676, %v7248_v59  ;;  %v6088_v46 = vsel %vm15581_vm15, %v6087_v17, %v6083_v41  ;;  %vm6120_vm7 = vweird.f32 %v15479_v48  ;;  %v6008_v33 = vsel %vm6005_vm6, %v6007_v8, %v6003_v21 }
 0x754   : > { %v8391_v42 = vclamps-f32 %v7228_v47, 1.0  ;;  %v6118_v5 = vmul.f32 %v15514_v11, %v6117_v16  ;;  %v6141_v10 = vadd.f32 0.18741608, %v6140_v4  ;;  %v6009_v2 = vmul.f32 %v6008_v33, %v15416_v25  ;;  %v6529_v39 = vpop.f32.mrf.mxu3 }
 0x755   : > { %v7250_v27 = vmul.f32 %v7249_v20, %v15554_v26  ;;  %v6124_v6 = vand.u32 2147483647, %v15479_v48  ;;  %v7238_v50 = vadd.f32 0.05243302, %v7237_v54  ;;  %v15607_v36 = vadd.f32 %v6527_v31, %v14045_v19 }
 0x756   : > { %v7925_v29 = vadd.f32 1.0, %v8391_v42  ;;  %v6158_v17 = vmul.f32 %v15556_v18, %v6157_v24  ;;  %v8320_v41 = vclamps-f32 %v6009_v2, 1.0  ;;  %v6354_v9 = vadd.f32 1.0, %v8319_v28 }
 0x757   : > { %v7251_v22 = vadd.f32 0.4994258, %v7250_v27  ;;  %v6089_v16 = vmul.f32 %v6088_v46, %v15524_v63  ;;  %vm6121_vm9 = vweird.f32 %v15514_v11  ;;  %v15614_v52 = vmul.f32 0.70710677, %v15607_v36 }
 0x758   : > { %v7957_v25 = vmul.f32 %v7925_v29, %v15568_v3  ;;  %v6119_v7 = vadd.f32 %v15514_v11, %v6118_v5  ;;  %v6142_v57 = vmul.f32 %v6141_v10, %v15356_v35  ;;  %v6355_v34 = vadd.f32 1.0, %v8320_v41  ;;  %vm15638_vm11 = vmor %vm6120_vm7, %vm6121_vm9 }
 0x759   : > { %v7252_v44 = vmul.f32 %v7251_v22, %v15554_v26  ;;  %vm6161_vm10 = vweird.f32 %v15556_v18  ;;  %v7239_v63 = vmul.f32 %v7238_v50, %v15554_v26  ;;  %v7271_v3 = vmul.f32 %v15614_v52, %v15614_v52 }
 0x75a   : > { %v7989_v38 = vadd.f32 %v7957_v25, %v16624_v61  ;;  %v6159_v30 = vadd.f32 %v15556_v18, %v6158_v17  ;;  %v6386_v56 = vmul.f32 %v6354_v9, %v15344_v62  ;;  %v6387_v32 = vmul.f32 %v6355_v34, %v15361_v51 }
 0x75b   : > { %v15627_v58 = vadd.f32 1.0, %v7252_v44  ;;  %v8322_v35 = vclamps-f32 %v6089_v16, 1.0  ;;  %v6126_v4 = vand.u32 2147483648, %v15479_v48  ;;  %v6166_v60 = vand.u32 2147483648, %v15498_v53 }
 0x75c   : > { %8021 = vst [vmem:[%s14240_s25 + $0x70] sm:$0xff] %v7989_v38  ;;  %v15632_v40 = vmin.f32 %v7271_v3, 16.0  ;;  %vm6160_vm12 = vweird.f32 %v15498_v53  ;;  %v6164_v62 = vand.u32 2147483647, %v15498_v53  ;;  %v6424_v51 = vpack.c.bf16 %v6387_v32, %v6386_v56 }
 0x75d   : > { %8796 = vrcp.f32 %v15627_v58  ;;  %v6103_v59 = vadd.f32 1.1283791, %v15565_v55  ;;  %vm15648_vm8 = vmor %vm6160_vm12, %vm6161_vm10  ;;  %v7240_v48 = vadd.f32 0.18741608, %v7239_v63  ;;  %v15654_v8 = vadd.f32 %v6529_v39, %v14045_v19 }
 0x75e   : > { %v7273_v28 = vmul.f32 2.1237322e-06, %v15632_v40  ;;  %v6123_v53 = vsel %vm15638_vm11, %v15514_v11, %v6119_v7  ;;  %v6143_v54 = vadd.f32 1.1283791, %v6142_v57  ;;  %v6163_v55 = vsel %vm15648_vm8, %v15556_v18, %v6159_v30  ;;  %6541 = vmatmul.bf16.gmra.mxu3 %v6424_v51 }
 0x75f   : > { %v7284_v24 = vmul.f32 3.8918573e-05, %v15632_v40  ;;  %v6357_v21 = vadd.f32 1.0, %v8322_v35  ;;  %v6127_v20 = vor.u32 1.1754944e-38, %v6126_v4  ;;  %v6167_v46 = vor.u32 1.1754944e-38, %v6166_v60 }
 0x760   : > { %v7274_v42 = vadd.f32 0.00028619796, %v7273_v28  ;;  %vm6125_vm14 = vcmp.eq.f32.partialorder %v6124_v6, 8.507059e+37  ;;  %vm6165_vm15 = vcmp.eq.f32.partialorder %v6164_v62, 8.507059e+37  ;;  %v15664_v5 = vmul.f32 0.70710677, %v15654_v8 }
 0x761   : > { %v7285_v33 = vadd.f32 0.001143296, %v7284_v24  ;;  %v6128_v10 = vsel %vm6125_vm14, %v6127_v20, %v6123_v53  ;;  %v6168_v11 = vsel %vm6165_vm15, %v6167_v46, %v6163_v55  ;;  %v7241_v2 = vmul.f32 %v7240_v48, %v15554_v26 }
 0x762   : > { %v7275_v27 = vmul.f32 %v7274_v42, %v15632_v40  ;;  %v6104_v31 = vmul.f32 %v6103_v59, %v15305_v15  ;;  %v6144_v29 = vmul.f32 %v6143_v54, %v15336_v0  ;;  %v7311_v6 = vmul.f32 %v15664_v5, %v15664_v5 }
 0x763   : > { %v8797_v18 = vpop.eup %8796  ;;  %v7286_v50 = vmul.f32 %v7285_v33, %v15632_v40  ;;  %v6388_v17 = vmul.f32 %v15552_v1, %v15364_v12  ;;  %v6389_v41 = vmul.f32 %v6357_v21, %v15426_v45  ;;  %v7242_v7 = vadd.f32 1.1283791, %v7241_v2 }
 0x764   : > { %v7255_v9 = vmul.f32 %v8797_v18, %v15627_v58  ;;  %v7276_v26 = vadd.f32 0.0036580483, %v7275_v27  ;;  %v15677_v22 = vmul.f32 %v6128_v10, %v6104_v31  ;;  %v6169_v16 = vmul.f32 %v6168_v11, %v6144_v29  ;;  %v6532_v0 = vpop.f32.mrf.mxu3 }
 0x765   : > { %v7287_v25 = vadd.f32 0.014752088, %v7286_v50  ;;  %v15679_v15 = vmin.f32 %v7311_v6, 16.0  ;;  %v15683_v44 = vadd.f32 %v6532_v0, %v14045_v19  ;;  %v7265_v12 = vand.u32 2147483648, %v15627_v58 }
 0x766   : > { %v7256_v57 = vsub.f32 1.0, %v7255_v9  ;;  %v7277_v34 = vmul.f32 %v7276_v26, %v15632_v40  ;;  %vm7260_vm0 = vweird.f32 %v8797_v18  ;;  %v7263_v63 = vand.u32 2147483647, %v15627_v58 }
 0x767   : > { %v7288_v45 = vmul.f32 %v7287_v25, %v15632_v40  ;;  %v7313_v1 = vmul.f32 2.1237322e-06, %v15679_v15  ;;  %v7324_v61 = vmul.f32 3.8918573e-05, %v15679_v15  ;;  %v15691_v3 = vmul.f32 0.70710677, %v15683_v44 }
 0x768   : > { %v7257_v38 = vmul.f32 %v8797_v18, %v7256_v57  ;;  %v6425_v56 = vpack.c.bf16 %v6389_v41, %v6388_v17  ;;  %vm7259_vm13 = vweird.f32 %v15627_v58  ;;  %v7278_v60 = vadd.f32 0.05243302, %v7277_v34 }
 0x769   : > { %v7289_v30 = vadd.f32 0.112945676, %v7288_v45  ;;  %v7314_v32 = vadd.f32 0.00028619796, %v7313_v1  ;;  %v7325_v35 = vadd.f32 0.001143296, %v7324_v61  ;;  %v7351_v13 = vmul.f32 %v15691_v3, %v15691_v3  ;;  %vm7261_vm1 = vmor %vm7259_vm13, %vm7260_vm0 }
 0x76a   : > { %v7258_v4 = vadd.f32 %v8797_v18, %v7257_v38  ;;  %v7266_v62 = vor.u32 1.1754944e-38, %v7265_v12  ;;  %v7243_v47 = vmul.f32 %v7242_v7, %v15521_v14  ;;  %vm7264_vm2 = vcmp.eq.f32.partialorder %v7263_v63, 8.507059e+37  ;;  %v16629_v45 = vld [vmem:[#allocation3_spill] sm:$0xff] }
 0x76b   : > { %v7290_v51 = vmul.f32 %v7289_v30, %v15632_v40  ;;  %v7315_v39 = vmul.f32 %v7314_v32, %v15679_v15  ;;  %v7326_v59 = vmul.f32 %v7325_v35, %v15679_v15  ;;  %v15700_v28 = vmin.f32 %v7351_v13, 16.0 }
 0x76c   : > { %v7262_v48 = vsel %vm7261_vm1, %v8797_v18, %v7258_v4  ;;  %v7279_v21 = vmul.f32 %v7278_v60, %v15632_v40  ;;  %v6534_v42 = vpop.f32.mrf.mxu3  ;;  %v8324_v33 = vclamps-f32 %v6169_v16, 1.0  ;;  %v8323_v11 = vclamps-f32 %v15677_v22, 1.0 }
 0x76d   : > { %v7267_v53 = vsel %vm7264_vm2, %v7266_v62, %v7262_v48  ;;  %v7291_v58 = vadd.f32 0.4994258, %v7290_v51  ;;  %v7316_v54 = vadd.f32 0.0036580483, %v7315_v39  ;;  %v7327_v55 = vadd.f32 0.014752088, %v7326_v59  ;;  %v4978_v59 = vpop.f32.mrf.mxu2 }
 0x76e   : > { %v7268_v24 = vmul.f32 %v7267_v53, %v7243_v47  ;;  %v7353_v20 = vmul.f32 2.1237322e-06, %v15700_v28  ;;  %v7364_v46 = vmul.f32 3.8918573e-05, %v15700_v28  ;;  %6546 = vmatmul.bf16.gmra.mxu3 %v6425_v56  ;;  %v6582_v31 = vmul.f32 0.5, %v15508_v49 }
 0x76f   : > { %v7292_v10 = vmul.f32 %v7291_v58, %v15632_v40  ;;  %v7328_v14 = vmul.f32 %v7327_v55, %v15679_v15  ;;  %v7317_v27 = vmul.f32 %v7316_v54, %v15679_v15  ;;  %v15713_v6 = vadd.f32 %v6534_v42, %v14045_v19 }
 0x770   : > { %v8392_v2 = vclamps-f32 %v7268_v24, 1.0  ;;  %v7354_v18 = vadd.f32 0.00028619796, %v7353_v20  ;;  %v7280_v41 = vadd.f32 0.18741608, %v7279_v21  ;;  %v6359_v16 = vadd.f32 1.0, %v8324_v33 }
 0x771   : > { %v15710_v29 = vadd.f32 1.0, %v7292_v10  ;;  %v7329_v50 = vadd.f32 0.112945676, %v7328_v14  ;;  %v7365_v26 = vadd.f32 0.001143296, %v7364_v46  ;;  %v5015_v22 = vmul.f32 0.5, %v15324_v43 }
 0x772   : > { %v7926_v17 = vadd.f32 1.0, %v8392_v2  ;;  %v7355_v9 = vmul.f32 %v7354_v18, %v15700_v28  ;;  %v7318_v0 = vadd.f32 0.05243302, %v7317_v27  ;;  %v6358_v7 = vadd.f32 1.0, %v8323_v11 }
 0x773   : > { %8798 = vrcp.f32 %v15710_v29  ;;  %v7330_v49 = vmul.f32 %v7329_v50, %v15679_v15  ;;  %v7366_v34 = vmul.f32 %v7365_v26, %v15700_v28  ;;  %v15721_v12 = vmul.f32 0.70710677, %v15713_v6 }
 0x774   : > { %v7958_v25 = vmul.f32 %v7926_v17, %v6582_v31  ;;  %v7356_v57 = vadd.f32 0.0036580483, %v7355_v9  ;;  %v7281_v61 = vmul.f32 %v7280_v41, %v15632_v40  ;;  %v5014_v63 = vmul.f32 0.5, %v15295_v37 }
 0x775   : > { %v7331_v38 = vadd.f32 0.4994258, %v7330_v49  ;;  %v6391_v30 = vmul.f32 %v6359_v16, %v5015_v22  ;;  %v7367_v43 = vadd.f32 0.014752088, %v7366_v34  ;;  %v7391_v56 = vmul.f32 %v15721_v12, %v15721_v12  ;;  %v4980_v22 = vpop.f32.mrf.mxu2 }
 0x776   : > { %v7990_v1 = vadd.f32 %v7958_v25, %v16629_v45  ;;  %v7319_v32 = vmul.f32 %v7318_v0, %v15679_v15  ;;  %v6390_v60 = vmul.f32 %v6358_v7, %v5014_v63  ;;  %v7357_v13 = vmul.f32 %v7356_v57, %v15700_v28 }
 0x777   : > { %v7332_v35 = vmul.f32 %v7331_v38, %v15679_v15  ;;  %v7368_v62 = vmul.f32 %v7367_v43, %v15700_v28  ;;  %v15733_v40 = vmin.f32 %v7391_v56, 16.0  ;;  %v7282_v51 = vadd.f32 1.1283791, %v7281_v61 }
 0x778   : > { %8022 = vst [vmem:[%s14240_s25 + $0x78] sm:$0xff] %v7990_v1  ;;  %v6426_v48 = vpack.c.bf16 %v6391_v30, %v6390_v60  ;;  %v7303_v55 = vand.u32 2147483647, %v15710_v29  ;;  %v7320_v24 = vadd.f32 0.18741608, %v7319_v32  ;;  %v7305_v21 = vand.u32 2147483648, %v15710_v29 }
 0x779   : > { %v8799_v4 = vpop.eup %8798  ;;  %v15736_v39 = vadd.f32 1.0, %v7332_v35  ;;  %v7369_v47 = vadd.f32 0.112945676, %v7368_v62  ;;  %v7393_v53 = vmul.f32 2.1237322e-06, %v15733_v40  ;;  %v15745_v14 = vadd.f32 %v4978_v59, %v13136_v23 }
 0x77a   : > { %v7295_v37 = vmul.f32 %v8799_v4, %v15710_v29  ;;  %v7404_v58 = vmul.f32 3.8918573e-05, %v15733_v40  ;;  %vm7300_vm3 = vweird.f32 %v8799_v4  ;;  %v7358_v20 = vadd.f32 0.05243302, %v7357_v13 }
 0x77b   : > { %8800 = vrcp.f32 %v15736_v39  ;;  %v7370_v46 = vmul.f32 %v7369_v47, %v15700_v28  ;;  %v7394_v33 = vadd.f32 0.00028619796, %v7393_v53  ;;  %vm7299_vm4 = vweird.f32 %v15710_v29 }
 0x77c   : > { %v7296_v54 = vsub.f32 1.0, %v7295_v37  ;;  %v7405_v10 = vadd.f32 0.001143296, %v7404_v58  ;;  %v7321_v27 = vmul.f32 %v7320_v24, %v15679_v15  ;;  %vm7301_vm5 = vmor %vm7299_vm4, %vm7300_vm3  ;;  %v7306_v50 = vor.u32 1.1754944e-38, %v7305_v21  ;;  %v16630_v21 = vld [vmem:[#allocation22_spill] sm:$0xff] }
 0x77d   : > { %v7371_v11 = vadd.f32 0.4994258, %v7370_v46  ;;  %v7395_v18 = vmul.f32 %v7394_v33, %v15733_v40  ;;  %v7359_v17 = vmul.f32 %v7358_v20, %v15700_v28  ;;  %v15755_v9 = vmul.f32 0.70710677, %v15745_v14 }
 0x77e   : > { %v7297_v42 = vmul.f32 %v8799_v4, %v7296_v54  ;;  %6551 = vmatmul.bf16.gmra.mxu3 %v6426_v48  ;;  %v7406_v31 = vmul.f32 %v7405_v10, %v15733_v40  ;;  %v7283_v26 = vmul.f32 %v7282_v51, %v15614_v52  ;;  %vm7304_vm6 = vcmp.eq.f32.partialorder %v7303_v55, 8.507059e+37  ;;  %v4983_v55 = vpop.f32.mrf.mxu2 }
 0x77f   : > { %v7372_v41 = vmul.f32 %v7371_v11, %v15700_v28  ;;  %v6583_v25 = vmul.f32 0.5, %v15607_v36  ;;  %v7396_v7 = vadd.f32 0.0036580483, %v7395_v18  ;;  %v7322_v34 = vadd.f32 1.1283791, %v7321_v27 }
 0x780   : > { %v7298_v2 = vadd.f32 %v8799_v4, %v7297_v42  ;;  %v7407_v15 = vadd.f32 0.014752088, %v7406_v31  ;;  %v7345_v38 = vand.u32 2147483648, %v15736_v39  ;;  %v7360_v52 = vadd.f32 0.18741608, %v7359_v17 }
 0x781   : > { %v8801_v29 = vpop.eup %8800  ;;  %v15760_v45 = vadd.f32 1.0, %v7372_v41  ;;  %v6172_v63 = vmul.f32 %v15755_v9, %v15755_v9  ;;  %v7343_v36 = vand.u32 2147483647, %v15736_v39  ;;  %v15769_v43 = vadd.f32 %v4980_v22, %v13136_v23 }
 0x782   : > { %v7302_v16 = vsel %vm7301_vm5, %v8799_v4, %v7298_v2  ;;  %v7335_v49 = vmul.f32 %v8801_v29, %v15736_v39  ;;  %v7408_v1 = vmul.f32 %v7407_v15, %v15733_v40  ;;  %vm7340_vm7 = vweird.f32 %v8801_v29 }
 0x783   : > { %v7307_v0 = vsel %vm7304_vm6, %v7306_v50, %v7302_v16  ;;  %8802 = vrcp.f32 %v15760_v45  ;;  %v7397_v32 = vmul.f32 %v7396_v7, %v15733_v40  ;;  %v7323_v60 = vmul.f32 %v7322_v34, %v15664_v5 }
 0x784   : > { %v7308_v57 = vmul.f32 %v7307_v0, %v7283_v26  ;;  %v7336_v61 = vsub.f32 1.0, %v7335_v49  ;;  %v7409_v35 = vadd.f32 0.112945676, %v7408_v1  ;;  %vm7339_vm9 = vweird.f32 %v15736_v39 }
 0x785   : > { %v15774_v13 = vmin.f32 %v6172_v63, 16.0  ;;  %v7346_v51 = vor.u32 1.1754944e-38, %v7345_v38  ;;  %v7361_v37 = vmul.f32 %v7360_v52, %v15700_v28  ;;  %vm7341_vm10 = vmor %vm7339_vm9, %vm7340_vm7  ;;  %v15781_v58 = vmul.f32 0.70710677, %v15769_v43 }
 0x786   : > { %v8393_v30 = vclamps-f32 %v7308_v57, 1.0  ;;  %v7337_v56 = vmul.f32 %v8801_v29, %v7336_v61  ;;  %v7410_v59 = vmul.f32 %v7409_v35, %v15733_v40  ;;  %vm7344_vm11 = vcmp.eq.f32.partialorder %v7343_v36, 8.507059e+37 }
 0x787   : > { %v6174_v48 = vmul.f32 2.1237322e-06, %v15774_v13  ;;  %v6185_v53 = vmul.f32 3.8918573e-05, %v15774_v13  ;;  %v7398_v39 = vadd.f32 0.05243302, %v7397_v32  ;;  %v6212_v31 = vmul.f32 %v15781_v58, %v15781_v58 }
 0x788   : > { %v7927_v4 = vadd.f32 1.0, %v8393_v30  ;;  %v7338_v62 = vadd.f32 %v8801_v29, %v7337_v56  ;;  %v7411_v54 = vadd.f32 0.4994258, %v7410_v59  ;;  %v6584_v20 = vmul.f32 0.5, %v15654_v8  ;;  %v16631_v30 = vld [vmem:[#allocation9_spill] sm:$0xff] }
 0x789   : > { %v8803_v24 = vpop.eup %8802  ;;  %v6186_v42 = vadd.f32 0.001143296, %v6185_v53  ;;  %v7362_v10 = vadd.f32 1.1283791, %v7361_v37  ;;  %v6175_v2 = vadd.f32 0.00028619796, %v6174_v48  ;;  %v15792_v50 = vadd.f32 %v4983_v55, %v13136_v23 }
 0x78a   : > { %v7959_v47 = vmul.f32 %v7927_v4, %v6583_v25  ;;  %v7342_v5 = vsel %vm7341_vm10, %v8801_v29, %v7338_v62  ;;  %v7375_v11 = vmul.f32 %v8803_v24, %v15760_v45  ;;  %v7412_v27 = vmul.f32 %v7411_v54, %v15733_v40 }
 0x78b   : > { %v7347_v46 = vsel %vm7344_vm11, %v7346_v51, %v7342_v5  ;;  %v6187_v18 = vmul.f32 %v6186_v42, %v15774_v13  ;;  %v7383_v41 = vand.u32 2147483647, %v15760_v45  ;;  %v7399_v29 = vmul.f32 %v7398_v39, %v15733_v40 }
 0x78c   : > { %v7991_v28 = vadd.f32 %v7959_v47, %v16630_v21  ;;  %v7348_v33 = vmul.f32 %v7347_v46, %v7323_v60  ;;  %v7376_v8 = vsub.f32 1.0, %v7375_v11  ;;  %v7385_v26 = vand.u32 2147483648, %v15760_v45 }
 0x78d   : > { %v15797_v16 = vadd.f32 1.0, %v7412_v27  ;;  %v6188_v15 = vadd.f32 0.014752088, %v6187_v18  ;;  %v15799_v22 = vmin.f32 %v6212_v31, 16.0  ;;  %vm7380_vm12 = vweird.f32 %v8803_v24 }
 0x78e   : > { %8023 = vst [vmem:[%s14240_s25 + $0x80] sm:$0xff] %v7991_v28  ;;  %v8394_v17 = vclamps-f32 %v7348_v33, 1.0  ;;  %v7377_v0 = vmul.f32 %v8803_v24, %v7376_v8  ;;  %v6176_v49 = vmul.f32 %v6175_v2, %v15774_v13  ;;  %v7363_v7 = vmul.f32 %v7362_v10, %v15691_v3 }
 0x78f   : > { %vm7379_vm8 = vweird.f32 %v15760_v45  ;;  %8804 = vrcp.f32 %v15797_v16  ;;  %v15806_v57 = vmul.f32 0.70710677, %v15792_v50  ;;  %v7400_v61 = vadd.f32 0.18741608, %v7399_v29 }
 0x790   : > { %v7928_v25 = vadd.f32 1.0, %v8394_v17  ;;  %v7378_v1 = vadd.f32 %v8803_v24, %v7377_v0  ;;  %v6189_v38 = vmul.f32 %v6188_v15, %v15774_v13  ;;  %vm7381_vm14 = vmor %vm7379_vm8, %vm7380_vm12  ;;  %vm7384_vm15 = vcmp.eq.f32.partialorder %v7383_v41, 8.507059e+37  ;;  %v4985_v17 = vpop.f32.mrf.mxu2 }
 0x791   : > { %v7386_v52 = vor.u32 1.1754944e-38, %v7385_v26  ;;  %v6214_v63 = vmul.f32 2.1237322e-06, %v15799_v22  ;;  %v6225_v3 = vmul.f32 3.8918573e-05, %v15799_v22  ;;  %v6252_v62 = vmul.f32 %v15806_v57, %v15806_v57  ;;  %v16632_v26 = vld [vmem:[#allocation24_spill] sm:$0xff] }
 0x792   : > { %v7960_v34 = vmul.f32 %v7928_v25, %v6584_v20  ;;  %v7382_v36 = vsel %vm7381_vm14, %v8803_v24, %v7378_v1  ;;  %v6177_v56 = vadd.f32 0.0036580483, %v6176_v49  ;;  %v6190_v32 = vadd.f32 0.112945676, %v6189_v38 }
 0x793   : > { %v7387_v35 = vsel %vm7384_vm15, %v7386_v52, %v7382_v36  ;;  %v6215_v4 = vadd.f32 0.00028619796, %v6214_v63  ;;  %v6226_v60 = vadd.f32 0.001143296, %v6225_v3  ;;  %v7401_v37 = vmul.f32 %v7400_v61, %v15733_v40 }
 0x794   : > { %v7992_v45 = vadd.f32 %v7960_v34, %v16631_v30  ;;  %v7388_v51 = vmul.f32 %v7387_v35, %v7363_v7  ;;  %v6191_v59 = vmul.f32 %v6190_v32, %v15774_v13  ;;  %v6178_v54 = vmul.f32 %v6177_v56, %v15774_v13 }
 0x795   : > { %v8805_v47 = vpop.eup %8804  ;;  %v6216_v48 = vmul.f32 %v6215_v4, %v15799_v22  ;;  %v6227_v53 = vmul.f32 %v6226_v60, %v15799_v22  ;;  %v15821_v55 = vmin.f32 %v6252_v62, 16.0  ;;  %v6585_v20 = vmul.f32 0.5, %v15683_v44 }
 0x796   : > { %8024 = vst [vmem:[%s14240_s25 + $0x88] sm:$0xff] %v7992_v45  ;;  %v8395_v5 = vclamps-f32 %v7388_v51, 1.0  ;;  %v7415_v39 = vmul.f32 %v8805_v47, %v15797_v16  ;;  %v6192_v24 = vadd.f32 0.4994258, %v6191_v59  ;;  %v7402_v46 = vadd.f32 1.1283791, %v7401_v37 }
 0x797   : > { %v6217_v21 = vadd.f32 0.0036580483, %v6216_v48  ;;  %v6228_v28 = vadd.f32 0.014752088, %v6227_v53  ;;  %v7423_v33 = vand.u32 2147483647, %v15797_v16  ;;  %vm7420_vm0 = vweird.f32 %v8805_v47 }
 0x798   : > { %v7929_v40 = vadd.f32 1.0, %v8395_v5  ;;  %v7416_v42 = vsub.f32 1.0, %v7415_v39  ;;  %v7425_v10 = vand.u32 2147483648, %v15797_v16  ;;  %v6193_v11 = vmul.f32 %v6192_v24, %v15774_v13 }
 0x799   : > { %v6229_v2 = vmul.f32 %v6228_v28, %v15799_v22  ;;  %v6179_v31 = vadd.f32 0.05243302, %v6178_v54  ;;  %v6218_v44 = vmul.f32 %v6217_v21, %v15799_v22  ;;  %v6265_v29 = vmul.f32 3.8918573e-05, %v15821_v55 }
 0x79a   : > { %v7961_v27 = vmul.f32 %v7929_v40, %v6585_v20  ;;  %v7417_v18 = vmul.f32 %v8805_v47, %v7416_v42  ;;  %v15828_v8 = vadd.f32 1.0, %v6193_v11  ;;  %vm7419_vm13 = vweird.f32 %v15797_v16 }
 0x79b   : > { %v6230_v41 = vadd.f32 0.112945676, %v6229_v2  ;;  %v7403_v0 = vmul.f32 %v7402_v46, %v15721_v12  ;;  %vm7421_vm1 = vmor %vm7419_vm13, %vm7420_vm0  ;;  %v7426_v49 = vor.u32 1.1754944e-38, %v7425_v10  ;;  %v15837_v7 = vadd.f32 %v4985_v17, %v13136_v23 }
 0x79c   : > { %v7993_v15 = vadd.f32 %v7961_v27, %v16632_v26  ;;  %v7418_v25 = vadd.f32 %v8805_v47, %v7417_v18  ;;  %8806 = vrcp.f32 %v15828_v8  ;;  %vm7424_vm2 = vcmp.eq.f32.partialorder %v7423_v33, 8.507059e+37 }
 0x79d   : > { %v6180_v1 = vmul.f32 %v6179_v31, %v15774_v13  ;;  %v6231_v61 = vmul.f32 %v6230_v41, %v15799_v22  ;;  %v6219_v52 = vadd.f32 0.05243302, %v6218_v44  ;;  %v6254_v16 = vmul.f32 2.1237322e-06, %v15821_v55 }
 0x79e   : > { %8025 = vst [vmem:[%s14240_s25 + $0x90] sm:$0xff] %v7993_v15  ;;  %v7422_v34 = vsel %vm7421_vm1, %v8805_v47, %v7418_v25  ;;  %v6266_v63 = vadd.f32 0.001143296, %v6265_v29  ;;  %v15845_v45 = vmul.f32 0.70710677, %v15837_v7  ;;  %v6586_v51 = vmul.f32 0.5, %v15713_v6 }
 0x79f   : > { %v7427_v38 = vsel %vm7424_vm2, %v7426_v49, %v7422_v34  ;;  %v6232_v3 = vadd.f32 0.4994258, %v6231_v61  ;;  %v6181_v36 = vadd.f32 0.18741608, %v6180_v1  ;;  %v6220_v35 = vmul.f32 %v6219_v52, %v15799_v22  ;;  %v16633_v6 = vld [vmem:[#allocation8_spill] sm:$0xff] }
 0x7a0   : > { %v7428_v12 = vmul.f32 %v7427_v38, %v7403_v0  ;;  %v6267_v30 = vmul.f32 %v6266_v63, %v15821_v55  ;;  %v6255_v4 = vadd.f32 0.00028619796, %v6254_v16  ;;  %v6292_v62 = vmul.f32 %v15845_v45, %v15845_v45  ;;  %v6537_v16 = vpop.f32.mrf.mxu3 }
 0x7a1   : > { %v6233_v56 = vmul.f32 %v6232_v3, %v15799_v22  ;;  %v6182_v54 = vmul.f32 %v6181_v36, %v15774_v13  ;;  %v6221_v24 = vadd.f32 0.18741608, %v6220_v35  ;;  %v6206_v46 = vand.u32 2147483648, %v15828_v8 }
 0x7a2   : > { %v8396_v23 = vclamps-f32 %v7428_v12, 1.0  ;;  %v8807_v32 = vpop.eup %8806  ;;  %v6268_v60 = vadd.f32 0.014752088, %v6267_v30  ;;  %v15856_v53 = vmin.f32 %v6292_v62, 16.0  ;;  %v6256_v21 = vmul.f32 %v6255_v4, %v15821_v55 }
 0x7a3   : > { %v6196_v59 = vmul.f32 %v8807_v32, %v15828_v8  ;;  %v15853_v47 = vadd.f32 1.0, %v6233_v56  ;;  %vm6201_vm3 = vweird.f32 %v8807_v32  ;;  %vm6200_vm4 = vweird.f32 %v15828_v8 }
 0x7a4   : > { %v7930_v37 = vadd.f32 1.0, %v8396_v23  ;;  %v6269_v48 = vmul.f32 %v6268_v60, %v15821_v55  ;;  %v6294_v42 = vmul.f32 2.1237322e-06, %v15856_v53  ;;  %v6305_v33 = vmul.f32 3.8918573e-05, %v15856_v53  ;;  %vm6202_vm5 = vmor %vm6200_vm4, %vm6201_vm3 }
 0x7a5   : > { %v6197_v39 = vsub.f32 1.0, %v6196_v59  ;;  %8808 = vrcp.f32 %v15853_v47  ;;  %v6204_v13 = vand.u32 2147483647, %v15828_v8  ;;  %v6257_v2 = vadd.f32 0.0036580483, %v6256_v21 }
 0x7a6   : > { %v7962_v5 = vmul.f32 %v7930_v37, %v6586_v51  ;;  %v6270_v40 = vadd.f32 0.112945676, %v6269_v48  ;;  %v6295_v27 = vadd.f32 0.00028619796, %v6294_v42  ;;  %v6306_v18 = vadd.f32 0.001143296, %v6305_v33 }
 0x7a7   : > { %v6198_v20 = vmul.f32 %v8807_v32, %v6197_v39  ;;  %v6183_v31 = vadd.f32 1.1283791, %v6182_v54  ;;  %v6222_v44 = vmul.f32 %v6221_v24, %v15799_v22  ;;  %v6207_v26 = vor.u32 1.1754944e-38, %v6206_v46 }
 0x7a8   : > { %v7994_v28 = vadd.f32 %v7962_v5, %v16633_v6  ;;  %v6271_v11 = vmul.f32 %v6270_v40, %v15821_v55  ;;  %v6296_v15 = vmul.f32 %v6295_v27, %v15856_v53  ;;  %v6307_v25 = vmul.f32 %v6306_v18, %v15856_v53  ;;  %v6539_v24 = vpop.f32.mrf.mxu3 }
 0x7a9   : > { %v6199_v10 = vadd.f32 %v8807_v32, %v6198_v20  ;;  %vm6205_vm6 = vcmp.eq.f32.partialorder %v6204_v13, 8.507059e+37  ;;  %v6258_v49 = vmul.f32 %v6257_v2, %v15821_v55  ;;  %v6184_v61 = vmul.f32 %v6183_v31, %v15755_v9 }
 0x7aa   : > { %8026 = vst [vmem:[%s14240_s25 + $0x98] sm:$0xff] %v7994_v28  ;;  %v6272_v41 = vadd.f32 0.4994258, %v6271_v11  ;;  %v6308_v1 = vadd.f32 0.014752088, %v6307_v25  ;;  %v6246_v52 = vand.u32 2147483648, %v15853_v47  ;;  %v15881_v30 = vadd.f32 %v6537_v16, %v14045_v19 }
 0x7ab   : > { %v6203_v17 = vsel %vm6202_vm5, %v8807_v32, %v6199_v10  ;;  %v8809_v29 = vpop.eup %8808  ;;  %v6223_v38 = vadd.f32 1.1283791, %v6222_v44  ;;  %v6297_v12 = vadd.f32 0.0036580483, %v6296_v15  ;;  %v6244_v56 = vand.u32 2147483647, %v15853_v47 }
 0x7ac   : > { %v6236_v8 = vmul.f32 %v8809_v29, %v15853_v47  ;;  %v6208_v0 = vsel %vm6205_vm6, %v6207_v26, %v6203_v17  ;;  %v6273_v34 = vmul.f32 %v6272_v41, %v15821_v55  ;;  %v6309_v3 = vmul.f32 %v6308_v1, %v15856_v53 }
 0x7ad   : > { %v6209_v23 = vmul.f32 %v6208_v0, %v6184_v61  ;;  %vm6241_vm7 = vweird.f32 %v8809_v29  ;;  %v6259_v32 = vadd.f32 0.05243302, %v6258_v49  ;;  %vm6240_vm9 = vweird.f32 %v15853_v47 }
 0x7ae   : > { %v6237_v22 = vsub.f32 1.0, %v6236_v8  ;;  %v15877_v63 = vadd.f32 1.0, %v6273_v34  ;;  %v6310_v35 = vadd.f32 0.112945676, %v6309_v3  ;;  %v6224_v4 = vmul.f32 %v6223_v38, %v15781_v58  ;;  %vm6242_vm10 = vmor %vm6240_vm9, %vm6241_vm7 }
 0x7af   : > { %v6247_v60 = vor.u32 1.1754944e-38, %v6246_v52  ;;  %v6298_v62 = vmul.f32 %v6297_v12, %v15856_v53  ;;  %v15889_v51 = vmul.f32 0.70710677, %v15881_v30  ;;  %v8325_v37 = vclamps-f32 %v6209_v23, 1.0 }
 0x7b0   : > { %v6238_v36 = vmul.f32 %v8809_v29, %v6237_v22  ;;  %8810 = vrcp.f32 %v15877_v63  ;;  %vm6245_vm11 = vcmp.eq.f32.partialorder %v6244_v56, 8.507059e+37  ;;  %v6311_v48 = vmul.f32 %v6310_v35, %v15856_v53 }
 0x7b1   : > { %v6260_v39 = vmul.f32 %v6259_v32, %v15821_v55  ;;  %v7431_v47 = vmul.f32 %v15889_v51, %v15889_v51  ;;  %v6299_v6 = vadd.f32 0.05243302, %v6298_v62  ;;  %v15898_v20 = vadd.f32 %v6539_v24, %v14045_v19 }
 0x7b2   : > { %v6239_v9 = vadd.f32 %v8809_v29, %v6238_v36  ;;  %v6312_v58 = vadd.f32 0.4994258, %v6311_v48  ;;  %v5016_v40 = vmul.f32 0.5, %v15745_v14  ;;  %v6360_v46 = vadd.f32 1.0, %v8325_v37 }
 0x7b3   : > { %v15895_v28 = vmin.f32 %v7431_v47, 16.0  ;;  %v6261_v10 = vadd.f32 0.18741608, %v6260_v39  ;;  %v5017_v27 = vmul.f32 0.5, %v15769_v43  ;;  %v15907_v17 = vmul.f32 0.70710677, %v15898_v20 }
 0x7b4   : > { %v6243_v59 = vsel %vm6242_vm10, %v8809_v29, %v6239_v9  ;;  %v6313_v13 = vmul.f32 %v6312_v58, %v15856_v53  ;;  %v6300_v14 = vmul.f32 %v6299_v6, %v15856_v53  ;;  %v6392_v26 = vmul.f32 %v6360_v46, %v5016_v40 }
 0x7b5   : > { %v6248_v5 = vsel %vm6245_vm11, %v6247_v60, %v6243_v59  ;;  %v7433_v11 = vmul.f32 2.1237322e-06, %v15895_v28  ;;  %v7444_v2 = vmul.f32 3.8918573e-05, %v15895_v28  ;;  %v7471_v8 = vmul.f32 %v15907_v17, %v15907_v17 }
 0x7b6   : > { %v6249_v54 = vmul.f32 %v6248_v5, %v6224_v4  ;;  %v8811_v21 = vpop.eup %8810  ;;  %v15910_v44 = vadd.f32 1.0, %v6313_v13  ;;  %v6262_v0 = vmul.f32 %v6261_v10, %v15821_v55  ;;  %v6286_v61 = vand.u32 2147483648, %v15877_v63 }
 0x7b7   : > { %v6276_v33 = vmul.f32 %v8811_v21, %v15877_v63  ;;  %v7434_v41 = vadd.f32 0.00028619796, %v7433_v11  ;;  %v7445_v29 = vadd.f32 0.001143296, %v7444_v2  ;;  %vm6281_vm12 = vweird.f32 %v8811_v21 }
 0x7b8   : > { %v8326_v42 = vclamps-f32 %v6249_v54, 1.0  ;;  %8812 = vrcp.f32 %v15910_v44  ;;  %v6301_v38 = vadd.f32 0.18741608, %v6300_v14  ;;  %v15919_v22 = vmin.f32 %v7471_v8, 16.0 }
 0x7b9   : > { %v6277_v31 = vsub.f32 1.0, %v6276_v33  ;;  %v7435_v49 = vmul.f32 %v7434_v41, %v15895_v28  ;;  %v7446_v34 = vmul.f32 %v7445_v29, %v15895_v28  ;;  %vm6280_vm8 = vweird.f32 %v15877_v63 }
 0x7ba   : > { %v6361_v18 = vadd.f32 1.0, %v8326_v42  ;;  %v6284_v52 = vand.u32 2147483647, %v15877_v63  ;;  %vm6282_vm14 = vmor %vm6280_vm8, %vm6281_vm12  ;;  %v7473_v55 = vmul.f32 2.1237322e-06, %v15919_v22  ;;  %v6287_v9 = vor.u32 1.1754944e-38, %v6286_v61 }
 0x7bb   : > { %v6278_v25 = vmul.f32 %v8811_v21, %v6277_v31  ;;  %v7447_v16 = vadd.f32 0.014752088, %v7446_v34  ;;  %v7484_v12 = vmul.f32 3.8918573e-05, %v15919_v22  ;;  %v6263_v3 = vadd.f32 1.1283791, %v6262_v0 }
 0x7bc   : > { %v6393_v15 = vmul.f32 %v6361_v18, %v5017_v27  ;;  %v7436_v36 = vadd.f32 0.0036580483, %v7435_v49  ;;  %v6302_v35 = vmul.f32 %v6301_v38, %v15856_v53  ;;  %v7474_v4 = vadd.f32 0.00028619796, %v7473_v55 }
 0x7bd   : > { %v6279_v43 = vadd.f32 %v8811_v21, %v6278_v25  ;;  %v7448_v56 = vmul.f32 %v7447_v16, %v15895_v28  ;;  %v7485_v60 = vadd.f32 0.001143296, %v7484_v12  ;;  %vm6285_vm15 = vcmp.eq.f32.partialorder %v6284_v52, 8.507059e+37 }
 0x7be   : > { %v6427_v1 = vpack.c.bf16 %v6393_v15, %v6392_v26  ;;  %v8813_v32 = vpop.eup %8812  ;;  %v7475_v59 = vmul.f32 %v7474_v4, %v15919_v22  ;;  %v6264_v5 = vmul.f32 %v6263_v3, %v15806_v57  ;;  %v7437_v47 = vmul.f32 %v7436_v36, %v15895_v28 }
 0x7bf   : > { %v6283_v23 = vsel %vm6282_vm14, %v8811_v21, %v6279_v43  ;;  %v6316_v63 = vmul.f32 %v8813_v32, %v15910_v44  ;;  %v7449_v37 = vadd.f32 0.112945676, %v7448_v56  ;;  %v7486_v48 = vmul.f32 %v7485_v60, %v15919_v22 }
 0x7c0   : > { %6556 = vmatmul.bf16.gmra.mxu3 %v6427_v1  ;;  %v6288_v62 = vsel %vm6285_vm15, %v6287_v9, %v6283_v23  ;;  %v6303_v54 = vadd.f32 1.1283791, %v6302_v35  ;;  %v6326_v58 = vand.u32 2147483648, %v15910_v44  ;;  %vm6321_vm0 = vweird.f32 %v8813_v32 }
 0x7c1   : > { %v6317_v39 = vsub.f32 1.0, %v6316_v63  ;;  %v7450_v53 = vmul.f32 %v7449_v37, %v15895_v28  ;;  %v7487_v24 = vadd.f32 0.014752088, %v7486_v48  ;;  %v6289_v21 = vmul.f32 %v6288_v62, %v6264_v5 }
 0x7c2   : > { %v6324_v40 = vand.u32 2147483647, %v15910_v44  ;;  %v7476_v42 = vadd.f32 0.0036580483, %v7475_v59  ;;  %vm6320_vm13 = vweird.f32 %v15910_v44  ;;  %v7438_v57 = vadd.f32 0.05243302, %v7437_v47 }
 0x7c3   : > { %v6318_v6 = vmul.f32 %v8813_v32, %v6317_v39  ;;  %v7451_v46 = vadd.f32 0.4994258, %v7450_v53  ;;  %v7488_v33 = vmul.f32 %v7487_v24, %v15919_v22  ;;  %vm6322_vm1 = vmor %vm6320_vm13, %vm6321_vm0  ;;  %v6327_v13 = vor.u32 1.1754944e-38, %v6326_v58 }
 0x7c4   : > { %v8327_v27 = vclamps-f32 %v6289_v21, 1.0  ;;  %v6304_v18 = vmul.f32 %v6303_v54, %v15845_v45  ;;  %vm6325_vm2 = vcmp.eq.f32.partialorder %v6324_v40, 8.507059e+37  ;;  %v7477_v29 = vmul.f32 %v7476_v42, %v15919_v22 }
 0x7c5   : > { %v6319_v10 = vadd.f32 %v8813_v32, %v6318_v6  ;;  %v7452_v11 = vmul.f32 %v7451_v46, %v15895_v28  ;;  %v7489_v2 = vadd.f32 0.112945676, %v7488_v33  ;;  %v7439_v44 = vmul.f32 %v7438_v57, %v15895_v28 }
 0x7c6   : > { %v6362_v0 = vadd.f32 1.0, %v8327_v27  ;;  %v7478_v43 = vadd.f32 0.05243302, %v7477_v29  ;;  %v5019_v49 = vmul.f32 0.5, %v15837_v7  ;;  %v5018_v61 = vmul.f32 0.5, %v15792_v50 }
 0x7c7   : > { %v6323_v31 = vsel %vm6322_vm1, %v8813_v32, %v6319_v10  ;;  %v7453_v41 = vadd.f32 1.0, %v7452_v11  ;;  %v7490_v26 = vmul.f32 %v7489_v2, %v15919_v22  ;;  %v7440_v45 = vadd.f32 0.18741608, %v7439_v44 }
 0x7c8   : > { %v6328_v14 = vsel %vm6325_vm2, %v6327_v13, %v6323_v31  ;;  %v6394_v55 = vmul.f32 %v6362_v0, %v5018_v61  ;;  %v7479_v12 = vmul.f32 %v7478_v43, %v15919_v22  ;;  %v6587_v46 = vmul.f32 0.5, %v15881_v30 }
 0x7c9   : > { %v6329_v15 = vmul.f32 %v6328_v14, %v6304_v18  ;;  %8814 = vrcp.f32 %v7453_v41  ;;  %v7491_v8 = vadd.f32 0.4994258, %v7490_v26  ;;  %v7441_v3 = vmul.f32 %v7440_v45, %v15895_v28 }
 0x7ca   : > { %v7465_v32 = vand.u32 2147483648, %v7453_v41  ;;  %v7480_v7 = vadd.f32 0.18741608, %v7479_v12  ;;  %v7463_v4 = vand.u32 2147483647, %v7453_v41  ;;  %vm7459_vm4 = vweird.f32 %v7453_v41  ;;  %v16635_v12 = vld [vmem:[#allocation26_spill] sm:$0xff] }
 0x7cb   : > { %v8328_v25 = vclamps-f32 %v6329_v15, 1.0  ;;  %v7492_v1 = vmul.f32 %v7491_v8, %v15919_v22  ;;  %v7442_v9 = vadd.f32 1.1283791, %v7441_v3  ;;  %v6588_v0 = vmul.f32 0.5, %v15898_v20 }
 0x7cc   : > { %v7466_v63 = vor.u32 1.1754944e-38, %v7465_v32  ;;  %v7481_v62 = vmul.f32 %v7480_v7, %v15919_v22  ;;  %vm7464_vm6 = vcmp.eq.f32.partialorder %v7463_v4, 8.507059e+37 }
 0x7cd   : > { %v6363_v34 = vadd.f32 1.0, %v8328_v25  ;;  %v7493_v52 = vadd.f32 1.0, %v7492_v1  ;;  %v7443_v59 = vmul.f32 %v7442_v9, %v15889_v51 }
 0x7ce   : > { %v7482_v24 = vadd.f32 1.1283791, %v7481_v62 }
 0x7cf   : > { %v6395_v38 = vmul.f32 %v6363_v34, %v5019_v49  ;;  %v8815_v16 = vpop.eup %8814  ;;  %8816 = vrcp.f32 %v7493_v52  ;;  %v7505_v58 = vand.u32 2147483648, %v7493_v52  ;;  %v7503_v22 = vand.u32 2147483647, %v7493_v52 }
 0x7d0   : > { %v7455_v23 = vmul.f32 %v8815_v16, %v7453_v41  ;;  %vm7460_vm3 = vweird.f32 %v8815_v16  ;;  %vm7499_vm9 = vweird.f32 %v7493_v52  ;;  %v7483_v57 = vmul.f32 %v7482_v24, %v15907_v17  ;;  %v16634_v41 = vld [vmem:[#allocation18_spill] sm:$0xff] }
 0x7d1   : > { %v6428_v36 = vpack.c.bf16 %v6395_v38, %v6394_v55  ;;  %vm7461_vm5 = vmor %vm7459_vm4, %vm7460_vm3  ;;  %v7506_v33 = vor.u32 1.1754944e-38, %v7505_v58  ;;  %vm7504_vm11 = vcmp.eq.f32.partialorder %v7503_v22, 8.507059e+37 }
 0x7d2   : > { %v7456_v56 = vsub.f32 1.0, %v7455_v23 }
 0x7d3   : > { %6561 = vmatmul.bf16.gmra.mxu3 %v6428_v36 }
 0x7d4   : > { %v7457_v35 = vmul.f32 %v8815_v16, %v7456_v56 }
 0x7d5   : > { %v8817_v50 = vpop.eup %8816 }
 0x7d6   : > { %v7458_v60 = vadd.f32 %v8815_v16, %v7457_v35  ;;  %v7495_v37 = vmul.f32 %v8817_v50, %v7493_v52  ;;  %vm7500_vm7 = vweird.f32 %v8817_v50 }
 0x7d7   : > { %vm7501_vm10 = vmor %vm7499_vm9, %vm7500_vm7 }
 0x7d8   : > { %v7462_v48 = vsel %vm7461_vm5, %v8815_v16, %v7458_v60  ;;  %v7496_v47 = vsub.f32 1.0, %v7495_v37 }
 0x7d9   : > { %v7467_v39 = vsel %vm7464_vm6, %v7466_v63, %v7462_v48 }
 0x7da   : > { %v7468_v54 = vmul.f32 %v7467_v39, %v7443_v59  ;;  %v7497_v21 = vmul.f32 %v8817_v50, %v7496_v47 }
 0x7dc   : > { %v8397_v6 = vclamps-f32 %v7468_v54, 1.0  ;;  %v7498_v40 = vadd.f32 %v8817_v50, %v7497_v21 }
 0x7de   : > { %v7931_v42 = vadd.f32 1.0, %v8397_v6  ;;  %v7502_v13 = vsel %vm7501_vm10, %v8817_v50, %v7498_v40 }
 0x7df   : > { %v7507_v27 = vsel %vm7504_vm11, %v7506_v33, %v7502_v13 }
 0x7e0   : > { %v7963_v2 = vmul.f32 %v7931_v42, %v6587_v46  ;;  %v7508_v14 = vmul.f32 %v7507_v27, %v7483_v57 }
 0x7e1   : > { %v6542_v28 = vpop.f32.mrf.mxu3 }
 0x7e2   : > { %v15950_v5 = vadd.f32 %v6542_v28, %v14045_v19  ;;  %v7995_v29 = vadd.f32 %v7963_v2, %v16634_v41  ;;  %v8398_v44 = vclamps-f32 %v7508_v14, 1.0 }
 0x7e4   : > { %v15953_v53 = vmul.f32 0.70710677, %v15950_v5  ;;  %8027 = vst [vmem:[%s14240_s25 + $0xa0] sm:$0xff] %v7995_v29  ;;  %v7932_v43 = vadd.f32 1.0, %v8398_v44 }
 0x7e6   : > { %v7511_v51 = vmul.f32 %v15953_v53, %v15953_v53  ;;  %v7964_v1 = vmul.f32 %v7932_v43, %v6588_v0 }
 0x7e8   : > { %v15958_v10 = vmin.f32 %v7511_v51, 16.0  ;;  %v7996_v20 = vadd.f32 %v7964_v1, %v16635_v12 }
 0x7e9   : > { %v6544_v11 = vpop.f32.mrf.mxu3 }
 0x7ea   : > { %v7513_v18 = vmul.f32 2.1237322e-06, %v15958_v10  ;;  %v7524_v31 = vmul.f32 3.8918573e-05, %v15958_v10  ;;  %v15964_v30 = vadd.f32 %v6544_v11, %v14045_v19  ;;  %8028 = vst [vmem:[%s14240_s25 + $0xa8] sm:$0xff] %v7996_v20 }
 0x7ec   : > { %v7514_v26 = vadd.f32 0.00028619796, %v7513_v18  ;;  %v7525_v15 = vadd.f32 0.001143296, %v7524_v31  ;;  %v15968_v17 = vmul.f32 0.70710677, %v15964_v30 }
 0x7ee   : > { %v7515_v25 = vmul.f32 %v7514_v26, %v15958_v10  ;;  %v7526_v8 = vmul.f32 %v7525_v15, %v15958_v10  ;;  %v7551_v49 = vmul.f32 %v15968_v17, %v15968_v17 }
 0x7f0   : > { %v7516_v34 = vadd.f32 0.0036580483, %v7515_v25  ;;  %v7527_v45 = vadd.f32 0.014752088, %v7526_v8  ;;  %v15976_v61 = vmin.f32 %v7551_v49, 16.0 }
 0x7f1   : > { %v6547_v38 = vpop.f32.mrf.mxu3 }
 0x7f2   : > { %v7517_v52 = vmul.f32 %v7516_v34, %v15958_v10  ;;  %v7528_v16 = vmul.f32 %v7527_v45, %v15958_v10  ;;  %v15981_v55 = vadd.f32 %v6547_v38, %v14045_v19  ;;  %v7553_v3 = vmul.f32 2.1237322e-06, %v15976_v61 }
 0x7f3   : > { %v7564_v23 = vmul.f32 3.8918573e-05, %v15976_v61 }
 0x7f4   : > { %v7518_v36 = vadd.f32 0.05243302, %v7517_v52  ;;  %v7529_v56 = vadd.f32 0.112945676, %v7528_v16  ;;  %v7554_v32 = vadd.f32 0.00028619796, %v7553_v3 }
 0x7f5   : > { %v7565_v7 = vadd.f32 0.001143296, %v7564_v23  ;;  %v15989_v35 = vmul.f32 0.70710677, %v15981_v55 }
 0x7f6   : > { %v7530_v9 = vmul.f32 %v7529_v56, %v15958_v10  ;;  %v7555_v4 = vmul.f32 %v7554_v32, %v15976_v61  ;;  %v7519_v62 = vmul.f32 %v7518_v36, %v15958_v10 }
 0x7f7   : > { %v7566_v50 = vmul.f32 %v7565_v7, %v15976_v61  ;;  %v7591_v63 = vmul.f32 %v15989_v35, %v15989_v35 }
 0x7f8   : > { %v7531_v60 = vadd.f32 0.4994258, %v7530_v9  ;;  %v7556_v37 = vadd.f32 0.0036580483, %v7555_v4  ;;  %v7520_v22 = vadd.f32 0.18741608, %v7519_v62 }
 0x7f9   : > { %v7567_v28 = vadd.f32 0.014752088, %v7566_v50  ;;  %v6549_v59 = vpop.f32.mrf.mxu3  ;;  %v15997_v39 = vmin.f32 %v7591_v63, 16.0 }
 0x7fa   : > { %v7532_v48 = vmul.f32 %v7531_v60, %v15958_v10  ;;  %v7557_v47 = vmul.f32 %v7556_v37, %v15976_v61  ;;  %v16003_v21 = vadd.f32 %v6549_v59, %v14045_v19  ;;  %v7521_v13 = vmul.f32 %v7520_v22, %v15958_v10 }
 0x7fb   : > { %v7568_v54 = vmul.f32 %v7567_v28, %v15976_v61  ;;  %v7593_v24 = vmul.f32 2.1237322e-06, %v15997_v39  ;;  %v7604_v51 = vmul.f32 3.8918573e-05, %v15997_v39 }
 0x7fc   : > { %v7533_v58 = vadd.f32 1.0, %v7532_v48  ;;  %v7558_v40 = vadd.f32 0.05243302, %v7557_v47  ;;  %v16008_v57 = vmul.f32 0.70710677, %v16003_v21 }
 0x7fd   : > { %v7569_v6 = vadd.f32 0.112945676, %v7568_v54  ;;  %v7594_v42 = vadd.f32 0.00028619796, %v7593_v24  ;;  %v7605_v33 = vadd.f32 0.001143296, %v7604_v51 }
 0x7fe   : > { %8818 = vrcp.f32 %v7533_v58  ;;  %v7559_v18 = vmul.f32 %v7558_v40, %v15976_v61  ;;  %v7631_v14 = vmul.f32 %v16008_v57, %v16008_v57  ;;  %v7522_v8 = vadd.f32 1.1283791, %v7521_v13 }
 0x7ff   : > { %v7570_v46 = vmul.f32 %v7569_v6, %v15976_v61  ;;  %v7595_v2 = vmul.f32 %v7594_v42, %v15997_v39  ;;  %v7606_v31 = vmul.f32 %v7605_v33, %v15997_v39  ;;  %v7543_v52 = vand.u32 2147483647, %v7533_v58 }
 0x800   : > { %v16020_v10 = vmin.f32 %v7631_v14, 16.0  ;;  %v7560_v49 = vadd.f32 0.18741608, %v7559_v18  ;;  %v7545_v16 = vand.u32 2147483648, %v7533_v58  ;;  %v7523_v32 = vmul.f32 %v7522_v8, %v15953_v53 }
 0x801   : > { %v7571_v11 = vadd.f32 0.4994258, %v7570_v46  ;;  %v6552_v27 = vpop.f32.mrf.mxu3  ;;  %v7596_v26 = vadd.f32 0.0036580483, %v7595_v2  ;;  %v7607_v44 = vadd.f32 0.014752088, %v7606_v31  ;;  %vm7539_vm8 = vweird.f32 %v7533_v58 }
 0x802   : > { %v16017_v41 = vadd.f32 %v6552_v27, %v14045_v19  ;;  %v7633_v45 = vmul.f32 2.1237322e-06, %v16020_v10  ;;  %v7644_v1 = vmul.f32 3.8918573e-05, %v16020_v10  ;;  %v7561_v7 = vmul.f32 %v7560_v49, %v15976_v61 }
 0x803   : > { %v7572_v29 = vmul.f32 %v7571_v11, %v15976_v61  ;;  %v7608_v34 = vmul.f32 %v7607_v44, %v15997_v39  ;;  %v7597_v12 = vmul.f32 %v7596_v26, %v15997_v39  ;;  %vm7544_vm15 = vcmp.eq.f32.partialorder %v7543_v52, 8.507059e+37 }
 0x804   : > { %v8819_v15 = vpop.eup %8818  ;;  %v16023_v25 = vmul.f32 0.70710677, %v16017_v41  ;;  %v7634_v36 = vadd.f32 0.00028619796, %v7633_v45  ;;  %v7645_v56 = vadd.f32 0.001143296, %v7644_v1 }
 0x805   : > { %v7535_v0 = vmul.f32 %v8819_v15, %v7533_v58  ;;  %v16025_v43 = vadd.f32 1.0, %v7572_v29  ;;  %vm7540_vm12 = vweird.f32 %v8819_v15  ;;  %v7609_v23 = vadd.f32 0.112945676, %v7608_v34 }
 0x806   : > { %v7671_v20 = vmul.f32 %v16023_v25, %v16023_v25  ;;  %v7635_v60 = vmul.f32 %v7634_v36, %v16020_v10  ;;  %v7646_v63 = vmul.f32 %v7645_v56, %v16020_v10  ;;  %vm7541_vm14 = vmor %vm7539_vm8, %vm7540_vm12  ;;  %v7546_v62 = vor.u32 1.1754944e-38, %v7545_v16 }
 0x807   : > { %v7536_v38 = vsub.f32 1.0, %v7535_v0  ;;  %8820 = vrcp.f32 %v16025_v43  ;;  %v7610_v50 = vmul.f32 %v7609_v23, %v15997_v39  ;;  %v7598_v37 = vadd.f32 0.05243302, %v7597_v12 }
 0x808   : > { %v16036_v9 = vmin.f32 %v7671_v20, 16.0  ;;  %v7636_v61 = vadd.f32 0.0036580483, %v7635_v60  ;;  %v7647_v47 = vadd.f32 0.014752088, %v7646_v63  ;;  %v6589_v54 = vmul.f32 0.5, %v15950_v5 }
 0x809   : > { %v7537_v3 = vmul.f32 %v8819_v15, %v7536_v38  ;;  %v7611_v48 = vadd.f32 0.4994258, %v7610_v50  ;;  %v7562_v51 = vadd.f32 1.1283791, %v7561_v7  ;;  %v7585_v33 = vand.u32 2147483648, %v16025_v43  ;;  %v6554_v31 = vpop.f32.mrf.mxu3  ;;  %v16636_v20 = vld [vmem:[#allocation28_spill] sm:$0xff] }
 0x80a   : > { %v7673_v28 = vmul.f32 2.1237322e-06, %v16036_v9  ;;  %v7684_v22 = vmul.f32 3.8918573e-05, %v16036_v9  ;;  %v7648_v46 = vmul.f32 %v7647_v47, %v16020_v10  ;;  %v7599_v13 = vmul.f32 %v7598_v37, %v15997_v39 }
 0x80b   : > { %v7538_v4 = vadd.f32 %v8819_v15, %v7537_v3  ;;  %v7612_v40 = vmul.f32 %v7611_v48, %v15997_v39  ;;  %v7637_v5 = vmul.f32 %v7636_v61, %v16020_v10  ;;  %v7583_v29 = vand.u32 2147483647, %v16025_v43 }
 0x80c   : > { %v7674_v11 = vadd.f32 0.00028619796, %v7673_v28  ;;  %v7649_v18 = vadd.f32 0.112945676, %v7648_v46  ;;  %v7685_v26 = vadd.f32 0.001143296, %v7684_v22  ;;  %vm7579_vm13 = vweird.f32 %v16025_v43 }
 0x80d   : > { %v8821_v53 = vpop.eup %8820  ;;  %v7542_v59 = vsel %vm7541_vm14, %v8819_v15, %v7538_v4  ;;  %v16050_v27 = vadd.f32 1.0, %v7612_v40  ;;  %v7600_v0 = vadd.f32 0.18741608, %v7599_v13  ;;  %v16059_v34 = vadd.f32 %v6554_v31, %v14045_v19 }
 0x80e   : > { %v7547_v58 = vsel %vm7544_vm15, %v7546_v62, %v7542_v59  ;;  %v7575_v24 = vmul.f32 %v8821_v53, %v16025_v43  ;;  %vm7580_vm0 = vweird.f32 %v8821_v53  ;;  %v7675_v44 = vmul.f32 %v7674_v11, %v16036_v9 }
 0x80f   : > { %v7548_v6 = vmul.f32 %v7547_v58, %v7523_v32  ;;  %8822 = vrcp.f32 %v16050_v27  ;;  %v7650_v49 = vmul.f32 %v7649_v18, %v16020_v10  ;;  %vm7581_vm1 = vmor %vm7579_vm13, %vm7580_vm0  ;;  %v7586_v1 = vor.u32 1.1754944e-38, %v7585_v33  ;;  %v16637_v33 = vld [vmem:[#allocation30_spill] sm:$0xff] }
 0x810   : > { %v7576_v42 = vsub.f32 1.0, %v7575_v24  ;;  %v7638_v38 = vadd.f32 0.05243302, %v7637_v5  ;;  %v7686_v52 = vmul.f32 %v7685_v26, %v16036_v9  ;;  %v7563_v43 = vmul.f32 %v7562_v51, %v15968_v17 }
 0x811   : > { %v8399_v2 = vclamps-f32 %v7548_v6, 1.0  ;;  %vm7584_vm2 = vcmp.eq.f32.partialorder %v7583_v29, 8.507059e+37  ;;  %v7651_v12 = vadd.f32 0.4994258, %v7650_v49  ;;  %v7676_v36 = vadd.f32 0.0036580483, %v7675_v44 }
 0x812   : > { %v7577_v14 = vmul.f32 %v8821_v53, %v7576_v42  ;;  %v7687_v56 = vadd.f32 0.014752088, %v7686_v52  ;;  %v7601_v7 = vmul.f32 %v7600_v0, %v15997_v39  ;;  %v16067_v50 = vmul.f32 0.70710677, %v16059_v34 }
 0x813   : > { %v7933_v15 = vadd.f32 1.0, %v8399_v2  ;;  %v7652_v4 = vmul.f32 %v7651_v12, %v16020_v10  ;;  %v7639_v17 = vmul.f32 %v7638_v38, %v16020_v10  ;;  %v6590_v48 = vmul.f32 0.5, %v15964_v30 }
 0x814   : > { %v7578_v8 = vadd.f32 %v8821_v53, %v7577_v14  ;;  %v7688_v63 = vmul.f32 %v7687_v56, %v16036_v9  ;;  %v7711_v39 = vmul.f32 %v16067_v50, %v16067_v50  ;;  %v7602_v47 = vadd.f32 1.1283791, %v7601_v7 }
 0x815   : > { %v7965_v45 = vmul.f32 %v7933_v15, %v6589_v54  ;;  %v8823_v60 = vpop.eup %8822  ;;  %v7653_v28 = vadd.f32 1.0, %v7652_v4  ;;  %v7623_v58 = vand.u32 2147483647, %v16050_v27  ;;  %v7625_v24 = vand.u32 2147483648, %v16050_v27 }
 0x816   : > { %v7582_v16 = vsel %vm7581_vm1, %v8821_v53, %v7578_v8  ;;  %v7615_v37 = vmul.f32 %v8823_v60, %v16050_v27  ;;  %v7677_v53 = vmul.f32 %v7676_v36, %v16036_v9  ;;  %v7689_v59 = vadd.f32 0.112945676, %v7688_v63  ;;  %v16638_v63 = vld [vmem:[#allocation31_spill] sm:$0xff] }
 0x817   : > { %v7997_v3 = vadd.f32 %v7965_v45, %v16636_v20  ;;  %v7587_v23 = vsel %vm7584_vm2, %v7586_v1, %v7582_v16  ;;  %v7640_v22 = vadd.f32 0.18741608, %v7639_v17  ;;  %8824 = vrcp.f32 %v7653_v28 }
 0x818   : > { %v7588_v32 = vmul.f32 %v7587_v23, %v7563_v43  ;;  %v7616_v54 = vsub.f32 1.0, %v7615_v37  ;;  %vm7620_vm3 = vweird.f32 %v8823_v60  ;;  %v7690_v40 = vmul.f32 %v7689_v59, %v16036_v9 }
 0x819   : > { %8029 = vst [vmem:[%s14240_s25 + $0xb0] sm:$0xff] %v7997_v3  ;;  %v7678_v46 = vadd.f32 0.05243302, %v7677_v53  ;;  %v16080_v42 = vmin.f32 %v7711_v39, 16.0  ;;  %vm7619_vm4 = vweird.f32 %v16050_v27  ;;  %v7603_v2 = vmul.f32 %v7602_v47, %v15989_v35 }
 0x81a   : > { %v8400_v62 = vclamps-f32 %v7588_v32, 1.0  ;;  %v7617_v51 = vmul.f32 %v8823_v60, %v7616_v54  ;;  %v7691_v11 = vadd.f32 0.4994258, %v7690_v40  ;;  %vm7621_vm5 = vmor %vm7619_vm4, %vm7620_vm3  ;;  %v7626_v5 = vor.u32 1.1754944e-38, %v7625_v24 }
 0x81b   : > { %v7713_v18 = vmul.f32 2.1237322e-06, %v16080_v42  ;;  %v7724_v31 = vmul.f32 3.8918573e-05, %v16080_v42  ;;  %vm7624_vm6 = vcmp.eq.f32.partialorder %v7623_v58, 8.507059e+37  ;;  %v7641_v29 = vmul.f32 %v7640_v22, %v16020_v10 }
 0x81c   : > { %v7934_v61 = vadd.f32 1.0, %v8400_v62  ;;  %v7618_v13 = vadd.f32 %v8823_v60, %v7617_v51  ;;  %v7692_v26 = vmul.f32 %v7691_v11, %v16036_v9  ;;  %v7679_v27 = vmul.f32 %v7678_v46, %v16036_v9 }
 0x81d   : > { %v8825_v15 = vpop.eup %8824  ;;  %v7714_v8 = vadd.f32 0.00028619796, %v7713_v18  ;;  %v7725_v0 = vadd.f32 0.001143296, %v7724_v31  ;;  %v6591_v45 = vmul.f32 0.5, %v15981_v55  ;;  %v7665_v20 = vand.u32 2147483648, %v7653_v28 }
 0x81e   : > { %v7966_v6 = vmul.f32 %v7934_v61, %v6590_v48  ;;  %v7622_v14 = vsel %vm7621_vm5, %v8823_v60, %v7618_v13  ;;  %v7655_v49 = vmul.f32 %v8825_v15, %v7653_v28  ;;  %v7693_v1 = vadd.f32 1.0, %v7692_v26  ;;  %v16639_v31 = vld [vmem:[#allocation36_spill] sm:$0xff] }
 0x81f   : > { %v7627_v44 = vsel %vm7624_vm6, %v7626_v5, %v7622_v14  ;;  %v7726_v38 = vmul.f32 %v7725_v0, %v16080_v42  ;;  %v7642_v43 = vadd.f32 1.1283791, %v7641_v29  ;;  %v7715_v10 = vmul.f32 %v7714_v8, %v16080_v42 }
 0x820   : > { %v7998_v30 = vadd.f32 %v7966_v6, %v16637_v33  ;;  %v7628_v35 = vmul.f32 %v7627_v44, %v7603_v2  ;;  %v7656_v16 = vsub.f32 1.0, %v7655_v49  ;;  %v7663_v12 = vand.u32 2147483647, %v7653_v28 }
 0x821   : > { %v7680_v3 = vadd.f32 0.18741608, %v7679_v27  ;;  %8826 = vrcp.f32 %v7693_v1  ;;  %vm7660_vm7 = vweird.f32 %v8825_v15  ;;  %v7727_v56 = vadd.f32 0.014752088, %v7726_v38 }
 0x822   : > { %8030 = vst [vmem:[%s14240_s25 + $0xb8] sm:$0xff] %v7998_v30  ;;  %v8401_v52 = vclamps-f32 %v7628_v35, 1.0  ;;  %v7657_v36 = vmul.f32 %v8825_v15, %v7656_v16  ;;  %vm7659_vm9 = vweird.f32 %v7653_v28  ;;  %v7716_v7 = vadd.f32 0.0036580483, %v7715_v10 }
 0x823   : > { %v7728_v4 = vmul.f32 %v7727_v56, %v16080_v42  ;;  %v7643_v60 = vmul.f32 %v7642_v43, %v16008_v57  ;;  %vm7661_vm10 = vmor %vm7659_vm9, %vm7660_vm7  ;;  %vm7664_vm11 = vcmp.eq.f32.partialorder %v7663_v12, 8.507059e+37  ;;  %v7666_v17 = vor.u32 1.1754944e-38, %v7665_v20 }
 0x824   : > { %v7935_v23 = vadd.f32 1.0, %v8401_v52  ;;  %v7658_v55 = vadd.f32 %v8825_v15, %v7657_v36  ;;  %v7681_v53 = vmul.f32 %v7680_v3, %v16036_v9  ;;  %v7717_v47 = vmul.f32 %v7716_v7, %v16080_v42 }
 0x825   : > { %v7729_v59 = vadd.f32 0.112945676, %v7728_v4  ;;  %v6592_v22 = vmul.f32 0.5, %v16003_v21  ;;  %v7703_v6 = vand.u32 2147483647, %v7693_v1  ;;  %v7705_v51 = vand.u32 2147483648, %v7693_v1 }
 0x826   : > { %v7967_v32 = vmul.f32 %v7935_v23, %v6591_v45  ;;  %v7662_v37 = vsel %vm7661_vm10, %v8825_v15, %v7658_v55  ;;  %v7682_v57 = vadd.f32 1.1283791, %v7681_v53  ;;  %v7718_v33 = vadd.f32 0.05243302, %v7717_v47 }
 0x827   : > { %v8827_v39 = vpop.eup %8826  ;;  %v7667_v48 = vsel %vm7664_vm11, %v7666_v17, %v7662_v37  ;;  %v7730_v54 = vmul.f32 %v7729_v59, %v16080_v42  ;;  %vm7699_vm8 = vweird.f32 %v7693_v1  ;;  %v7706_v5 = vor.u32 1.1754944e-38, %v7705_v51  ;;  %v16641_v37 = vld [vmem:[#allocation35_spill] sm:$0xff] }
 0x828   : > { %v7999_v62 = vadd.f32 %v7967_v32, %v16638_v63  ;;  %v7668_v28 = vmul.f32 %v7667_v48, %v7643_v60  ;;  %v7695_v61 = vmul.f32 %v8827_v39, %v7693_v1  ;;  %vm7700_vm12 = vweird.f32 %v8827_v39  ;;  %v16640_v1 = vld [vmem:[#allocation37_spill] sm:$0xff] }
 0x829   : > { %v7731_v40 = vadd.f32 0.4994258, %v7730_v54  ;;  %v7683_v2 = vmul.f32 %v7682_v57, %v16023_v25  ;;  %vm7701_vm14 = vmor %vm7699_vm8, %vm7700_vm12  ;;  %vm7704_vm15 = vcmp.eq.f32.partialorder %v7703_v6, 8.507059e+37  ;;  %v7719_v29 = vmul.f32 %v7718_v33, %v16080_v42 }
 0x82a   : > { %8031 = vst [vmem:[%s14240_s25 + $0xc0] sm:$0xff] %v7999_v62  ;;  %v8402_v58 = vclamps-f32 %v7668_v28, 1.0  ;;  %v7696_v24 = vsub.f32 1.0, %v7695_v61  ;;  %v6593_v8 = vmul.f32 0.5, %v16017_v41  ;;  %v6594_v4 = vmul.f32 0.5, %v16059_v34 }
 0x82b   : > { %v7732_v30 = vmul.f32 %v7731_v40, %v16080_v42  ;;  %v7720_v27 = vadd.f32 0.18741608, %v7719_v29 }
 0x82c   : > { %v7936_v46 = vadd.f32 1.0, %v8402_v58  ;;  %v7697_v9 = vmul.f32 %v8827_v39, %v7696_v24 }
 0x82d   : > { %v7733_v18 = vadd.f32 1.0, %v7732_v30  ;;  %v7721_v49 = vmul.f32 %v7720_v27, %v16080_v42 }
 0x82e   : > { %v7968_v13 = vmul.f32 %v7936_v46, %v6592_v22  ;;  %v7698_v11 = vadd.f32 %v8827_v39, %v7697_v9 }
 0x82f   : > { %8828 = vrcp.f32 %v7733_v18  ;;  %v7745_v43 = vand.u32 2147483648, %v7733_v18  ;;  %v7722_v16 = vadd.f32 1.1283791, %v7721_v49  ;;  %v7743_v12 = vand.u32 2147483647, %v7733_v18 }
 0x830   : > { %v8000_v21 = vadd.f32 %v7968_v13, %v16639_v31  ;;  %v7702_v14 = vsel %vm7701_vm14, %v8827_v39, %v7698_v11  ;;  %vm7739_vm13 = vweird.f32 %v7733_v18 }
 0x831   : > { %v7707_v26 = vsel %vm7704_vm15, %v7706_v5, %v7702_v14  ;;  %v7746_v3 = vor.u32 1.1754944e-38, %v7745_v43  ;;  %v7723_v41 = vmul.f32 %v7722_v16, %v16067_v50  ;;  %vm7744_vm2 = vcmp.eq.f32.partialorder %v7743_v12, 8.507059e+37 }
 0x832   : > { %8032 = vst [vmem:[%s14240_s25 + $0xc8] sm:$0xff] %v8000_v21  ;;  %v7708_v15 = vmul.f32 %v7707_v26, %v7683_v2 }
 0x834   : > { %v8403_v44 = vclamps-f32 %v7708_v15, 1.0 }
 0x835   : > { %v8829_v25 = vpop.eup %8828 }
 0x836   : > { %v7937_v0 = vadd.f32 1.0, %v8403_v44  ;;  %v7735_v45 = vmul.f32 %v8829_v25, %v7733_v18  ;;  %vm7740_vm0 = vweird.f32 %v8829_v25 }
 0x837   : > { %vm7741_vm1 = vmor %vm7739_vm13, %vm7740_vm0 }
 0x838   : > { %v7969_v35 = vmul.f32 %v7937_v0, %v6593_v8  ;;  %v7736_v52 = vsub.f32 1.0, %v7735_v45 }
 0x83a   : > { %v8001_v38 = vadd.f32 %v7969_v35, %v16640_v1  ;;  %v7737_v10 = vmul.f32 %v8829_v25, %v7736_v52 }
 0x83c   : > { %8033 = vst [vmem:[%s14240_s25 + $0xd0] sm:$0xff] %v8001_v38  ;;  %v7738_v20 = vadd.f32 %v8829_v25, %v7737_v10 }
 0x83e   : > { %v7742_v23 = vsel %vm7741_vm1, %v8829_v25, %v7738_v20 }
 0x83f   : > { %v7747_v36 = vsel %vm7744_vm2, %v7746_v3, %v7742_v23 }
 0x840   : > { %v7748_v56 = vmul.f32 %v7747_v36, %v7723_v41 }
 0x842   : > { %v8404_v55 = vclamps-f32 %v7748_v56, 1.0 }
 0x843   : > { %v6557_v42 = vpop.f32.mrf.mxu3 }
 0x844   : > { %v16113_v32 = vadd.f32 %v6557_v42, %v14045_v19  ;;  %v7938_v60 = vadd.f32 1.0, %v8404_v55 }
 0x846   : > { %v16116_v7 = vmul.f32 0.70710677, %v16113_v32  ;;  %v7970_v50 = vmul.f32 %v7938_v60, %v6594_v4 }
 0x848   : > { %v7751_v17 = vmul.f32 %v16116_v7, %v16116_v7  ;;  %v8002_v53 = vadd.f32 %v7970_v50, %v16641_v37 }
 0x84a   : > { %v7752_v63 = vmin.f32 %v7751_v17, 16.0  ;;  %8034 = vst [vmem:[%s14240_s25 + $0xd8] sm:$0xff] %v8002_v53 }
 0x84b   : > { %v6559_v62 = vpop.f32.mrf.mxu3 }
 0x84c   : > { %v7753_v59 = vmul.f32 2.1237322e-06, %v7752_v63  ;;  %v7764_v39 = vmul.f32 3.8918573e-05, %v7752_v63  ;;  %v16123_v48 = vadd.f32 %v6559_v62, %v14045_v19 }
 0x84e   : > { %v7754_v28 = vadd.f32 0.00028619796, %v7753_v59  ;;  %v7765_v61 = vadd.f32 0.001143296, %v7764_v39  ;;  %v16127_v47 = vmul.f32 0.70710677, %v16123_v48 }
 0x850   : > { %v7755_v34 = vmul.f32 %v7754_v28, %v7752_v63  ;;  %v7766_v54 = vmul.f32 %v7765_v61, %v7752_v63  ;;  %v7791_v58 = vmul.f32 %v16127_v47, %v16127_v47 }
 0x852   : > { %v7756_v57 = vadd.f32 0.0036580483, %v7755_v34  ;;  %v7767_v24 = vadd.f32 0.014752088, %v7766_v54  ;;  %v7792_v22 = vmin.f32 %v7791_v58, 16.0 }
 0x854   : > { %v7768_v6 = vmul.f32 %v7767_v24, %v7752_v63  ;;  %v7757_v51 = vmul.f32 %v7756_v57, %v7752_v63  ;;  %v7793_v40 = vmul.f32 2.1237322e-06, %v7792_v22  ;;  %v7804_v46 = vmul.f32 3.8918573e-05, %v7792_v22 }
 0x856   : > { %v7769_v9 = vadd.f32 0.112945676, %v7768_v6  ;;  %v7794_v33 = vadd.f32 0.00028619796, %v7793_v40  ;;  %v7805_v30 = vadd.f32 0.001143296, %v7804_v46  ;;  %v6562_v29 = vpop.f32.mrf.mxu3 }
 0x857   : > { %v7758_v11 = vadd.f32 0.05243302, %v7757_v51  ;;  %v16132_v44 = vadd.f32 %v6562_v29, %v14045_v19  ;;  %v6595_v29 = vmul.f32 0.5, %v16113_v32 }
 0x858   : > { %v7770_v13 = vmul.f32 %v7769_v9, %v7752_v63  ;;  %v7795_v2 = vmul.f32 %v7794_v33, %v7792_v22  ;;  %v7806_v5 = vmul.f32 %v7805_v30, %v7792_v22 }
 0x859   : > { %v7759_v26 = vmul.f32 %v7758_v11, %v7752_v63  ;;  %v16135_v49 = vmul.f32 0.70710677, %v16132_v44 }
 0x85a   : > { %v7771_v18 = vadd.f32 0.4994258, %v7770_v13  ;;  %v7796_v31 = vadd.f32 0.0036580483, %v7795_v2  ;;  %v7807_v21 = vadd.f32 0.014752088, %v7806_v5 }
 0x85b   : > { %v7760_v25 = vadd.f32 0.18741608, %v7759_v26  ;;  %v7831_v38 = vmul.f32 %v16135_v49, %v16135_v49 }
 0x85c   : > { %v7772_v14 = vmul.f32 %v7771_v18, %v7752_v63  ;;  %v7808_v15 = vmul.f32 %v7807_v21, %v7792_v22  ;;  %v7797_v8 = vmul.f32 %v7796_v31, %v7792_v22 }
 0x85d   : > { %v7761_v43 = vmul.f32 %v7760_v25, %v7752_v63  ;;  %v16139_v10 = vmin.f32 %v7831_v38, 16.0 }
 0x85e   : > { %v7773_v27 = vadd.f32 1.0, %v7772_v14  ;;  %v7809_v0 = vadd.f32 0.112945676, %v7808_v15  ;;  %v7798_v45 = vadd.f32 0.05243302, %v7797_v8  ;;  %v6564_v52 = vpop.f32.mrf.mxu3 }
 0x85f   : > { %v16142_v23 = vadd.f32 %v6564_v52, %v14045_v19  ;;  %v7833_v36 = vmul.f32 2.1237322e-06, %v16139_v10  ;;  %v7844_v42 = vmul.f32 3.8918573e-05, %v16139_v10  ;;  %v7762_v56 = vadd.f32 1.1283791, %v7761_v43 }
 0x860   : > { %8830 = vrcp.f32 %v7773_v27  ;;  %v7810_v35 = vmul.f32 %v7809_v0, %v7792_v22  ;;  %v7799_v20 = vmul.f32 %v7798_v45, %v7792_v22  ;;  %v7783_v4 = vand.u32 2147483647, %v7773_v27  ;;  %v16642_v43 = vld [vmem:[#allocation38_spill] sm:$0xff] }
 0x861   : > { %v7785_v60 = vand.u32 2147483648, %v7773_v27  ;;  %v7834_v50 = vadd.f32 0.00028619796, %v7833_v36  ;;  %v7845_v62 = vadd.f32 0.001143296, %v7844_v42  ;;  %vm7779_vm4 = vweird.f32 %v7773_v27 }
 0x862   : > { %v7811_v1 = vadd.f32 0.4994258, %v7810_v35  ;;  %v7800_v17 = vadd.f32 0.18741608, %v7799_v20  ;;  %v16147_v37 = vmul.f32 0.70710677, %v16142_v23  ;;  %v7763_v28 = vmul.f32 %v7762_v56, %v16116_v7 }
 0x863   : > { %v7835_v19 = vmul.f32 %v7834_v50, %v16139_v10  ;;  %v7846_v59 = vmul.f32 %v7845_v62, %v16139_v10  ;;  %v7786_v61 = vor.u32 1.1754944e-38, %v7785_v60  ;;  %vm7784_vm6 = vcmp.eq.f32.partialorder %v7783_v4, 8.507059e+37 }
 0x864   : > { %v7812_v16 = vmul.f32 %v7811_v1, %v7792_v22  ;;  %v7871_v39 = vmul.f32 %v16147_v37, %v16147_v37  ;;  %v7801_v34 = vmul.f32 %v7800_v17, %v7792_v22  ;;  %v6596_v60 = vmul.f32 0.5, %v16123_v48 }
 0x865   : > { %v7847_v57 = vadd.f32 0.014752088, %v7846_v59  ;;  %v7836_v40 = vadd.f32 0.0036580483, %v7835_v19  ;;  %v16643_v59 = vld [vmem:[#allocation23_spill] sm:$0xff] }
 0x866   : > { %v8831_v12 = vpop.eup %8830  ;;  %v7813_v41 = vadd.f32 1.0, %v7812_v16  ;;  %v16154_v24 = vmin.f32 %v7871_v39, 16.0  ;;  %v7802_v7 = vadd.f32 1.1283791, %v7801_v34 }
 0x867   : > { %v7775_v3 = vmul.f32 %v8831_v12, %v7773_v27  ;;  %vm7780_vm3 = vweird.f32 %v8831_v12  ;;  %v7848_v9 = vmul.f32 %v7847_v57, %v16139_v10  ;;  %v7837_v21 = vmul.f32 %v7836_v40, %v16139_v10 }
 0x868   : > { %8832 = vrcp.f32 %v7813_v41  ;;  %vm7781_vm5 = vmor %vm7779_vm4, %vm7780_vm3  ;;  %v7873_v33 = vmul.f32 2.1237322e-06, %v16154_v24  ;;  %v7884_v30 = vmul.f32 3.8918573e-05, %v16154_v24  ;;  %v7823_v11 = vand.u32 2147483647, %v7813_v41 }
 0x869   : > { %v7776_v55 = vsub.f32 1.0, %v7775_v3  ;;  %v7825_v2 = vand.u32 2147483648, %v7813_v41  ;;  %v7849_v5 = vadd.f32 0.112945676, %v7848_v9  ;;  %vm7819_vm9 = vweird.f32 %v7813_v41 }
 0x86a   : > { %v7874_v18 = vadd.f32 0.00028619796, %v7873_v33  ;;  %v7885_v14 = vadd.f32 0.001143296, %v7884_v30  ;;  %v7803_v35 = vmul.f32 %v7802_v7, %v16127_v47  ;;  %vm7824_vm11 = vcmp.eq.f32.partialorder %v7823_v11, 8.507059e+37 }
 0x86b   : > { %v7777_v63 = vmul.f32 %v8831_v12, %v7776_v55  ;;  %v7850_v15 = vmul.f32 %v7849_v5, %v16139_v10  ;;  %v7826_v45 = vor.u32 1.1754944e-38, %v7825_v2  ;;  %v7838_v52 = vadd.f32 0.05243302, %v7837_v21 }
 0x86c   : > { %v7875_v27 = vmul.f32 %v7874_v18, %v16154_v24  ;;  %v7886_v0 = vmul.f32 %v7885_v14, %v16154_v24 }
 0x86d   : > { %v7778_v53 = vadd.f32 %v8831_v12, %v7777_v63  ;;  %v7851_v1 = vadd.f32 0.4994258, %v7850_v15  ;;  %v7839_v56 = vmul.f32 %v7838_v52, %v16139_v10  ;;  %v6597_v15 = vmul.f32 0.5, %v16132_v44 }
 0x86e   : > { %v8833_v54 = vpop.eup %8832  ;;  %v7887_v32 = vadd.f32 0.014752088, %v7886_v0  ;;  %v7876_v3 = vadd.f32 0.0036580483, %v7875_v27 }
 0x86f   : > { %v7782_v58 = vsel %vm7781_vm5, %v8831_v12, %v7778_v53  ;;  %v7815_v51 = vmul.f32 %v8833_v54, %v7813_v41  ;;  %vm7820_vm7 = vweird.f32 %v8833_v54  ;;  %v7852_v20 = vmul.f32 %v7851_v1, %v16139_v10 }
 0x870   : > { %v7787_v6 = vsel %vm7784_vm6, %v7786_v61, %v7782_v58  ;;  %vm7821_vm10 = vmor %vm7819_vm9, %vm7820_vm7  ;;  %v7888_v36 = vmul.f32 %v7887_v32, %v16154_v24  ;;  %v7877_v4 = vmul.f32 %v7876_v3, %v16154_v24  ;;  %v7840_v62 = vadd.f32 0.18741608, %v7839_v56 }
 0x871   : > { %v7788_v46 = vmul.f32 %v7787_v6, %v7763_v28  ;;  %v7816_v13 = vsub.f32 1.0, %v7815_v51  ;;  %v7853_v42 = vadd.f32 1.0, %v7852_v20  ;;  %v6598_v32 = vmul.f32 0.5, %v16142_v23 }
 0x872   : > { %v7889_v55 = vadd.f32 0.112945676, %v7888_v36  ;;  %v7878_v53 = vadd.f32 0.05243302, %v7877_v4  ;;  %v7841_v34 = vmul.f32 %v7840_v62, %v16139_v10 }
 0x873   : > { %v8405_v22 = vclamps-f32 %v7788_v46, 1.0  ;;  %v7817_v31 = vmul.f32 %v8833_v54, %v7816_v13  ;;  %8834 = vrcp.f32 %v7853_v42  ;;  %v7865_v6 = vand.u32 2147483648, %v7853_v42 }
 0x874   : > { %v7890_v50 = vmul.f32 %v7889_v55, %v16154_v24  ;;  %v7879_v57 = vmul.f32 %v7878_v53, %v16154_v24  ;;  %v7842_v51 = vadd.f32 1.1283791, %v7841_v34  ;;  %v7863_v46 = vand.u32 2147483647, %v7853_v42 }
 0x875   : > { %v7939_v26 = vadd.f32 1.0, %v8405_v22  ;;  %v7818_v8 = vadd.f32 %v8833_v54, %v7817_v31  ;;  %vm7859_vm8 = vweird.f32 %v7853_v42  ;;  %v7866_v30 = vor.u32 1.1754944e-38, %v7865_v6 }
 0x876   : > { %v7891_v19 = vadd.f32 0.4994258, %v7890_v50  ;;  %v7880_v9 = vadd.f32 0.18741608, %v7879_v57  ;;  %v7843_v13 = vmul.f32 %v7842_v51, %v16135_v49  ;;  %vm7864_vm15 = vcmp.eq.f32.partialorder %v7863_v46, 8.507059e+37 }
 0x877   : > { %v7971_v25 = vmul.f32 %v7939_v26, %v6595_v29  ;;  %v7822_v38 = vsel %vm7821_vm10, %v8833_v54, %v7818_v8 }
 0x878   : > { %v7827_v12 = vsel %vm7824_vm11, %v7826_v45, %v7822_v38  ;;  %v7892_v28 = vmul.f32 %v7891_v19, %v16154_v24  ;;  %v7881_v22 = vmul.f32 %v7880_v9, %v16154_v24 }
 0x879   : > { %v8003_v16 = vadd.f32 %v7971_v25, %v16642_v43  ;;  %v7828_v41 = vmul.f32 %v7827_v12, %v7803_v35  ;;  %v8835_v61 = vpop.eup %8834  ;;  %v16644_v35 = vld [vmem:[#allocation17_spill] sm:$0xff] }
 0x87a   : > { %v7855_v54 = vmul.f32 %v8835_v61, %v7853_v42  ;;  %v7893_v58 = vadd.f32 1.0, %v7892_v28  ;;  %vm7860_vm12 = vweird.f32 %v8835_v61  ;;  %v7882_v14 = vadd.f32 1.1283791, %v7881_v22 }
 0x87b   : > { %8035 = vst [vmem:[%s14240_s25 + $0xe0] sm:$0xff] %v8003_v16  ;;  %v8406_v47 = vclamps-f32 %v7828_v41, 1.0  ;;  %vm7861_vm14 = vmor %vm7859_vm8, %vm7860_vm12  ;;  %v16645_v16 = vld [vmem:[#allocation27_spill] sm:$0xff] }
 0x87c   : > { %v7856_v48 = vsub.f32 1.0, %v7855_v54  ;;  %8836 = vrcp.f32 %v7893_v58  ;;  %v7905_v21 = vand.u32 2147483648, %v7893_v58  ;;  %v7903_v26 = vand.u32 2147483647, %v7893_v58 }
 0x87d   : > { %v7940_v17 = vadd.f32 1.0, %v8406_v47  ;;  %vm7899_vm13 = vweird.f32 %v7893_v58  ;;  %v7883_v24 = vmul.f32 %v7882_v14, %v16147_v37 }
 0x87e   : > { %v7857_v40 = vmul.f32 %v8835_v61, %v7856_v48  ;;  %v7906_v0 = vor.u32 1.1754944e-38, %v7905_v21  ;;  %vm7904_vm2 = vcmp.eq.f32.partialorder %v7903_v26, 8.507059e+37 }
 0x87f   : > { %v7972_v63 = vmul.f32 %v7940_v17, %v6596_v60 }
 0x880   : > { %v7858_v33 = vadd.f32 %v8835_v61, %v7857_v40 }
 0x881   : > { %v8004_v39 = vadd.f32 %v7972_v63, %v16643_v59 }
 0x882   : > { %v8837_v7 = vpop.eup %8836  ;;  %v7862_v10 = vsel %vm7861_vm14, %v8835_v61, %v7858_v33 }
 0x883   : > { %8036 = vst [vmem:[%s14240_s25 + $0xe8] sm:$0xff] %v8004_v39  ;;  %v7867_v11 = vsel %vm7864_vm15, %v7866_v30, %v7862_v10  ;;  %v7895_v2 = vmul.f32 %v8837_v7, %v7893_v58  ;;  %vm7900_vm0 = vweird.f32 %v8837_v7 }
 0x884   : > { %v7868_v5 = vmul.f32 %v7867_v11, %v7843_v13  ;;  %vm7901_vm1 = vmor %vm7899_vm13, %vm7900_vm0 }
 0x885   : > { %v7896_v18 = vsub.f32 1.0, %v7895_v2 }
 0x886   : > { %v8407_v31 = vclamps-f32 %v7868_v5, 1.0 }
 0x887   : > { %v7897_v29 = vmul.f32 %v8837_v7, %v7896_v18 }
 0x888   : > { %v7941_v27 = vadd.f32 1.0, %v8407_v31 }
 0x889   : > { %v7898_v8 = vadd.f32 %v8837_v7, %v7897_v29 }
 0x88a   : > { %v7973_v49 = vmul.f32 %v7941_v27, %v6597_v15 }
 0x88b   : > { %v7902_v25 = vsel %vm7901_vm1, %v8837_v7, %v7898_v8 }
 0x88c   : > { %v8005_v45 = vadd.f32 %v7973_v49, %v16644_v35  ;;  %v7907_v1 = vsel %vm7904_vm2, %v7906_v0, %v7902_v25 }
 0x88d   : > { %v7908_v38 = vmul.f32 %v7907_v1, %v7883_v24 }
 0x88e   : > { %8037 = vst [vmem:[%s14240_s25 + $0xf0] sm:$0xff] %v8005_v45 }
 0x88f   : > { %v8408_v52 = vclamps-f32 %v7908_v38, 1.0 }
 0x891   : > { %v7942_v44 = vadd.f32 1.0, %v8408_v52 }
 0x893   : > { %v7974_v43 = vmul.f32 %v7942_v44, %v6598_v32 }
 0x895   : > { %v8006_v12 = vadd.f32 %v7974_v43, %v16645_v16 }
 0x897   : > { %8038 = vst [vmem:[%s14240_s25 + $0xf8] sm:$0xff] %v8006_v12 }
 0x898 PF: > { %s13_s12 = sadd.s32 1, %s8880_s12  }
 0x899   : > { %p10_p4 = scmp.ge.s32.totalorder %s13_s12, 4  }
 0x89b   :  { %12 = sbr.rel (!%p10_p4) target bundleno = 1 (0x1), region = 66 }

</bundles_post_ra>
